<compile_context>
chip_gen: v7x
topology: tpu7x:2x2x1
jax: 0.10.0
libtpu: 0.0.40
codegen_flags: <defaults>
</compile_context>

<pallas_src>
import functools

import jax
import jax.numpy as jnp
from jax.experimental import pallas as pl
from jax.experimental.pallas import tpu as pltpu


# ---------------------------------------------------------------------------
# Fused  im2col-GEMM Conv2d(3x3, pad=1) + bias + ReLU + MaxPool(2x2, stride 2)
# ---------------------------------------------------------------------------
def _conv_gemm_pool_kernel(p_ref, w_ref, b_ref, o_ref, *, q):
    """One grid step processes `bb` whole images.

    p_ref : (bb*4*q, K)   im2col patches, rows ordered (img, hp, wp, ho, wo)
    w_ref : (K, Cout)     folded 3x3 weights, K = 9*Cin
    b_ref : (1, Cout)
    o_ref : (bb*q, Cout)  pooled output, rows ordered (img, ho, wo)
    """
    mo, cout = o_ref.shape
    bb = mo // q

    # Single K = 9*Cin MXU matmul (no per-tap slicing / relayout copies).
    y = jnp.dot(p_ref[...], w_ref[...], preferred_element_type=jnp.float32)
    y = jnp.maximum(y + b_ref[...], 0.0)                 # conv + bias + ReLU

    # 2x2 max pool: the wrapper laid out the 4 pool taps of each output pixel
    # as 4 contiguous slabs of q rows per image, so pooling is an aligned
    # elementwise max (q % 8 == 0 -> clean sublane split, no strided selects,
    # no size-2 sublane dim).
    y = y.reshape(bb, 4, q, cout)
    pooled = jnp.maximum(jnp.maximum(y[:, 0], y[:, 1]),
                         jnp.maximum(y[:, 2], y[:, 3]))   # (bb, q, cout)
    o_ref[...] = pooled.reshape(mo, cout).astype(o_ref.dtype)


def _pick_block_b(batch, cap=4):
    """Images per conv grid step: >=2 steps when batch >= 2 (so v7x's two
    TensorCores both get work), several images per step at larger batch to
    amortize the ~0.35us/step pipeline overhead, capped for VMEM."""
    target = min(cap, max(batch // 2, 1))
    for bb in range(target, 0, -1):
        if batch % bb == 0:
            return bb
    return 1


def conv3x3_relu_pool(x, w, b):
    """pool2x2(relu(conv2d_3x3_same(x, w) + b)).

    x: (B, H, W, Cin) NHWC f32; w: PyTorch layout (Cout, Cin, 3, 3); b: (Cout,).
    Returns (B, H//2, W//2, Cout) f32.
    """
    B, H, W, Cin = x.shape
    Cout = w.shape[0]
    assert H % 2 == 0 and W % 2 == 0, (H, W)
    Ho, Wo = H // 2, W // 2
    Q = Ho * Wo
    assert Q % 8 == 0, Q          # keeps every in-kernel reshape a clean split
    K = 9 * Cin

    # Wrapper-side im2col: the 9 shifted copies are built with plain XLA ops
    # so the Pallas kernel never does sublane-unaligned slicing and never sees
    # a Cin=3 lane-sparse input block.  The 9x blow-up is tiny at these sizes
    # (accepted consciously; it also subsumes the old explicit jnp.pad copy).
    xp = jnp.pad(x, ((0, 0), (1, 1), (1, 1), (0, 0)))
    cols = [xp[:, dh:dh + H, dw:dw + W, :] for dh in range(3) for dw in range(3)]
    patches = jnp.concatenate(cols, axis=-1)                  # (B, H, W, 9*Cin)
    # Reorder rows to (b, hp, wp, ho, wo): pool taps -> 4 contiguous row slabs.
    patches = patches.reshape(B, Ho, 2, Wo, 2, K)
    patches = jnp.transpose(patches, (0, 2, 4, 1, 3, 5))      # (B, 2, 2, Ho, Wo, K)
    patches = patches.reshape(B * 4 * Q, K)

    wt = jnp.transpose(w, (2, 3, 1, 0)).reshape(K, Cout)      # (dh, dw, cin)-major
    b2 = b.reshape(1, Cout).astype(jnp.float32)

    bb = _pick_block_b(B)
    kernel = functools.partial(_conv_gemm_pool_kernel, q=Q)
    out2d = pl.pallas_call(
        kernel,
        out_shape=jax.ShapeDtypeStruct((B * Q, Cout), jnp.float32),
        grid_spec=pltpu.PrefetchScalarGridSpec(
            num_scalar_prefetch=0,
            grid=(B // bb,),
            in_specs=[
                pl.BlockSpec((bb * 4 * Q, K), lambda i: (i, 0)),
                pl.BlockSpec((K, Cout), lambda i: (0, 0)),     # resident weights
                pl.BlockSpec((1, Cout), lambda i: (0, 0)),
            ],
            out_specs=pl.BlockSpec((bb * Q, Cout), lambda i: (i, 0)),
        ),
        compiler_params=pltpu.CompilerParams(
            dimension_semantics=("parallel",),
            vmem_limit_bytes=32 * 1024 * 1024),
    )(patches, wt, b2)
    return out2d.reshape(B, Ho, Wo, Cout)


# ---------------------------------------------------------------------------
# Linear layers: N-parallel x K-reduction tiled GEMM with fused bias (+ ReLU).
# ---------------------------------------------------------------------------
def _linear_kernel(x_ref, w_ref, b_ref, o_ref, acc_ref, *, apply_relu):
    k = pl.program_id(1)

    @pl.when(k == 0)
    def _():
        acc_ref[...] = jnp.zeros_like(acc_ref)

    acc_ref[...] += jnp.dot(x_ref[...].astype(w_ref.dtype), w_ref[...],
                            preferred_element_type=jnp.float32)

    @pl.when(k == pl.num_programs(1) - 1)
    def _():
        out = acc_ref[...] + b_ref[...]
        if apply_relu:
            out = jnp.maximum(out, 0.0)
        o_ref[...] = out.astype(o_ref.dtype)


def linear_bias_act(x, w, b, *, apply_relu, tile_n=None, tile_k=None):
    """act(x @ w + b).  x: (M, K) f32; w: (K, N) f32 or bf16; b: (N,).

    Grid = (N/tile_n ["parallel"], K/tile_k ["arbitrary"]); reduction axis last.
    The N split lets v7x shard the weight stream across both TensorCores.
    """
    M, K = x.shape
    K2, N = w.shape
    assert K == K2
    tile_n = N if tile_n is None else tile_n
    tile_k = K if tile_k is None else tile_k
    assert N % tile_n == 0 and K % tile_k == 0, (N, tile_n, K, tile_k)
    b2 = b.reshape(1, N).astype(jnp.float32)

    kernel = functools.partial(_linear_kernel, apply_relu=apply_relu)
    return pl.pallas_call(
        kernel,
        out_shape=jax.ShapeDtypeStruct((M, N), jnp.float32),
        grid_spec=pltpu.PrefetchScalarGridSpec(
            num_scalar_prefetch=0,
            grid=(N // tile_n, K // tile_k),
            in_specs=[
                pl.BlockSpec((M, tile_k), lambda n, k: (0, k)),
                pl.BlockSpec((tile_k, tile_n), lambda n, k: (k, n)),
                pl.BlockSpec((1, tile_n), lambda n, k: (0, n)),
            ],
            out_specs=pl.BlockSpec((M, tile_n), lambda n, k: (0, n)),
            scratch_shapes=[pltpu.VMEM((M, tile_n), jnp.float32)],
        ),
        compiler_params=pltpu.CompilerParams(
            dimension_semantics=("parallel", "arbitrary"),
            vmem_limit_bytes=32 * 1024 * 1024),
    )(x, w, b2)


# ---------------------------------------------------------------------------
# Full forward pass (inference).
# ---------------------------------------------------------------------------
def cnn_forward(x_nchw, params):
    x = jnp.transpose(x_nchw, (0, 2, 3, 1))                          # NCHW -> NHWC
    x = conv3x3_relu_pool(x, params["conv1_w"], params["conv1_b"])   # (B, 24, 24, 32)
    x = conv3x3_relu_pool(x, params["conv2_w"], params["conv2_b"])   # (B, 12, 12, 64)
    B = x.shape[0]
    x = x.reshape(B, -1)                                             # (B, 9216) NHWC flatten
    # fc1: 9.4 MB bf16 weight streamed in 4 fat tiles (2 N-parallel x 2 K).
    # NOTE: activations are cast to the bf16 weight dtype for the MXU (f32
    # accumulation) -> ~1e-2 relative deviation vs an f32 reference.
    x = linear_bias_act(x, params["fc1_w"], params["fc1_b"],
                        apply_relu=True, tile_n=256, tile_k=4608)    # (B, 512)
    # TODO(synk): Dropout(0.5) is identity in eval mode; training-mode random
    # masking/scaling is not implemented here.
    x = linear_bias_act(x, params["fc2_w"], params["fc2_b"],
                        apply_relu=False)                            # (B, num_classes)
    return x


def init_params(num_classes=10):
    keys = jax.random.split(jax.random.PRNGKey(42), 8)
    conv1_w = jax.random.normal(keys[0], (32, 3, 3, 3), jnp.float32) * 0.05
    conv1_b = jax.random.normal(keys[1], (32,), jnp.float32) * 0.05
    conv2_w = jax.random.normal(keys[2], (64, 32, 3, 3), jnp.float32) * 0.05
    conv2_b = jax.random.normal(keys[3], (64,), jnp.float32) * 0.05
    # fc1 weight defined in PyTorch flatten order (out, C, H, W), permuted to
    # (H, W, C, out) so the NHWC flatten hits the same logical weights.
    # Stored bf16: fc1 is weight-bandwidth bound (f32 accumulation on the MXU).
    fc1_w_pt = jax.random.normal(keys[4], (512, 64, 12, 12), jnp.float32) * 0.02
    fc1_w = (jnp.transpose(fc1_w_pt, (2, 3, 1, 0))
             .reshape(64 * 12 * 12, 512).astype(jnp.bfloat16))
    fc1_b = jax.random.normal(keys[5], (512,), jnp.float32) * 0.02
    fc2_w = (jax.random.normal(keys[6], (num_classes, 512), jnp.float32) * 0.02).T
    fc2_b = jax.random.normal(keys[7], (num_classes,), jnp.float32) * 0.02
    return {
        "conv1_w": conv1_w, "conv1_b": conv1_b,
        "conv2_w": conv2_w, "conv2_b": conv2_b,
        "fc1_w": fc1_w, "fc1_b": fc1_b,
        "fc2_w": fc2_w, "fc2_b": fc2_b,
    }


if __name__ == "__main__":
    num_classes = 10
    batch = 2
    # fc1 expects 64*12*12 features -> input spatial size must be 48x48.
    x = jax.random.normal(jax.random.PRNGKey(0), (batch, 3, 48, 48), jnp.float32)
    params = init_params(num_classes)

    fwd = jax.jit(cnn_forward)
    out = jax.block_until_ready(fwd(x, params))
    assert out.shape == (batch, num_classes), out.shape
    assert out.dtype == jnp.float32
    assert bool(jnp.all(jnp.isfinite(out)))
    print("KERNEL_OK")
</pallas_src>

<mosaic_0001>
module attributes {stable_mosaic.version = 11 : i64} {
  func.func @_conv_gemm_pool_kernel(%arg0: i32, %arg1: memref<2304x27xf32, #tpu.memory_space<vmem>>, %arg2: memref<27x32xf32, #tpu.memory_space<vmem>>, %arg3: memref<1x32xf32, #tpu.memory_space<vmem>>, %arg4: memref<576x32xf32, #tpu.memory_space<vmem>>) attributes {dimension_semantics = [#tpu.dimension_semantics<parallel>], iteration_bounds = array<i64: 2>, scalar_prefetch = 0 : i64, scratch_operands = 0 : i64, tpu.core_type = #tpu.core_type<tc>, window_params = [{transform_indices = @transform_0, window_bounds = array<i64: 2304, 27>}, {pipeline_mode = #tpu.pipeline_mode<synchronous>, transform_indices = @transform_1, window_bounds = array<i64: 27, 32>}, {pipeline_mode = #tpu.pipeline_mode<synchronous>, transform_indices = @transform_2, window_bounds = array<i64: 1, 32>}, {transform_indices = @transform_3, window_bounds = array<i64: 576, 32>}]} {
    %c0 = arith.constant 0 : index
    %c0_0 = arith.constant 0 : index
    %0 = vector.load %arg1[%c0, %c0_0] : memref<2304x27xf32, #tpu.memory_space<vmem>>, vector<2304x27xf32>
    %c0_1 = arith.constant 0 : index
    %c0_2 = arith.constant 0 : index
    %1 = vector.load %arg2[%c0_1, %c0_2] : memref<27x32xf32, #tpu.memory_space<vmem>>, vector<27x32xf32>
    %cst = arith.constant dense<0.000000e+00> : vector<2304x32xf32>
    %2 = tpu.matmul %0, %1, %cst {dimension_numbers = #tpu.dot_dimension_numbers<[1], [0], [0], [1], [0, 0, 1, 1], [], []>} : vector<2304x27xf32>, vector<27x32xf32>, vector<2304x32xf32> -> vector<2304x32xf32>
    %c0_3 = arith.constant 0 : index
    %c0_4 = arith.constant 0 : index
    %3 = vector.load %arg3[%c0_3, %c0_4] : memref<1x32xf32, #tpu.memory_space<vmem>>, vector<1x32xf32>
    %4 = vector.broadcast %3 : vector<1x32xf32> to vector<2304x32xf32>
    %5 = arith.addf %2, %4 : vector<2304x32xf32>
    %cst_5 = arith.constant 0.000000e+00 : f32
    %6 = vector.broadcast %cst_5 : f32 to vector<2304x32xf32>
    %7 = arith.maximumf %5, %6 : vector<2304x32xf32>
    %8 = vector.shape_cast %7 : vector<2304x32xf32> to vector<1x4x576x32xf32>
    %9 = vector.extract_strided_slice %8 {offsets = [0, 0, 0, 0], sizes = [1, 1, 576, 32], strides = [1, 1, 1, 1]} : vector<1x4x576x32xf32> to vector<1x1x576x32xf32>
    %10 = vector.shape_cast %9 : vector<1x1x576x32xf32> to vector<1x576x32xf32>
    %11 = vector.extract_strided_slice %8 {offsets = [0, 1, 0, 0], sizes = [1, 1, 576, 32], strides = [1, 1, 1, 1]} : vector<1x4x576x32xf32> to vector<1x1x576x32xf32>
    %12 = vector.shape_cast %11 : vector<1x1x576x32xf32> to vector<1x576x32xf32>
    %13 = arith.maximumf %10, %12 : vector<1x576x32xf32>
    %14 = vector.extract_strided_slice %8 {offsets = [0, 2, 0, 0], sizes = [1, 1, 576, 32], strides = [1, 1, 1, 1]} : vector<1x4x576x32xf32> to vector<1x1x576x32xf32>
    %15 = vector.shape_cast %14 : vector<1x1x576x32xf32> to vector<1x576x32xf32>
    %16 = vector.extract_strided_slice %8 {offsets = [0, 3, 0, 0], sizes = [1, 1, 576, 32], strides = [1, 1, 1, 1]} : vector<1x4x576x32xf32> to vector<1x1x576x32xf32>
    %17 = vector.shape_cast %16 : vector<1x1x576x32xf32> to vector<1x576x32xf32>
    %18 = arith.maximumf %15, %17 : vector<1x576x32xf32>
    %19 = arith.maximumf %13, %18 : vector<1x576x32xf32>
    %20 = vector.shape_cast %19 : vector<1x576x32xf32> to vector<576x32xf32>
    %c0_6 = arith.constant 0 : index
    %c0_7 = arith.constant 0 : index
    %21 = vector.load %arg4[%c0_6, %c0_7] : memref<576x32xf32, #tpu.memory_space<vmem>>, vector<576x32xf32>
    tpu.vector_store %arg4[%c0_6, %c0_7], %20 {strides = array<i32>} : memref<576x32xf32, #tpu.memory_space<vmem>>, vector<576x32xf32>,
    return
  }
  func.func @transform_0(%arg0: i32) -> (i32, i32) {
    %c0_i32 = arith.constant 0 : i32
    %c0_i32_0 = arith.constant 0 : i32
    return %arg0, %c0_i32 : i32, i32
  }
  func.func @transform_1(%arg0: i32) -> (i32, i32) {
    %c0_i32 = arith.constant 0 : i32
    %c0_i32_0 = arith.constant 0 : i32
    %c0_i32_1 = arith.constant 0 : i32
    return %c0_i32, %c0_i32_0 : i32, i32
  }
  func.func @transform_2(%arg0: i32) -> (i32, i32) {
    %c0_i32 = arith.constant 0 : i32
    %c0_i32_0 = arith.constant 0 : i32
    %c0_i32_1 = arith.constant 0 : i32
    return %c0_i32, %c0_i32_0 : i32, i32
  }
  func.func @transform_3(%arg0: i32) -> (i32, i32) {
    %c0_i32 = arith.constant 0 : i32
    %c0_i32_0 = arith.constant 0 : i32
    return %arg0, %c0_i32 : i32, i32
  }
}

module attributes {stable_mosaic.version = 11 : i64} {
  func.func @_conv_gemm_pool_kernel(%arg0: i32, %arg1: memref<576x288xf32, #tpu.memory_space<vmem>>, %arg2: memref<288x64xf32, #tpu.memory_space<vmem>>, %arg3: memref<1x64xf32, #tpu.memory_space<vmem>>, %arg4: memref<144x64xf32, #tpu.memory_space<vmem>>) attributes {dimension_semantics = [#tpu.dimension_semantics<parallel>], iteration_bounds = array<i64: 2>, scalar_prefetch = 0 : i64, scratch_operands = 0 : i64, tpu.core_type = #tpu.core_type<tc>, window_params = [{transform_indices = @transform_0, window_bounds = array<i64: 576, 288>}, {pipeline_mode = #tpu.pipeline_mode<synchronous>, transform_indices = @transform_1, window_bounds = array<i64: 288, 64>}, {pipeline_mode = #tpu.pipeline_mode<synchronous>, transform_indices = @transform_2, window_bounds = array<i64: 1, 64>}, {transform_indices = @transform_3, window_bounds = array<i64: 144, 64>}]} {
    %c0 = arith.constant 0 : index
    %c0_0 = arith.constant 0 : index
    %0 = vector.load %arg1[%c0, %c0_0] : memref<576x288xf32, #tpu.memory_space<vmem>>, vector<576x288xf32>
    %c0_1 = arith.constant 0 : index
    %c0_2 = arith.constant 0 : index
    %1 = vector.load %arg2[%c0_1, %c0_2] : memref<288x64xf32, #tpu.memory_space<vmem>>, vector<288x64xf32>
    %cst = arith.constant dense<0.000000e+00> : vector<576x64xf32>
    %2 = tpu.matmul %0, %1, %cst {dimension_numbers = #tpu.dot_dimension_numbers<[1], [0], [0], [1], [0, 0, 1, 1], [], []>} : vector<576x288xf32>, vector<288x64xf32>, vector<576x64xf32> -> vector<576x64xf32>
    %c0_3 = arith.constant 0 : index
    %c0_4 = arith.constant 0 : index
    %3 = vector.load %arg3[%c0_3, %c0_4] : memref<1x64xf32, #tpu.memory_space<vmem>>, vector<1x64xf32>
    %4 = vector.broadcast %3 : vector<1x64xf32> to vector<576x64xf32>
    %5 = arith.addf %2, %4 : vector<576x64xf32>
    %cst_5 = arith.constant 0.000000e+00 : f32
    %6 = vector.broadcast %cst_5 : f32 to vector<576x64xf32>
    %7 = arith.maximumf %5, %6 : vector<576x64xf32>
    %8 = vector.shape_cast %7 : vector<576x64xf32> to vector<1x4x144x64xf32>
    %9 = vector.extract_strided_slice %8 {offsets = [0, 0, 0, 0], sizes = [1, 1, 144, 64], strides = [1, 1, 1, 1]} : vector<1x4x144x64xf32> to vector<1x1x144x64xf32>
    %10 = vector.shape_cast %9 : vector<1x1x144x64xf32> to vector<1x144x64xf32>
    %11 = vector.extract_strided_slice %8 {offsets = [0, 1, 0, 0], sizes = [1, 1, 144, 64], strides = [1, 1, 1, 1]} : vector<1x4x144x64xf32> to vector<1x1x144x64xf32>
    %12 = vector.shape_cast %11 : vector<1x1x144x64xf32> to vector<1x144x64xf32>
    %13 = arith.maximumf %10, %12 : vector<1x144x64xf32>
    %14 = vector.extract_strided_slice %8 {offsets = [0, 2, 0, 0], sizes = [1, 1, 144, 64], strides = [1, 1, 1, 1]} : vector<1x4x144x64xf32> to vector<1x1x144x64xf32>
    %15 = vector.shape_cast %14 : vector<1x1x144x64xf32> to vector<1x144x64xf32>
    %16 = vector.extract_strided_slice %8 {offsets = [0, 3, 0, 0], sizes = [1, 1, 144, 64], strides = [1, 1, 1, 1]} : vector<1x4x144x64xf32> to vector<1x1x144x64xf32>
    %17 = vector.shape_cast %16 : vector<1x1x144x64xf32> to vector<1x144x64xf32>
    %18 = arith.maximumf %15, %17 : vector<1x144x64xf32>
    %19 = arith.maximumf %13, %18 : vector<1x144x64xf32>
    %20 = vector.shape_cast %19 : vector<1x144x64xf32> to vector<144x64xf32>
    %c0_6 = arith.constant 0 : index
    %c0_7 = arith.constant 0 : index
    %21 = vector.load %arg4[%c0_6, %c0_7] : memref<144x64xf32, #tpu.memory_space<vmem>>, vector<144x64xf32>
    tpu.vector_store %arg4[%c0_6, %c0_7], %20 {strides = array<i32>} : memref<144x64xf32, #tpu.memory_space<vmem>>, vector<144x64xf32>,
    return
  }
  func.func @transform_0(%arg0: i32) -> (i32, i32) {
    %c0_i32 = arith.constant 0 : i32
    %c0_i32_0 = arith.constant 0 : i32
    return %arg0, %c0_i32 : i32, i32
  }
  func.func @transform_1(%arg0: i32) -> (i32, i32) {
    %c0_i32 = arith.constant 0 : i32
    %c0_i32_0 = arith.constant 0 : i32
    %c0_i32_1 = arith.constant 0 : i32
    return %c0_i32, %c0_i32_0 : i32, i32
  }
  func.func @transform_2(%arg0: i32) -> (i32, i32) {
    %c0_i32 = arith.constant 0 : i32
    %c0_i32_0 = arith.constant 0 : i32
    %c0_i32_1 = arith.constant 0 : i32
    return %c0_i32, %c0_i32_0 : i32, i32
  }
  func.func @transform_3(%arg0: i32) -> (i32, i32) {
    %c0_i32 = arith.constant 0 : i32
    %c0_i32_0 = arith.constant 0 : i32
    return %arg0, %c0_i32 : i32, i32
  }
}

module attributes {stable_mosaic.version = 11 : i64} {
  func.func @_linear_kernel(%arg0: i32, %arg1: i32, %arg2: memref<2x4608xf32, #tpu.memory_space<vmem>>, %arg3: memref<4608x256xbf16, #tpu.memory_space<vmem>>, %arg4: memref<1x256xf32, #tpu.memory_space<vmem>>, %arg5: memref<2x256xf32, #tpu.memory_space<vmem>>, %arg6: memref<2x256xf32, #tpu.memory_space<vmem>>) attributes {dimension_semantics = [#tpu.dimension_semantics<parallel>, #tpu.dimension_semantics<arbitrary>], iteration_bounds = array<i64: 2, 2>, scalar_prefetch = 0 : i64, scratch_operands = 1 : i64, tpu.core_type = #tpu.core_type<tc>, window_params = [{transform_indices = @transform_0, window_bounds = array<i64: 2, 4608>}, {transform_indices = @transform_1, window_bounds = array<i64: 4608, 256>}, {transform_indices = @transform_2, window_bounds = array<i64: 1, 256>}, {transform_indices = @transform_3, window_bounds = array<i64: 2, 256>}]} {
    %c0_i32 = arith.constant 0 : i32
    %0 = arith.cmpi eq, %arg1, %c0_i32 : i32
    %1 = arith.extui %0 : i1 to i32
    %c0_i32_0 = arith.constant 0 : i32
    %2 = arith.cmpi ne, %1, %c0_i32_0 : i32
    scf.if %2 {
      %cst_9 = arith.constant 0.000000e+00 : f32
      %13 = vector.broadcast %cst_9 : f32 to vector<2x256xf32>
      %c0_10 = arith.constant 0 : index
      %c0_11 = arith.constant 0 : index
      %14 = vector.load %arg6[%c0_10, %c0_11] : memref<2x256xf32, #tpu.memory_space<vmem>>, vector<2x256xf32>
      tpu.vector_store %arg6[%c0_10, %c0_11], %13 {strides = array<i32>} : memref<2x256xf32, #tpu.memory_space<vmem>>, vector<2x256xf32>,
    } else {
    }
    %c0 = arith.constant 0 : index
    %c0_1 = arith.constant 0 : index
    %3 = vector.load %arg6[%c0, %c0_1] : memref<2x256xf32, #tpu.memory_space<vmem>>, vector<2x256xf32>
    %c0_2 = arith.constant 0 : index
    %c0_3 = arith.constant 0 : index
    %4 = vector.load %arg2[%c0_2, %c0_3] : memref<2x4608xf32, #tpu.memory_space<vmem>>, vector<2x4608xf32>
    %5 = arith.truncf %4 : vector<2x4608xf32> to vector<2x4608xbf16>
    %c0_4 = arith.constant 0 : index
    %c0_5 = arith.constant 0 : index
    %6 = vector.load %arg3[%c0_4, %c0_5] : memref<4608x256xbf16, #tpu.memory_space<vmem>>, vector<4608x256xbf16>
    %cst = arith.constant dense<0.000000e+00> : vector<2x256xf32>
    %7 = tpu.matmul %5, %6, %cst {dimension_numbers = #tpu.dot_dimension_numbers<[1], [0], [0], [1], [0, 0, 1, 1], [], []>} : vector<2x4608xbf16>, vector<4608x256xbf16>, vector<2x256xf32> -> vector<2x256xf32>
    %8 = arith.addf %3, %7 : vector<2x256xf32>
    %c0_6 = arith.constant 0 : index
    %c0_7 = arith.constant 0 : index
    %9 = vector.load %arg6[%c0_6, %c0_7] : memref<2x256xf32, #tpu.memory_space<vmem>>, vector<2x256xf32>
    tpu.vector_store %arg6[%c0_6, %c0_7], %8 {strides = array<i32>} : memref<2x256xf32, #tpu.memory_space<vmem>>, vector<2x256xf32>,
    %c1_i32 = arith.constant 1 : i32
    %10 = arith.cmpi eq, %arg1, %c1_i32 : i32
    %11 = arith.extui %10 : i1 to i32
    %c0_i32_8 = arith.constant 0 : i32
    %12 = arith.cmpi ne, %11, %c0_i32_8 : i32
    scf.if %12 {
      %c0_9 = arith.constant 0 : index
      %c0_10 = arith.constant 0 : index
      %13 = vector.load %arg6[%c0_9, %c0_10] : memref<2x256xf32, #tpu.memory_space<vmem>>, vector<2x256xf32>
      %c0_11 = arith.constant 0 : index
      %c0_12 = arith.constant 0 : index
      %14 = vector.load %arg4[%c0_11, %c0_12] : memref<1x256xf32, #tpu.memory_space<vmem>>, vector<1x256xf32>
      %15 = vector.broadcast %14 : vector<1x256xf32> to vector<2x256xf32>
      %16 = arith.addf %13, %15 : vector<2x256xf32>
      %cst_13 = arith.constant 0.000000e+00 : f32
      %17 = vector.broadcast %cst_13 : f32 to vector<2x256xf32>
      %18 = arith.maximumf %16, %17 : vector<2x256xf32>
      %c0_14 = arith.constant 0 : index
      %c0_15 = arith.constant 0 : index
      %19 = vector.load %arg5[%c0_14, %c0_15] : memref<2x256xf32, #tpu.memory_space<vmem>>, vector<2x256xf32>
      tpu.vector_store %arg5[%c0_14, %c0_15], %18 {strides = array<i32>} : memref<2x256xf32, #tpu.memory_space<vmem>>, vector<2x256xf32>,
    } else {
    }
    return
  }
  func.func @transform_0(%arg0: i32, %arg1: i32) -> (i32, i32) {
    %c0_i32 = arith.constant 0 : i32
    %c0_i32_0 = arith.constant 0 : i32
    return %c0_i32, %arg1 : i32, i32
  }
  func.func @transform_1(%arg0: i32, %arg1: i32) -> (i32, i32) {
    %c0_i32 = arith.constant 0 : i32
    return %arg1, %arg0 : i32, i32
  }
  func.func @transform_2(%arg0: i32, %arg1: i32) -> (i32, i32) {
    %c0_i32 = arith.constant 0 : i32
    %c0_i32_0 = arith.constant 0 : i32
    return %c0_i32, %arg0 : i32, i32
  }
  func.func @transform_3(%arg0: i32, %arg1: i32) -> (i32, i32) {
    %c0_i32 = arith.constant 0 : i32
    %c0_i32_0 = arith.constant 0 : i32
    return %c0_i32, %arg0 : i32, i32
  }
}

module attributes {stable_mosaic.version = 11 : i64} {
  func.func @_linear_kernel(%arg0: i32, %arg1: i32, %arg2: memref<2x512xf32, #tpu.memory_space<vmem>>, %arg3: memref<512x10xf32, #tpu.memory_space<vmem>>, %arg4: memref<1x10xf32, #tpu.memory_space<vmem>>, %arg5: memref<2x10xf32, #tpu.memory_space<vmem>>, %arg6: memref<2x10xf32, #tpu.memory_space<vmem>>) attributes {dimension_semantics = [#tpu.dimension_semantics<parallel>, #tpu.dimension_semantics<arbitrary>], iteration_bounds = array<i64: 1, 1>, scalar_prefetch = 0 : i64, scratch_operands = 1 : i64, tpu.core_type = #tpu.core_type<tc>, window_params = [{transform_indices = @transform_0, window_bounds = array<i64: 2, 512>}, {transform_indices = @transform_1, window_bounds = array<i64: 512, 10>}, {transform_indices = @transform_2, window_bounds = array<i64: 1, 10>}, {transform_indices = @transform_3, window_bounds = array<i64: 2, 10>}]} {
    %c0_i32 = arith.constant 0 : i32
    %0 = arith.cmpi eq, %arg1, %c0_i32 : i32
    %1 = arith.extui %0 : i1 to i32
    %c0_i32_0 = arith.constant 0 : i32
    %2 = arith.cmpi ne, %1, %c0_i32_0 : i32
    scf.if %2 {
      %cst_10 = arith.constant 0.000000e+00 : f32
      %12 = vector.broadcast %cst_10 : f32 to vector<2x10xf32>
      %c0_11 = arith.constant 0 : index
      %c0_12 = arith.constant 0 : index
      %13 = vector.load %arg6[%c0_11, %c0_12] : memref<2x10xf32, #tpu.memory_space<vmem>>, vector<2x10xf32>
      tpu.vector_store %arg6[%c0_11, %c0_12], %12 {strides = array<i32>} : memref<2x10xf32, #tpu.memory_space<vmem>>, vector<2x10xf32>,
    } else {
    }
    %c0 = arith.constant 0 : index
    %c0_1 = arith.constant 0 : index
    %3 = vector.load %arg6[%c0, %c0_1] : memref<2x10xf32, #tpu.memory_space<vmem>>, vector<2x10xf32>
    %c0_2 = arith.constant 0 : index
    %c0_3 = arith.constant 0 : index
    %4 = vector.load %arg2[%c0_2, %c0_3] : memref<2x512xf32, #tpu.memory_space<vmem>>, vector<2x512xf32>
    %c0_4 = arith.constant 0 : index
    %c0_5 = arith.constant 0 : index
    %5 = vector.load %arg3[%c0_4, %c0_5] : memref<512x10xf32, #tpu.memory_space<vmem>>, vector<512x10xf32>
    %cst = arith.constant dense<0.000000e+00> : vector<2x10xf32>
    %6 = tpu.matmul %4, %5, %cst {dimension_numbers = #tpu.dot_dimension_numbers<[1], [0], [0], [1], [0, 0, 1, 1], [], []>} : vector<2x512xf32>, vector<512x10xf32>, vector<2x10xf32> -> vector<2x10xf32>
    %7 = arith.addf %3, %6 : vector<2x10xf32>
    %c0_6 = arith.constant 0 : index
    %c0_7 = arith.constant 0 : index
    %8 = vector.load %arg6[%c0_6, %c0_7] : memref<2x10xf32, #tpu.memory_space<vmem>>, vector<2x10xf32>
    tpu.vector_store %arg6[%c0_6, %c0_7], %7 {strides = array<i32>} : memref<2x10xf32, #tpu.memory_space<vmem>>, vector<2x10xf32>,
    %c0_i32_8 = arith.constant 0 : i32
    %9 = arith.cmpi eq, %arg1, %c0_i32_8 : i32
    %10 = arith.extui %9 : i1 to i32
    %c0_i32_9 = arith.constant 0 : i32
    %11 = arith.cmpi ne, %10, %c0_i32_9 : i32
    scf.if %11 {
      %c0_10 = arith.constant 0 : index
      %c0_11 = arith.constant 0 : index
      %12 = vector.load %arg6[%c0_10, %c0_11] : memref<2x10xf32, #tpu.memory_space<vmem>>, vector<2x10xf32>
      %c0_12 = arith.constant 0 : index
      %c0_13 = arith.constant 0 : index
      %13 = vector.load %arg4[%c0_12, %c0_13] : memref<1x10xf32, #tpu.memory_space<vmem>>, vector<1x10xf32>
      %14 = vector.broadcast %13 : vector<1x10xf32> to vector<2x10xf32>
      %15 = arith.addf %12, %14 : vector<2x10xf32>
      %c0_14 = arith.constant 0 : index
      %c0_15 = arith.constant 0 : index
      %16 = vector.load %arg5[%c0_14, %c0_15] : memref<2x10xf32, #tpu.memory_space<vmem>>, vector<2x10xf32>
      tpu.vector_store %arg5[%c0_14, %c0_15], %15 {strides = array<i32>} : memref<2x10xf32, #tpu.memory_space<vmem>>, vector<2x10xf32>,
    } else {
    }
    return
  }
  func.func @transform_0(%arg0: i32, %arg1: i32) -> (i32, i32) {
    %c0_i32 = arith.constant 0 : i32
    %c0_i32_0 = arith.constant 0 : i32
    return %c0_i32, %arg1 : i32, i32
  }
  func.func @transform_1(%arg0: i32, %arg1: i32) -> (i32, i32) {
    %c0_i32 = arith.constant 0 : i32
    return %arg1, %arg0 : i32, i32
  }
  func.func @transform_2(%arg0: i32, %arg1: i32) -> (i32, i32) {
    %c0_i32 = arith.constant 0 : i32
    %c0_i32_0 = arith.constant 0 : i32
    return %c0_i32, %arg0 : i32, i32
  }
  func.func @transform_3(%arg0: i32, %arg1: i32) -> (i32, i32) {
    %c0_i32 = arith.constant 0 : i32
    %c0_i32_0 = arith.constant 0 : i32
    return %c0_i32, %arg0 : i32, i32
  }
}

</mosaic_0001>

<bundles_post_ra>
// kernel: cnn_forward.4
= control target key start
LH: loop header
LB: loop body
LE: loop exit
PB: predicated region body
PF: predicated region fallthrough
CT: control target
= control target key end

     0   :  { %s4565_s12 = smov 0   ;;  %s6764_s0 = inlined_call_operand.vmem [shape: f32[4608,27], index: 0, kind: input, shape index: {}]   ;;  %s6765_s1 = inlined_call_operand.vmem [shape: f32[27,32], index: 1, kind: input, shape index: {}]   ;;  %s6766_s2 = inlined_call_operand.vmem [shape: f32[1,32], index: 2, kind: input, shape index: {}]   ;;  %s6767_s3 = inlined_call_operand.vmem [shape: f32[1152,32], index: 3, kind: output, shape index: {}]  }
   0x1 LB: > { %s3480_s13 = sadd.s32 4294967295, %s4542_s12   ;;  %p3484_p0 = scmp.ge.s32.totalorder %s4542_s12, 1  ;;  %s4542_s12 = sphi %s4565_s12, %s13_s12  }
   0x2   : > { %p138_p1 = scmp.lt.s32.totalorder %s4542_s12, 3 }
   0x4   : > { %p139_p2 = pnand %p3484_p0, %p138_p1 }
   0x6   : > { %142 = sbr.rel (%p139_p2) target bundleno = 558 (0x22e), region = 32 }
   0xd   : > { %v462_v0 = vld [vmem:[%s6765_s1] sm:$0xff]  ;;  %v463_v1 = vld [vmem:[%s6765_s1 + $0x8] sm:$0xff]  ;;  %v464_v2 = vld [vmem:[%s6765_s1 + $0x10] sm:$0xff]  ;;  %vm1338_vm0 = vcmask 1042432   ;;  %s162_s20 = smul.u32 288, %s3480_s13  ;;  %vm4544_vm1 = vmmov 1  }
   0xe   : > { %v4511_v3 = vpack.c.bf16 %v463_v1, %v462_v0  ;;  %v465_v4 = vld [vmem:[%s6765_s1 + $0x18] sm:$0x7]  ;;  %vm4516_vm2 = vmpackc.low %vm1338_vm0, %vm4544_vm1  ;;  %vm473_vm3 = vcmask 220160   ;;  %s5897_s29 = smul.u32 72, %s3480_s13  ;;  %vm3351_vm4 = vcmask 261120  }
   0xf   : > { %v4515_v5 = vpack.c.bf16 %v465_v4, %v464_v2  ;;  %p163_p3 = scmp.lt.s32.totalorder %s162_s20, 575 }
  0x10   : > { %4512 = vmatprep.subr.bf16.mxu0 %v4511_v3  ;;  %4521 = vmatprep.subr.bf16.mxu1 %v4511_v3  ;;  %p169_p4 = scmp.lt.s32.totalorder %s5897_s29, 143 }
  0x11   : > { %4514 = vmatpush3.bf16.msra.mxu0 %v4511_v3  ;;  %4523 = vmatpush3.bf16.msra.mxu1 %v4511_v3  ;;  %s7248_s20 = smov (!%p163_p3, %s162_s20), 575 }
  0x12   : > { %4517 = vmatprep.subr.msk.bf16.mxu0 %vm4516_vm2, %v4515_v5  ;;  %4522 = vmatprep.subr.msk.bf16.mxu1 %vm4516_vm2, %v4515_v5  ;;  %s3485_s23 = sshll.u32 %s7248_s20, 3  ;;  %s7250_s29 = smov (!%p169_p4, %s5897_s29), 143 }
  0x13   : > { %s4590_s26 = scalar_lea.vmem %s6764_s0, %s3485_s23  ;;  %s3486_s30 = sshll.u32 %s7250_s29, 3 }
  0x14   : > { %v174_v6 = vld [vmem:[%s4590_s26] sm:$0xff]  ;;  %v175_v8 = vld [vmem:[%s4590_s26 + $0x8] sm:$0xff]  ;;  %v176_v10 = vld [vmem:[%s4590_s26 + $0x10] sm:$0xff]  ;;  %s6033_s6 = scalar_lea.vmem %s6767_s3, %s3486_s30 }
  0x15   : > { %4520 = vmatpush3.bf16.msk.msra.mxu0 %vm4516_vm2, %v4515_v5  ;;  %4524 = vmatpush3.bf16.msk.msra.mxu1 %vm4516_vm2, %v4515_v5  ;;  %v318_v7 = vld [vmem:[%s4590_s26 + $0x480] sm:$0xff]  ;;  %v319_v9 = vld [vmem:[%s4590_s26 + $0x488] sm:$0xff]  ;;  %v320_v11 = vld [vmem:[%s4590_s26 + $0x490] sm:$0xff] }
  0x16   : > { %4079 = vmatprep.mubr.msk.f32.mxu0 %vm473_vm3, %v174_v6  ;;  %4295 = vmatprep.mubr.msk.f32.mxu1 %vm473_vm3, %v318_v7  ;;  %v177_v12 = vld [vmem:[%s4590_s26 + $0x18] sm:$0xff]  ;;  %v178_v14 = vld [vmem:[%s4590_s26 + $0x20] sm:$0xff]  ;;  %v179_v16 = vld [vmem:[%s4590_s26 + $0x28] sm:$0xff] }
  0x17   : > { %v321_v13 = vld [vmem:[%s4590_s26 + $0x498] sm:$0xff]  ;;  %v322_v15 = vld [vmem:[%s4590_s26 + $0x4a0] sm:$0xff]  ;;  %v323_v17 = vld [vmem:[%s4590_s26 + $0x4a8] sm:$0xff] }
  0x18   : > { %4080 = vmatmul.mubr.msk.f32.vlgmr.msra.gmra.mrb[0].mxu0 %vm473_vm3, %v175_v8  ;;  %4296 = vmatmul.mubr.msk.f32.vlgmr.msra.gmra.mrb[0].mxu1 %vm473_vm3, %v319_v9  ;;  %v180_v18 = vld [vmem:[%s4590_s26 + $0x30] sm:$0xff]  ;;  %v181_v20 = vld [vmem:[%s4590_s26 + $0x38] sm:$0xff]  ;;  %v182_v22 = vld [vmem:[%s4590_s26 + $0x40] sm:$0xff] }
  0x19   : > { %4082 = vmatprep.mubr.msk.f32.mxu0 %vm473_vm3, %v176_v10  ;;  %4298 = vmatprep.mubr.msk.f32.mxu1 %vm473_vm3, %v320_v11  ;;  %v324_v19 = vld [vmem:[%s4590_s26 + $0x4b0] sm:$0xff]  ;;  %v325_v21 = vld [vmem:[%s4590_s26 + $0x4b8] sm:$0xff]  ;;  %v326_v23 = vld [vmem:[%s4590_s26 + $0x4c0] sm:$0xff] }
  0x1a   : > { %v183_v24 = vld [vmem:[%s4590_s26 + $0x48] sm:$0xff]  ;;  %v184_v26 = vld [vmem:[%s4590_s26 + $0x50] sm:$0xff]  ;;  %v185_v28 = vld [vmem:[%s4590_s26 + $0x58] sm:$0xff] }
  0x1b   : > { %v327_v25 = vld [vmem:[%s4590_s26 + $0x4c8] sm:$0xff]  ;;  %v328_v27 = vld [vmem:[%s4590_s26 + $0x4d0] sm:$0xff]  ;;  %v329_v29 = vld [vmem:[%s4590_s26 + $0x4d8] sm:$0xff] }
  0x1c   : > { %4083 = vmatmul.mubr.msk.f32.gmra.mrb[2].mxu0 %vm473_vm3, %v177_v12  ;;  %4299 = vmatmul.mubr.msk.f32.gmra.mrb[2].mxu1 %vm473_vm3, %v321_v13  ;;  %v186_v30 = vld [vmem:[%s4590_s26 + $0x60] sm:$0xff]  ;;  %v187_v32 = vld [vmem:[%s4590_s26 + $0x68] sm:$0xff]  ;;  %v188_v34 = vld [vmem:[%s4590_s26 + $0x70] sm:$0xff] }
  0x1d   : > { %4085 = vmatprep.mubr.msk.f32.mxu0 %vm473_vm3, %v178_v14  ;;  %4301 = vmatprep.mubr.msk.f32.mxu1 %vm473_vm3, %v322_v15  ;;  %v330_v31 = vld [vmem:[%s4590_s26 + $0x4e0] sm:$0xff]  ;;  %v331_v33 = vld [vmem:[%s4590_s26 + $0x4e8] sm:$0xff]  ;;  %v332_v35 = vld [vmem:[%s4590_s26 + $0x4f0] sm:$0xff] }
  0x1e   : > { %v189_v36 = vld [vmem:[%s4590_s26 + $0x78] sm:$0xff]  ;;  %v190_v38 = vld [vmem:[%s4590_s26 + $0x80] sm:$0xff]  ;;  %v191_v40 = vld [vmem:[%s4590_s26 + $0x88] sm:$0xff] }
  0x1f   : > { %v333_v37 = vld [vmem:[%s4590_s26 + $0x4f8] sm:$0xff]  ;;  %v334_v39 = vld [vmem:[%s4590_s26 + $0x500] sm:$0xff]  ;;  %v335_v41 = vld [vmem:[%s4590_s26 + $0x508] sm:$0xff] }
  0x20   : > { %4086 = vmatmul.mubr.msk.f32.gmra.mrb[4].mxu0 %vm473_vm3, %v179_v16  ;;  %4302 = vmatmul.mubr.msk.f32.gmra.mrb[4].mxu1 %vm473_vm3, %v323_v17  ;;  %v192_v42 = vld [vmem:[%s4590_s26 + $0x90] sm:$0xff]  ;;  %v193_v44 = vld [vmem:[%s4590_s26 + $0x98] sm:$0xff]  ;;  %v194_v46 = vld [vmem:[%s4590_s26 + $0xa0] sm:$0xff] }
  0x21   : > { %4088 = vmatprep.mubr.msk.f32.mxu0 %vm473_vm3, %v180_v18  ;;  %4304 = vmatprep.mubr.msk.f32.mxu1 %vm473_vm3, %v324_v19  ;;  %v336_v43 = vld [vmem:[%s4590_s26 + $0x510] sm:$0xff]  ;;  %v337_v45 = vld [vmem:[%s4590_s26 + $0x518] sm:$0xff]  ;;  %v338_v47 = vld [vmem:[%s4590_s26 + $0x520] sm:$0xff] }
  0x22   : > { %v195_v48 = vld [vmem:[%s4590_s26 + $0xa8] sm:$0xff]  ;;  %v196_v50 = vld [vmem:[%s4590_s26 + $0xb0] sm:$0xff]  ;;  %v197_v52 = vld [vmem:[%s4590_s26 + $0xb8] sm:$0xff] }
  0x23   : > { %v339_v49 = vld [vmem:[%s4590_s26 + $0x528] sm:$0xff]  ;;  %v340_v51 = vld [vmem:[%s4590_s26 + $0x530] sm:$0xff]  ;;  %v341_v53 = vld [vmem:[%s4590_s26 + $0x538] sm:$0xff] }
  0x24   : > { %4089 = vmatmul.mubr.msk.f32.gmra.mrb[6].mxu0 %vm473_vm3, %v181_v20  ;;  %4305 = vmatmul.mubr.msk.f32.gmra.mrb[6].mxu1 %vm473_vm3, %v325_v21  ;;  %v198_v54 = vld [vmem:[%s4590_s26 + $0xc0] sm:$0xff]  ;;  %v199_v56 = vld [vmem:[%s4590_s26 + $0xc8] sm:$0xff]  ;;  %v200_v58 = vld [vmem:[%s4590_s26 + $0xd0] sm:$0xff] }
  0x25   : > { %4091 = vmatprep.mubr.msk.f32.mxu0 %vm473_vm3, %v182_v22  ;;  %4307 = vmatprep.mubr.msk.f32.mxu1 %vm473_vm3, %v326_v23  ;;  %v342_v55 = vld [vmem:[%s4590_s26 + $0x540] sm:$0xff]  ;;  %v343_v57 = vld [vmem:[%s4590_s26 + $0x548] sm:$0xff]  ;;  %v344_v59 = vld [vmem:[%s4590_s26 + $0x550] sm:$0xff] }
  0x26   : > { %v201_v60 = vld [vmem:[%s4590_s26 + $0xd8] sm:$0xff]  ;;  %v202_v62 = vld [vmem:[%s4590_s26 + $0xe0] sm:$0xff]  ;;  %v203_v0 = vld [vmem:[%s4590_s26 + $0xe8] sm:$0xff] }
  0x27   : > { %v345_v61 = vld [vmem:[%s4590_s26 + $0x558] sm:$0xff]  ;;  %v346_v63 = vld [vmem:[%s4590_s26 + $0x560] sm:$0xff]  ;;  %v347_v1 = vld [vmem:[%s4590_s26 + $0x568] sm:$0xff] }
  0x28   : > { %4092 = vmatmul.mubr.msk.f32.gmra.mrb[8].mxu0 %vm473_vm3, %v183_v24  ;;  %4308 = vmatmul.mubr.msk.f32.gmra.mrb[8].mxu1 %vm473_vm3, %v327_v25  ;;  %v204_v2 = vld [vmem:[%s4590_s26 + $0xf0] sm:$0xff]  ;;  %v205_v4 = vld [vmem:[%s4590_s26 + $0xf8] sm:$0xff]  ;;  %v206_v6 = vld [vmem:[%s4590_s26 + $0x100] sm:$0xff] }
  0x29   : > { %4094 = vmatprep.mubr.msk.f32.mxu0 %vm473_vm3, %v184_v26  ;;  %4310 = vmatprep.mubr.msk.f32.mxu1 %vm473_vm3, %v328_v27  ;;  %v348_v3 = vld [vmem:[%s4590_s26 + $0x570] sm:$0xff]  ;;  %v349_v5 = vld [vmem:[%s4590_s26 + $0x578] sm:$0xff]  ;;  %v350_v7 = vld [vmem:[%s4590_s26 + $0x580] sm:$0xff] }
  0x2a   : > { %v207_v8 = vld [vmem:[%s4590_s26 + $0x108] sm:$0xff]  ;;  %v208_v10 = vld [vmem:[%s4590_s26 + $0x110] sm:$0xff]  ;;  %v209_v12 = vld [vmem:[%s4590_s26 + $0x118] sm:$0xff] }
  0x2b   : > { %v351_v9 = vld [vmem:[%s4590_s26 + $0x588] sm:$0xff]  ;;  %v352_v11 = vld [vmem:[%s4590_s26 + $0x590] sm:$0xff]  ;;  %v353_v13 = vld [vmem:[%s4590_s26 + $0x598] sm:$0xff] }
  0x2c   : > { %4095 = vmatmul.mubr.msk.f32.gmra.mrb[10].mxu0 %vm473_vm3, %v185_v28  ;;  %4311 = vmatmul.mubr.msk.f32.gmra.mrb[10].mxu1 %vm473_vm3, %v329_v29  ;;  %v210_v14 = vld [vmem:[%s4590_s26 + $0x120] sm:$0xff]  ;;  %v211_v16 = vld [vmem:[%s4590_s26 + $0x128] sm:$0xff]  ;;  %v212_v18 = vld [vmem:[%s4590_s26 + $0x130] sm:$0xff] }
  0x2d   : > { %4097 = vmatprep.mubr.msk.f32.mxu0 %vm473_vm3, %v186_v30  ;;  %4313 = vmatprep.mubr.msk.f32.mxu1 %vm473_vm3, %v330_v31  ;;  %v354_v15 = vld [vmem:[%s4590_s26 + $0x5a0] sm:$0xff]  ;;  %v355_v17 = vld [vmem:[%s4590_s26 + $0x5a8] sm:$0xff]  ;;  %v356_v19 = vld [vmem:[%s4590_s26 + $0x5b0] sm:$0xff] }
  0x2e   : > { %v213_v20 = vld [vmem:[%s4590_s26 + $0x138] sm:$0xff]  ;;  %v214_v22 = vld [vmem:[%s4590_s26 + $0x140] sm:$0xff]  ;;  %v215_v24 = vld [vmem:[%s4590_s26 + $0x148] sm:$0xff] }
  0x2f   : > { %v357_v21 = vld [vmem:[%s4590_s26 + $0x5b8] sm:$0xff]  ;;  %v358_v23 = vld [vmem:[%s4590_s26 + $0x5c0] sm:$0xff]  ;;  %v359_v25 = vld [vmem:[%s4590_s26 + $0x5c8] sm:$0xff] }
  0x30   : > { %4098 = vmatmul.mubr.msk.f32.gmra.mrb[12].mxu0 %vm473_vm3, %v187_v32  ;;  %4314 = vmatmul.mubr.msk.f32.gmra.mrb[12].mxu1 %vm473_vm3, %v331_v33  ;;  %v216_v26 = vld [vmem:[%s4590_s26 + $0x150] sm:$0xff]  ;;  %v217_v28 = vld [vmem:[%s4590_s26 + $0x158] sm:$0xff]  ;;  %v218_v30 = vld [vmem:[%s4590_s26 + $0x160] sm:$0xff] }
  0x31   : > { %4100 = vmatprep.mubr.msk.f32.mxu0 %vm473_vm3, %v188_v34  ;;  %4316 = vmatprep.mubr.msk.f32.mxu1 %vm473_vm3, %v332_v35  ;;  %v360_v27 = vld [vmem:[%s4590_s26 + $0x5d0] sm:$0xff]  ;;  %v361_v29 = vld [vmem:[%s4590_s26 + $0x5d8] sm:$0xff]  ;;  %v362_v31 = vld [vmem:[%s4590_s26 + $0x5e0] sm:$0xff] }
  0x32   : > { %v219_v32 = vld [vmem:[%s4590_s26 + $0x168] sm:$0xff]  ;;  %v220_v34 = vld [vmem:[%s4590_s26 + $0x170] sm:$0xff] }
  0x33   : > { %v363_v33 = vld [vmem:[%s4590_s26 + $0x5e8] sm:$0xff]  ;;  %v364_v35 = vld [vmem:[%s4590_s26 + $0x5f0] sm:$0xff] }
  0x34   : > { %4101 = vmatmul.mubr.msk.f32.gmra.mrb[14].mxu0 %vm473_vm3, %v189_v36  ;;  %4317 = vmatmul.mubr.msk.f32.gmra.mrb[14].mxu1 %vm473_vm3, %v333_v37  ;;  %v221_v36 = vld [vmem:[%s4590_s26 + $0x178] sm:$0xff] }
  0x35   : > { %4103 = vmatprep.mubr.msk.f32.mxu0 %vm473_vm3, %v190_v38  ;;  %4319 = vmatprep.mubr.msk.f32.mxu1 %vm473_vm3, %v334_v39  ;;  %v365_v37 = vld [vmem:[%s4590_s26 + $0x5f8] sm:$0xff]  ;;  %v222_v38 = vld [vmem:[%s4590_s26 + $0x180] sm:$0xff] }
  0x36   : > { %v366_v39 = vld [vmem:[%s4590_s26 + $0x600] sm:$0xff] }
  0x38   : > { %4104 = vmatmul.mubr.msk.f32.gmra.mrb[16].mxu0 %vm473_vm3, %v191_v40  ;;  %4320 = vmatmul.mubr.msk.f32.gmra.mrb[16].mxu1 %vm473_vm3, %v335_v41  ;;  %v223_v40 = vld [vmem:[%s4590_s26 + $0x188] sm:$0xff] }
  0x39   : > { %4106 = vmatprep.mubr.msk.f32.mxu0 %vm473_vm3, %v192_v42  ;;  %4322 = vmatprep.mubr.msk.f32.mxu1 %vm473_vm3, %v336_v43  ;;  %v367_v41 = vld [vmem:[%s4590_s26 + $0x608] sm:$0xff]  ;;  %v224_v42 = vld [vmem:[%s4590_s26 + $0x190] sm:$0xff] }
  0x3a   : > { %v368_v43 = vld [vmem:[%s4590_s26 + $0x610] sm:$0xff] }
  0x3c   : > { %4107 = vmatmul.mubr.msk.f32.gmra.mrb[18].mxu0 %vm473_vm3, %v193_v44  ;;  %4323 = vmatmul.mubr.msk.f32.gmra.mrb[18].mxu1 %vm473_vm3, %v337_v45  ;;  %v225_v44 = vld [vmem:[%s4590_s26 + $0x198] sm:$0xff] }
  0x3d   : > { %4109 = vmatprep.mubr.msk.f32.mxu0 %vm473_vm3, %v194_v46  ;;  %4325 = vmatprep.mubr.msk.f32.mxu1 %vm473_vm3, %v338_v47  ;;  %v369_v45 = vld [vmem:[%s4590_s26 + $0x618] sm:$0xff]  ;;  %v226_v46 = vld [vmem:[%s4590_s26 + $0x1a0] sm:$0xff] }
  0x3e   : > { %v370_v47 = vld [vmem:[%s4590_s26 + $0x620] sm:$0xff] }
  0x40   : > { %4110 = vmatmul.mubr.msk.f32.gmra.mrb[20].mxu0 %vm473_vm3, %v195_v48  ;;  %4326 = vmatmul.mubr.msk.f32.gmra.mrb[20].mxu1 %vm473_vm3, %v339_v49  ;;  %v227_v48 = vld [vmem:[%s4590_s26 + $0x1a8] sm:$0xff] }
  0x41   : > { %4112 = vmatprep.mubr.msk.f32.mxu0 %vm473_vm3, %v196_v50  ;;  %4328 = vmatprep.mubr.msk.f32.mxu1 %vm473_vm3, %v340_v51  ;;  %v371_v49 = vld [vmem:[%s4590_s26 + $0x628] sm:$0xff]  ;;  %v228_v50 = vld [vmem:[%s4590_s26 + $0x1b0] sm:$0xff] }
  0x42   : > { %v372_v51 = vld [vmem:[%s4590_s26 + $0x630] sm:$0xff] }
  0x44   : > { %4113 = vmatmul.mubr.msk.f32.gmra.mrb[22].mxu0 %vm473_vm3, %v197_v52  ;;  %4329 = vmatmul.mubr.msk.f32.gmra.mrb[22].mxu1 %vm473_vm3, %v341_v53  ;;  %v229_v52 = vld [vmem:[%s4590_s26 + $0x1b8] sm:$0xff] }
  0x45   : > { %4115 = vmatprep.mubr.msk.f32.mxu0 %vm473_vm3, %v198_v54  ;;  %4331 = vmatprep.mubr.msk.f32.mxu1 %vm473_vm3, %v342_v55  ;;  %v373_v53 = vld [vmem:[%s4590_s26 + $0x638] sm:$0xff]  ;;  %v230_v54 = vld [vmem:[%s4590_s26 + $0x1c0] sm:$0xff] }
  0x46   : > { %v374_v55 = vld [vmem:[%s4590_s26 + $0x640] sm:$0xff] }
  0x48   : > { %4116 = vmatmul.mubr.msk.f32.gmra.mrb[24].mxu0 %vm473_vm3, %v199_v56  ;;  %4332 = vmatmul.mubr.msk.f32.gmra.mrb[24].mxu1 %vm473_vm3, %v343_v57  ;;  %v231_v56 = vld [vmem:[%s4590_s26 + $0x1c8] sm:$0xff] }
  0x49   : > { %4118 = vmatprep.mubr.msk.f32.mxu0 %vm473_vm3, %v200_v58  ;;  %4334 = vmatprep.mubr.msk.f32.mxu1 %vm473_vm3, %v344_v59  ;;  %v375_v57 = vld [vmem:[%s4590_s26 + $0x648] sm:$0xff]  ;;  %v232_v58 = vld [vmem:[%s4590_s26 + $0x1d0] sm:$0xff] }
  0x4a   : > { %v376_v59 = vld [vmem:[%s4590_s26 + $0x650] sm:$0xff] }
  0x4c   : > { %4119 = vmatmul.mubr.msk.f32.gmra.mrb[26].mxu0 %vm473_vm3, %v201_v60  ;;  %4335 = vmatmul.mubr.msk.f32.gmra.mrb[26].mxu1 %vm473_vm3, %v345_v61  ;;  %v233_v60 = vld [vmem:[%s4590_s26 + $0x1d8] sm:$0xff] }
  0x4d   : > { %4121 = vmatprep.mubr.msk.f32.mxu0 %vm473_vm3, %v202_v62  ;;  %4337 = vmatprep.mubr.msk.f32.mxu1 %vm473_vm3, %v346_v63  ;;  %v377_v61 = vld [vmem:[%s4590_s26 + $0x658] sm:$0xff]  ;;  %v234_v62 = vld [vmem:[%s4590_s26 + $0x1e0] sm:$0xff] }
  0x4e   : > { %v378_v63 = vld [vmem:[%s4590_s26 + $0x660] sm:$0xff] }
  0x50   : > { %4122 = vmatmul.mubr.msk.f32.gmra.mrb[28].mxu0 %vm473_vm3, %v203_v0  ;;  %4338 = vmatmul.mubr.msk.f32.gmra.mrb[28].mxu1 %vm473_vm3, %v347_v1  ;;  %v235_v0 = vld [vmem:[%s4590_s26 + $0x1e8] sm:$0xff] }
  0x51   : > { %4124 = vmatprep.mubr.msk.f32.mxu0 %vm473_vm3, %v204_v2  ;;  %4340 = vmatprep.mubr.msk.f32.mxu1 %vm473_vm3, %v348_v3  ;;  %v379_v1 = vld [vmem:[%s4590_s26 + $0x668] sm:$0xff]  ;;  %v236_v2 = vld [vmem:[%s4590_s26 + $0x1f0] sm:$0xff] }
  0x52   : > { %v380_v3 = vld [vmem:[%s4590_s26 + $0x670] sm:$0xff] }
  0x54   : > { %4125 = vmatmul.mubr.msk.f32.gmra.mrb[30].mxu0 %vm473_vm3, %v205_v4  ;;  %4341 = vmatmul.mubr.msk.f32.gmra.mrb[30].mxu1 %vm473_vm3, %v349_v5  ;;  %v237_v4 = vld [vmem:[%s4590_s26 + $0x1f8] sm:$0xff] }
  0x55   : > { %4127 = vmatprep.mubr.msk.f32.mxu0 %vm473_vm3, %v206_v6  ;;  %4343 = vmatprep.mubr.msk.f32.mxu1 %vm473_vm3, %v350_v7  ;;  %v381_v5 = vld [vmem:[%s4590_s26 + $0x678] sm:$0xff]  ;;  %v238_v6 = vld [vmem:[%s4590_s26 + $0x200] sm:$0xff] }
  0x56   : > { %v382_v7 = vld [vmem:[%s4590_s26 + $0x680] sm:$0xff] }
  0x58   : > { %4128 = vmatmul.mubr.msk.f32.gmra.mrb[32].mxu0 %vm473_vm3, %v207_v8  ;;  %4344 = vmatmul.mubr.msk.f32.gmra.mrb[32].mxu1 %vm473_vm3, %v351_v9  ;;  %v239_v8 = vld [vmem:[%s4590_s26 + $0x208] sm:$0xff] }
  0x59   : > { %4130 = vmatprep.mubr.msk.f32.mxu0 %vm473_vm3, %v208_v10  ;;  %4346 = vmatprep.mubr.msk.f32.mxu1 %vm473_vm3, %v352_v11  ;;  %v383_v9 = vld [vmem:[%s4590_s26 + $0x688] sm:$0xff]  ;;  %v240_v10 = vld [vmem:[%s4590_s26 + $0x210] sm:$0xff] }
  0x5a   : > { %v384_v11 = vld [vmem:[%s4590_s26 + $0x690] sm:$0xff] }
  0x5c   : > { %4131 = vmatmul.mubr.msk.f32.gmra.mrb[34].mxu0 %vm473_vm3, %v209_v12  ;;  %4347 = vmatmul.mubr.msk.f32.gmra.mrb[34].mxu1 %vm473_vm3, %v353_v13  ;;  %v241_v12 = vld [vmem:[%s4590_s26 + $0x218] sm:$0xff] }
  0x5d   : > { %4133 = vmatprep.mubr.msk.f32.mxu0 %vm473_vm3, %v210_v14  ;;  %4349 = vmatprep.mubr.msk.f32.mxu1 %vm473_vm3, %v354_v15  ;;  %v385_v13 = vld [vmem:[%s4590_s26 + $0x698] sm:$0xff]  ;;  %v242_v14 = vld [vmem:[%s4590_s26 + $0x220] sm:$0xff] }
  0x5e   : > { %v386_v15 = vld [vmem:[%s4590_s26 + $0x6a0] sm:$0xff] }
  0x60   : > { %4134 = vmatmul.mubr.msk.f32.gmra.mrb[36].mxu0 %vm473_vm3, %v211_v16  ;;  %4350 = vmatmul.mubr.msk.f32.gmra.mrb[36].mxu1 %vm473_vm3, %v355_v17  ;;  %v243_v16 = vld [vmem:[%s4590_s26 + $0x228] sm:$0xff] }
  0x61   : > { %4136 = vmatprep.mubr.msk.f32.mxu0 %vm473_vm3, %v212_v18  ;;  %4352 = vmatprep.mubr.msk.f32.mxu1 %vm473_vm3, %v356_v19  ;;  %v387_v17 = vld [vmem:[%s4590_s26 + $0x6a8] sm:$0xff]  ;;  %v244_v18 = vld [vmem:[%s4590_s26 + $0x230] sm:$0xff] }
  0x62   : > { %v388_v19 = vld [vmem:[%s4590_s26 + $0x6b0] sm:$0xff] }
  0x64   : > { %4137 = vmatmul.mubr.msk.f32.gmra.mrb[38].mxu0 %vm473_vm3, %v213_v20  ;;  %4353 = vmatmul.mubr.msk.f32.gmra.mrb[38].mxu1 %vm473_vm3, %v357_v21  ;;  %v245_v20 = vld [vmem:[%s4590_s26 + $0x238] sm:$0xff] }
  0x65   : > { %4139 = vmatprep.mubr.msk.f32.mxu0 %vm473_vm3, %v214_v22  ;;  %4355 = vmatprep.mubr.msk.f32.mxu1 %vm473_vm3, %v358_v23  ;;  %v389_v21 = vld [vmem:[%s4590_s26 + $0x6b8] sm:$0xff]  ;;  %v246_v22 = vld [vmem:[%s4590_s26 + $0x240] sm:$0xff] }
  0x66   : > { %v390_v23 = vld [vmem:[%s4590_s26 + $0x6c0] sm:$0xff] }
  0x68   : > { %4140 = vmatmul.mubr.msk.f32.gmra.mrb[40].mxu0 %vm473_vm3, %v215_v24  ;;  %4356 = vmatmul.mubr.msk.f32.gmra.mrb[40].mxu1 %vm473_vm3, %v359_v25  ;;  %v247_v24 = vld [vmem:[%s4590_s26 + $0x248] sm:$0xff] }
  0x69   : > { %4142 = vmatprep.mubr.msk.f32.mxu0 %vm473_vm3, %v216_v26  ;;  %4358 = vmatprep.mubr.msk.f32.mxu1 %vm473_vm3, %v360_v27  ;;  %v391_v25 = vld [vmem:[%s4590_s26 + $0x6c8] sm:$0xff]  ;;  %v248_v26 = vld [vmem:[%s4590_s26 + $0x250] sm:$0xff] }
  0x6a   : > { %v392_v27 = vld [vmem:[%s4590_s26 + $0x6d0] sm:$0xff] }
  0x6c   : > { %4143 = vmatmul.mubr.msk.f32.gmra.mrb[42].mxu0 %vm473_vm3, %v217_v28  ;;  %4359 = vmatmul.mubr.msk.f32.gmra.mrb[42].mxu1 %vm473_vm3, %v361_v29  ;;  %v249_v28 = vld [vmem:[%s4590_s26 + $0x258] sm:$0xff] }
  0x6d   : > { %4145 = vmatprep.mubr.msk.f32.mxu0 %vm473_vm3, %v218_v30  ;;  %4361 = vmatprep.mubr.msk.f32.mxu1 %vm473_vm3, %v362_v31  ;;  %v393_v29 = vld [vmem:[%s4590_s26 + $0x6d8] sm:$0xff]  ;;  %v250_v30 = vld [vmem:[%s4590_s26 + $0x260] sm:$0xff] }
  0x6e   : > { %v394_v31 = vld [vmem:[%s4590_s26 + $0x6e0] sm:$0xff] }
  0x70   : > { %4146 = vmatmul.mubr.msk.f32.gmra.mrb[44].mxu0 %vm473_vm3, %v219_v32  ;;  %4362 = vmatmul.mubr.msk.f32.gmra.mrb[44].mxu1 %vm473_vm3, %v363_v33  ;;  %v251_v32 = vld [vmem:[%s4590_s26 + $0x268] sm:$0xff] }
  0x71   : > { %4148 = vmatprep.mubr.msk.f32.mxu0 %vm473_vm3, %v220_v34  ;;  %4364 = vmatprep.mubr.msk.f32.mxu1 %vm473_vm3, %v364_v35  ;;  %v395_v33 = vld [vmem:[%s4590_s26 + $0x6e8] sm:$0xff]  ;;  %v252_v34 = vld [vmem:[%s4590_s26 + $0x270] sm:$0xff] }
  0x72   : > { %v396_v35 = vld [vmem:[%s4590_s26 + $0x6f0] sm:$0xff] }
  0x74   : > { %4149 = vmatmul.mubr.msk.f32.gmra.mrb[46].mxu0 %vm473_vm3, %v221_v36  ;;  %4365 = vmatmul.mubr.msk.f32.gmra.mrb[46].mxu1 %vm473_vm3, %v365_v37  ;;  %v253_v36 = vld [vmem:[%s4590_s26 + $0x278] sm:$0xff] }
  0x75   : > { %4151 = vmatprep.mubr.msk.f32.mxu0 %vm473_vm3, %v222_v38  ;;  %4367 = vmatprep.mubr.msk.f32.mxu1 %vm473_vm3, %v366_v39  ;;  %v397_v37 = vld [vmem:[%s4590_s26 + $0x6f8] sm:$0xff]  ;;  %v254_v38 = vld [vmem:[%s4590_s26 + $0x280] sm:$0xff] }
  0x76   : > { %v398_v39 = vld [vmem:[%s4590_s26 + $0x700] sm:$0xff] }
  0x78   : > { %4152 = vmatmul.mubr.msk.f32.gmra.mrb[48].mxu0 %vm473_vm3, %v223_v40  ;;  %4368 = vmatmul.mubr.msk.f32.gmra.mrb[48].mxu1 %vm473_vm3, %v367_v41  ;;  %v255_v40 = vld [vmem:[%s4590_s26 + $0x288] sm:$0xff] }
  0x79   : > { %4154 = vmatprep.mubr.msk.f32.mxu0 %vm473_vm3, %v224_v42  ;;  %4370 = vmatprep.mubr.msk.f32.mxu1 %vm473_vm3, %v368_v43  ;;  %v399_v41 = vld [vmem:[%s4590_s26 + $0x708] sm:$0xff]  ;;  %v256_v42 = vld [vmem:[%s4590_s26 + $0x290] sm:$0xff] }
  0x7a   : > { %v400_v43 = vld [vmem:[%s4590_s26 + $0x710] sm:$0xff] }
  0x7c   : > { %4155 = vmatmul.mubr.msk.f32.gmra.mrb[50].mxu0 %vm473_vm3, %v225_v44  ;;  %4371 = vmatmul.mubr.msk.f32.gmra.mrb[50].mxu1 %vm473_vm3, %v369_v45  ;;  %v257_v44 = vld [vmem:[%s4590_s26 + $0x298] sm:$0xff] }
  0x7d   : > { %4157 = vmatprep.mubr.msk.f32.mxu0 %vm473_vm3, %v226_v46  ;;  %4373 = vmatprep.mubr.msk.f32.mxu1 %vm473_vm3, %v370_v47  ;;  %v401_v45 = vld [vmem:[%s4590_s26 + $0x718] sm:$0xff]  ;;  %v258_v46 = vld [vmem:[%s4590_s26 + $0x2a0] sm:$0xff] }
  0x7e   : > { %v402_v47 = vld [vmem:[%s4590_s26 + $0x720] sm:$0xff] }
  0x80   : > { %4158 = vmatmul.mubr.msk.f32.gmra.mrb[52].mxu0 %vm473_vm3, %v227_v48  ;;  %4374 = vmatmul.mubr.msk.f32.gmra.mrb[52].mxu1 %vm473_vm3, %v371_v49  ;;  %v259_v48 = vld [vmem:[%s4590_s26 + $0x2a8] sm:$0xff] }
  0x81   : > { %4160 = vmatprep.mubr.msk.f32.mxu0 %vm473_vm3, %v228_v50  ;;  %4376 = vmatprep.mubr.msk.f32.mxu1 %vm473_vm3, %v372_v51  ;;  %v403_v49 = vld [vmem:[%s4590_s26 + $0x728] sm:$0xff]  ;;  %v260_v50 = vld [vmem:[%s4590_s26 + $0x2b0] sm:$0xff] }
  0x82   : > { %v404_v51 = vld [vmem:[%s4590_s26 + $0x730] sm:$0xff] }
  0x84   : > { %4161 = vmatmul.mubr.msk.f32.gmra.mrb[54].mxu0 %vm473_vm3, %v229_v52  ;;  %4377 = vmatmul.mubr.msk.f32.gmra.mrb[54].mxu1 %vm473_vm3, %v373_v53  ;;  %v261_v52 = vld [vmem:[%s4590_s26 + $0x2b8] sm:$0xff] }
  0x85   : > { %4163 = vmatprep.mubr.msk.f32.mxu0 %vm473_vm3, %v230_v54  ;;  %4379 = vmatprep.mubr.msk.f32.mxu1 %vm473_vm3, %v374_v55  ;;  %v405_v53 = vld [vmem:[%s4590_s26 + $0x738] sm:$0xff]  ;;  %v262_v54 = vld [vmem:[%s4590_s26 + $0x2c0] sm:$0xff] }
  0x86   : > { %v406_v55 = vld [vmem:[%s4590_s26 + $0x740] sm:$0xff] }
  0x88   : > { %4164 = vmatmul.mubr.msk.f32.gmra.mrb[56].mxu0 %vm473_vm3, %v231_v56  ;;  %4380 = vmatmul.mubr.msk.f32.gmra.mrb[56].mxu1 %vm473_vm3, %v375_v57  ;;  %v263_v56 = vld [vmem:[%s4590_s26 + $0x2c8] sm:$0xff] }
  0x89   : > { %4166 = vmatprep.mubr.msk.f32.mxu0 %vm473_vm3, %v232_v58  ;;  %4382 = vmatprep.mubr.msk.f32.mxu1 %vm473_vm3, %v376_v59  ;;  %v407_v57 = vld [vmem:[%s4590_s26 + $0x748] sm:$0xff]  ;;  %v264_v58 = vld [vmem:[%s4590_s26 + $0x2d0] sm:$0xff] }
  0x8a   : > { %v408_v59 = vld [vmem:[%s4590_s26 + $0x750] sm:$0xff] }
  0x8c   : > { %4167 = vmatmul.mubr.msk.f32.gmra.mrb[58].mxu0 %vm473_vm3, %v233_v60  ;;  %4383 = vmatmul.mubr.msk.f32.gmra.mrb[58].mxu1 %vm473_vm3, %v377_v61  ;;  %v265_v60 = vld [vmem:[%s4590_s26 + $0x2d8] sm:$0xff] }
  0x8d   : > { %4169 = vmatprep.mubr.msk.f32.mxu0 %vm473_vm3, %v234_v62  ;;  %4385 = vmatprep.mubr.msk.f32.mxu1 %vm473_vm3, %v378_v63  ;;  %v409_v61 = vld [vmem:[%s4590_s26 + $0x758] sm:$0xff]  ;;  %v266_v62 = vld [vmem:[%s4590_s26 + $0x2e0] sm:$0xff] }
  0x8e   : > { %v410_v63 = vld [vmem:[%s4590_s26 + $0x760] sm:$0xff] }
  0x90   : > { %4170 = vmatmul.mubr.msk.f32.gmra.mrb[60].mxu0 %vm473_vm3, %v235_v0  ;;  %4386 = vmatmul.mubr.msk.f32.gmra.mrb[60].mxu1 %vm473_vm3, %v379_v1  ;;  %v267_v0 = vld [vmem:[%s4590_s26 + $0x2e8] sm:$0xff] }
  0x91   : > { %4172 = vmatprep.mubr.msk.f32.mxu0 %vm473_vm3, %v236_v2  ;;  %4388 = vmatprep.mubr.msk.f32.mxu1 %vm473_vm3, %v380_v3  ;;  %v411_v1 = vld [vmem:[%s4590_s26 + $0x768] sm:$0xff]  ;;  %v268_v2 = vld [vmem:[%s4590_s26 + $0x2f0] sm:$0xff] }
  0x92   : > { %v412_v3 = vld [vmem:[%s4590_s26 + $0x770] sm:$0xff] }
  0x94   : > { %4173 = vmatmul.mubr.msk.f32.gmra.mrb[62].mxu0 %vm473_vm3, %v237_v4  ;;  %4389 = vmatmul.mubr.msk.f32.gmra.mrb[62].mxu1 %vm473_vm3, %v381_v5  ;;  %v269_v4 = vld [vmem:[%s4590_s26 + $0x2f8] sm:$0xff] }
  0x95   : > { %4175 = vmatprep.mubr.msk.f32.mxu0 %vm473_vm3, %v238_v6  ;;  %4391 = vmatprep.mubr.msk.f32.mxu1 %vm473_vm3, %v382_v7  ;;  %v413_v5 = vld [vmem:[%s4590_s26 + $0x778] sm:$0xff]  ;;  %v270_v6 = vld [vmem:[%s4590_s26 + $0x300] sm:$0xff] }
  0x96   : > { %v414_v7 = vld [vmem:[%s4590_s26 + $0x780] sm:$0xff] }
  0x98   : > { %4176 = vmatmul.mubr.msk.f32.gmra.mrb[64].mxu0 %vm473_vm3, %v239_v8  ;;  %4392 = vmatmul.mubr.msk.f32.gmra.mrb[64].mxu1 %vm473_vm3, %v383_v9  ;;  %v271_v8 = vld [vmem:[%s4590_s26 + $0x308] sm:$0xff] }
  0x99   : > { %4178 = vmatprep.mubr.msk.f32.mxu0 %vm473_vm3, %v240_v10  ;;  %4394 = vmatprep.mubr.msk.f32.mxu1 %vm473_vm3, %v384_v11  ;;  %v415_v9 = vld [vmem:[%s4590_s26 + $0x788] sm:$0xff]  ;;  %v272_v10 = vld [vmem:[%s4590_s26 + $0x310] sm:$0xff] }
  0x9a   : > { %v416_v11 = vld [vmem:[%s4590_s26 + $0x790] sm:$0xff] }
  0x9c   : > { %4179 = vmatmul.mubr.msk.f32.gmra.mrb[66].mxu0 %vm473_vm3, %v241_v12  ;;  %4395 = vmatmul.mubr.msk.f32.gmra.mrb[66].mxu1 %vm473_vm3, %v385_v13  ;;  %v273_v12 = vld [vmem:[%s4590_s26 + $0x318] sm:$0xff] }
  0x9d   : > { %4181 = vmatprep.mubr.msk.f32.mxu0 %vm473_vm3, %v242_v14  ;;  %4397 = vmatprep.mubr.msk.f32.mxu1 %vm473_vm3, %v386_v15  ;;  %v417_v13 = vld [vmem:[%s4590_s26 + $0x798] sm:$0xff]  ;;  %v274_v14 = vld [vmem:[%s4590_s26 + $0x320] sm:$0xff] }
  0x9e   : > { %v418_v15 = vld [vmem:[%s4590_s26 + $0x7a0] sm:$0xff] }
  0xa0   : > { %4182 = vmatmul.mubr.msk.f32.gmra.mrb[68].mxu0 %vm473_vm3, %v243_v16  ;;  %4398 = vmatmul.mubr.msk.f32.gmra.mrb[68].mxu1 %vm473_vm3, %v387_v17  ;;  %v275_v16 = vld [vmem:[%s4590_s26 + $0x328] sm:$0xff] }
  0xa1   : > { %4184 = vmatprep.mubr.msk.f32.mxu0 %vm473_vm3, %v244_v18  ;;  %4400 = vmatprep.mubr.msk.f32.mxu1 %vm473_vm3, %v388_v19  ;;  %v419_v17 = vld [vmem:[%s4590_s26 + $0x7a8] sm:$0xff]  ;;  %v276_v18 = vld [vmem:[%s4590_s26 + $0x330] sm:$0xff] }
  0xa2   : > { %v420_v19 = vld [vmem:[%s4590_s26 + $0x7b0] sm:$0xff] }
  0xa4   : > { %4185 = vmatmul.mubr.msk.f32.gmra.mrb[70].mxu0 %vm473_vm3, %v245_v20  ;;  %4401 = vmatmul.mubr.msk.f32.gmra.mrb[70].mxu1 %vm473_vm3, %v389_v21  ;;  %v277_v20 = vld [vmem:[%s4590_s26 + $0x338] sm:$0xff] }
  0xa5   : > { %4187 = vmatprep.mubr.msk.f32.mxu0 %vm473_vm3, %v246_v22  ;;  %4403 = vmatprep.mubr.msk.f32.mxu1 %vm473_vm3, %v390_v23  ;;  %v421_v21 = vld [vmem:[%s4590_s26 + $0x7b8] sm:$0xff]  ;;  %v278_v22 = vld [vmem:[%s4590_s26 + $0x340] sm:$0xff] }
  0xa6   : > { %v422_v23 = vld [vmem:[%s4590_s26 + $0x7c0] sm:$0xff] }
  0xa8   : > { %4188 = vmatmul.mubr.msk.f32.gmra.mrb[72].mxu0 %vm473_vm3, %v247_v24  ;;  %4404 = vmatmul.mubr.msk.f32.gmra.mrb[72].mxu1 %vm473_vm3, %v391_v25  ;;  %v279_v24 = vld [vmem:[%s4590_s26 + $0x348] sm:$0xff] }
  0xa9   : > { %4190 = vmatprep.mubr.msk.f32.mxu0 %vm473_vm3, %v248_v26  ;;  %4406 = vmatprep.mubr.msk.f32.mxu1 %vm473_vm3, %v392_v27  ;;  %v423_v25 = vld [vmem:[%s4590_s26 + $0x7c8] sm:$0xff]  ;;  %v280_v26 = vld [vmem:[%s4590_s26 + $0x350] sm:$0xff] }
  0xaa   : > { %v424_v27 = vld [vmem:[%s4590_s26 + $0x7d0] sm:$0xff] }
  0xac   : > { %4191 = vmatmul.mubr.msk.f32.gmra.mrb[74].mxu0 %vm473_vm3, %v249_v28  ;;  %4407 = vmatmul.mubr.msk.f32.gmra.mrb[74].mxu1 %vm473_vm3, %v393_v29  ;;  %v281_v28 = vld [vmem:[%s4590_s26 + $0x358] sm:$0xff] }
  0xad   : > { %4193 = vmatprep.mubr.msk.f32.mxu0 %vm473_vm3, %v250_v30  ;;  %4409 = vmatprep.mubr.msk.f32.mxu1 %vm473_vm3, %v394_v31  ;;  %v425_v29 = vld [vmem:[%s4590_s26 + $0x7d8] sm:$0xff]  ;;  %v282_v30 = vld [vmem:[%s4590_s26 + $0x360] sm:$0xff] }
  0xae   : > { %v426_v31 = vld [vmem:[%s4590_s26 + $0x7e0] sm:$0xff] }
  0xb0   : > { %4194 = vmatmul.mubr.msk.f32.gmra.mrb[76].mxu0 %vm473_vm3, %v251_v32  ;;  %4410 = vmatmul.mubr.msk.f32.gmra.mrb[76].mxu1 %vm473_vm3, %v395_v33 }
  0xb1   : > { %4196 = vmatprep.mubr.msk.f32.mxu0 %vm473_vm3, %v252_v34  ;;  %4412 = vmatprep.mubr.msk.f32.mxu1 %vm473_vm3, %v396_v35 }
  0xb4   : > { %4197 = vmatmul.mubr.msk.f32.gmra.mrb[78].mxu0 %vm473_vm3, %v253_v36  ;;  %4413 = vmatmul.mubr.msk.f32.gmra.mrb[78].mxu1 %vm473_vm3, %v397_v37  ;;  %v283_v36 = vld [vmem:[%s4590_s26 + $0x368] sm:$0xff] }
  0xb5   : > { %4199 = vmatprep.mubr.msk.f32.mxu0 %vm473_vm3, %v254_v38  ;;  %4415 = vmatprep.mubr.msk.f32.mxu1 %vm473_vm3, %v398_v39  ;;  %v427_v37 = vld [vmem:[%s4590_s26 + $0x7e8] sm:$0xff]  ;;  %v284_v38 = vld [vmem:[%s4590_s26 + $0x370] sm:$0xff] }
  0xb6   : > { %v428_v39 = vld [vmem:[%s4590_s26 + $0x7f0] sm:$0xff] }
  0xb8   : > { %4200 = vmatmul.mubr.msk.f32.gmra.mrb[80].mxu0 %vm473_vm3, %v255_v40  ;;  %4416 = vmatmul.mubr.msk.f32.gmra.mrb[80].mxu1 %vm473_vm3, %v399_v41 }
  0xb9   : > { %4202 = vmatprep.mubr.msk.f32.mxu0 %vm473_vm3, %v256_v42  ;;  %4418 = vmatprep.mubr.msk.f32.mxu1 %vm473_vm3, %v400_v43 }
  0xbc   : > { %4203 = vmatmul.mubr.msk.f32.gmra.mrb[82].mxu0 %vm473_vm3, %v257_v44  ;;  %4419 = vmatmul.mubr.msk.f32.gmra.mrb[82].mxu1 %vm473_vm3, %v401_v45  ;;  %v285_v44 = vld [vmem:[%s4590_s26 + $0x378] sm:$0xff] }
  0xbd   : > { %4205 = vmatprep.mubr.msk.f32.mxu0 %vm473_vm3, %v258_v46  ;;  %4421 = vmatprep.mubr.msk.f32.mxu1 %vm473_vm3, %v402_v47  ;;  %v429_v45 = vld [vmem:[%s4590_s26 + $0x7f8] sm:$0xff]  ;;  %v286_v46 = vld [vmem:[%s4590_s26 + $0x380] sm:$0xff] }
  0xbe   : > { %v430_v47 = vld [vmem:[%s4590_s26 + $0x800] sm:$0xff] }
  0xc0   : > { %4206 = vmatmul.mubr.msk.f32.gmra.mrb[84].mxu0 %vm473_vm3, %v259_v48  ;;  %4422 = vmatmul.mubr.msk.f32.gmra.mrb[84].mxu1 %vm473_vm3, %v403_v49 }
  0xc1   : > { %4208 = vmatprep.mubr.msk.f32.mxu0 %vm473_vm3, %v260_v50  ;;  %4424 = vmatprep.mubr.msk.f32.mxu1 %vm473_vm3, %v404_v51 }
  0xc4   : > { %4209 = vmatmul.mubr.msk.f32.gmra.mrb[86].mxu0 %vm473_vm3, %v261_v52  ;;  %4425 = vmatmul.mubr.msk.f32.gmra.mrb[86].mxu1 %vm473_vm3, %v405_v53  ;;  %v287_v52 = vld [vmem:[%s4590_s26 + $0x388] sm:$0xff] }
  0xc5   : > { %4211 = vmatprep.mubr.msk.f32.mxu0 %vm473_vm3, %v262_v54  ;;  %4427 = vmatprep.mubr.msk.f32.mxu1 %vm473_vm3, %v406_v55  ;;  %v431_v53 = vld [vmem:[%s4590_s26 + $0x808] sm:$0xff]  ;;  %v288_v54 = vld [vmem:[%s4590_s26 + $0x390] sm:$0xff] }
  0xc6   : > { %v432_v55 = vld [vmem:[%s4590_s26 + $0x810] sm:$0xff] }
  0xc8   : > { %4212 = vmatmul.mubr.msk.f32.gmra.mrb[88].mxu0 %vm473_vm3, %v263_v56  ;;  %4428 = vmatmul.mubr.msk.f32.gmra.mrb[88].mxu1 %vm473_vm3, %v407_v57 }
  0xc9   : > { %4214 = vmatprep.mubr.msk.f32.mxu0 %vm473_vm3, %v264_v58  ;;  %4430 = vmatprep.mubr.msk.f32.mxu1 %vm473_vm3, %v408_v59 }
  0xcc   : > { %4215 = vmatmul.mubr.msk.f32.gmra.mrb[90].mxu0 %vm473_vm3, %v265_v60  ;;  %4431 = vmatmul.mubr.msk.f32.gmra.mrb[90].mxu1 %vm473_vm3, %v409_v61  ;;  %v289_v60 = vld [vmem:[%s4590_s26 + $0x398] sm:$0xff] }
  0xcd   : > { %4217 = vmatprep.mubr.msk.f32.mxu0 %vm473_vm3, %v266_v62  ;;  %4433 = vmatprep.mubr.msk.f32.mxu1 %vm473_vm3, %v410_v63  ;;  %v433_v61 = vld [vmem:[%s4590_s26 + $0x818] sm:$0xff]  ;;  %v290_v62 = vld [vmem:[%s4590_s26 + $0x3a0] sm:$0xff] }
  0xce   : > { %v434_v63 = vld [vmem:[%s4590_s26 + $0x820] sm:$0xff] }
  0xd0   : > { %4218 = vmatmul.mubr.msk.f32.gmra.mrb[92].mxu0 %vm473_vm3, %v267_v0  ;;  %4434 = vmatmul.mubr.msk.f32.gmra.mrb[92].mxu1 %vm473_vm3, %v411_v1 }
  0xd1   : > { %4220 = vmatprep.mubr.msk.f32.mxu0 %vm473_vm3, %v268_v2  ;;  %4436 = vmatprep.mubr.msk.f32.mxu1 %vm473_vm3, %v412_v3 }
  0xd4   : > { %4221 = vmatmul.mubr.msk.f32.gmra.mrb[94].mxu0 %vm473_vm3, %v269_v4  ;;  %4437 = vmatmul.mubr.msk.f32.gmra.mrb[94].mxu1 %vm473_vm3, %v413_v5  ;;  %v291_v4 = vld [vmem:[%s4590_s26 + $0x3a8] sm:$0xff] }
  0xd5   : > { %4223 = vmatprep.mubr.msk.f32.mxu0 %vm473_vm3, %v270_v6  ;;  %4439 = vmatprep.mubr.msk.f32.mxu1 %vm473_vm3, %v414_v7  ;;  %v435_v5 = vld [vmem:[%s4590_s26 + $0x828] sm:$0xff]  ;;  %v292_v6 = vld [vmem:[%s4590_s26 + $0x3b0] sm:$0xff] }
  0xd6   : > { %v436_v7 = vld [vmem:[%s4590_s26 + $0x830] sm:$0xff] }
  0xd8   : > { %4224 = vmatmul.mubr.msk.f32.gmra.mrb[96].mxu0 %vm473_vm3, %v271_v8  ;;  %4440 = vmatmul.mubr.msk.f32.gmra.mrb[96].mxu1 %vm473_vm3, %v415_v9 }
  0xd9   : > { %4226 = vmatprep.mubr.msk.f32.mxu0 %vm473_vm3, %v272_v10  ;;  %4442 = vmatprep.mubr.msk.f32.mxu1 %vm473_vm3, %v416_v11 }
  0xdc   : > { %4227 = vmatmul.mubr.msk.f32.gmra.mrb[98].mxu0 %vm473_vm3, %v273_v12  ;;  %4443 = vmatmul.mubr.msk.f32.gmra.mrb[98].mxu1 %vm473_vm3, %v417_v13  ;;  %v293_v12 = vld [vmem:[%s4590_s26 + $0x3b8] sm:$0xff] }
  0xdd   : > { %4229 = vmatprep.mubr.msk.f32.mxu0 %vm473_vm3, %v274_v14  ;;  %4445 = vmatprep.mubr.msk.f32.mxu1 %vm473_vm3, %v418_v15  ;;  %v437_v13 = vld [vmem:[%s4590_s26 + $0x838] sm:$0xff]  ;;  %v294_v14 = vld [vmem:[%s4590_s26 + $0x3c0] sm:$0xff] }
  0xde   : > { %v438_v15 = vld [vmem:[%s4590_s26 + $0x840] sm:$0xff] }
  0xe0   : > { %4230 = vmatmul.mubr.msk.f32.gmra.mrb[100].mxu0 %vm473_vm3, %v275_v16  ;;  %4446 = vmatmul.mubr.msk.f32.gmra.mrb[100].mxu1 %vm473_vm3, %v419_v17 }
  0xe1   : > { %4232 = vmatprep.mubr.msk.f32.mxu0 %vm473_vm3, %v276_v18  ;;  %4448 = vmatprep.mubr.msk.f32.mxu1 %vm473_vm3, %v420_v19 }
  0xe4   : > { %4233 = vmatmul.mubr.msk.f32.gmra.mrb[102].mxu0 %vm473_vm3, %v277_v20  ;;  %4449 = vmatmul.mubr.msk.f32.gmra.mrb[102].mxu1 %vm473_vm3, %v421_v21  ;;  %v295_v20 = vld [vmem:[%s4590_s26 + $0x3c8] sm:$0xff] }
  0xe5   : > { %4235 = vmatprep.mubr.msk.f32.mxu0 %vm473_vm3, %v278_v22  ;;  %4451 = vmatprep.mubr.msk.f32.mxu1 %vm473_vm3, %v422_v23  ;;  %v439_v21 = vld [vmem:[%s4590_s26 + $0x848] sm:$0xff]  ;;  %v296_v22 = vld [vmem:[%s4590_s26 + $0x3d0] sm:$0xff] }
  0xe6   : > { %v440_v23 = vld [vmem:[%s4590_s26 + $0x850] sm:$0xff] }
  0xe8   : > { %4236 = vmatmul.mubr.msk.f32.gmra.mrb[104].mxu0 %vm473_vm3, %v279_v24  ;;  %4452 = vmatmul.mubr.msk.f32.gmra.mrb[104].mxu1 %vm473_vm3, %v423_v25 }
  0xe9   : > { %4238 = vmatprep.mubr.msk.f32.mxu0 %vm473_vm3, %v280_v26  ;;  %4454 = vmatprep.mubr.msk.f32.mxu1 %vm473_vm3, %v424_v27 }
  0xeb   : > { %v5024_v32 = vpop.f32.mrb[0].mxu0  ;;  %v5026_v33 = vpop.f32.mrb[0].mxu1 }
  0xec   : > { %v5028_v34 = vpop.f32.mrb[1].mxu0  ;;  %4239 = vmatmul.mubr.msk.f32.gmra.mrb[106].mxu0 %vm473_vm3, %v281_v28  ;;  %v5031_v35 = vpop.f32.mrb[1].mxu1  ;;  %4455 = vmatmul.mubr.msk.f32.gmra.mrb[106].mxu1 %vm473_vm3, %v425_v29  ;;  %v297_v28 = vld [vmem:[%s4590_s26 + $0x3d8] sm:$0xff] }
  0xed   : > { %4241 = vmatprep.mubr.msk.f32.mxu0 %vm473_vm3, %v282_v30  ;;  %4457 = vmatprep.mubr.msk.f32.mxu1 %vm473_vm3, %v426_v31  ;;  %v441_v29 = vld [vmem:[%s4590_s26 + $0x858] sm:$0xff]  ;;  %v298_v30 = vld [vmem:[%s4590_s26 + $0x3e0] sm:$0xff] }
  0xee   : > { %v442_v31 = vld [vmem:[%s4590_s26 + $0x860] sm:$0xff] }
  0xef   : > { %v5040_v40 = vpop.f32.mrb[2].mxu0  ;;  %v5042_v41 = vpop.f32.mrb[2].mxu1 }
  0xf0   : > { %v5044_v42 = vpop.f32.mrb[3].mxu0  ;;  %4242 = vmatmul.mubr.msk.f32.gmra.mrb[108].mxu0 %vm473_vm3, %v283_v36  ;;  %v5047_v43 = vpop.f32.mrb[3].mxu1  ;;  %4458 = vmatmul.mubr.msk.f32.gmra.mrb[108].mxu1 %vm473_vm3, %v427_v37 }
  0xf1   : > { %4244 = vmatprep.mubr.msk.f32.mxu0 %vm473_vm3, %v284_v38  ;;  %4460 = vmatprep.mubr.msk.f32.mxu1 %vm473_vm3, %v428_v39 }
  0xf3   : > { %v5056_v48 = vpop.f32.mrb[4].mxu0  ;;  %v5058_v49 = vpop.f32.mrb[4].mxu1 }
  0xf4   : > { %v5060_v50 = vpop.f32.mrb[5].mxu0  ;;  %4245 = vmatmul.mubr.msk.f32.gmra.mrb[110].mxu0 %vm473_vm3, %v285_v44  ;;  %v5063_v51 = vpop.f32.mrb[5].mxu1  ;;  %4461 = vmatmul.mubr.msk.f32.gmra.mrb[110].mxu1 %vm473_vm3, %v429_v45  ;;  %v299_v44 = vld [vmem:[%s4590_s26 + $0x3e8] sm:$0xff] }
  0xf5   : > { %4247 = vmatprep.mubr.msk.f32.mxu0 %vm473_vm3, %v286_v46  ;;  %4463 = vmatprep.mubr.msk.f32.mxu1 %vm473_vm3, %v430_v47  ;;  %v443_v45 = vld [vmem:[%s4590_s26 + $0x868] sm:$0xff]  ;;  %v300_v46 = vld [vmem:[%s4590_s26 + $0x3f0] sm:$0xff] }
  0xf6   : > { %v444_v47 = vld [vmem:[%s4590_s26 + $0x870] sm:$0xff] }
  0xf7   : > { %v5072_v56 = vpop.f32.mrb[6].mxu0  ;;  %v5074_v57 = vpop.f32.mrb[6].mxu1 }
  0xf8   : > { %v5076_v58 = vpop.f32.mrb[7].mxu0  ;;  %4248 = vmatmul.mubr.msk.f32.gmra.mrb[112].mxu0 %vm473_vm3, %v287_v52  ;;  %v5079_v59 = vpop.f32.mrb[7].mxu1  ;;  %4464 = vmatmul.mubr.msk.f32.gmra.mrb[112].mxu1 %vm473_vm3, %v431_v53 }
  0xf9   : > { %4250 = vmatprep.mubr.msk.f32.mxu0 %vm473_vm3, %v288_v54  ;;  %4466 = vmatprep.mubr.msk.f32.mxu1 %vm473_vm3, %v432_v55 }
  0xfb   : > { %v5088_v0 = vpop.f32.mrb[8].mxu0  ;;  %v5090_v1 = vpop.f32.mrb[8].mxu1 }
  0xfc   : > { %v5092_v2 = vpop.f32.mrb[9].mxu0  ;;  %4251 = vmatmul.mubr.msk.f32.gmra.mrb[114].mxu0 %vm473_vm3, %v289_v60  ;;  %v5095_v3 = vpop.f32.mrb[9].mxu1  ;;  %4467 = vmatmul.mubr.msk.f32.gmra.mrb[114].mxu1 %vm473_vm3, %v433_v61  ;;  %v301_v60 = vld [vmem:[%s4590_s26 + $0x3f8] sm:$0xff] }
  0xfd   : > { %4253 = vmatprep.mubr.msk.f32.mxu0 %vm473_vm3, %v290_v62  ;;  %4469 = vmatprep.mubr.msk.f32.mxu1 %vm473_vm3, %v434_v63  ;;  %v445_v61 = vld [vmem:[%s4590_s26 + $0x878] sm:$0xff]  ;;  %v302_v62 = vld [vmem:[%s4590_s26 + $0x400] sm:$0xff] }
  0xfe   : > { %v446_v63 = vld [vmem:[%s4590_s26 + $0x880] sm:$0xff] }
  0xff   : > { %v5104_v8 = vpop.f32.mrb[10].mxu0  ;;  %v5106_v9 = vpop.f32.mrb[10].mxu1 }
 0x100   : > { %v5108_v10 = vpop.f32.mrb[11].mxu0  ;;  %4254 = vmatmul.mubr.msk.f32.gmra.mrb[116].mxu0 %vm473_vm3, %v291_v4  ;;  %v5111_v11 = vpop.f32.mrb[11].mxu1  ;;  %4470 = vmatmul.mubr.msk.f32.gmra.mrb[116].mxu1 %vm473_vm3, %v435_v5 }
 0x101   : > { %4256 = vmatprep.mubr.msk.f32.mxu0 %vm473_vm3, %v292_v6  ;;  %4472 = vmatprep.mubr.msk.f32.mxu1 %vm473_vm3, %v436_v7 }
 0x103   : > { %v5120_v16 = vpop.f32.mrb[12].mxu0  ;;  %v5122_v17 = vpop.f32.mrb[12].mxu1 }
 0x104   : > { %v5124_v18 = vpop.f32.mrb[13].mxu0  ;;  %4257 = vmatmul.mubr.msk.f32.gmra.mrb[118].mxu0 %vm473_vm3, %v293_v12  ;;  %v5127_v19 = vpop.f32.mrb[13].mxu1  ;;  %4473 = vmatmul.mubr.msk.f32.gmra.mrb[118].mxu1 %vm473_vm3, %v437_v13  ;;  %v303_v12 = vld [vmem:[%s4590_s26 + $0x408] sm:$0xff] }
 0x105   : > { %4259 = vmatprep.mubr.msk.f32.mxu0 %vm473_vm3, %v294_v14  ;;  %4475 = vmatprep.mubr.msk.f32.mxu1 %vm473_vm3, %v438_v15  ;;  %v447_v13 = vld [vmem:[%s4590_s26 + $0x888] sm:$0xff]  ;;  %v304_v14 = vld [vmem:[%s4590_s26 + $0x410] sm:$0xff] }
 0x106   : > { %v448_v15 = vld [vmem:[%s4590_s26 + $0x890] sm:$0xff] }
 0x107   : > { %v5136_v24 = vpop.f32.mrb[14].mxu0  ;;  %v5138_v25 = vpop.f32.mrb[14].mxu1 }
 0x108   : > { %v5140_v26 = vpop.f32.mrb[15].mxu0  ;;  %4260 = vmatmul.mubr.msk.f32.gmra.mrb[120].mxu0 %vm473_vm3, %v295_v20  ;;  %v5143_v27 = vpop.f32.mrb[15].mxu1  ;;  %4476 = vmatmul.mubr.msk.f32.gmra.mrb[120].mxu1 %vm473_vm3, %v439_v21 }
 0x109   : > { %4262 = vmatprep.mubr.msk.f32.mxu0 %vm473_vm3, %v296_v22  ;;  %4478 = vmatprep.mubr.msk.f32.mxu1 %vm473_vm3, %v440_v23 }
 0x10b   : > { %v5152_v36 = vpop.f32.mrb[16].mxu0  ;;  %v5154_v37 = vpop.f32.mrb[16].mxu1 }
 0x10c   : > { %v5156_v38 = vpop.f32.mrb[17].mxu0  ;;  %4263 = vmatmul.mubr.msk.f32.gmra.mrb[122].mxu0 %vm473_vm3, %v297_v28  ;;  %v5159_v39 = vpop.f32.mrb[17].mxu1  ;;  %4479 = vmatmul.mubr.msk.f32.gmra.mrb[122].mxu1 %vm473_vm3, %v441_v29  ;;  %v305_v28 = vld [vmem:[%s4590_s26 + $0x418] sm:$0xff] }
 0x10d   : > { %4265 = vmatprep.mubr.msk.f32.mxu0 %vm473_vm3, %v298_v30  ;;  %4481 = vmatprep.mubr.msk.f32.mxu1 %vm473_vm3, %v442_v31  ;;  %v449_v29 = vld [vmem:[%s4590_s26 + $0x898] sm:$0xff]  ;;  %v306_v30 = vld [vmem:[%s4590_s26 + $0x420] sm:$0xff] }
 0x10e   : > { %v450_v31 = vld [vmem:[%s4590_s26 + $0x8a0] sm:$0xff] }
 0x10f   : > { %v5168_v52 = vpop.f32.mrb[18].mxu0  ;;  %v5170_v53 = vpop.f32.mrb[18].mxu1 }
 0x110   : > { %v5172_v54 = vpop.f32.mrb[19].mxu0  ;;  %4266 = vmatmul.mubr.msk.f32.gmra.mrb[124].mxu0 %vm473_vm3, %v299_v44  ;;  %v5175_v55 = vpop.f32.mrb[19].mxu1  ;;  %4482 = vmatmul.mubr.msk.f32.gmra.mrb[124].mxu1 %vm473_vm3, %v443_v45 }
 0x111   : > { %4268 = vmatprep.mubr.msk.f32.mxu0 %vm473_vm3, %v300_v46  ;;  %4484 = vmatprep.mubr.msk.f32.mxu1 %vm473_vm3, %v444_v47 }
 0x113   : > { %v5184_v4 = vpop.f32.mrb[20].mxu0  ;;  %v5186_v5 = vpop.f32.mrb[20].mxu1 }
 0x114   : > { %v5188_v6 = vpop.f32.mrb[21].mxu0  ;;  %4269 = vmatmul.mubr.msk.f32.gmra.mrb[126].mxu0 %vm473_vm3, %v301_v60  ;;  %v5191_v7 = vpop.f32.mrb[21].mxu1  ;;  %4485 = vmatmul.mubr.msk.f32.gmra.mrb[126].mxu1 %vm473_vm3, %v445_v61  ;;  %v307_v60 = vld [vmem:[%s4590_s26 + $0x428] sm:$0xff] }
 0x115   : > { %4271 = vmatprep.mubr.msk.f32.mxu0 %vm473_vm3, %v302_v62  ;;  %4487 = vmatprep.mubr.msk.f32.mxu1 %vm473_vm3, %v446_v63  ;;  %v451_v61 = vld [vmem:[%s4590_s26 + $0x8a8] sm:$0xff]  ;;  %v308_v62 = vld [vmem:[%s4590_s26 + $0x430] sm:$0xff] }
 0x116   : > { %v452_v63 = vld [vmem:[%s4590_s26 + $0x8b0] sm:$0xff] }
 0x117   : > { %v5200_v20 = vpop.f32.mrb[22].mxu0  ;;  %v5202_v21 = vpop.f32.mrb[22].mxu1 }
 0x118   : > { %v5204_v22 = vpop.f32.mrb[23].mxu0  ;;  %4272 = vmatmul.mubr.msk.f32.gmra.mrb[128].mxu0 %vm473_vm3, %v303_v12  ;;  %v5207_v23 = vpop.f32.mrb[23].mxu1  ;;  %4488 = vmatmul.mubr.msk.f32.gmra.mrb[128].mxu1 %vm473_vm3, %v447_v13 }
 0x119   : > { %4274 = vmatprep.mubr.msk.f32.mxu0 %vm473_vm3, %v304_v14  ;;  %4490 = vmatprep.mubr.msk.f32.mxu1 %vm473_vm3, %v448_v15 }
 0x11b   : > { %v5216_v44 = vpop.f32.mrb[24].mxu0  ;;  %v5218_v45 = vpop.f32.mrb[24].mxu1 }
 0x11c   : > { %v5220_v46 = vpop.f32.mrb[25].mxu0  ;;  %4275 = vmatmul.mubr.msk.f32.gmra.mrb[130].mxu0 %vm473_vm3, %v305_v28  ;;  %v5223_v47 = vpop.f32.mrb[25].mxu1  ;;  %4491 = vmatmul.mubr.msk.f32.gmra.mrb[130].mxu1 %vm473_vm3, %v449_v29  ;;  %v309_v28 = vld [vmem:[%s4590_s26 + $0x438] sm:$0xff] }
 0x11d   : > { %4277 = vmatprep.mubr.msk.f32.mxu0 %vm473_vm3, %v306_v30  ;;  %4493 = vmatprep.mubr.msk.f32.mxu1 %vm473_vm3, %v450_v31  ;;  %v453_v29 = vld [vmem:[%s4590_s26 + $0x8b8] sm:$0xff]  ;;  %v310_v30 = vld [vmem:[%s4590_s26 + $0x440] sm:$0xff] }
 0x11e   : > { %v454_v31 = vld [vmem:[%s4590_s26 + $0x8c0] sm:$0xff] }
 0x11f   : > { %v5232_v12 = vpop.f32.mrb[26].mxu0  ;;  %v5234_v13 = vpop.f32.mrb[26].mxu1 }
 0x120   : > { %6842 = vst [vmem:[#allocation2_spill] sm:$0xff] %v5232_v12  ;;  %6843 = vst [vmem:[#allocation3_spill] sm:$0xff] %v5234_v13  ;;  %v5236_v14 = vpop.f32.mrb[27].mxu0  ;;  %4278 = vmatmul.mubr.msk.f32.gmra.mrb[132].mxu0 %vm473_vm3, %v307_v60  ;;  %v5239_v15 = vpop.f32.mrb[27].mxu1  ;;  %4494 = vmatmul.mubr.msk.f32.gmra.mrb[132].mxu1 %vm473_vm3, %v451_v61 }
 0x121   : > { %6844 = vst [vmem:[#allocation4_spill] sm:$0xff] %v5236_v14  ;;  %6845 = vst [vmem:[#allocation5_spill] sm:$0xff] %v5239_v15  ;;  %4280 = vmatprep.mubr.msk.f32.mxu0 %vm473_vm3, %v308_v62  ;;  %4496 = vmatprep.mubr.msk.f32.mxu1 %vm473_vm3, %v452_v63  ;;  %v311_v62 = vld [vmem:[%s4590_s26 + $0x448] sm:$0xff] }
 0x122   : > { %v455_v63 = vld [vmem:[%s4590_s26 + $0x8c8] sm:$0xff] }
 0x123   : > { %v5248_v13 = vpop.f32.mrb[28].mxu0  ;;  %v5250_v14 = vpop.f32.mrb[28].mxu1 }
 0x124   : > { %6846 = vst [vmem:[#allocation6_spill] sm:$0xff] %v5248_v13  ;;  %6847 = vst [vmem:[#allocation7_spill] sm:$0xff] %v5250_v14  ;;  %v5252_v60 = vpop.f32.mrb[29].mxu0  ;;  %4281 = vmatmul.mubr.msk.f32.gmra.mrb[134].mxu0 %vm473_vm3, %v309_v28  ;;  %v5255_v61 = vpop.f32.mrb[29].mxu1  ;;  %4497 = vmatmul.mubr.msk.f32.gmra.mrb[134].mxu1 %vm473_vm3, %v453_v29  ;;  %v312_v13 = vld [vmem:[%s4590_s26 + $0x450] sm:$0xff] }
 0x125   : > { %6848 = vst [vmem:[#allocation8_spill] sm:$0xff] %v5252_v60  ;;  %6849 = vst [vmem:[#allocation9_spill] sm:$0xff] %v5255_v61  ;;  %4283 = vmatprep.mubr.msk.f32.mxu0 %vm473_vm3, %v310_v30  ;;  %4499 = vmatprep.mubr.msk.f32.mxu1 %vm473_vm3, %v454_v31  ;;  %v456_v14 = vld [vmem:[%s4590_s26 + $0x8d0] sm:$0xff]  ;;  %v313_v30 = vld [vmem:[%s4590_s26 + $0x458] sm:$0xff] }
 0x126   : > { %v457_v31 = vld [vmem:[%s4590_s26 + $0x8d8] sm:$0xff] }
 0x127   : > { %v5264_v15 = vpop.f32.mrb[30].mxu0  ;;  %v5266_v60 = vpop.f32.mrb[30].mxu1 }
 0x128   : > { %6850 = vst [vmem:[#allocation10_spill] sm:$0xff] %v5264_v15  ;;  %6851 = vst [vmem:[#allocation11_spill] sm:$0xff] %v5266_v60  ;;  %v5268_v28 = vpop.f32.mrb[31].mxu0  ;;  %4284 = vmatmul.mubr.msk.f32.gmra.mrb[136].mxu0 %vm473_vm3, %v311_v62  ;;  %v5271_v29 = vpop.f32.mrb[31].mxu1  ;;  %4500 = vmatmul.mubr.msk.f32.gmra.mrb[136].mxu1 %vm473_vm3, %v455_v63  ;;  %v314_v15 = vld [vmem:[%s4590_s26 + $0x460] sm:$0xff] }
 0x129   : > { %6852 = vst [vmem:[#allocation12_spill] sm:$0xff] %v5268_v28  ;;  %6853 = vst [vmem:[#allocation13_spill] sm:$0xff] %v5271_v29  ;;  %4286 = vmatprep.mubr.msk.f32.mxu0 %vm473_vm3, %v312_v13  ;;  %4502 = vmatprep.mubr.msk.f32.mxu1 %vm473_vm3, %v456_v14  ;;  %v458_v60 = vld [vmem:[%s4590_s26 + $0x8e0] sm:$0xff]  ;;  %v315_v13 = vld [vmem:[%s4590_s26 + $0x468] sm:$0xff] }
 0x12a   : > { %v459_v14 = vld [vmem:[%s4590_s26 + $0x8e8] sm:$0xff]  ;;  %v316_v29 = vld [vmem:[%s4590_s26 + $0x470] sm:$0xff] }
 0x12b   : > { %v5280_v61 = vpop.f32.mrb[32].mxu0  ;;  %v5282_v28 = vpop.f32.mrb[32].mxu1 }
 0x12c   : > { %6854 = vst [vmem:[#allocation14_spill] sm:$0xff] %v5280_v61  ;;  %6855 = vst [vmem:[#allocation15_spill] sm:$0xff] %v5282_v28  ;;  %v5284_v62 = vpop.f32.mrb[33].mxu0  ;;  %4287 = vmatmul.mubr.msk.f32.gmra.mrb[138].mxu0 %vm473_vm3, %v313_v30  ;;  %v5287_v63 = vpop.f32.mrb[33].mxu1  ;;  %4503 = vmatmul.mubr.msk.f32.gmra.mrb[138].mxu1 %vm473_vm3, %v457_v31  ;;  %v460_v61 = vld [vmem:[%s4590_s26 + $0x8f0] sm:$0xff] }
 0x12d   : > { %6856 = vst [vmem:[#allocation16_spill] sm:$0xff] %v5284_v62  ;;  %6857 = vst [vmem:[#allocation17_spill] sm:$0xff] %v5287_v63  ;;  %4289 = vmatprep.mubr.msk.f32.mxu0 %vm473_vm3, %v314_v15  ;;  %4505 = vmatprep.mubr.msk.f32.mxu1 %vm473_vm3, %v458_v60  ;;  %v317_v15 = vld [vmem:[%s4590_s26 + $0x478] sm:$0xff] }
 0x12e   : > { %v461_v60 = vld [vmem:[%s4590_s26 + $0x8f8] sm:$0xff] }
 0x12f   : > { %v5296_v12 = vpop.f32.mrb[34].mxu0  ;;  %v5298_v28 = vpop.f32.mrb[34].mxu1 }
 0x130   : > { %6858 = vst [vmem:[#allocation18_spill] sm:$0xff] %v5296_v12  ;;  %v5300_v62 = vpop.f32.mrb[35].mxu0  ;;  %4290 = vmatmul.mubr.msk.f32.gmra.mrb[140].mxu0 %vm473_vm3, %v315_v13  ;;  %v5303_v30 = vpop.f32.mrb[35].mxu1  ;;  %4506 = vmatmul.mubr.msk.f32.gmra.mrb[140].mxu1 %vm473_vm3, %v459_v14 }
 0x131   : > { %6859 = vst [vmem:[#allocation19_spill] sm:$0xff] %v5300_v62  ;;  %6860 = vst [vmem:[#allocation20_spill] sm:$0xff] %v5303_v30  ;;  %4292 = vmatprep.mubr.msk.f32.mxu0 %vm473_vm3, %v316_v29  ;;  %4508 = vmatprep.mubr.msk.f32.mxu1 %vm473_vm3, %v460_v61 }
 0x133   : > { %v5310_v31 = vpop.f32.mrb[36].mxu0  ;;  %v5312_v63 = vpop.f32.mrb[36].mxu1 }
 0x134   : > { %6861 = vst [vmem:[#allocation21_spill] sm:$0xff] %v5310_v31  ;;  %6862 = vst [vmem:[#allocation22_spill] sm:$0xff] %v5312_v63  ;;  %v5314_v12 = vpop.f32.mrb[37].mxu0  ;;  %4293 = vmatmul.mubr.msk.f32.gmra.mrb[142].mxu0 %vm473_vm3, %v317_v15  ;;  %v5317_v62 = vpop.f32.mrb[37].mxu1  ;;  %4509 = vmatmul.mubr.msk.f32.gmra.mrb[142].mxu1 %vm473_vm3, %v461_v60 }
 0x135   : > { %6863 = vst [vmem:[#allocation23_spill] sm:$0xff] %v5314_v12  ;;  %6864 = vst [vmem:[#allocation24_spill] sm:$0xff] %v5317_v62 }
 0x137   : > { %v5320_v13 = vpop.f32.mrb[38].mxu0  ;;  %v5322_v14 = vpop.f32.mrb[38].mxu1 }
 0x138   : > { %6865 = vst [vmem:[#allocation25_spill] sm:$0xff] %v5320_v13  ;;  %v5324_v29 = vpop.f32.mrb[39].mxu0  ;;  %v5326_v61 = vpop.f32.mrb[39].mxu1 }
 0x139   : > { %6866 = vst [vmem:[#allocation26_spill] sm:$0xff] %v5324_v29  ;;  %6867 = vst [vmem:[#allocation27_spill] sm:$0xff] %v5326_v61  ;;  %v5347_v61 = vld [vmem:[%s6766_s2] ss:$0 sm:$0xff] }
 0x13b   : > { %v5328_v30 = vpop.f32.mrb[40].mxu0  ;;  %v5330_v31 = vpop.f32.mrb[40].mxu1 }
 0x13c   : > { %6868 = vst [vmem:[#allocation28_spill] sm:$0xff] %v5328_v30  ;;  %6869 = vst [vmem:[#allocation29_spill] sm:$0xff] %v5330_v31  ;;  %v5332_v63 = vpop.f32.mrb[41].mxu0  ;;  %v5334_v12 = vpop.f32.mrb[41].mxu1 }
 0x13d   : > { %6870 = vst [vmem:[#allocation30_spill] sm:$0xff] %v5332_v63  ;;  %6871 = vst [vmem:[#allocation31_spill] sm:$0xff] %v5334_v12 }
 0x13f   : > { %v5336_v15 = vpop.f32.mrb[42].mxu0  ;;  %v5338_v62 = vpop.f32.mrb[42].mxu1 }
 0x140   : > { %6872 = vst [vmem:[#allocation32_spill] sm:$0xff] %v5336_v15  ;;  %6873 = vst [vmem:[#allocation33_spill] sm:$0xff] %v5338_v62  ;;  %v5340_v60 = vpop.f32.mrb[43].mxu0  ;;  %v5342_v13 = vpop.f32.mrb[43].mxu1  ;;  %v5359_v62 = vadd.f32 %v5024_v32, %v5347_v61  ;;  %v5379_v32 = vadd.f32 %v5042_v41, %v5347_v61  ;;  %v5399_v41 = vadd.f32 %v5056_v48, %v5347_v61 }
 0x141   : > { %6874 = vst [vmem:[#allocation34_spill] sm:$0xff] %v5340_v60  ;;  %6875 = vst [vmem:[#allocation35_spill] sm:$0xff] %v5342_v13  ;;  %v5363_v13 = vadd.f32 %v5026_v33, %v5347_v61  ;;  %v5367_v60 = vadd.f32 %v5347_v61, %v5028_v34  ;;  %v5387_v34 = vadd.f32 %v5347_v61, %v5044_v42 }
 0x142   : > { %6880 = vst [vmem:[#allocation40_spill] sm:$0xff] %v5379_v32  ;;  %v5441_v42 = vadd.f32 %v5347_v61, %v5076_v58  ;;  %v5459_v58 = vadd.f32 %v5347_v61, %v5092_v2  ;;  %v5495_v32 = vadd.f32 %v5120_v16, %v5347_v61 }
 0x143   : > { %v5349_v30 = vpop.f32.mrb[44].mxu0  ;;  %v5351_v31 = vpop.f32.mrb[44].mxu1 }
 0x144   : > { %6876 = vst [vmem:[#allocation36_spill] sm:$0xff] %v5349_v30  ;;  %6877 = vst [vmem:[#allocation37_spill] sm:$0xff] %v5351_v31  ;;  %v5353_v63 = vpop.f32.mrb[45].mxu0  ;;  %v5355_v12 = vpop.f32.mrb[45].mxu1  ;;  %v5371_v30 = vadd.f32 %v5347_v61, %v5031_v35  ;;  %v5391_v35 = vadd.f32 %v5347_v61, %v5047_v43  ;;  %v5409_v43 = vadd.f32 %v5347_v61, %v5060_v50 }
 0x145   : > { %6878 = vst [vmem:[#allocation38_spill] sm:$0xff] %v5353_v63  ;;  %6879 = vst [vmem:[#allocation39_spill] sm:$0xff] %v5355_v12  ;;  %v5375_v63 = vadd.f32 %v5040_v40, %v5347_v61  ;;  %v5467_v50 = vadd.f32 %v5104_v8, %v5347_v61  ;;  %v5485_v8 = vadd.f32 %v5347_v61, %v5111_v11 }
 0x146   : > { %6883 = vst [vmem:[#allocation43_spill] sm:$0xff] %v5391_v35  ;;  %6887 = vst [vmem:[#allocation47_spill] sm:$0xff] %v5409_v43  ;;  %v5451_v35 = vadd.f32 %v5088_v0, %v5347_v61  ;;  %v5471_v0 = vadd.f32 %v5106_v9, %v5347_v61  ;;  %v5509_v43 = vadd.f32 %v5347_v61, %v5127_v19 }
 0x147   : > { %v5381_v12 = vpop.f32.mrb[46].mxu0  ;;  %v5383_v33 = vpop.f32.mrb[46].mxu1  ;;  %6890 = vst [vmem:[#allocation50_spill] sm:$0xff] %v5441_v42  ;;  %6893 = vst [vmem:[#allocation53_spill] sm:$0xff] %v5485_v8  ;;  %v5523_v19 = vadd.f32 %v5136_v24, %v5347_v61  ;;  %v5537_v11 = vadd.f32 %v5347_v61, %v5140_v26  ;;  %v5541_v24 = vadd.f32 %v5347_v61, %v5143_v27 }
 0x148   : > { %6881 = vst [vmem:[#allocation41_spill] sm:$0xff] %v5381_v12  ;;  %6882 = vst [vmem:[#allocation42_spill] sm:$0xff] %v5383_v33  ;;  %v5393_v31 = vpop.f32.mrb[47].mxu0  ;;  %v5395_v40 = vpop.f32.mrb[47].mxu1  ;;  %v5403_v12 = vadd.f32 %v5058_v49, %v5347_v61  ;;  %v5455_v49 = vadd.f32 %v5090_v1, %v5347_v61  ;;  %v5547_v8 = vadd.f32 %v5152_v36, %v5347_v61 }
 0x149   : > { %6884 = vst [vmem:[#allocation44_spill] sm:$0xff] %v5393_v31  ;;  %6885 = vst [vmem:[#allocation45_spill] sm:$0xff] %v5395_v40  ;;  %v5413_v31 = vadd.f32 %v5347_v61, %v5063_v51  ;;  %v5427_v51 = vadd.f32 %v5072_v56, %v5347_v61  ;;  %v5431_v40 = vadd.f32 %v5074_v57, %v5347_v61 }
 0x14a   : > { %6886 = vst [vmem:[#allocation46_spill] sm:$0xff] %v5403_v12  ;;  %v5445_v56 = vadd.f32 %v5347_v61, %v5079_v59  ;;  %v5463_v59 = vadd.f32 %v5347_v61, %v5095_v3  ;;  %6892 = vst [vmem:[#allocation52_spill] sm:$0xff] %v5471_v0  ;;  %v5481_v3 = vadd.f32 %v5347_v61, %v5108_v10 }
 0x14b   : > { %6888 = vst [vmem:[#allocation48_spill] sm:$0xff] %v5413_v31  ;;  %v5419_v29 = vpop.f32.mrb[48].mxu0  ;;  %v5421_v33 = vpop.f32.mrb[48].mxu1  ;;  %6889 = vst [vmem:[#allocation49_spill] sm:$0xff] %v5431_v40  ;;  %v5499_v10 = vadd.f32 %v5122_v17, %v5347_v61  ;;  %v5505_v40 = vadd.f32 %v5347_v61, %v5124_v18  ;;  %v5527_v12 = vadd.f32 %v5138_v25, %v5347_v61 }
 0x14c   : > { %v5433_v48 = vpop.f32.mrb[49].mxu0  ;;  %v5435_v15 = vpop.f32.mrb[49].mxu1  ;;  %6891 = vst [vmem:[#allocation51_spill] sm:$0xff] %v5445_v56  ;;  %6896 = vst [vmem:[#allocation56_spill] sm:$0xff] %v5509_v43  ;;  %v5551_v17 = vadd.f32 %v5154_v37, %v5347_v61  ;;  %v5555_v26 = vadd.f32 %v5347_v61, %v5156_v38  ;;  %v5559_v27 = vadd.f32 %v5347_v61, %v5159_v39 }
 0x14d   : > { %6894 = vst [vmem:[#allocation54_spill] sm:$0xff] %v5499_v10  ;;  %6895 = vst [vmem:[#allocation55_spill] sm:$0xff] %v5505_v40  ;;  %v5563_v18 = vadd.f32 %v5168_v52, %v5347_v61  ;;  %v5567_v36 = vadd.f32 %v5170_v53, %v5347_v61  ;;  %v5577_v39 = vadd.f32 %v5347_v61, %v5172_v54 }
 0x14e   : > { %6897 = vst [vmem:[#allocation57_spill] sm:$0xff] %v5527_v12  ;;  %6898 = vst [vmem:[#allocation58_spill] sm:$0xff] %v5537_v11  ;;  %v5581_v52 = vadd.f32 %v5347_v61, %v5175_v55  ;;  %v5591_v0 = vadd.f32 %v5184_v4, %v5347_v61  ;;  %v5595_v54 = vadd.f32 %v5186_v5, %v5347_v61 }
 0x14f   : > { %v5473_v57 = vpop.f32.mrb[50].mxu0  ;;  %v5475_v1 = vpop.f32.mrb[50].mxu1  ;;  %6899 = vst [vmem:[#allocation59_spill] sm:$0xff] %v5541_v24  ;;  %6900 = vst [vmem:[#allocation60_spill] sm:$0xff] %v5555_v26  ;;  %v5601_v12 = vadd.f32 %v5347_v61, %v5188_v6  ;;  %v5605_v40 = vadd.f32 %v5347_v61, %v5191_v7  ;;  %v5619_v7 = vadd.f32 %v5200_v20, %v5347_v61  ;;  %v6918_v6 = vld [vmem:[#allocation2_spill] sm:$0xff]  ;;  %v6932_v26 = vld [vmem:[#allocation8_spill] sm:$0xff] }
 0x150   : > { %v5487_v31 = vpop.f32.mrb[51].mxu0  ;;  %v5489_v9 = vpop.f32.mrb[51].mxu1  ;;  %6901 = vst [vmem:[#allocation61_spill] sm:$0xff] %v5559_v27  ;;  %6902 = vst [vmem:[#allocation62_spill] sm:$0xff] %v5563_v18  ;;  %v5623_v10 = vadd.f32 %v5202_v21, %v5347_v61  ;;  %v5633_v55 = vadd.f32 %v5347_v61, %v5204_v22  ;;  %v5637_v20 = vadd.f32 %v5347_v61, %v5207_v23  ;;  %v6920_v21 = vld [vmem:[#allocation3_spill] sm:$0xff] }
 0x151   : > { %6903 = vst [vmem:[#allocation63_spill] sm:$0xff] %v5567_v36  ;;  %6904 = vst [vmem:[#allocation64_spill] sm:$0xff] %v5577_v39  ;;  %v5647_v5 = vadd.f32 %v5218_v45, %v5347_v61  ;;  %v5651_v22 = vadd.f32 %v5347_v61, %v5220_v46  ;;  %v5655_v23 = vadd.f32 %v5347_v61, %v5223_v47  ;;  %v6930_v46 = vld [vmem:[#allocation7_spill] sm:$0xff] }
 0x152   : > { %6905 = vst [vmem:[#allocation65_spill] sm:$0xff] %v5581_v52  ;;  %6906 = vst [vmem:[#allocation66_spill] sm:$0xff] %v5591_v0  ;;  %v5643_v52 = vadd.f32 %v5216_v44, %v5347_v61  ;;  %v5659_v36 = vadd.f32 %v6918_v6, %v5347_v61  ;;  %v5663_v44 = vadd.f32 %v6920_v21, %v5347_v61  ;;  %v6924_v0 = vld [vmem:[#allocation5_spill] sm:$0xff]  ;;  %v6939_v27 = vld [vmem:[#allocation11_spill] sm:$0xff] }
 0x153   : > { %v5515_v42 = vpop.f32.mrb[52].mxu0  ;;  %v5517_v2 = vpop.f32.mrb[52].mxu1  ;;  %6907 = vst [vmem:[#allocation67_spill] sm:$0xff] %v5595_v54  ;;  %6908 = vst [vmem:[#allocation68_spill] sm:$0xff] %v5601_v12  ;;  %v6922_v54 = vld [vmem:[#allocation4_spill] sm:$0xff]  ;;  %v5677_v6 = vadd.f32 %v5347_v61, %v6924_v0  ;;  %v6928_v12 = vld [vmem:[#allocation6_spill] sm:$0xff] }
 0x154   : > { %v5529_v16 = vpop.f32.mrb[53].mxu0  ;;  %v5531_v56 = vpop.f32.mrb[53].mxu1  ;;  %6909 = vst [vmem:[#allocation69_spill] sm:$0xff] %v5605_v40  ;;  %6910 = vst [vmem:[#allocation70_spill] sm:$0xff] %v5619_v7  ;;  %v5673_v47 = vadd.f32 %v5347_v61, %v6922_v54  ;;  %v5687_v7 = vadd.f32 %v6928_v12, %v5347_v61  ;;  %v5691_v54 = vadd.f32 %v6930_v46, %v5347_v61  ;;  %v6948_v46 = vld [vmem:[#allocation15_spill] sm:$0xff] }
 0x155   : > { %6911 = vst [vmem:[#allocation71_spill] sm:$0xff] %v5623_v10  ;;  %6912 = vst [vmem:[#allocation72_spill] sm:$0xff] %v5633_v55 }
 0x156   : > { %6913 = vst [vmem:[#allocation73_spill] sm:$0xff] %v5637_v20  ;;  %6914 = vst [vmem:[#allocation74_spill] sm:$0xff] %v5643_v52 }
 0x157   : > { %v5569_v25 = vpop.f32.mrb[54].mxu0  ;;  %v5571_v37 = vpop.f32.mrb[54].mxu1  ;;  %6915 = vst [vmem:[#allocation75_spill] sm:$0xff] %v5647_v5  ;;  %6916 = vst [vmem:[#allocation76_spill] sm:$0xff] %v5651_v22  ;;  %v6937_v5 = vld [vmem:[#allocation10_spill] sm:$0xff]  ;;  %v5719_v22 = vadd.f32 %v6939_v27, %v5347_v61 }
 0x158   : > { %v5583_v43 = vpop.f32.mrb[55].mxu0  ;;  %v5585_v53 = vpop.f32.mrb[55].mxu1  ;;  %6917 = vst [vmem:[#allocation77_spill] sm:$0xff] %v5655_v23  ;;  %6919 = vst [vmem:[#allocation2_spill] sm:$0xff] %v5659_v36  ;;  %v6943_v36 = vld [vmem:[#allocation12_spill] sm:$0xff] }
 0x159   : > { %6921 = vst [vmem:[#allocation3_spill] sm:$0xff] %v5663_v44  ;;  %6923 = vst [vmem:[#allocation4_spill] sm:$0xff] %v5673_v47  ;;  %v5729_v0 = vadd.f32 %v5347_v61, %v6943_v36  ;;  %v6947_v47 = vld [vmem:[#allocation14_spill] sm:$0xff]  ;;  %v6950_v44 = vld [vmem:[#allocation16_spill] sm:$0xff] }
 0x15a   : > { %6925 = vst [vmem:[#allocation5_spill] sm:$0xff] %v5677_v6  ;;  %6929 = vst [vmem:[#allocation6_spill] sm:$0xff] %v5687_v7  ;;  %v5743_v7 = vadd.f32 %v6948_v46, %v5347_v61  ;;  %v5747_v36 = vadd.f32 %v5347_v61, %v6950_v44  ;;  %v6954_v6 = vld [vmem:[#allocation18_spill] sm:$0xff]  ;;  %v6961_v23 = vld [vmem:[#allocation20_spill] sm:$0xff] }
 0x15b   : > { %v5611_v11 = vpop.f32.mrb[56].mxu0  ;;  %v5613_v38 = vpop.f32.mrb[56].mxu1  ;;  %6931 = vst [vmem:[#allocation7_spill] sm:$0xff] %v5691_v54  ;;  %6940 = vst [vmem:[#allocation11_spill] sm:$0xff] %v5719_v22  ;;  %v6952_v54 = vld [vmem:[#allocation17_spill] sm:$0xff]  ;;  %v6967_v44 = vld [vmem:[#allocation22_spill] sm:$0xff] }
 0x15c   : > { %v5625_v4 = vpop.f32.mrb[57].mxu0  ;;  %v5627_v24 = vpop.f32.mrb[57].mxu1  ;;  %6944 = vst [vmem:[#allocation12_spill] sm:$0xff] %v5729_v0  ;;  %6949 = vst [vmem:[#allocation14_spill] sm:$0xff] %v5743_v7  ;;  %v6975_v7 = vld [vmem:[#allocation25_spill] sm:$0xff] }
 0x15d   : > { %6951 = vst [vmem:[#allocation15_spill] sm:$0xff] %v5747_v36  ;;  %v7001_v36 = vld [vmem:[#allocation38_spill] sm:$0xff] }
 0x15f   : > { %v5665_v40 = vpop.f32.mrb[58].mxu0  ;;  %v5667_v45 = vpop.f32.mrb[58].mxu1 }
 0x160   : > { %v5679_v39 = vpop.f32.mrb[59].mxu0  ;;  %v5681_v21 = vpop.f32.mrb[59].mxu1 }
 0x161   : > { %6926 = vst [vmem:[#allocation78_spill] sm:$0xff] %v5679_v39  ;;  %6927 = vst [vmem:[#allocation79_spill] sm:$0xff] %v5681_v21  ;;  %v5697_v39 = vadd.f32 %v5347_v61, %v6932_v26  ;;  %v6934_v21 = vld [vmem:[#allocation9_spill] sm:$0xff] }
 0x162   : > { %v5701_v18 = vadd.f32 %v5347_v61, %v6934_v21  ;;  %v5715_v21 = vadd.f32 %v6937_v5, %v5347_v61  ;;  %v6945_v26 = vld [vmem:[#allocation13_spill] sm:$0xff] }
 0x163   : > { %6933 = vst [vmem:[#allocation8_spill] sm:$0xff] %v5697_v39  ;;  %v5707_v55 = vpop.f32.mrb[60].mxu0  ;;  %v5709_v10 = vpop.f32.mrb[60].mxu1  ;;  %v5733_v5 = vadd.f32 %v5347_v61, %v6945_v26  ;;  %v5751_v26 = vadd.f32 %v5347_v61, %v6952_v54  ;;  %v5755_v39 = vadd.f32 %v6954_v6, %v5347_v61  ;;  %v5773_v6 = vadd.f32 %v5347_v61, %v6961_v23 }
 0x164   : > { %6935 = vst [vmem:[#allocation9_spill] sm:$0xff] %v5701_v18  ;;  %6936 = vst [vmem:[#allocation80_spill] sm:$0xff] %v5709_v10  ;;  %v5721_v12 = vpop.f32.mrb[61].mxu0  ;;  %v5723_v20 = vpop.f32.mrb[61].mxu1  ;;  %v6965_v18 = vld [vmem:[#allocation21_spill] sm:$0xff]  ;;  %v6969_v10 = vld [vmem:[#allocation23_spill] sm:$0xff] }
 0x165   : > { %6938 = vst [vmem:[#allocation10_spill] sm:$0xff] %v5715_v21  ;;  %6941 = vst [vmem:[#allocation81_spill] sm:$0xff] %v5721_v12  ;;  %v5739_v12 = vadd.f32 %v6947_v47, %v5347_v61  ;;  %v5759_v47 = vadd.f32 %v5298_v28, %v5347_v61  ;;  %v5783_v21 = vadd.f32 %v6965_v18, %v5347_v61 }
 0x166   : > { %6942 = vst [vmem:[#allocation82_spill] sm:$0xff] %v5723_v20  ;;  %6946 = vst [vmem:[#allocation13_spill] sm:$0xff] %v5733_v5  ;;  %v6959_v20 = vld [vmem:[#allocation19_spill] sm:$0xff] }
 0x167   : > { %6953 = vst [vmem:[#allocation16_spill] sm:$0xff] %v5751_v26  ;;  %6955 = vst [vmem:[#allocation17_spill] sm:$0xff] %v5755_v39  ;;  %v5761_v27 = vpop.f32.mrb[62].mxu0  ;;  %v5763_v46 = vpop.f32.mrb[62].mxu1  ;;  %v5769_v54 = vadd.f32 %v5347_v61, %v6959_v20  ;;  %v5787_v20 = vadd.f32 %v6967_v44, %v5347_v61  ;;  %v6985_v44 = vld [vmem:[#allocation29_spill] sm:$0xff]  ;;  %v6995_v39 = vld [vmem:[#allocation35_spill] sm:$0xff] }
 0x168   : > { %6956 = vst [vmem:[#allocation18_spill] sm:$0xff] %v5759_v47  ;;  %6957 = vst [vmem:[#allocation83_spill] sm:$0xff] %v5761_v27  ;;  %v5775_v52 = vpop.f32.mrb[63].mxu0  ;;  %v5777_v28 = vpop.f32.mrb[63].mxu1  ;;  %v6994_v47 = vld [vmem:[#allocation34_spill] sm:$0xff] }
 0x169   : > { %6958 = vst [vmem:[#allocation84_spill] sm:$0xff] %v5763_v46  ;;  %6960 = vst [vmem:[#allocation19_spill] sm:$0xff] %v5769_v54  ;;  %v5815_v46 = vadd.f32 %v5322_v14, %v5347_v61  ;;  %v6990_v14 = vld [vmem:[#allocation33_spill] sm:$0xff] }
 0x16a   : > { %6962 = vst [vmem:[#allocation20_spill] sm:$0xff] %v5773_v6  ;;  %6963 = vst [vmem:[#allocation85_spill] sm:$0xff] %v5775_v52  ;;  %v5793_v52 = vadd.f32 %v5347_v61, %v6969_v10  ;;  %v6981_v10 = vld [vmem:[#allocation27_spill] sm:$0xff]  ;;  %v6989_v6 = vld [vmem:[#allocation32_spill] sm:$0xff] }
 0x16b   : > { %6964 = vst [vmem:[#allocation86_spill] sm:$0xff] %v5777_v28  ;;  %6966 = vst [vmem:[#allocation21_spill] sm:$0xff] %v5783_v21  ;;  %v6971_v28 = vld [vmem:[#allocation24_spill] sm:$0xff]  ;;  %v5803_v0 = vpop.f32.mrb[64].mxu0  ;;  %v5805_v22 = vpop.f32.mrb[64].mxu1  ;;  %v7000_v21 = vld [vmem:[#allocation37_spill] sm:$0xff] }
 0x16c   : > { %6968 = vst [vmem:[#allocation22_spill] sm:$0xff] %v5787_v20  ;;  %6970 = vst [vmem:[#allocation23_spill] sm:$0xff] %v5793_v52  ;;  %v5797_v27 = vadd.f32 %v5347_v61, %v6971_v28  ;;  %v5811_v28 = vadd.f32 %v6975_v7, %v5347_v61  ;;  %v5817_v18 = vpop.f32.mrb[65].mxu0  ;;  %v5819_v5 = vpop.f32.mrb[65].mxu1  ;;  %v5829_v7 = vadd.f32 %v5347_v61, %v6981_v10  ;;  %v6988_v20 = vld [vmem:[#allocation31_spill] sm:$0xff] }
 0x16d   : > { %6973 = vst [vmem:[#allocation87_spill] sm:$0xff] %v5803_v0  ;;  %6974 = vst [vmem:[#allocation88_spill] sm:$0xff] %v5805_v22  ;;  %v6980_v0 = vld [vmem:[#allocation26_spill] sm:$0xff]  ;;  %v5847_v10 = vadd.f32 %v5347_v61, %v6988_v20  ;;  %v5851_v52 = vadd.f32 %v6989_v6, %v5347_v61  ;;  %v5865_v20 = vadd.f32 %v5347_v61, %v6994_v47 }
 0x16e   : > { %6972 = vst [vmem:[#allocation24_spill] sm:$0xff] %v5797_v27  ;;  %6976 = vst [vmem:[#allocation25_spill] sm:$0xff] %v5811_v28  ;;  %v5825_v23 = vadd.f32 %v5347_v61, %v6980_v0  ;;  %v6987_v22 = vld [vmem:[#allocation30_spill] sm:$0xff]  ;;  %v5869_v6 = vadd.f32 %v5347_v61, %v6995_v39  ;;  %v5883_v47 = vadd.f32 %v7000_v21, %v5347_v61 }
 0x16f   : > { %6977 = vst [vmem:[#allocation89_spill] sm:$0xff] %v5815_v46  ;;  %6978 = vst [vmem:[#allocation90_spill] sm:$0xff] %v5817_v18  ;;  %v6983_v18 = vld [vmem:[#allocation28_spill] sm:$0xff]  ;;  %v5843_v0 = vadd.f32 %v5347_v61, %v6987_v22  ;;  %v5857_v27 = vpop.f32.mrb[66].mxu0 }
 0x170   : > { %6979 = vst [vmem:[#allocation91_spill] sm:$0xff] %v5819_v5  ;;  %6982 = vst [vmem:[#allocation26_spill] sm:$0xff] %v5829_v7  ;;  %v5835_v54 = vadd.f32 %v6983_v18, %v5347_v61  ;;  %v5839_v5 = vadd.f32 %v6985_v44, %v5347_v61  ;;  %v5855_v18 = vadd.f32 %v6990_v14, %v5347_v61  ;;  %v5859_v44 = vpop.f32.mrb[66].mxu1  ;;  %v5871_v26 = vpop.f32.mrb[67].mxu0  ;;  %v6999_v22 = vld [vmem:[#allocation36_spill] sm:$0xff] }
 0x171   : > { %6992 = vst [vmem:[#allocation30_spill] sm:$0xff] %v5857_v27  ;;  %6993 = vst [vmem:[#allocation31_spill] sm:$0xff] %v5859_v44  ;;  %v5873_v14 = vpop.f32.mrb[67].mxu1  ;;  %v5879_v28 = vadd.f32 %v6999_v22, %v5347_v61  ;;  %v7006_v22 = vld [vmem:[#allocation42_spill] sm:$0xff] }
 0x172   : > { %6984 = vst [vmem:[#allocation27_spill] sm:$0xff] %v5835_v54  ;;  %6986 = vst [vmem:[#allocation28_spill] sm:$0xff] %v5839_v5  ;;  %v7005_v54 = vld [vmem:[#allocation41_spill] sm:$0xff]  ;;  %v5915_v21 = vadd.f32 %v7006_v22, %v5347_v61  ;;  %v5952_v22 = vadd.f32 %v5473_v57, %v5347_v61  ;;  %v5970_v57 = vadd.f32 %v5347_v61, %v5489_v9 }
 0x173   : > { %6991 = vst [vmem:[#allocation29_spill] sm:$0xff] %v5855_v18  ;;  %6996 = vst [vmem:[#allocation32_spill] sm:$0xff] %v5869_v6  ;;  %v5903_v39 = vpop.f32.mrb[68].mxu0  ;;  %v5911_v7 = vadd.f32 %v7005_v54, %v5347_v61  ;;  %v7009_v18 = vld [vmem:[#allocation44_spill] sm:$0xff] }
 0x174   : > { %6997 = vst [vmem:[#allocation33_spill] sm:$0xff] %v5871_v26  ;;  %6998 = vst [vmem:[#allocation34_spill] sm:$0xff] %v5873_v14  ;;  %v5889_v26 = vadd.f32 %v5347_v61, %v7001_v36  ;;  %v7002_v14 = vld [vmem:[#allocation39_spill] sm:$0xff]  ;;  %v5905_v36 = vpop.f32.mrb[68].mxu1  ;;  %v5917_v44 = vpop.f32.mrb[69].mxu0  ;;  %v5925_v5 = vadd.f32 %v5347_v61, %v7009_v18  ;;  %v5944_v18 = vadd.f32 %v5347_v61, %v5433_v48 }
 0x175   : > { %v5893_v27 = vadd.f32 %v5347_v61, %v7002_v14  ;;  %7003 = vst [vmem:[#allocation35_spill] sm:$0xff] %v5903_v39  ;;  %7004 = vst [vmem:[#allocation36_spill] sm:$0xff] %v5905_v36  ;;  %v5919_v46 = vpop.f32.mrb[69].mxu1  ;;  %v7011_v14 = vld [vmem:[#allocation45_spill] sm:$0xff]  ;;  %v5939_v39 = vadd.f32 %v5421_v33, %v5347_v61  ;;  %v5980_v48 = vadd.f32 %v5515_v42, %v5347_v61 }
 0x176   : > { %7007 = vst [vmem:[#allocation37_spill] sm:$0xff] %v5917_v44  ;;  %7008 = vst [vmem:[#allocation38_spill] sm:$0xff] %v5919_v46  ;;  %v5929_v54 = vadd.f32 %v5347_v61, %v7011_v14  ;;  %v5935_v44 = vadd.f32 %v5419_v29, %v5347_v61  ;;  %v5948_v14 = vadd.f32 %v5347_v61, %v5435_v15 }
 0x177   : > { %7010 = vst [vmem:[#allocation39_spill] sm:$0xff] %v5925_v5  ;;  %7014 = vst [vmem:[#allocation44_spill] sm:$0xff] %v5939_v39  ;;  %v5956_v29 = vadd.f32 %v5475_v1, %v5347_v61  ;;  %v5958_v6 = vpop.f32.mrb[70].mxu0  ;;  %v5960_v33 = vpop.f32.mrb[70].mxu1  ;;  %v5966_v15 = vadd.f32 %v5347_v61, %v5487_v31  ;;  %v5984_v31 = vadd.f32 %v5517_v2, %v5347_v61 }
 0x178   : > { %7012 = vst [vmem:[#allocation41_spill] sm:$0xff] %v5929_v54  ;;  %7013 = vst [vmem:[#allocation42_spill] sm:$0xff] %v5935_v44  ;;  %v5972_v1 = vpop.f32.mrb[71].mxu0  ;;  %v5974_v46 = vpop.f32.mrb[71].mxu1 }
 0x179   : > { %7015 = vst [vmem:[#allocation45_spill] sm:$0xff] %v5956_v29  ;;  %7016 = vst [vmem:[#allocation92_spill] sm:$0xff] %v5958_v6  ;;  %v5994_v6 = vadd.f32 %v5347_v61, %v5531_v56 }
 0x17a   : > { %7017 = vst [vmem:[#allocation93_spill] sm:$0xff] %v5960_v33  ;;  %7018 = vst [vmem:[#allocation94_spill] sm:$0xff] %v5966_v15 }
 0x17b   : > { %7019 = vst [vmem:[#allocation95_spill] sm:$0xff] %v5972_v1  ;;  %7020 = vst [vmem:[#allocation96_spill] sm:$0xff] %v5974_v46  ;;  %v5990_v46 = vadd.f32 %v5347_v61, %v5529_v16  ;;  %v4189_v36 = vpop.f32.mrb[72].mxu0  ;;  %v4405_v1 = vpop.f32.mrb[72].mxu1  ;;  %v7026_v16 = vmax.f32 %v5363_v13, 0.0 }
 0x17c   : > { %7021 = vst [vmem:[#allocation97_spill] sm:$0xff] %v5980_v48  ;;  %7022 = vst [vmem:[#allocation98_spill] sm:$0xff] %v5984_v31  ;;  %v1774_v56 = vadd.f32 %v4189_v36, %v5347_v61  ;;  %v2494_v44 = vadd.f32 %v4405_v1, %v5347_v61  ;;  %v1768_v54 = vpop.f32.mrb[73].mxu0  ;;  %v2488_v5 = vpop.f32.mrb[73].mxu1  ;;  %v6018_v36 = vadd.f32 %v5569_v25, %v5347_v61 }
 0x17d   : > { %7023 = vst [vmem:[#allocation99_spill] sm:$0xff] %v5990_v46  ;;  %7024 = vst [vmem:[#allocation100_spill] sm:$0xff] %v5994_v6  ;;  %v1769_v33 = vadd.f32 %v5347_v61, %v1768_v54  ;;  %v2489_v9 = vadd.f32 %v5347_v61, %v2488_v5  ;;  %v6022_v1 = vadd.f32 %v5571_v37, %v5347_v61  ;;  %v7025_v5 = vmax.f32 %v5359_v62, 0.0 }
 0x17e   : > { %v2920_v15 = vmax.f32 %v1774_v56, 0.0  ;;  %v3064_v39 = vmax.f32 %v2494_v44, 0.0  ;;  %v7027_v37 = vmax.f32 %v5367_v60, 0.0  ;;  %v7028_v62 = vmax.f32 %v5371_v30, 0.0 }
 0x17f   : > { %v2919_v2 = vmax.f32 %v1769_v33, 0.0  ;;  %v3063_v42 = vmax.f32 %v2489_v9, 0.0  ;;  %v4192_v54 = vpop.f32.mrb[74].mxu0  ;;  %v4408_v31 = vpop.f32.mrb[74].mxu1  ;;  %v6047_v60 = vadd.f32 %v5347_v61, %v5585_v53 }
 0x180   : > { %v3136_v29 = vmax.f32 %v7025_v5, %v2920_v15  ;;  %v3208_v56 = vmax.f32 %v7026_v16, %v3064_v39  ;;  %v1784_v44 = vadd.f32 %v4192_v54, %v5347_v61  ;;  %v2504_v6 = vadd.f32 %v4408_v31, %v5347_v61  ;;  %v1778_v25 = vpop.f32.mrb[75].mxu0  ;;  %v2498_v46 = vpop.f32.mrb[75].mxu1 }
 0x181   : > { %v3135_v33 = vmax.f32 %v7027_v37, %v2919_v2  ;;  %v3207_v15 = vmax.f32 %v7028_v62, %v3063_v42  ;;  %v1779_v13 = vadd.f32 %v5347_v61, %v1778_v25  ;;  %v2499_v39 = vadd.f32 %v5347_v61, %v2498_v46 }
 0x182   : > { %v6043_v31 = vadd.f32 %v5347_v61, %v5583_v43  ;;  %v3280_v9 = vmax.f32 %v3136_v29, %v3208_v56  ;;  %v2922_v16 = vmax.f32 %v1784_v44, 0.0  ;;  %v3066_v54 = vmax.f32 %v2504_v6, 0.0  ;;  %v7030_v43 = vld [vmem:[#allocation40_spill] sm:$0xff] }
 0x183   : > { %v3279_v2 = vmax.f32 %v3135_v33, %v3207_v15  ;;  %v2921_v5 = vmax.f32 %v1779_v13, 0.0  ;;  %v3065_v30 = vmax.f32 %v2499_v39, 0.0  ;;  %v4195_v42 = vpop.f32.mrb[76].mxu0  ;;  %v4411_v37 = vpop.f32.mrb[76].mxu1  ;;  %v7029_v46 = vmax.f32 %v5375_v63, 0.0  ;;  %v7033_v13 = vld [vmem:[#allocation43_spill] sm:$0xff] }
 0x184   : > { %3353 = vst.msk [vmem:[%s6033_s6 + $0x8] sm:$0xff] %vm3351_vm4, %v3280_v9  ;;  %v7031_v62 = vmax.f32 %v7030_v43, 0.0  ;;  %v1794_v56 = vadd.f32 %v4195_v42, %v5347_v61  ;;  %v2514_v6 = vadd.f32 %v4411_v37, %v5347_v61  ;;  %v1788_v44 = vpop.f32.mrb[77].mxu0  ;;  %v2508_v53 = vpop.f32.mrb[77].mxu1  ;;  %v7032_v33 = vmax.f32 %v5387_v34, 0.0 }
 0x185   : > { %v3138_v25 = vmax.f32 %v7029_v46, %v2922_v16  ;;  %3352 = vst.msk [vmem:[%s6033_s6] sm:$0xff] %vm3351_vm4, %v3279_v2  ;;  %v7034_v39 = vmax.f32 %v7033_v13, 0.0  ;;  %v1789_v63 = vadd.f32 %v5347_v61, %v1788_v44  ;;  %v2509_v16 = vadd.f32 %v5347_v61, %v2508_v53 }
 0x186   : > { %v3210_v29 = vmax.f32 %v7031_v62, %v3066_v54  ;;  %v3137_v15 = vmax.f32 %v7032_v33, %v2921_v5  ;;  %v2902_v54 = vmax.f32 %v6018_v36, 0.0  ;;  %v2924_v37 = vmax.f32 %v1794_v56, 0.0  ;;  %v7036_v33 = vld [vmem:[#allocation46_spill] sm:$0xff] }
 0x187   : > { %v3209_v9 = vmax.f32 %v7034_v39, %v3065_v30  ;;  %v3068_v46 = vmax.f32 %v2514_v6, 0.0  ;;  %v2923_v2 = vmax.f32 %v1789_v63, 0.0  ;;  %v3067_v48 = vmax.f32 %v2509_v16, 0.0  ;;  %v4198_v34 = vpop.f32.mrb[78].mxu0  ;;  %v4414_v5 = vpop.f32.mrb[78].mxu1  ;;  %v7040_v63 = vld [vmem:[#allocation48_spill] sm:$0xff] }
 0x188   : > { %v3282_v42 = vmax.f32 %v3138_v25, %v3210_v29  ;;  %v7035_v30 = vmax.f32 %v5399_v41, 0.0  ;;  %v7037_v53 = vmax.f32 %v7036_v33, 0.0  ;;  %v1804_v25 = vadd.f32 %v4198_v34, %v5347_v61  ;;  %v1798_v56 = vpop.f32.mrb[79].mxu0  ;;  %v2518_v6 = vpop.f32.mrb[79].mxu1 }
 0x189   : > { %v3281_v62 = vmax.f32 %v3137_v15, %v3209_v9  ;;  %v2524_v29 = vadd.f32 %v4414_v5, %v5347_v61  ;;  %v7038_v15 = vld [vmem:[#allocation47_spill] sm:$0xff]  ;;  %v7041_v16 = vmax.f32 %v7040_v63, 0.0  ;;  %v1799_v41 = vadd.f32 %v5347_v61, %v1798_v56 }
 0x18a   : > { %3355 = vst.msk [vmem:[%s6033_s6 + $0x18] sm:$0xff] %vm3351_vm4, %v3282_v42  ;;  %v3140_v44 = vmax.f32 %v7035_v30, %v2924_v37  ;;  %v3212_v13 = vmax.f32 %v7037_v53, %v3068_v46  ;;  %v7039_v39 = vmax.f32 %v7038_v15, 0.0  ;;  %v2519_v37 = vadd.f32 %v5347_v61, %v2518_v6 }
 0x18b   : > { %3354 = vst.msk [vmem:[%s6033_s6 + $0x10] sm:$0xff] %vm3351_vm4, %v3281_v62  ;;  %v3211_v42 = vmax.f32 %v7041_v16, %v3067_v48  ;;  %v2901_v46 = vmax.f32 %v6043_v31, 0.0  ;;  %v2926_v5 = vmax.f32 %v1804_v25, 0.0  ;;  %v3070_v30 = vmax.f32 %v2524_v29, 0.0  ;;  %v4201_v15 = vpop.f32.mrb[80].mxu0 }
 0x18c   : > { %v3139_v9 = vmax.f32 %v7039_v39, %v2923_v2  ;;  %v3284_v34 = vmax.f32 %v3140_v44, %v3212_v13  ;;  %v3045_v33 = vmax.f32 %v6047_v60, 0.0  ;;  %v2925_v62 = vmax.f32 %v1799_v41, 0.0  ;;  %v4417_v2 = vpop.f32.mrb[80].mxu1  ;;  %v7043_v39 = vld [vmem:[#allocation49_spill] sm:$0xff]  ;;  %v1808_v25 = vpop.f32.mrb[81].mxu0  ;;  %v7047_v41 = vld [vmem:[#allocation51_spill] sm:$0xff] }
 0x18d   : > { %v3069_v43 = vmax.f32 %v2519_v37, 0.0  ;;  %v7042_v48 = vmax.f32 %v5427_v51, 0.0  ;;  %v7044_v6 = vmax.f32 %v7043_v39, 0.0  ;;  %v1814_v44 = vadd.f32 %v4201_v15, %v5347_v61  ;;  %v2528_v29 = vpop.f32.mrb[81].mxu1 }
 0x18e   : > { %v3283_v53 = vmax.f32 %v3139_v9, %v3211_v42  ;;  %3357 = vst.msk [vmem:[%s6033_s6 + $0x28] sm:$0xff] %vm3351_vm4, %v3284_v34  ;;  %v2534_v13 = vadd.f32 %v4417_v2, %v5347_v61  ;;  %v7045_v9 = vld [vmem:[#allocation50_spill] sm:$0xff]  ;;  %v7048_v37 = vmax.f32 %v7047_v41, 0.0  ;;  %v1809_v51 = vadd.f32 %v5347_v61, %v1808_v25 }
 0x18f   : > { %v3142_v56 = vmax.f32 %v7042_v48, %v2926_v5  ;;  %v3214_v63 = vmax.f32 %v7044_v6, %v3070_v30  ;;  %v7046_v16 = vmax.f32 %v7045_v9, 0.0  ;;  %v2529_v5 = vadd.f32 %v5347_v61, %v2528_v29  ;;  %v4420_v9 = vpop.f32.mrb[82].mxu1 }
 0x190   : > { %3356 = vst.msk [vmem:[%s6033_s6 + $0x20] sm:$0xff] %vm3351_vm4, %v3283_v53  ;;  %v3213_v34 = vmax.f32 %v7048_v37, %v3069_v43  ;;  %v6103_v30 = vadd.f32 %v5611_v11, %v5347_v61  ;;  %v2928_v2 = vmax.f32 %v1814_v44, 0.0  ;;  %v3072_v48 = vmax.f32 %v2534_v13, 0.0  ;;  %v4204_v43 = vpop.f32.mrb[82].mxu0 }
 0x191   : > { %v3141_v42 = vmax.f32 %v7046_v16, %v2925_v62  ;;  %v3286_v15 = vmax.f32 %v3142_v56, %v3214_v63  ;;  %v6107_v53 = vadd.f32 %v5613_v38, %v5347_v61  ;;  %v2927_v39 = vmax.f32 %v1809_v51, 0.0  ;;  %v1818_v13 = vpop.f32.mrb[83].mxu0  ;;  %v2538_v38 = vpop.f32.mrb[83].mxu1 }
 0x192   : > { %v3071_v6 = vmax.f32 %v2529_v5, 0.0  ;;  %v7049_v25 = vmax.f32 %v5451_v35, 0.0  ;;  %v7050_v11 = vmax.f32 %v5455_v49, 0.0  ;;  %v1824_v63 = vadd.f32 %v4204_v43, %v5347_v61 }
 0x193   : > { %v3285_v62 = vmax.f32 %v3141_v42, %v3213_v34  ;;  %3359 = vst.msk [vmem:[%s6033_s6 + $0x38] sm:$0xff] %vm3351_vm4, %v3286_v15  ;;  %v2544_v44 = vadd.f32 %v4420_v9, %v5347_v61  ;;  %v7051_v16 = vmax.f32 %v5459_v58, 0.0  ;;  %v7052_v41 = vmax.f32 %v5463_v59, 0.0 }
 0x194   : > { %v3144_v29 = vmax.f32 %v7049_v25, %v2928_v2  ;;  %v3216_v56 = vmax.f32 %v7050_v11, %v3072_v48  ;;  %v1819_v35 = vadd.f32 %v5347_v61, %v1818_v13  ;;  %v2539_v49 = vadd.f32 %v5347_v61, %v2538_v38  ;;  %v7057_v13 = vld [vmem:[#allocation53_spill] sm:$0xff] }
 0x195   : > { %3358 = vst.msk [vmem:[%s6033_s6 + $0x30] sm:$0xff] %vm3351_vm4, %v3285_v62  ;;  %v3143_v42 = vmax.f32 %v7051_v16, %v2927_v39  ;;  %v3215_v37 = vmax.f32 %v7052_v41, %v3071_v6  ;;  %v6127_v34 = vadd.f32 %v5347_v61, %v5625_v4  ;;  %v2930_v5 = vmax.f32 %v1824_v63, 0.0  ;;  %v4207_v62 = vpop.f32.mrb[84].mxu0  ;;  %v4423_v39 = vpop.f32.mrb[84].mxu1  ;;  %v7054_v4 = vld [vmem:[#allocation52_spill] sm:$0xff] }
 0x196   : > { %v3288_v51 = vmax.f32 %v3144_v29, %v3216_v56  ;;  %v3074_v15 = vmax.f32 %v2544_v44, 0.0  ;;  %v6131_v2 = vadd.f32 %v5347_v61, %v5627_v24  ;;  %v2929_v48 = vmax.f32 %v1819_v35, 0.0  ;;  %v1828_v56 = vpop.f32.mrb[85].mxu0  ;;  %v2548_v24 = vpop.f32.mrb[85].mxu1 }
 0x197   : > { %v3287_v58 = vmax.f32 %v3143_v42, %v3215_v37  ;;  %v3073_v59 = vmax.f32 %v2539_v49, 0.0  ;;  %v7053_v6 = vmax.f32 %v5467_v50, 0.0  ;;  %v7055_v9 = vmax.f32 %v7054_v4, 0.0 }
 0x198   : > { %3361 = vst.msk [vmem:[%s6033_s6 + $0x48] sm:$0xff] %vm3351_vm4, %v3288_v51  ;;  %v1834_v29 = vadd.f32 %v4207_v62, %v5347_v61  ;;  %v2554_v11 = vadd.f32 %v4423_v39, %v5347_v61  ;;  %v7056_v63 = vmax.f32 %v5481_v3, 0.0  ;;  %v7058_v38 = vmax.f32 %v7057_v13, 0.0  ;;  %v4210_v3 = vpop.f32.mrb[86].mxu0  ;;  %v7060_v39 = vld [vmem:[#allocation54_spill] sm:$0xff] }
 0x199   : > { %v3146_v43 = vmax.f32 %v7053_v6, %v2930_v5  ;;  %v3218_v25 = vmax.f32 %v7055_v9, %v3074_v15  ;;  %3360 = vst.msk [vmem:[%s6033_s6 + $0x40] sm:$0xff] %vm3351_vm4, %v3287_v58  ;;  %v1829_v50 = vadd.f32 %v5347_v61, %v1828_v56  ;;  %v2549_v42 = vadd.f32 %v5347_v61, %v2548_v24 }
 0x19a   : > { %v3145_v44 = vmax.f32 %v7056_v63, %v2929_v48  ;;  %v3217_v16 = vmax.f32 %v7058_v38, %v3073_v59  ;;  %v2904_v41 = vmax.f32 %v6103_v30, 0.0  ;;  %v2932_v35 = vmax.f32 %v1834_v29, 0.0  ;;  %v4426_v48 = vpop.f32.mrb[86].mxu1  ;;  %v7064_v63 = vld [vmem:[#allocation56_spill] sm:$0xff] }
 0x19b   : > { %v3290_v37 = vmax.f32 %v3146_v43, %v3218_v25  ;;  %v3076_v49 = vmax.f32 %v2554_v11, 0.0  ;;  %v2931_v15 = vmax.f32 %v1829_v50, 0.0  ;;  %v3075_v58 = vmax.f32 %v2549_v42, 0.0  ;;  %v1838_v25 = vpop.f32.mrb[87].mxu0  ;;  %v2558_v29 = vpop.f32.mrb[87].mxu1  ;;  %v7062_v11 = vld [vmem:[#allocation55_spill] sm:$0xff] }
 0x19c   : > { %v3289_v5 = vmax.f32 %v3145_v44, %v3217_v16  ;;  %v7059_v59 = vmax.f32 %v5495_v32, 0.0  ;;  %v7061_v6 = vmax.f32 %v7060_v39, 0.0  ;;  %v1844_v43 = vadd.f32 %v4210_v3, %v5347_v61  ;;  %v7067_v39 = vld [vmem:[#allocation57_spill] sm:$0xff] }
 0x19d   : > { %3363 = vst.msk [vmem:[%s6033_s6 + $0x58] sm:$0xff] %vm3351_vm4, %v3290_v37  ;;  %v2564_v9 = vadd.f32 %v4426_v48, %v5347_v61  ;;  %v7063_v56 = vmax.f32 %v7062_v11, 0.0  ;;  %v7065_v44 = vmax.f32 %v7064_v63, 0.0  ;;  %v1839_v32 = vadd.f32 %v5347_v61, %v1838_v25  ;;  %v4213_v48 = vpop.f32.mrb[88].mxu0 }
 0x19e   : > { %v3148_v62 = vmax.f32 %v7059_v59, %v2932_v35  ;;  %v3220_v4 = vmax.f32 %v7061_v6, %v3076_v49  ;;  %3362 = vst.msk [vmem:[%s6033_s6 + $0x50] sm:$0xff] %vm3351_vm4, %v3289_v5  ;;  %v2559_v38 = vadd.f32 %v5347_v61, %v2558_v29  ;;  %v2934_v42 = vmax.f32 %v1844_v43, 0.0  ;;  %v1848_v43 = vpop.f32.mrb[89].mxu0  ;;  %v7069_v29 = vld [vmem:[#allocation58_spill] sm:$0xff] }
 0x19f   : > { %v3147_v24 = vmax.f32 %v7063_v56, %v2931_v15  ;;  %v3219_v13 = vmax.f32 %v7065_v44, %v3075_v58  ;;  %v3078_v37 = vmax.f32 %v2564_v9, 0.0  ;;  %v2933_v5 = vmax.f32 %v1839_v32, 0.0  ;;  %v4429_v15 = vpop.f32.mrb[88].mxu1 }
 0x1a0   : > { %v3292_v50 = vmax.f32 %v3148_v62, %v3220_v4  ;;  %v3077_v3 = vmax.f32 %v2559_v38, 0.0  ;;  %v7066_v58 = vmax.f32 %v5523_v19, 0.0  ;;  %v7068_v6 = vmax.f32 %v7067_v39, 0.0  ;;  %v2568_v9 = vpop.f32.mrb[89].mxu1 }
 0x1a1   : > { %v3291_v49 = vmax.f32 %v3147_v24, %v3219_v13  ;;  %v1854_v62 = vadd.f32 %v4213_v48, %v5347_v61  ;;  %v2574_v4 = vadd.f32 %v4429_v15, %v5347_v61  ;;  %v7070_v11 = vmax.f32 %v7069_v29, 0.0  ;;  %v7071_v24 = vld [vmem:[#allocation59_spill] sm:$0xff]  ;;  %v4432_v15 = vpop.f32.mrb[90].mxu1  ;;  %v7077_v29 = vld [vmem:[#allocation61_spill] sm:$0xff] }
 0x1a2   : > { %3365 = vst.msk [vmem:[%s6033_s6 + $0x68] sm:$0xff] %vm3351_vm4, %v3292_v50  ;;  %v3150_v59 = vmax.f32 %v7066_v58, %v2934_v42  ;;  %v3222_v25 = vmax.f32 %v7068_v6, %v3078_v37  ;;  %v7072_v63 = vmax.f32 %v7071_v24, 0.0  ;;  %v1849_v19 = vadd.f32 %v5347_v61, %v1848_v43  ;;  %v7079_v24 = vld [vmem:[#allocation78_spill] sm:$0xff] }
 0x1a3   : > { %3364 = vst.msk [vmem:[%s6033_s6 + $0x60] sm:$0xff] %vm3351_vm4, %v3291_v49  ;;  %v3149_v56 = vmax.f32 %v7070_v11, %v2933_v5  ;;  %v2569_v13 = vadd.f32 %v5347_v61, %v2568_v9  ;;  %v6187_v32 = vadd.f32 %v5665_v40, %v5347_v61  ;;  %v2936_v50 = vmax.f32 %v1854_v62, 0.0 }
 0x1a4   : > { %v3221_v44 = vmax.f32 %v7072_v63, %v3077_v3  ;;  %v3294_v38 = vmax.f32 %v3150_v59, %v3222_v25  ;;  %v3080_v42 = vmax.f32 %v2574_v4, 0.0  ;;  %v6191_v37 = vadd.f32 %v5667_v45, %v5347_v61  ;;  %v4216_v3 = vpop.f32.mrb[90].mxu0  ;;  %v2578_v45 = vpop.f32.mrb[91].mxu1  ;;  %v7075_v4 = vld [vmem:[#allocation60_spill] sm:$0xff] }
 0x1a5   : > { %v2935_v5 = vmax.f32 %v1849_v19, 0.0  ;;  %v3079_v48 = vmax.f32 %v2569_v13, 0.0  ;;  %v7073_v58 = vmax.f32 %v5547_v8, 0.0  ;;  %v7074_v40 = vmax.f32 %v5551_v17, 0.0  ;;  %v1858_v62 = vpop.f32.mrb[91].mxu0 }
 0x1a6   : > { %v3293_v49 = vmax.f32 %v3149_v56, %v3221_v44  ;;  %3367 = vst.msk [vmem:[%s6033_s6 + $0x78] sm:$0xff] %vm3351_vm4, %v3294_v38  ;;  %v1864_v6 = vadd.f32 %v4216_v3, %v5347_v61  ;;  %v2584_v25 = vadd.f32 %v4432_v15, %v5347_v61  ;;  %v7076_v43 = vmax.f32 %v7075_v4, 0.0  ;;  %v7080_v38 = vld [vmem:[#allocation79_spill] sm:$0xff]  ;;  %v4435_v3 = vpop.f32.mrb[92].mxu1  ;;  %v7081_v15 = vld [vmem:[#allocation62_spill] sm:$0xff] }
 0x1a7   : > { %v3152_v39 = vmax.f32 %v7073_v58, %v2936_v50  ;;  %v3224_v59 = vmax.f32 %v7074_v40, %v3080_v42  ;;  %v7078_v11 = vmax.f32 %v7077_v29, 0.0  ;;  %v1859_v8 = vadd.f32 %v5347_v61, %v1858_v62  ;;  %v7083_v62 = vld [vmem:[#allocation63_spill] sm:$0xff]  ;;  %v2588_v4 = vpop.f32.mrb[93].mxu1 }
 0x1a8   : > { %3366 = vst.msk [vmem:[%s6033_s6 + $0x70] sm:$0xff] %vm3351_vm4, %v3293_v49  ;;  %v3151_v9 = vmax.f32 %v7076_v43, %v2935_v5  ;;  %v2579_v17 = vadd.f32 %v5347_v61, %v2578_v45  ;;  %v6211_v63 = vadd.f32 %v5347_v61, %v7079_v24  ;;  %v2938_v19 = vmax.f32 %v1864_v6, 0.0  ;;  %v7085_v43 = vld [vmem:[#allocation64_spill] sm:$0xff] }
 0x1a9   : > { %v3223_v56 = vmax.f32 %v7078_v11, %v3079_v48  ;;  %v3296_v44 = vmax.f32 %v3152_v39, %v3224_v59  ;;  %v3082_v13 = vmax.f32 %v2584_v25, 0.0  ;;  %v6215_v50 = vadd.f32 %v5347_v61, %v7080_v38  ;;  %v4219_v48 = vpop.f32.mrb[92].mxu0  ;;  %v7087_v11 = vld [vmem:[#allocation65_spill] sm:$0xff] }
 0x1aa   : > { %v2937_v49 = vmax.f32 %v1859_v8, 0.0  ;;  %v3081_v5 = vmax.f32 %v2579_v17, 0.0  ;;  %v7082_v58 = vmax.f32 %v7081_v15, 0.0  ;;  %v7084_v45 = vmax.f32 %v7083_v62, 0.0  ;;  %v1868_v25 = vpop.f32.mrb[93].mxu0 }
 0x1ab   : > { %v3295_v42 = vmax.f32 %v3151_v9, %v3223_v56  ;;  %3369 = vst.msk [vmem:[%s6033_s6 + $0x88] sm:$0xff] %vm3351_vm4, %v3296_v44  ;;  %v1874_v59 = vadd.f32 %v4219_v48, %v5347_v61  ;;  %v2594_v6 = vadd.f32 %v4435_v3, %v5347_v61  ;;  %v7086_v9 = vmax.f32 %v7085_v43, 0.0 }
 0x1ac   : > { %v3154_v40 = vmax.f32 %v7082_v58, %v2938_v19  ;;  %v3226_v39 = vmax.f32 %v7084_v45, %v3082_v13  ;;  %v7088_v56 = vmax.f32 %v7087_v11, 0.0  ;;  %v1869_v17 = vadd.f32 %v5347_v61, %v1868_v25  ;;  %v4222_v58 = vpop.f32.mrb[94].mxu0  ;;  %v7091_v25 = vld [vmem:[#allocation67_spill] sm:$0xff] }
 0x1ad   : > { %3368 = vst.msk [vmem:[%s6033_s6 + $0x80] sm:$0xff] %vm3351_vm4, %v3295_v42  ;;  %v3153_v29 = vmax.f32 %v7086_v9, %v2937_v49  ;;  %v2589_v24 = vadd.f32 %v5347_v61, %v2588_v4  ;;  %v2940_v13 = vmax.f32 %v1874_v59, 0.0  ;;  %v3084_v38 = vmax.f32 %v2594_v6, 0.0  ;;  %v4438_v49 = vpop.f32.mrb[94].mxu1  ;;  %v1878_v6 = vpop.f32.mrb[95].mxu0  ;;  %v7093_v9 = vld [vmem:[#allocation68_spill] sm:$0xff] }
 0x1ae   : > { %v3225_v8 = vmax.f32 %v7088_v56, %v3081_v5  ;;  %v3298_v19 = vmax.f32 %v3154_v40, %v3226_v39  ;;  %v2939_v42 = vmax.f32 %v1869_v17, 0.0  ;;  %v7089_v5 = vld [vmem:[#allocation66_spill] sm:$0xff]  ;;  %v7092_v61 = vmax.f32 %v7091_v25, 0.0  ;;  %v2598_v43 = vpop.f32.mrb[95].mxu1  ;;  %v7095_v56 = vld [vmem:[#allocation69_spill] sm:$0xff] }
 0x1af   : > { %v3083_v15 = vmax.f32 %v2589_v24, 0.0  ;;  %v7090_v62 = vmax.f32 %v7089_v5, 0.0  ;;  %v6244_v40 = vld [vmem:[%s6766_s2] ss:$0 sm:$0xff] }
 0x1b0   : > { %v3297_v3 = vmax.f32 %v3153_v29, %v3225_v8  ;;  %3371 = vst.msk [vmem:[%s6033_s6 + $0x98] sm:$0xff] %vm3351_vm4, %v3298_v19  ;;  %v3228_v4 = vmax.f32 %v7092_v61, %v3084_v38  ;;  %v1884_v39 = vadd.f32 %v6244_v40, %v4222_v58  ;;  %v2604_v59 = vadd.f32 %v6244_v40, %v4438_v49  ;;  %v4225_v61 = vpop.f32.mrb[96].mxu0 }
 0x1b1   : > { %v3156_v45 = vmax.f32 %v7090_v62, %v2940_v13  ;;  %v7094_v29 = vmax.f32 %v7093_v9, 0.0  ;;  %v7096_v8 = vmax.f32 %v7095_v56, 0.0  ;;  %v1879_v24 = vadd.f32 %v6244_v40, %v1878_v6 }
 0x1b2   : > { %3370 = vst.msk [vmem:[%s6033_s6 + $0x90] sm:$0xff] %vm3351_vm4, %v3297_v3  ;;  %v2599_v19 = vadd.f32 %v6244_v40, %v2598_v43  ;;  %v2942_v58 = vmax.f32 %v1884_v39, 0.0  ;;  %v3086_v49 = vmax.f32 %v2604_v59, 0.0  ;;  %v1888_v39 = vpop.f32.mrb[97].mxu0 }
 0x1b3   : > { %v3155_v11 = vmax.f32 %v7094_v29, %v2939_v42  ;;  %v3227_v17 = vmax.f32 %v7096_v8, %v3083_v15  ;;  %v3300_v38 = vmax.f32 %v3156_v45, %v3228_v4  ;;  %v2941_v3 = vmax.f32 %v1879_v24, 0.0  ;;  %v4441_v42 = vpop.f32.mrb[96].mxu1  ;;  %v7097_v15 = vld [vmem:[#allocation70_spill] sm:$0xff]  ;;  %v7099_v29 = vld [vmem:[#allocation71_spill] sm:$0xff]  ;;  %v7103_v24 = vld [vmem:[#allocation73_spill] sm:$0xff] }
 0x1b4   : > { %v3085_v25 = vmax.f32 %v2599_v19, 0.0  ;;  %v7098_v9 = vmax.f32 %v7097_v15, 0.0  ;;  %v7100_v43 = vmax.f32 %v7099_v29, 0.0  ;;  %v1894_v45 = vadd.f32 %v6244_v40, %v4225_v61  ;;  %v2608_v59 = vpop.f32.mrb[97].mxu1  ;;  %v7105_v29 = vld [vmem:[#allocation80_spill] sm:$0xff] }
 0x1b5   : > { %v3299_v62 = vmax.f32 %v3155_v11, %v3227_v17  ;;  %3373 = vst.msk [vmem:[%s6033_s6 + $0xa8] sm:$0xff] %vm3351_vm4, %v3300_v38  ;;  %v2614_v4 = vadd.f32 %v6244_v40, %v4441_v42  ;;  %v7101_v11 = vld [vmem:[#allocation72_spill] sm:$0xff]  ;;  %v7104_v19 = vmax.f32 %v7103_v24, 0.0  ;;  %v2609_v15 = vadd.f32 %v6244_v40, %v2608_v59 }
 0x1b6   : > { %v3158_v6 = vmax.f32 %v7098_v9, %v2942_v58  ;;  %v3230_v56 = vmax.f32 %v7100_v43, %v3086_v49  ;;  %v7102_v8 = vmax.f32 %v7101_v11, 0.0  ;;  %v1889_v58 = vadd.f32 %v6244_v40, %v1888_v39  ;;  %v7106_v39 = vld [vmem:[#allocation74_spill] sm:$0xff] }
 0x1b7   : > { %3372 = vst.msk [vmem:[%s6033_s6 + $0xa0] sm:$0xff] %vm3351_vm4, %v3299_v62  ;;  %v3229_v38 = vmax.f32 %v7104_v19, %v3085_v25  ;;  %v6276_v49 = vadd.f32 %v6244_v40, %v5707_v55  ;;  %v2944_v42 = vmax.f32 %v1894_v45, 0.0  ;;  %v3088_v9 = vmax.f32 %v2614_v4, 0.0  ;;  %v4228_v25 = vpop.f32.mrb[98].mxu0  ;;  %v7108_v55 = vld [vmem:[#allocation75_spill] sm:$0xff] }
 0x1b8   : > { %v3157_v17 = vmax.f32 %v7102_v8, %v2941_v3  ;;  %v3302_v61 = vmax.f32 %v3158_v6, %v3230_v56  ;;  %v6280_v62 = vadd.f32 %v6244_v40, %v7105_v29  ;;  %v2943_v43 = vmax.f32 %v1889_v58, 0.0  ;;  %v4444_v8 = vpop.f32.mrb[98].mxu1  ;;  %v1898_v4 = vpop.f32.mrb[99].mxu0 }
 0x1b9   : > { %v3087_v11 = vmax.f32 %v2609_v15, 0.0  ;;  %v7107_v59 = vmax.f32 %v7106_v39, 0.0  ;;  %v7109_v19 = vmax.f32 %v7108_v55, 0.0  ;;  %v1904_v56 = vadd.f32 %v6244_v40, %v4228_v25  ;;  %v2618_v29 = vpop.f32.mrb[99].mxu1  ;;  %v7112_v15 = vld [vmem:[#allocation77_spill] sm:$0xff] }
 0x1ba   : > { %v3301_v3 = vmax.f32 %v3157_v17, %v3229_v38  ;;  %3375 = vst.msk [vmem:[%s6033_s6 + $0xb8] sm:$0xff] %vm3351_vm4, %v3302_v61  ;;  %v2624_v45 = vadd.f32 %v6244_v40, %v4444_v8  ;;  %v7110_v17 = vld [vmem:[#allocation76_spill] sm:$0xff]  ;;  %v7113_v61 = vmax.f32 %v7112_v15, 0.0  ;;  %v2619_v39 = vadd.f32 %v6244_v40, %v2618_v29  ;;  %v4447_v15 = vpop.f32.mrb[100].mxu1 }
 0x1bb   : > { %v3160_v24 = vmax.f32 %v7107_v59, %v2944_v42  ;;  %v3232_v6 = vmax.f32 %v7109_v19, %v3088_v9  ;;  %v7111_v38 = vmax.f32 %v7110_v17, 0.0  ;;  %v1899_v42 = vadd.f32 %v6244_v40, %v1898_v4  ;;  %v7114_v9 = vld [vmem:[#allocation81_spill] sm:$0xff]  ;;  %v7115_v19 = vld [vmem:[#allocation82_spill] sm:$0xff] }
 0x1bc   : > { %3374 = vst.msk [vmem:[%s6033_s6 + $0xb0] sm:$0xff] %vm3351_vm4, %v3301_v3  ;;  %v3231_v5 = vmax.f32 %v7113_v61, %v3087_v11  ;;  %v6300_v25 = vadd.f32 %v6244_v40, %v7114_v9  ;;  %v2946_v59 = vmax.f32 %v1904_v56, 0.0  ;;  %v3090_v55 = vmax.f32 %v2624_v45, 0.0  ;;  %v4231_v11 = vpop.f32.mrb[100].mxu0  ;;  %v7116_v4 = vld [vmem:[#allocation2_spill] sm:$0xff]  ;;  %v7118_v9 = vld [vmem:[#allocation3_spill] sm:$0xff] }
 0x1bd   : > { %v3159_v58 = vmax.f32 %v7111_v38, %v2943_v43  ;;  %v3304_v8 = vmax.f32 %v3160_v24, %v3232_v6  ;;  %v6304_v3 = vadd.f32 %v6244_v40, %v7115_v19  ;;  %v2945_v17 = vmax.f32 %v1899_v42, 0.0  ;;  %v1908_v45 = vpop.f32.mrb[101].mxu0  ;;  %v2628_v19 = vpop.f32.mrb[101].mxu1 }
 0x1be   : > { %v3089_v38 = vmax.f32 %v2619_v39, 0.0  ;;  %v7117_v29 = vmax.f32 %v7116_v4, 0.0  ;;  %v7119_v13 = vmax.f32 %v7118_v9, 0.0  ;;  %v1914_v6 = vadd.f32 %v6244_v40, %v4231_v11  ;;  %v7122_v39 = vld [vmem:[#allocation5_spill] sm:$0xff] }
 0x1bf   : > { %v3303_v43 = vmax.f32 %v3159_v58, %v3231_v5  ;;  %3377 = vst.msk [vmem:[%s6033_s6 + $0xc8] sm:$0xff] %vm3351_vm4, %v3304_v8  ;;  %v2634_v56 = vadd.f32 %v6244_v40, %v4447_v15  ;;  %v7120_v5 = vld [vmem:[#allocation4_spill] sm:$0xff]  ;;  %v7123_v8 = vmax.f32 %v7122_v39, 0.0  ;;  %v2629_v4 = vadd.f32 %v6244_v40, %v2628_v19  ;;  %v7126_v39 = vld [vmem:[#allocation7_spill] sm:$0xff] }
 0x1c0   : > { %v3162_v61 = vmax.f32 %v7117_v29, %v2946_v59  ;;  %v3234_v24 = vmax.f32 %v7119_v13, %v3090_v55  ;;  %v7121_v58 = vmax.f32 %v7120_v5, 0.0  ;;  %v1909_v59 = vadd.f32 %v6244_v40, %v1908_v45  ;;  %v4234_v5 = vpop.f32.mrb[102].mxu0 }
 0x1c1   : > { %3376 = vst.msk [vmem:[%s6033_s6 + $0xc0] sm:$0xff] %vm3351_vm4, %v3303_v43  ;;  %v3233_v48 = vmax.f32 %v7123_v8, %v3089_v38  ;;  %v2948_v11 = vmax.f32 %v1914_v6, 0.0  ;;  %v3092_v15 = vmax.f32 %v2634_v56, 0.0  ;;  %v3091_v44 = vmax.f32 %v2629_v4, 0.0  ;;  %v7124_v38 = vld [vmem:[#allocation6_spill] sm:$0xff]  ;;  %v1918_v6 = vpop.f32.mrb[103].mxu0 }
 0x1c2   : > { %v3161_v42 = vmax.f32 %v7121_v58, %v2945_v17  ;;  %v3306_v55 = vmax.f32 %v3162_v61, %v3234_v24  ;;  %v2947_v43 = vmax.f32 %v1909_v59, 0.0  ;;  %v4450_v17 = vpop.f32.mrb[102].mxu1  ;;  %v7125_v58 = vmax.f32 %v7124_v38, 0.0  ;;  %v7130_v4 = vld [vmem:[#allocation9_spill] sm:$0xff] }
 0x1c3   : > { %v7127_v19 = vmax.f32 %v7126_v39, 0.0  ;;  %v1924_v61 = vadd.f32 %v6244_v40, %v4234_v5  ;;  %v2644_v24 = vadd.f32 %v6244_v40, %v4450_v17  ;;  %v2638_v56 = vpop.f32.mrb[103].mxu1 }
 0x1c4   : > { %v3305_v9 = vmax.f32 %v3161_v42, %v3233_v48  ;;  %3379 = vst.msk [vmem:[%s6033_s6 + $0xd8] sm:$0xff] %vm3351_vm4, %v3306_v55  ;;  %v3164_v45 = vmax.f32 %v7125_v58, %v2948_v11  ;;  %v7128_v48 = vld [vmem:[#allocation8_spill] sm:$0xff]  ;;  %v7131_v55 = vmax.f32 %v7130_v4, 0.0  ;;  %v1919_v11 = vadd.f32 %v6244_v40, %v1918_v6  ;;  %v7134_v4 = vld [vmem:[#allocation11_spill] sm:$0xff] }
 0x1c5   : > { %v3236_v8 = vmax.f32 %v7127_v19, %v3092_v15  ;;  %v7129_v42 = vmax.f32 %v7128_v48, 0.0  ;;  %v2639_v38 = vadd.f32 %v6244_v40, %v2638_v56  ;;  %v2950_v17 = vmax.f32 %v1924_v61, 0.0  ;;  %v4237_v48 = vpop.f32.mrb[104].mxu0 }
 0x1c6   : > { %3378 = vst.msk [vmem:[%s6033_s6 + $0xd0] sm:$0xff] %vm3351_vm4, %v3305_v9  ;;  %v3235_v29 = vmax.f32 %v7131_v55, %v3091_v44  ;;  %v3094_v58 = vmax.f32 %v2644_v24, 0.0  ;;  %v2949_v9 = vmax.f32 %v1919_v11, 0.0  ;;  %v7132_v44 = vld [vmem:[#allocation10_spill] sm:$0xff]  ;;  %v7135_v56 = vmax.f32 %v7134_v4, 0.0  ;;  %v1928_v61 = vpop.f32.mrb[105].mxu0 }
 0x1c7   : > { %v3163_v59 = vmax.f32 %v7129_v42, %v2947_v43  ;;  %v3308_v5 = vmax.f32 %v3164_v45, %v3236_v8  ;;  %v3093_v13 = vmax.f32 %v2639_v38, 0.0  ;;  %v4453_v43 = vpop.f32.mrb[104].mxu1  ;;  %v7133_v42 = vmax.f32 %v7132_v44, 0.0  ;;  %v7138_v38 = vld [vmem:[#allocation13_spill] sm:$0xff] }
 0x1c8   : > { %v3238_v55 = vmax.f32 %v7135_v56, %v3094_v58  ;;  %v1934_v45 = vadd.f32 %v6244_v40, %v4237_v48  ;;  %v2654_v8 = vadd.f32 %v6244_v40, %v4453_v43  ;;  %v2648_v24 = vpop.f32.mrb[105].mxu1  ;;  %v7140_v58 = vld [vmem:[#allocation83_spill] sm:$0xff]  ;;  %v7141_v56 = vld [vmem:[#allocation84_spill] sm:$0xff] }
 0x1c9   : > { %v3307_v19 = vmax.f32 %v3163_v59, %v3235_v29  ;;  %3381 = vst.msk [vmem:[%s6033_s6 + $0xe8] sm:$0xff] %vm3351_vm4, %v3308_v5  ;;  %v3166_v6 = vmax.f32 %v7133_v42, %v2950_v17  ;;  %v7136_v29 = vld [vmem:[#allocation12_spill] sm:$0xff]  ;;  %v7139_v5 = vmax.f32 %v7138_v38, 0.0  ;;  %v1929_v17 = vadd.f32 %v6244_v40, %v1928_v61  ;;  %v4456_v38 = vpop.f32.mrb[106].mxu1 }
 0x1ca   : > { %v7137_v59 = vmax.f32 %v7136_v29, 0.0  ;;  %v2649_v44 = vadd.f32 %v6244_v40, %v2648_v24  ;;  %v6360_v48 = vadd.f32 %v6244_v40, %v7140_v58  ;;  %v2952_v42 = vmax.f32 %v1934_v45, 0.0 }
 0x1cb   : > { %3380 = vst.msk [vmem:[%s6033_s6 + $0xe0] sm:$0xff] %vm3351_vm4, %v3307_v19  ;;  %v3237_v39 = vmax.f32 %v7139_v5, %v3093_v13  ;;  %v3310_v43 = vmax.f32 %v3166_v6, %v3238_v55  ;;  %v3096_v4 = vmax.f32 %v2654_v8, 0.0  ;;  %v6364_v19 = vadd.f32 %v6244_v40, %v7141_v56  ;;  %v4240_v13 = vpop.f32.mrb[106].mxu0  ;;  %v7143_v5 = vld [vmem:[#allocation14_spill] sm:$0xff]  ;;  %v2658_v56 = vpop.f32.mrb[107].mxu1 }
 0x1cc   : > { %v3165_v11 = vmax.f32 %v7137_v59, %v2949_v9  ;;  %v2951_v29 = vmax.f32 %v1929_v17, 0.0  ;;  %v3095_v59 = vmax.f32 %v2649_v44, 0.0  ;;  %v7142_v61 = vmax.f32 %v5739_v12, 0.0  ;;  %v1938_v8 = vpop.f32.mrb[107].mxu0  ;;  %v7147_v44 = vld [vmem:[#allocation16_spill] sm:$0xff] }
 0x1cd   : > { %3383 = vst.msk [vmem:[%s6033_s6 + $0xf8] sm:$0xff] %vm3351_vm4, %v3310_v43  ;;  %v7144_v58 = vmax.f32 %v7143_v5, 0.0  ;;  %v1944_v55 = vadd.f32 %v6244_v40, %v4240_v13  ;;  %v2664_v45 = vadd.f32 %v6244_v40, %v4456_v38  ;;  %v7148_v43 = vmax.f32 %v7147_v44, 0.0  ;;  %v4459_v44 = vpop.f32.mrb[108].mxu1 }
 0x1ce   : > { %v3309_v9 = vmax.f32 %v3165_v11, %v3237_v39  ;;  %v3168_v24 = vmax.f32 %v7142_v61, %v2952_v42  ;;  %v7145_v39 = vld [vmem:[#allocation15_spill] sm:$0xff]  ;;  %v1939_v12 = vadd.f32 %v6244_v40, %v1938_v8  ;;  %v2659_v42 = vadd.f32 %v6244_v40, %v2658_v56  ;;  %v7151_v8 = vld [vmem:[#allocation17_spill] sm:$0xff] }
 0x1cf   : > { %v3240_v6 = vmax.f32 %v7144_v58, %v3096_v4  ;;  %v7146_v11 = vmax.f32 %v7145_v39, 0.0  ;;  %v3239_v15 = vmax.f32 %v7148_v43, %v3095_v59  ;;  %v7149_v4 = vld [vmem:[#allocation85_spill] sm:$0xff]  ;;  %v2954_v61 = vmax.f32 %v1944_v55, 0.0  ;;  %v7150_v58 = vld [vmem:[#allocation86_spill] sm:$0xff]  ;;  %v4243_v59 = vpop.f32.mrb[108].mxu0 }
 0x1d0   : > { %3382 = vst.msk [vmem:[%s6033_s6 + $0xf0] sm:$0xff] %vm3351_vm4, %v3309_v9  ;;  %v6384_v13 = vadd.f32 %v6244_v40, %v7149_v4  ;;  %v3098_v5 = vmax.f32 %v2664_v45, 0.0  ;;  %v6388_v9 = vadd.f32 %v6244_v40, %v7150_v58  ;;  %v2953_v39 = vmax.f32 %v1939_v12, 0.0  ;;  %v7153_v4 = vld [vmem:[#allocation18_spill] sm:$0xff]  ;;  %v1948_v45 = vpop.f32.mrb[109].mxu0  ;;  %v2668_v58 = vpop.f32.mrb[109].mxu1 }
 0x1d1   : > { %v3167_v17 = vmax.f32 %v7146_v11, %v2951_v29  ;;  %v3312_v38 = vmax.f32 %v3168_v24, %v3240_v6  ;;  %v3097_v11 = vmax.f32 %v2659_v42, 0.0  ;;  %v7152_v56 = vmax.f32 %v7151_v8, 0.0  ;;  %v7157_v42 = vld [vmem:[#allocation20_spill] sm:$0xff] }
 0x1d2   : > { %v7154_v35 = vmax.f32 %v7153_v4, 0.0  ;;  %v1954_v6 = vadd.f32 %v6244_v40, %v4243_v59  ;;  %v2674_v55 = vadd.f32 %v6244_v40, %v4459_v44  ;;  %v2669_v8 = vadd.f32 %v6244_v40, %v2668_v58 }
 0x1d3   : > { %v3311_v29 = vmax.f32 %v3167_v17, %v3239_v15  ;;  %3385 = vst.msk [vmem:[%s6033_s6 + $0x108] sm:$0xff] %vm3351_vm4, %v3312_v38  ;;  %v3170_v43 = vmax.f32 %v7152_v56, %v2954_v61  ;;  %v7155_v15 = vld [vmem:[#allocation19_spill] sm:$0xff]  ;;  %v7158_v38 = vmax.f32 %v7157_v42, 0.0  ;;  %v1949_v61 = vadd.f32 %v6244_v40, %v1948_v45  ;;  %v7161_v42 = vld [vmem:[#allocation22_spill] sm:$0xff] }
 0x1d4   : > { %v3242_v24 = vmax.f32 %v7154_v35, %v3098_v5  ;;  %v7156_v17 = vmax.f32 %v7155_v15, 0.0  ;;  %v2956_v59 = vmax.f32 %v1954_v6, 0.0  ;;  %v3100_v44 = vmax.f32 %v2674_v55, 0.0  ;;  %v4246_v15 = vpop.f32.mrb[110].mxu0 }
 0x1d5   : > { %3384 = vst.msk [vmem:[%s6033_s6 + $0x100] sm:$0xff] %vm3351_vm4, %v3311_v29  ;;  %v3241_v16 = vmax.f32 %v7158_v38, %v3097_v11  ;;  %v2955_v29 = vmax.f32 %v1949_v61, 0.0  ;;  %v3099_v51 = vmax.f32 %v2669_v8, 0.0  ;;  %v7159_v11 = vld [vmem:[#allocation21_spill] sm:$0xff]  ;;  %v7162_v58 = vmax.f32 %v7161_v42, 0.0  ;;  %v1958_v6 = vpop.f32.mrb[111].mxu0 }
 0x1d6   : > { %v3169_v12 = vmax.f32 %v7156_v17, %v2953_v39  ;;  %v3314_v5 = vmax.f32 %v3170_v43, %v3242_v24  ;;  %v4462_v39 = vpop.f32.mrb[110].mxu1  ;;  %v7160_v17 = vmax.f32 %v7159_v11, 0.0  ;;  %v1964_v43 = vadd.f32 %v6244_v40, %v4246_v15  ;;  %v7165_v8 = vld [vmem:[#allocation24_spill] sm:$0xff] }
 0x1d7   : > { %v3244_v38 = vmax.f32 %v7162_v58, %v3100_v44  ;;  %v2684_v24 = vadd.f32 %v6244_v40, %v4462_v39  ;;  %v2678_v55 = vpop.f32.mrb[111].mxu1  ;;  %v2909_v44 = vmax.f32 %v6384_v13, 0.0 }
 0x1d8   : > { %v3313_v4 = vmax.f32 %v3169_v12, %v3241_v16  ;;  %3387 = vst.msk [vmem:[%s6033_s6 + $0x118] sm:$0xff] %vm3351_vm4, %v3314_v5  ;;  %v3172_v45 = vmax.f32 %v7160_v17, %v2956_v59  ;;  %v7163_v16 = vld [vmem:[#allocation23_spill] sm:$0xff]  ;;  %v7166_v5 = vmax.f32 %v7165_v8, 0.0  ;;  %v1959_v59 = vadd.f32 %v6244_v40, %v1958_v6  ;;  %v7169_v8 = vld [vmem:[#allocation89_spill] sm:$0xff] }
 0x1d9   : > { %v7164_v12 = vmax.f32 %v7163_v16, 0.0  ;;  %v2679_v11 = vadd.f32 %v6244_v40, %v2678_v55  ;;  %v2958_v39 = vmax.f32 %v1964_v43, 0.0  ;;  %v3102_v17 = vmax.f32 %v2684_v24, 0.0  ;;  %v4249_v16 = vpop.f32.mrb[112].mxu0 }
 0x1da   : > { %3386 = vst.msk [vmem:[%s6033_s6 + $0x110] sm:$0xff] %vm3351_vm4, %v3313_v4  ;;  %v3243_v56 = vmax.f32 %v7166_v5, %v3099_v51  ;;  %v3316_v15 = vmax.f32 %v3172_v45, %v3244_v38  ;;  %v2957_v4 = vmax.f32 %v1959_v59, 0.0  ;;  %v7167_v51 = vld [vmem:[#allocation25_spill] sm:$0xff]  ;;  %v7170_v55 = vmax.f32 %v7169_v8, 0.0  ;;  %v1968_v43 = vpop.f32.mrb[113].mxu0  ;;  %v7172_v59 = vld [vmem:[#allocation26_spill] sm:$0xff] }
 0x1db   : > { %v3171_v61 = vmax.f32 %v7164_v12, %v2955_v29  ;;  %v3101_v35 = vmax.f32 %v2679_v11, 0.0  ;;  %v4465_v29 = vpop.f32.mrb[112].mxu1  ;;  %v7168_v12 = vmax.f32 %v7167_v51, 0.0  ;;  %v1974_v45 = vadd.f32 %v6244_v40, %v4249_v16 }
 0x1dc   : > { %3389 = vst.msk [vmem:[%s6033_s6 + $0x128] sm:$0xff] %vm3351_vm4, %v3316_v15  ;;  %v3246_v5 = vmax.f32 %v7170_v55, %v3102_v17  ;;  %v2694_v38 = vadd.f32 %v6244_v40, %v4465_v29  ;;  %v2688_v24 = vpop.f32.mrb[113].mxu1  ;;  %v7173_v11 = vmax.f32 %v7172_v59, 0.0  ;;  %v7174_v17 = vld [vmem:[#allocation87_spill] sm:$0xff]  ;;  %v7175_v55 = vld [vmem:[#allocation88_spill] sm:$0xff] }
 0x1dd   : > { %v3315_v58 = vmax.f32 %v3171_v61, %v3243_v56  ;;  %v3174_v6 = vmax.f32 %v7168_v12, %v2958_v39  ;;  %v7171_v56 = vmax.f32 %v5825_v23, 0.0  ;;  %v1969_v39 = vadd.f32 %v6244_v40, %v1968_v43  ;;  %v4468_v59 = vpop.f32.mrb[114].mxu1  ;;  %v7176_v43 = vld [vmem:[#allocation27_spill] sm:$0xff] }
 0x1de   : > { %v3245_v15 = vmax.f32 %v7173_v11, %v3101_v35  ;;  %v2689_v51 = vadd.f32 %v6244_v40, %v2688_v24  ;;  %v6444_v16 = vadd.f32 %v6244_v40, %v7174_v17  ;;  %v2960_v12 = vmax.f32 %v1974_v45, 0.0  ;;  %v4252_v35 = vpop.f32.mrb[114].mxu0  ;;  %v7178_v17 = vld [vmem:[#allocation28_spill] sm:$0xff] }
 0x1df   : > { %3388 = vst.msk [vmem:[%s6033_s6 + $0x120] sm:$0xff] %vm3351_vm4, %v3315_v58  ;;  %v3173_v61 = vmax.f32 %v7171_v56, %v2957_v4  ;;  %v3318_v29 = vmax.f32 %v3174_v6, %v3246_v5  ;;  %v3104_v8 = vmax.f32 %v2694_v38, 0.0  ;;  %v6448_v58 = vadd.f32 %v6244_v40, %v7175_v55  ;;  %v1978_v38 = vpop.f32.mrb[115].mxu0  ;;  %v2698_v55 = vpop.f32.mrb[115].mxu1 }
 0x1e0   : > { %v2959_v4 = vmax.f32 %v1969_v39, 0.0  ;;  %v3103_v56 = vmax.f32 %v2689_v51, 0.0  ;;  %v7177_v24 = vmax.f32 %v7176_v43, 0.0  ;;  %v7179_v42 = vmax.f32 %v7178_v17, 0.0  ;;  %v4471_v17 = vpop.f32.mrb[116].mxu1 }
 0x1e1   : > { %v3317_v23 = vmax.f32 %v3173_v61, %v3245_v15  ;;  %3391 = vst.msk [vmem:[%s6033_s6 + $0x138] sm:$0xff] %vm3351_vm4, %v3318_v29  ;;  %v1984_v5 = vadd.f32 %v6244_v40, %v4252_v35  ;;  %v2704_v45 = vadd.f32 %v6244_v40, %v4468_v59  ;;  %v7180_v61 = vmax.f32 %v5843_v0, 0.0 }
 0x1e2   : > { %v3176_v11 = vmax.f32 %v7177_v24, %v2960_v12  ;;  %v3248_v6 = vmax.f32 %v7179_v42, %v3104_v8  ;;  %v7181_v39 = vmax.f32 %v5847_v10, 0.0  ;;  %v1979_v29 = vadd.f32 %v6244_v40, %v1978_v38  ;;  %v7182_v42 = vld [vmem:[#allocation90_spill] sm:$0xff]  ;;  %v7183_v24 = vld [vmem:[#allocation91_spill] sm:$0xff] }
 0x1e3   : > { %3390 = vst.msk [vmem:[%s6033_s6 + $0x130] sm:$0xff] %vm3351_vm4, %v3317_v23  ;;  %v3175_v15 = vmax.f32 %v7180_v61, %v2959_v4  ;;  %v2699_v12 = vadd.f32 %v6244_v40, %v2698_v55  ;;  %v6468_v8 = vadd.f32 %v6244_v40, %v7182_v42  ;;  %v2962_v59 = vmax.f32 %v1984_v5, 0.0  ;;  %v7185_v61 = vld [vmem:[#allocation29_spill] sm:$0xff]  ;;  %v2708_v42 = vpop.f32.mrb[117].mxu1 }
 0x1e4   : > { %v3247_v51 = vmax.f32 %v7181_v39, %v3103_v56  ;;  %v3320_v35 = vmax.f32 %v3176_v11, %v3248_v6  ;;  %v3106_v43 = vmax.f32 %v2704_v45, 0.0  ;;  %v6472_v23 = vadd.f32 %v6244_v40, %v7183_v24  ;;  %v4255_v56 = vpop.f32.mrb[116].mxu0 }
 0x1e5   : > { %v2961_v4 = vmax.f32 %v1979_v29, 0.0  ;;  %v3105_v10 = vmax.f32 %v2699_v12, 0.0  ;;  %v7184_v38 = vmax.f32 %v5851_v52, 0.0  ;;  %v7186_v39 = vmax.f32 %v7185_v61, 0.0  ;;  %v1988_v45 = vpop.f32.mrb[117].mxu0  ;;  %v7188_v29 = vld [vmem:[#allocation32_spill] sm:$0xff] }
 0x1e6   : > { %v3319_v0 = vmax.f32 %v3175_v15, %v3247_v51  ;;  %3393 = vst.msk [vmem:[%s6033_s6 + $0x148] sm:$0xff] %vm3351_vm4, %v3320_v35  ;;  %v1994_v6 = vadd.f32 %v6244_v40, %v4255_v56  ;;  %v2714_v5 = vadd.f32 %v6244_v40, %v4471_v17  ;;  %v7187_v15 = vmax.f32 %v5865_v20, 0.0  ;;  %v4258_v20 = vpop.f32.mrb[118].mxu0 }
 0x1e7   : > { %v3178_v55 = vmax.f32 %v7184_v38, %v2962_v59  ;;  %v3250_v11 = vmax.f32 %v7186_v39, %v3106_v43  ;;  %v7189_v12 = vmax.f32 %v7188_v29, 0.0  ;;  %v1989_v52 = vadd.f32 %v6244_v40, %v1988_v45 }
 0x1e8   : > { %3392 = vst.msk [vmem:[%s6033_s6 + $0x140] sm:$0xff] %vm3351_vm4, %v3319_v0  ;;  %v3177_v51 = vmax.f32 %v7187_v15, %v2961_v4  ;;  %v2709_v59 = vadd.f32 %v6244_v40, %v2708_v42  ;;  %v2912_v43 = vmax.f32 %v6444_v16, 0.0  ;;  %v2964_v56 = vmax.f32 %v1994_v6, 0.0  ;;  %v4474_v4 = vpop.f32.mrb[118].mxu1  ;;  %v1998_v6 = vpop.f32.mrb[119].mxu0 }
 0x1e9   : > { %v3249_v35 = vmax.f32 %v7189_v12, %v3105_v10  ;;  %v3322_v24 = vmax.f32 %v3178_v55, %v3250_v11  ;;  %v3108_v17 = vmax.f32 %v2714_v5, 0.0  ;;  %v3056_v38 = vmax.f32 %v6448_v58, 0.0  ;;  %v2718_v5 = vpop.f32.mrb[119].mxu1 }
 0x1ea   : > { %v2963_v0 = vmax.f32 %v1989_v52, 0.0  ;;  %v3107_v39 = vmax.f32 %v2709_v59, 0.0  ;;  %v7190_v10 = vmax.f32 %v5879_v28, 0.0  ;;  %v7191_v42 = vmax.f32 %v5883_v47, 0.0 }
 0x1eb   : > { %v3321_v61 = vmax.f32 %v3177_v51, %v3249_v35  ;;  %3395 = vst.msk [vmem:[%s6033_s6 + $0x158] sm:$0xff] %vm3351_vm4, %v3322_v24  ;;  %v2004_v55 = vadd.f32 %v6244_v40, %v4258_v20  ;;  %v2724_v11 = vadd.f32 %v6244_v40, %v4474_v4  ;;  %v7192_v51 = vmax.f32 %v5889_v26, 0.0  ;;  %v4261_v26 = vpop.f32.mrb[120].mxu0 }
 0x1ec   : > { %v3180_v45 = vmax.f32 %v7190_v10, %v2964_v56  ;;  %v3252_v15 = vmax.f32 %v7191_v42, %v3108_v17  ;;  %v7193_v12 = vmax.f32 %v5893_v27, 0.0  ;;  %v1999_v28 = vadd.f32 %v6244_v40, %v1998_v6  ;;  %v7196_v6 = vld [vmem:[#allocation39_spill] sm:$0xff] }
 0x1ed   : > { %3394 = vst.msk [vmem:[%s6033_s6 + $0x150] sm:$0xff] %vm3351_vm4, %v3321_v61  ;;  %v3179_v29 = vmax.f32 %v7192_v51, %v2963_v0  ;;  %v2719_v47 = vadd.f32 %v6244_v40, %v2718_v5  ;;  %v2911_v52 = vmax.f32 %v6468_v8, 0.0  ;;  %v2966_v24 = vmax.f32 %v2004_v55, 0.0  ;;  %v4477_v0 = vpop.f32.mrb[120].mxu1  ;;  %v2008_v55 = vpop.f32.mrb[121].mxu0 }
 0x1ee   : > { %v3251_v35 = vmax.f32 %v7193_v12, %v3107_v39  ;;  %v3324_v59 = vmax.f32 %v3180_v45, %v3252_v15  ;;  %v3110_v56 = vmax.f32 %v2724_v11, 0.0  ;;  %v3055_v17 = vmax.f32 %v6472_v23, 0.0  ;;  %v2728_v11 = vpop.f32.mrb[121].mxu1 }
 0x1ef   : > { %v2965_v61 = vmax.f32 %v1999_v28, 0.0  ;;  %v3109_v4 = vmax.f32 %v2719_v47, 0.0  ;;  %v7194_v27 = vmax.f32 %v5911_v7, 0.0  ;;  %v7195_v10 = vmax.f32 %v5915_v21, 0.0  ;;  %v7200_v28 = vld [vmem:[#allocation30_spill] sm:$0xff] }
 0x1f0   : > { %v3323_v20 = vmax.f32 %v3179_v29, %v3251_v35  ;;  %3397 = vst.msk [vmem:[%s6033_s6 + $0x168] sm:$0xff] %vm3351_vm4, %v3324_v59  ;;  %v2014_v45 = vadd.f32 %v6244_v40, %v4261_v26  ;;  %v2734_v15 = vadd.f32 %v6244_v40, %v4477_v0  ;;  %v7197_v5 = vmax.f32 %v7196_v6, 0.0  ;;  %v7198_v29 = vld [vmem:[#allocation41_spill] sm:$0xff]  ;;  %v7201_v26 = vld [vmem:[#allocation31_spill] sm:$0xff] }
 0x1f1   : > { %v3182_v39 = vmax.f32 %v7194_v27, %v2966_v24  ;;  %v3254_v42 = vmax.f32 %v7195_v10, %v3110_v56  ;;  %v7199_v12 = vmax.f32 %v7198_v29, 0.0  ;;  %v2009_v7 = vadd.f32 %v6244_v40, %v2008_v55  ;;  %v4480_v10 = vpop.f32.mrb[122].mxu1  ;;  %v7202_v55 = vld [vmem:[#allocation42_spill] sm:$0xff] }
 0x1f2   : > { %3396 = vst.msk [vmem:[%s6033_s6 + $0x160] sm:$0xff] %vm3351_vm4, %v3323_v20  ;;  %v3181_v51 = vmax.f32 %v7197_v5, %v2965_v61  ;;  %v2729_v21 = vadd.f32 %v6244_v40, %v2728_v11  ;;  %v6528_v47 = vadd.f32 %v6244_v40, %v7200_v28  ;;  %v2968_v24 = vmax.f32 %v2014_v45, 0.0  ;;  %v7204_v5 = vld [vmem:[#allocation44_spill] sm:$0xff] }
 0x1f3   : > { %v3253_v35 = vmax.f32 %v7199_v12, %v3109_v4  ;;  %v3326_v59 = vmax.f32 %v3182_v39, %v3254_v42  ;;  %v3112_v56 = vmax.f32 %v2734_v15, 0.0  ;;  %v6532_v20 = vadd.f32 %v6244_v40, %v7201_v26  ;;  %v4264_v4 = vpop.f32.mrb[122].mxu0  ;;  %v2738_v12 = vpop.f32.mrb[123].mxu1 }
 0x1f4   : > { %v2967_v0 = vmax.f32 %v2009_v7, 0.0  ;;  %v3111_v27 = vmax.f32 %v2729_v21, 0.0  ;;  %v7203_v11 = vmax.f32 %v7202_v55, 0.0  ;;  %v7205_v29 = vmax.f32 %v7204_v5, 0.0  ;;  %v2018_v15 = vpop.f32.mrb[123].mxu0  ;;  %v7209_v55 = vld [vmem:[#allocation34_spill] sm:$0xff] }
 0x1f5   : > { %v3325_v61 = vmax.f32 %v3181_v51, %v3253_v35  ;;  %3399 = vst.msk [vmem:[%s6033_s6 + $0x178] sm:$0xff] %vm3351_vm4, %v3326_v59  ;;  %v2024_v42 = vadd.f32 %v6244_v40, %v4264_v4  ;;  %v2744_v45 = vadd.f32 %v6244_v40, %v4480_v10  ;;  %v7206_v51 = vmax.f32 %v5944_v18, 0.0 }
 0x1f6   : > { %v3184_v6 = vmax.f32 %v7203_v11, %v2968_v24  ;;  %v3256_v39 = vmax.f32 %v7205_v29, %v3112_v56  ;;  %v7207_v7 = vmax.f32 %v5948_v14, 0.0  ;;  %v2019_v28 = vadd.f32 %v6244_v40, %v2018_v15  ;;  %v7208_v24 = vld [vmem:[#allocation33_spill] sm:$0xff]  ;;  %v4483_v11 = vpop.f32.mrb[124].mxu1 }
 0x1f7   : > { %3398 = vst.msk [vmem:[%s6033_s6 + $0x170] sm:$0xff] %vm3351_vm4, %v3325_v61  ;;  %v3183_v35 = vmax.f32 %v7206_v51, %v2967_v0  ;;  %v2739_v59 = vadd.f32 %v6244_v40, %v2738_v12  ;;  %v6552_v56 = vadd.f32 %v6244_v40, %v7208_v24  ;;  %v2970_v4 = vmax.f32 %v2024_v42, 0.0  ;;  %v7211_v15 = vld [vmem:[#allocation45_spill] sm:$0xff]  ;;  %v2748_v51 = vpop.f32.mrb[125].mxu1 }
 0x1f8   : > { %v3255_v21 = vmax.f32 %v7207_v7, %v3111_v27  ;;  %v3328_v26 = vmax.f32 %v3184_v6, %v3256_v39  ;;  %v3114_v10 = vmax.f32 %v2744_v45, 0.0  ;;  %v6556_v61 = vadd.f32 %v6244_v40, %v7209_v55  ;;  %v4267_v27 = vpop.f32.mrb[124].mxu0 }
 0x1f9   : > { %v2969_v0 = vmax.f32 %v2019_v28, 0.0  ;;  %v3113_v14 = vmax.f32 %v2739_v59, 0.0  ;;  %v7210_v5 = vmax.f32 %v5952_v22, 0.0  ;;  %v7212_v12 = vmax.f32 %v7211_v15, 0.0  ;;  %v2028_v45 = vpop.f32.mrb[125].mxu0 }
 0x1fa   : > { %v3327_v18 = vmax.f32 %v3183_v35, %v3255_v21  ;;  %3401 = vst.msk [vmem:[%s6033_s6 + $0x188] sm:$0xff] %vm3351_vm4, %v3328_v26  ;;  %v2034_v39 = vadd.f32 %v6244_v40, %v4267_v27  ;;  %v2754_v42 = vadd.f32 %v6244_v40, %v4483_v11  ;;  %v7213_v35 = vld [vmem:[#allocation94_spill] sm:$0xff]  ;;  %v7215_v28 = vmax.f32 %v5970_v57, 0.0  ;;  %v4270_v15 = vpop.f32.mrb[126].mxu0  ;;  %v7216_v57 = vld [vmem:[#allocation97_spill] sm:$0xff] }
 0x1fb   : > { %v3186_v29 = vmax.f32 %v7210_v5, %v2970_v4  ;;  %v3258_v6 = vmax.f32 %v7212_v12, %v3114_v10  ;;  %v7214_v7 = vmax.f32 %v7213_v35, 0.0  ;;  %v2029_v22 = vadd.f32 %v6244_v40, %v2028_v45  ;;  %v7218_v45 = vld [vmem:[#allocation98_spill] sm:$0xff] }
 0x1fc   : > { %3400 = vst.msk [vmem:[%s6033_s6 + $0x180] sm:$0xff] %vm3351_vm4, %v3327_v18  ;;  %v3257_v59 = vmax.f32 %v7215_v28, %v3113_v14  ;;  %v2749_v24 = vadd.f32 %v6244_v40, %v2748_v51  ;;  %v2914_v26 = vmax.f32 %v6528_v47, 0.0  ;;  %v2972_v10 = vmax.f32 %v2034_v39, 0.0  ;;  %v2038_v39 = vpop.f32.mrb[127].mxu0  ;;  %v4535_v47 = vld [vmem:[%s6766_s2] ss:$0 sm:$0xff] }
 0x1fd   : > { %v3185_v21 = vmax.f32 %v7214_v7, %v2969_v0  ;;  %v3330_v4 = vmax.f32 %v3186_v29, %v3258_v6  ;;  %v3116_v55 = vmax.f32 %v2754_v42, 0.0  ;;  %v3058_v27 = vmax.f32 %v6532_v20, 0.0  ;;  %v4486_v0 = vpop.f32.mrb[126].mxu1  ;;  %v7220_v7 = vld [vmem:[#allocation99_spill] sm:$0xff] }
 0x1fe   : > { %v2971_v18 = vmax.f32 %v2029_v22, 0.0  ;;  %v3115_v5 = vmax.f32 %v2749_v24, 0.0  ;;  %v7217_v14 = vmax.f32 %v7216_v57, 0.0  ;;  %v7219_v51 = vmax.f32 %v7218_v45, 0.0  ;;  %v2758_v42 = vpop.f32.mrb[127].mxu1 }
 0x1ff   : > { %v3329_v11 = vmax.f32 %v3185_v21, %v3257_v59  ;;  %3403 = vst.msk [vmem:[%s6033_s6 + $0x198] sm:$0xff] %vm3351_vm4, %v3330_v4  ;;  %v2044_v29 = vadd.f32 %v6244_v40, %v4270_v15  ;;  %v2764_v6 = vadd.f32 %v6244_v40, %v4486_v0  ;;  %v7221_v21 = vmax.f32 %v7220_v7, 0.0  ;;  %v7222_v59 = vld [vmem:[#allocation100_spill] sm:$0xff]  ;;  %v4273_v7 = vpop.f32.mrb[128].mxu0 }
 0x200   : > { %v3188_v12 = vmax.f32 %v7217_v14, %v2972_v10  ;;  %v3260_v35 = vmax.f32 %v7219_v51, %v3116_v55  ;;  %v7223_v22 = vmax.f32 %v7222_v59, 0.0  ;;  %v2039_v4 = vadd.f32 %v6244_v40, %v2038_v39 }
 0x201   : > { %3402 = vst.msk [vmem:[%s6033_s6 + $0x190] sm:$0xff] %vm3351_vm4, %v3329_v11  ;;  %v3187_v28 = vmax.f32 %v7221_v21, %v2971_v18  ;;  %v2759_v10 = vadd.f32 %v6244_v40, %v2758_v42  ;;  %v2913_v55 = vmax.f32 %v6552_v56, 0.0  ;;  %v2974_v0 = vmax.f32 %v2044_v29, 0.0  ;;  %v4489_v18 = vpop.f32.mrb[128].mxu1  ;;  %v2048_v29 = vpop.f32.mrb[129].mxu0 }
 0x202   : > { %v3259_v24 = vmax.f32 %v7223_v22, %v3115_v5  ;;  %v3332_v15 = vmax.f32 %v3188_v12, %v3260_v35  ;;  %v3118_v57 = vmax.f32 %v2764_v6, 0.0  ;;  %v3057_v14 = vmax.f32 %v6556_v61, 0.0  ;;  %v2768_v6 = vpop.f32.mrb[129].mxu1 }
 0x203   : > { %v2973_v11 = vmax.f32 %v2039_v4, 0.0  ;;  %v3117_v51 = vmax.f32 %v2759_v10, 0.0  ;;  %v3190_v5 = vmax.f32 %v2902_v54, %v2974_v0  ;;  %v7224_v39 = vmax.f32 %v6022_v1, 0.0  ;;  %v7225_v54 = vld [vmem:[#allocation35_spill] sm:$0xff]  ;;  %v7226_v10 = vld [vmem:[#allocation36_spill] sm:$0xff]  ;;  %v4492_v0 = vpop.f32.mrb[130].mxu1 }
 0x204   : > { %v3331_v45 = vmax.f32 %v3187_v28, %v3259_v24  ;;  %3405 = vst.msk [vmem:[%s6033_s6 + $0x1a8] sm:$0xff] %vm3351_vm4, %v3332_v15  ;;  %v2054_v12 = vadd.f32 %v6244_v40, %v4273_v7  ;;  %v2774_v35 = vadd.f32 %v6244_v40, %v4489_v18  ;;  %v2049_v36 = vadd.f32 %v6244_v40, %v2048_v29 }
 0x205   : > { %v3262_v42 = vmax.f32 %v7224_v39, %v3118_v57  ;;  %v3189_v21 = vmax.f32 %v2901_v46, %v2973_v11  ;;  %v3261_v28 = vmax.f32 %v3045_v33, %v3117_v51  ;;  %v2769_v1 = vadd.f32 %v6244_v40, %v2768_v6  ;;  %v4276_v33 = vpop.f32.mrb[130].mxu0 }
 0x206   : > { %3404 = vst.msk [vmem:[%s6033_s6 + $0x1a0] sm:$0xff] %vm3351_vm4, %v3331_v45  ;;  %v6612_v59 = vadd.f32 %v6244_v40, %v7225_v54  ;;  %v2976_v24 = vmax.f32 %v2054_v12, 0.0  ;;  %v3120_v4 = vmax.f32 %v2774_v35, 0.0  ;;  %v6616_v15 = vadd.f32 %v6244_v40, %v7226_v10  ;;  %v2058_v18 = vpop.f32.mrb[131].mxu0 }
 0x207   : > { %v3334_v22 = vmax.f32 %v3190_v5, %v3262_v42  ;;  %v3333_v31 = vmax.f32 %v3189_v21, %v3261_v28  ;;  %v2975_v46 = vmax.f32 %v2049_v36, 0.0  ;;  %v3119_v60 = vmax.f32 %v2769_v1, 0.0  ;;  %v2778_v5 = vpop.f32.mrb[131].mxu1  ;;  %v7231_v36 = vld [vmem:[#allocation38_spill] sm:$0xff] }
 0x208   : > { %v3192_v57 = vmax.f32 %v2904_v41, %v2976_v24  ;;  %v7227_v45 = vmax.f32 %v6107_v53, 0.0  ;;  %v2064_v51 = vadd.f32 %v6244_v40, %v4276_v33  ;;  %v2784_v7 = vadd.f32 %v6244_v40, %v4492_v0  ;;  %v7230_v41 = vld [vmem:[#allocation37_spill] sm:$0xff]  ;;  %v4495_v24 = vpop.f32.mrb[132].mxu1 }
 0x209   : > { %3407 = vst.msk [vmem:[%s6033_s6 + $0x1b8] sm:$0xff] %vm3351_vm4, %v3334_v22  ;;  %3406 = vst.msk [vmem:[%s6033_s6 + $0x1b0] sm:$0xff] %vm3351_vm4, %v3333_v31  ;;  %v7228_v39 = vmax.f32 %v6127_v34, 0.0  ;;  %v7229_v12 = vmax.f32 %v6131_v2, 0.0  ;;  %v2059_v30 = vadd.f32 %v6244_v40, %v2058_v18  ;;  %v2779_v53 = vadd.f32 %v6244_v40, %v2778_v5  ;;  %v4279_v22 = vpop.f32.mrb[132].mxu0 }
 0x20a   : > { %v3264_v11 = vmax.f32 %v7227_v45, %v3120_v4  ;;  %v6636_v29 = vadd.f32 %v6244_v40, %v7230_v41  ;;  %v2978_v21 = vmax.f32 %v2064_v51, 0.0  ;;  %v3122_v28 = vmax.f32 %v2784_v7, 0.0  ;;  %v2068_v0 = vpop.f32.mrb[133].mxu0 }
 0x20b   : > { %v3191_v42 = vmax.f32 %v7228_v39, %v2975_v46  ;;  %v3263_v35 = vmax.f32 %v7229_v12, %v3119_v60  ;;  %v6640_v1 = vadd.f32 %v6244_v40, %v7231_v36  ;;  %v2977_v54 = vmax.f32 %v2059_v30, 0.0 }
 0x20c   : > { %v3336_v6 = vmax.f32 %v3192_v57, %v3264_v11  ;;  %v3121_v2 = vmax.f32 %v2779_v53, 0.0  ;;  %v7232_v4 = vmax.f32 %v6187_v32, 0.0  ;;  %v7233_v31 = vmax.f32 %v6191_v37, 0.0  ;;  %v2788_v57 = vpop.f32.mrb[133].mxu1 }
 0x20d   : > { %v3335_v34 = vmax.f32 %v3191_v42, %v3263_v35  ;;  %v2074_v60 = vadd.f32 %v6244_v40, %v4279_v22  ;;  %v2794_v33 = vadd.f32 %v6244_v40, %v4495_v24  ;;  %v7234_v45 = vmax.f32 %v6211_v63, 0.0  ;;  %v4282_v63 = vpop.f32.mrb[134].mxu0  ;;  %v4498_v41 = vpop.f32.mrb[134].mxu1 }
 0x20e   : > { %3409 = vst.msk [vmem:[%s6033_s6 + $0x1c8] sm:$0xff] %vm3351_vm4, %v3336_v6  ;;  %v3194_v10 = vmax.f32 %v7232_v4, %v2978_v21  ;;  %v3266_v46 = vmax.f32 %v7233_v31, %v3122_v28  ;;  %v7235_v51 = vmax.f32 %v6215_v50, 0.0  ;;  %v2069_v32 = vadd.f32 %v6244_v40, %v2068_v0 }
 0x20f   : > { %3408 = vst.msk [vmem:[%s6033_s6 + $0x1c0] sm:$0xff] %vm3351_vm4, %v3335_v34  ;;  %v3193_v11 = vmax.f32 %v7234_v45, %v2977_v54  ;;  %v2789_v37 = vadd.f32 %v6244_v40, %v2788_v57  ;;  %v2916_v18 = vmax.f32 %v6612_v59, 0.0  ;;  %v2980_v39 = vmax.f32 %v2074_v60, 0.0  ;;  %v2078_v54 = vpop.f32.mrb[135].mxu0 }
 0x210   : > { %v3265_v7 = vmax.f32 %v7235_v51, %v3121_v2  ;;  %v3338_v5 = vmax.f32 %v3194_v10, %v3266_v46  ;;  %v3124_v42 = vmax.f32 %v2794_v33, 0.0  ;;  %v3060_v12 = vmax.f32 %v6616_v15, 0.0  ;;  %v2798_v2 = vpop.f32.mrb[135].mxu1 }
 0x211   : > { %v2979_v30 = vmax.f32 %v2069_v32, 0.0  ;;  %v3123_v53 = vmax.f32 %v2789_v37, 0.0  ;;  %v7236_v50 = vmax.f32 %v6276_v49, 0.0  ;;  %v7237_v21 = vmax.f32 %v6280_v62, 0.0  ;;  %v4501_v51 = vpop.f32.mrb[136].mxu1 }
 0x212   : > { %v3337_v35 = vmax.f32 %v3193_v11, %v3265_v7  ;;  %3411 = vst.msk [vmem:[%s6033_s6 + $0x1d8] sm:$0xff] %vm3351_vm4, %v3338_v5  ;;  %v2084_v36 = vadd.f32 %v6244_v40, %v4282_v63  ;;  %v2804_v34 = vadd.f32 %v6244_v40, %v4498_v41  ;;  %v7238_v22 = vmax.f32 %v6300_v25, 0.0  ;;  %v4285_v25 = vpop.f32.mrb[136].mxu0  ;;  %v7243_v41 = vld [vmem:[#allocation92_spill] sm:$0xff] }
 0x213   : > { %v3196_v6 = vmax.f32 %v7236_v50, %v2980_v39  ;;  %v3268_v28 = vmax.f32 %v7237_v21, %v3124_v42  ;;  %v7239_v4 = vmax.f32 %v6304_v3, 0.0  ;;  %v2079_v49 = vadd.f32 %v6244_v40, %v2078_v54  ;;  %v2088_v42 = vpop.f32.mrb[137].mxu0 }
 0x214   : > { %3410 = vst.msk [vmem:[%s6033_s6 + $0x1d0] sm:$0xff] %vm3351_vm4, %v3337_v35  ;;  %v3195_v24 = vmax.f32 %v7238_v22, %v2979_v30  ;;  %v2799_v62 = vadd.f32 %v6244_v40, %v2798_v2  ;;  %v2915_v31 = vmax.f32 %v6636_v29, 0.0  ;;  %v2982_v60 = vmax.f32 %v2084_v36, 0.0  ;;  %v2808_v35 = vpop.f32.mrb[137].mxu1  ;;  %v7244_v36 = vld [vmem:[#allocation93_spill] sm:$0xff]  ;;  %v4288_v54 = vpop.f32.mrb[138].mxu0 }
 0x215   : > { %v3267_v10 = vmax.f32 %v7239_v4, %v3123_v53  ;;  %v3340_v46 = vmax.f32 %v3196_v6, %v3268_v28  ;;  %v3126_v33 = vmax.f32 %v2804_v34, 0.0  ;;  %v3059_v0 = vmax.f32 %v6640_v1, 0.0  ;;  %v4504_v2 = vpop.f32.mrb[138].mxu1 }
 0x216   : > { %v2981_v45 = vmax.f32 %v2079_v49, 0.0  ;;  %v3125_v11 = vmax.f32 %v2799_v62, 0.0  ;;  %v7240_v3 = vmax.f32 %v6360_v48, 0.0  ;;  %v7241_v32 = vmax.f32 %v6364_v19, 0.0  ;;  %v2098_v49 = vpop.f32.mrb[139].mxu0  ;;  %v2818_v62 = vpop.f32.mrb[139].mxu1 }
 0x217   : > { %v3339_v57 = vmax.f32 %v3195_v24, %v3267_v10  ;;  %3413 = vst.msk [vmem:[%s6033_s6 + $0x1e8] sm:$0xff] %vm3351_vm4, %v3340_v46  ;;  %v2094_v5 = vadd.f32 %v6244_v40, %v4285_v25  ;;  %v2814_v39 = vadd.f32 %v6244_v40, %v4501_v51  ;;  %v7242_v53 = vmax.f32 %v6388_v9, 0.0  ;;  %v4507_v23 = vpop.f32.mrb[140].mxu1 }
 0x218   : > { %v3198_v7 = vmax.f32 %v7240_v3, %v2982_v60  ;;  %v3270_v37 = vmax.f32 %v7241_v32, %v3126_v33  ;;  %v3197_v30 = vmax.f32 %v2909_v44, %v2981_v45  ;;  %v2089_v48 = vadd.f32 %v6244_v40, %v2088_v42  ;;  %v4291_v3 = vpop.f32.mrb[140].mxu0 }
 0x219   : > { %3412 = vst.msk [vmem:[%s6033_s6 + $0x1e0] sm:$0xff] %vm3351_vm4, %v3339_v57  ;;  %v3269_v63 = vmax.f32 %v7242_v53, %v3125_v11  ;;  %v2809_v19 = vadd.f32 %v6244_v40, %v2808_v35  ;;  %v6696_v50 = vadd.f32 %v6244_v40, %v7243_v41  ;;  %v2984_v21 = vmax.f32 %v2094_v5, 0.0  ;;  %v7246_v11 = vld [vmem:[#allocation96_spill] sm:$0xff]  ;;  %v2108_v5 = vpop.f32.mrb[141].mxu0 }
 0x21a   : > { %v3342_v6 = vmax.f32 %v3198_v7, %v3270_v37  ;;  %v3128_v28 = vmax.f32 %v2814_v39, 0.0  ;;  %v6700_v34 = vadd.f32 %v6244_v40, %v7244_v36  ;;  %v2983_v44 = vmax.f32 %v2089_v48, 0.0  ;;  %v2828_v39 = vpop.f32.mrb[141].mxu1 }
 0x21b   : > { %v3341_v13 = vmax.f32 %v3197_v30, %v3269_v63  ;;  %v3127_v9 = vmax.f32 %v2809_v19, 0.0  ;;  %v3200_v22 = vmax.f32 %v2912_v43, %v2984_v21  ;;  %v2104_v4 = vadd.f32 %v6244_v40, %v4288_v54  ;;  %v7245_v43 = vld [vmem:[#allocation95_spill] sm:$0xff]  ;;  %v4294_v19 = vpop.f32.mrb[142].mxu0  ;;  %v4510_v61 = vpop.f32.mrb[142].mxu1 }
 0x21c   : > { %3415 = vst.msk [vmem:[%s6033_s6 + $0x1f8] sm:$0xff] %vm3351_vm4, %v3342_v6  ;;  %v3272_v24 = vmax.f32 %v3056_v38, %v3128_v28  ;;  %v2824_v10 = vadd.f32 %v6244_v40, %v4504_v2  ;;  %v3199_v46 = vmax.f32 %v2911_v52, %v2983_v44  ;;  %v2099_v16 = vadd.f32 %v6244_v40, %v2098_v49  ;;  %v2118_v21 = vpop.f32.mrb[143].mxu0  ;;  %v2838_v28 = vpop.f32.mrb[143].mxu1 }
 0x21d   : > { %3414 = vst.msk [vmem:[%s6033_s6 + $0x1f0] sm:$0xff] %vm3351_vm4, %v3341_v13  ;;  %v3271_v60 = vmax.f32 %v3055_v17, %v3127_v9  ;;  %v2819_v58 = vadd.f32 %v6244_v40, %v2818_v62  ;;  %v1759_v38 = vadd.f32 %v6244_v40, %v7245_v43  ;;  %v2986_v57 = vmax.f32 %v2104_v4, 0.0 }
 0x21e   : > { %v3344_v33 = vmax.f32 %v3200_v22, %v3272_v24  ;;  %v3130_v45 = vmax.f32 %v2824_v10, 0.0  ;;  %v2479_v25 = vadd.f32 %v6244_v40, %v7246_v11  ;;  %v2985_v8 = vmax.f32 %v2099_v16, 0.0 }
 0x21f   : > { %v3343_v51 = vmax.f32 %v3199_v46, %v3271_v60  ;;  %v3129_v52 = vmax.f32 %v2819_v58, 0.0  ;;  %v3202_v17 = vmax.f32 %v2914_v26, %v2986_v57  ;;  %v2114_v32 = vadd.f32 %v6244_v40, %v4291_v3 }
 0x220   : > { %3417 = vst.msk [vmem:[%s6033_s6 + $0x208] sm:$0xff] %vm3351_vm4, %v3344_v33  ;;  %v3274_v7 = vmax.f32 %v3058_v27, %v3130_v45  ;;  %v2834_v37 = vadd.f32 %v6244_v40, %v4507_v23  ;;  %v3201_v42 = vmax.f32 %v2913_v55, %v2985_v8  ;;  %v2109_v20 = vadd.f32 %v4535_v47, %v2108_v5 }
 0x221   : > { %3416 = vst.msk [vmem:[%s6033_s6 + $0x200] sm:$0xff] %vm3351_vm4, %v3343_v51  ;;  %v3273_v35 = vmax.f32 %v3057_v14, %v3129_v52  ;;  %v2829_v26 = vadd.f32 %v4535_v47, %v2828_v39  ;;  %v2918_v27 = vmax.f32 %v6696_v50, 0.0  ;;  %v2988_v30 = vmax.f32 %v2114_v32, 0.0 }
 0x222   : > { %v3346_v40 = vmax.f32 %v3202_v17, %v3274_v7  ;;  %v3132_v53 = vmax.f32 %v2834_v37, 0.0  ;;  %v3062_v63 = vmax.f32 %v6700_v34, 0.0  ;;  %v2987_v48 = vmax.f32 %v2109_v20, 0.0 }
 0x223   : > { %v3345_v56 = vmax.f32 %v3201_v42, %v3273_v35  ;;  %v3131_v55 = vmax.f32 %v2829_v26, 0.0  ;;  %v3204_v14 = vmax.f32 %v2916_v18, %v2988_v30  ;;  %v2124_v50 = vadd.f32 %v4535_v47, %v4294_v19 }
 0x224   : > { %3419 = vst.msk [vmem:[%s6033_s6 + $0x218] sm:$0xff] %vm3351_vm4, %v3346_v40  ;;  %v3276_v41 = vmax.f32 %v3060_v12, %v3132_v53  ;;  %v2844_v6 = vadd.f32 %v4535_v47, %v4510_v61  ;;  %v3203_v36 = vmax.f32 %v2915_v31, %v2987_v48  ;;  %v2119_v13 = vadd.f32 %v4535_v47, %v2118_v21 }
 0x225   : > { %3418 = vst.msk [vmem:[%s6033_s6 + $0x210] sm:$0xff] %vm3351_vm4, %v3345_v56  ;;  %v3275_v34 = vmax.f32 %v3059_v0, %v3131_v55  ;;  %v2839_v59 = vadd.f32 %v4535_v47, %v2838_v28  ;;  %v2917_v18 = vmax.f32 %v1759_v38, 0.0  ;;  %v2990_v12 = vmax.f32 %v2124_v50, 0.0 }
 0x226   : > { %v3348_v15 = vmax.f32 %v3204_v14, %v3276_v41  ;;  %v3134_v44 = vmax.f32 %v2844_v6, 0.0  ;;  %v3061_v9 = vmax.f32 %v2479_v25, 0.0  ;;  %v2989_v2 = vmax.f32 %v2119_v13, 0.0 }
 0x227   : > { %v3347_v54 = vmax.f32 %v3203_v36, %v3275_v34  ;;  %v3133_v22 = vmax.f32 %v2839_v59, 0.0  ;;  %v3206_v29 = vmax.f32 %v2918_v27, %v2990_v12 }
 0x228   : > { %3421 = vst.msk [vmem:[%s6033_s6 + $0x228] sm:$0xff] %vm3351_vm4, %v3348_v15  ;;  %v3278_v24 = vmax.f32 %v3062_v63, %v3134_v44  ;;  %v3205_v1 = vmax.f32 %v2917_v18, %v2989_v2 }
 0x229   : > { %3420 = vst.msk [vmem:[%s6033_s6 + $0x220] sm:$0xff] %vm3351_vm4, %v3347_v54  ;;  %v3277_v31 = vmax.f32 %v3061_v9, %v3133_v22 }
 0x22a   : > { %v3350_v0 = vmax.f32 %v3206_v29, %v3278_v24 }
 0x22b   : > { %v3349_v4 = vmax.f32 %v3205_v1, %v3277_v31 }
 0x22c   : > { %3423 = vst.msk [vmem:[%s6033_s6 + $0x238] sm:$0xff] %vm3351_vm4, %v3350_v0 }
 0x22d   : > { %3422 = vst.msk [vmem:[%s6033_s6 + $0x230] sm:$0xff] %vm3351_vm4, %v3349_v4 }
 0x22e PF: > { %s13_s12 = sadd.s32 1, %s4542_s12  }
 0x22f   : > { %p10_p5 = scmp.ge.s32.totalorder %s13_s12, 4  }
 0x231   :  { %12 = sbr.rel (!%p10_p5) target bundleno = 1 (0x1), region = 62 }

// kernel: cnn_forward.5
= control target key start
LH: loop header
LB: loop body
LE: loop exit
PB: predicated region body
PF: predicated region fallthrough
CT: control target
= control target key end

     0   :  { %s2105_s12 = smov 0   ;;  %s2956_s0 = inlined_call_operand.vmem [shape: f32[1152,288], index: 0, kind: input, shape index: {}]   ;;  %s2957_s1 = inlined_call_operand.vmem [shape: f32[288,64], index: 1, kind: input, shape index: {}]   ;;  %s2958_s2 = inlined_call_operand.vmem [shape: f32[1,64], index: 2, kind: input, shape index: {}]   ;;  %s2959_s3 = inlined_call_operand.vmem [shape: f32[288,64], index: 3, kind: output, shape index: {}]  }
   0x1 LB: > { %s1704_s13 = sadd.s32 4294967295, %s2082_s12   ;;  %p1708_p0 = scmp.ge.s32.totalorder %s2082_s12, 1  ;;  %s2082_s12 = sphi %s2105_s12, %s13_s12  }
   0x2   : > { %p139_p1 = scmp.lt.s32.totalorder %s2082_s12, 3 }
   0x4   : > { %p140_p2 = pnand %p1708_p0, %p139_p1 }
   0x6   : > { %143 = sbr.rel (%p140_p2) target bundleno = 514 (0x202), region = 32 }
   0xd   : > { %v393_v0 = vld [vmem:[%s2957_s1] sm:$0xff]  ;;  %v394_v1 = vld [vmem:[%s2957_s1 + $0x8] sm:$0xff]  ;;  %v395_v2 = vld [vmem:[%s2957_s1 + $0x10] sm:$0xff]  ;;  %s164_s20 = smul.u32 72, %s1704_s13  ;;  %v2084_v3 = vmov 0.0|0.0   ;;  %vm436_vm0 = vcmask 261120  }
   0xe   : > { %1978 = vmatprep.subr.bf16.mxu0 %v2084_v3  ;;  %2034 = vmatprep.subr.bf16.mxu1 %v2084_v3  ;;  %v1979_v4 = vpack.c.bf16 %v394_v1, %v393_v0  ;;  %v396_v5 = vld [vmem:[%s2957_s1 + $0x18] sm:$0xff]  ;;  %v397_v7 = vld [vmem:[%s2957_s1 + $0x20] sm:$0xff]  ;;  %v398_v8 = vld [vmem:[%s2957_s1 + $0x28] sm:$0xff]  ;;  %s171_s19 = smul.u32 18, %s1704_s13  ;;  %vm1629_vm1 = vcmask 523264  }
   0xf   : > { %p165_p3 = scmp.lt.s32.totalorder %s164_s20, 143  ;;  %v1982_v6 = vpack.c.bf16 %v396_v5, %v395_v2  ;;  %v1985_v9 = vpack.c.bf16 %v398_v8, %v397_v7  ;;  %v399_v10 = vld [vmem:[%s2957_s1 + $0x30] sm:$0xff]  ;;  %v400_v11 = vld [vmem:[%s2957_s1 + $0x38] sm:$0xff]  ;;  %v401_v15 = vld [vmem:[%s2957_s1 + $0x40] sm:$0xff] }
  0x10   : > { %1980 = vmatpush1.bf16.msra.mxu0 %v1979_v4  ;;  %2050 = vmatpush1.bf16.msra.mxu1 %v1979_v4  ;;  %v1988_v13 = vpack.c.bf16 %v400_v11, %v399_v10  ;;  %v402_v16 = vld [vmem:[%s2957_s1 + $0x48] sm:$0xff]  ;;  %v403_v18 = vld [vmem:[%s2957_s1 + $0x50] sm:$0xff]  ;;  %v404_v19 = vld [vmem:[%s2957_s1 + $0x58] sm:$0xff]  ;;  %p172_p4 = scmp.lt.s32.totalorder %s171_s19, 35 }
  0x11   : > { %1981 = vmatprep.subr.bf16.mxu0 %v2084_v3  ;;  %2035 = vmatprep.subr.bf16.mxu1 %v2084_v3  ;;  %s2971_s20 = smov (!%p165_p3, %s164_s20), 143  ;;  %v1991_v17 = vpack.c.bf16 %v402_v16, %v401_v15  ;;  %v1994_v20 = vpack.c.bf16 %v404_v19, %v403_v18  ;;  %v405_v21 = vld [vmem:[%s2957_s1 + $0x60] sm:$0xff]  ;;  %v406_v22 = vld [vmem:[%s2957_s1 + $0x68] sm:$0xff]  ;;  %v407_v24 = vld [vmem:[%s2957_s1 + $0x70] sm:$0xff] }
  0x12   : > { %s2066_s27 = smul.u32 24, %s2971_s20  ;;  %v1997_v23 = vpack.c.bf16 %v406_v22, %v405_v21  ;;  %v408_v25 = vld [vmem:[%s2957_s1 + $0x78] sm:$0xff]  ;;  %v409_v27 = vld [vmem:[%s2957_s1 + $0x80] sm:$0xff]  ;;  %v410_v28 = vld [vmem:[%s2957_s1 + $0x88] sm:$0xff]  ;;  %s2973_s19 = smov (!%p172_p4, %s171_s19), 35 }
  0x13   : > { %v2000_v26 = vpack.c.bf16 %v408_v25, %v407_v24  ;;  %v2003_v29 = vpack.c.bf16 %v410_v28, %v409_v27  ;;  %v411_v30 = vld [vmem:[%s2957_s1 + $0x90] sm:$0xff]  ;;  %v412_v31 = vld [vmem:[%s2957_s1 + $0x98] sm:$0xff]  ;;  %v413_v33 = vld [vmem:[%s2957_s1 + $0xa0] sm:$0xff]  ;;  %s1710_s13 = sshll.u32 %s2973_s19, 3 }
  0x14   : > { %1983 = vmatpush1.bf16.msra.mxu0 %v1982_v6  ;;  %2051 = vmatpush1.bf16.msra.mxu1 %v1982_v6  ;;  %s2148_s7 = scalar_lea.vmem %s2956_s0, %s2066_s27  ;;  %v2006_v32 = vpack.c.bf16 %v412_v31, %v411_v30  ;;  %v414_v34 = vld [vmem:[%s2957_s1 + $0xa8] sm:$0xff]  ;;  %v415_v36 = vld [vmem:[%s2957_s1 + $0xb0] sm:$0xff]  ;;  %v416_v37 = vld [vmem:[%s2957_s1 + $0xb8] sm:$0xff]  ;;  %s2840_s22 = scalar_lea.vmem %s2959_s3, %s1710_s13 }
  0x15   : > { %1984 = vmatprep.subr.bf16.mxu0 %v2084_v3  ;;  %2036 = vmatprep.subr.bf16.mxu1 %v2084_v3  ;;  %v178_v12 = vld [vmem:[%s2148_s7 + $0x8] sm:$0xff]  ;;  %v340_v14 = vld [vmem:[%s2148_s7 + $0x518] sm:$0xff]  ;;  %v2009_v35 = vpack.c.bf16 %v414_v34, %v413_v33  ;;  %v2012_v38 = vpack.c.bf16 %v416_v37, %v415_v36  ;;  %v417_v39 = vld [vmem:[%s2957_s1 + $0xc0] sm:$0xff] }
  0x16   : > { %717 = vmatprep.mubr.f32.mxu0 %v178_v12  ;;  %987 = vmatprep.mubr.f32.mxu1 %v340_v14  ;;  %v418_v40 = vld [vmem:[%s2957_s1 + $0xc8] sm:$0xff]  ;;  %v419_v42 = vld [vmem:[%s2957_s1 + $0xd0] sm:$0xff]  ;;  %v420_v43 = vld [vmem:[%s2957_s1 + $0xd8] sm:$0xff] }
  0x17   : > { %v2015_v41 = vpack.c.bf16 %v418_v40, %v417_v39  ;;  %v2018_v44 = vpack.c.bf16 %v420_v43, %v419_v42  ;;  %v421_v45 = vld [vmem:[%s2957_s1 + $0xe0] sm:$0xff]  ;;  %v422_v46 = vld [vmem:[%s2957_s1 + $0xe8] sm:$0xff]  ;;  %v423_v48 = vld [vmem:[%s2957_s1 + $0xf0] sm:$0xff] }
  0x18   : > { %1986 = vmatpush1.bf16.msra.mxu0 %v1985_v9  ;;  %2052 = vmatpush1.bf16.msra.mxu1 %v1985_v9  ;;  %v2021_v47 = vpack.c.bf16 %v422_v46, %v421_v45  ;;  %v424_v49 = vld [vmem:[%s2957_s1 + $0xf8] sm:$0xff]  ;;  %v425_v50 = vld [vmem:[%s2957_s1 + $0x100] sm:$0xff]  ;;  %v426_v51 = vld [vmem:[%s2957_s1 + $0x108] sm:$0xff] }
  0x19   : > { %1987 = vmatprep.subr.bf16.mxu0 %v2084_v3  ;;  %2037 = vmatprep.subr.bf16.mxu1 %v2084_v3  ;;  %v2024_v52 = vpack.c.bf16 %v424_v49, %v423_v48  ;;  %v2026_v53 = vpack.c.bf16 %v426_v51, %v425_v50  ;;  %v427_v54 = vld [vmem:[%s2957_s1 + $0x110] sm:$0xff]  ;;  %v428_v55 = vld [vmem:[%s2957_s1 + $0x118] sm:$0xff]  ;;  %v177_v56 = vld [vmem:[%s2148_s7] sm:$0xff] }
  0x1a   : > { %v339_v57 = vld [vmem:[%s2148_s7 + $0x510] sm:$0xff]  ;;  %v181_v58 = vld [vmem:[%s2148_s7 + $0x20] sm:$0xff]  ;;  %v2030_v59 = vpack.c.bf16 %v428_v55, %v427_v54  ;;  %v180_v61 = vld [vmem:[%s2148_s7 + $0x18] sm:$0xff] }
  0x1b   : > { %v343_v60 = vld [vmem:[%s2148_s7 + $0x530] sm:$0xff]  ;;  %v342_v62 = vld [vmem:[%s2148_s7 + $0x528] sm:$0xff]  ;;  %v184_v63 = vld [vmem:[%s2148_s7 + $0x38] sm:$0xff] }
  0x1c   : > { %1989 = vmatpush1.bf16.msra.mxu0 %v1988_v13  ;;  %2053 = vmatpush1.bf16.msra.mxu1 %v1988_v13  ;;  %v346_v0 = vld [vmem:[%s2148_s7 + $0x548] sm:$0xff]  ;;  %v183_v1 = vld [vmem:[%s2148_s7 + $0x30] sm:$0xff]  ;;  %v345_v2 = vld [vmem:[%s2148_s7 + $0x540] sm:$0xff] }
  0x1d   : > { %1990 = vmatprep.subr.bf16.mxu0 %v2084_v3  ;;  %2038 = vmatprep.subr.bf16.mxu1 %v2084_v3  ;;  %v349_v4 = vld [vmem:[%s2148_s7 + $0x560] sm:$0xff]  ;;  %v186_v5 = vld [vmem:[%s2148_s7 + $0x48] sm:$0xff]  ;;  %v348_v6 = vld [vmem:[%s2148_s7 + $0x558] sm:$0xff] }
  0x1e   : > { %v190_v7 = vld [vmem:[%s2148_s7 + $0x68] sm:$0xff]  ;;  %v352_v8 = vld [vmem:[%s2148_s7 + $0x578] sm:$0xff]  ;;  %v189_v9 = vld [vmem:[%s2148_s7 + $0x60] sm:$0xff] }
  0x1f   : > { %v351_v10 = vld [vmem:[%s2148_s7 + $0x570] sm:$0xff]  ;;  %v193_v11 = vld [vmem:[%s2148_s7 + $0x80] sm:$0xff]  ;;  %v192_v13 = vld [vmem:[%s2148_s7 + $0x78] sm:$0xff] }
  0x20   : > { %1992 = vmatpush1.bf16.msra.mxu0 %v1991_v17  ;;  %2054 = vmatpush1.bf16.msra.mxu1 %v1991_v17  ;;  %v355_v12 = vld [vmem:[%s2148_s7 + $0x590] sm:$0xff]  ;;  %v354_v14 = vld [vmem:[%s2148_s7 + $0x588] sm:$0xff]  ;;  %v196_v15 = vld [vmem:[%s2148_s7 + $0x98] sm:$0xff] }
  0x21   : > { %1993 = vmatprep.subr.bf16.mxu0 %v2084_v3  ;;  %2039 = vmatprep.subr.bf16.mxu1 %v2084_v3  ;;  %v358_v16 = vld [vmem:[%s2148_s7 + $0x5a8] sm:$0xff]  ;;  %v195_v17 = vld [vmem:[%s2148_s7 + $0x90] sm:$0xff]  ;;  %v357_v18 = vld [vmem:[%s2148_s7 + $0x5a0] sm:$0xff] }
  0x22   : > { %v199_v19 = vld [vmem:[%s2148_s7 + $0xb0] sm:$0xff]  ;;  %v198_v21 = vld [vmem:[%s2148_s7 + $0xa8] sm:$0xff]  ;;  %v360_v22 = vld [vmem:[%s2148_s7 + $0x5b8] sm:$0xff] }
  0x23   : > { %v364_v24 = vld [vmem:[%s2148_s7 + $0x5d8] sm:$0xff]  ;;  %v201_v25 = vld [vmem:[%s2148_s7 + $0xc0] sm:$0xff]  ;;  %v367_v28 = vld [vmem:[%s2148_s7 + $0x5f0] sm:$0xff] }
  0x24   : > { %1995 = vmatpush1.bf16.msra.mxu0 %v1994_v20  ;;  %2055 = vmatpush1.bf16.msra.mxu1 %v1994_v20  ;;  %v361_v20 = vld [vmem:[%s2148_s7 + $0x5c0] sm:$0xff]  ;;  %v366_v30 = vld [vmem:[%s2148_s7 + $0x5e8] sm:$0xff]  ;;  %v208_v31 = vld [vmem:[%s2148_s7 + $0xf8] sm:$0xff] }
  0x25   : > { %1996 = vmatprep.subr.bf16.mxu0 %v2084_v3  ;;  %2040 = vmatprep.subr.bf16.mxu1 %v2084_v3  ;;  %v205_v27 = vld [vmem:[%s2148_s7 + $0xe0] sm:$0xff]  ;;  %v207_v33 = vld [vmem:[%s2148_s7 + $0xf0] sm:$0xff]  ;;  %v210_v37 = vld [vmem:[%s2148_s7 + $0x108] sm:$0xff] }
  0x26   : > { %v369_v34 = vld [vmem:[%s2148_s7 + $0x600] sm:$0xff]  ;;  %v214_v39 = vld [vmem:[%s2148_s7 + $0x128] sm:$0xff]  ;;  %v376_v40 = vld [vmem:[%s2148_s7 + $0x638] sm:$0xff] }
  0x27   : > { %v373_v36 = vld [vmem:[%s2148_s7 + $0x620] sm:$0xff]  ;;  %v375_v42 = vld [vmem:[%s2148_s7 + $0x630] sm:$0xff]  ;;  %v216_v45 = vld [vmem:[%s2148_s7 + $0x138] sm:$0xff] }
  0x28   : > { %1998 = vmatpush1.bf16.msra.mxu0 %v1997_v23  ;;  %2056 = vmatpush1.bf16.msra.mxu1 %v1997_v23  ;;  %v202_v23 = vld [vmem:[%s2148_s7 + $0xc8] sm:$0xff]  ;;  %v217_v43 = vld [vmem:[%s2148_s7 + $0x140] sm:$0xff]  ;;  %v219_v49 = vld [vmem:[%s2148_s7 + $0x150] sm:$0xff] }
  0x29   : > { %1999 = vmatprep.subr.bf16.mxu0 %v2084_v3  ;;  %2041 = vmatprep.subr.bf16.mxu1 %v2084_v3  ;;  %v378_v46 = vld [vmem:[%s2148_s7 + $0x648] sm:$0xff]  ;;  %v381_v50 = vld [vmem:[%s2148_s7 + $0x660] sm:$0xff]  ;;  %v223_v51 = vld [vmem:[%s2148_s7 + $0x170] sm:$0xff] }
  0x2a   : > { %v382_v48 = vld [vmem:[%s2148_s7 + $0x668] sm:$0xff]  ;;  %v384_v54 = vld [vmem:[%s2148_s7 + $0x678] sm:$0xff] }
  0x2b   : > { %v226_v55 = vld [vmem:[%s2148_s7 + $0x188] sm:$0xff] }
  0x2c   : > { %2001 = vmatpush1.bf16.msra.mxu0 %v2000_v26  ;;  %2057 = vmatpush1.bf16.msra.mxu1 %v2000_v26  ;;  %v363_v26 = vld [vmem:[%s2148_s7 + $0x5d0] sm:$0xff] }
  0x2d   : > { %2002 = vmatprep.subr.bf16.mxu0 %v2084_v3  ;;  %2042 = vmatprep.subr.bf16.mxu1 %v2084_v3 }
  0x30   : > { %2004 = vmatpush1.bf16.msra.mxu0 %v2003_v29  ;;  %2058 = vmatpush1.bf16.msra.mxu1 %v2003_v29  ;;  %v204_v29 = vld [vmem:[%s2148_s7 + $0xd8] sm:$0xff] }
  0x31   : > { %2005 = vmatprep.subr.bf16.mxu0 %v2084_v3  ;;  %2043 = vmatprep.subr.bf16.mxu1 %v2084_v3 }
  0x34   : > { %2007 = vmatpush1.bf16.msra.mxu0 %v2006_v32  ;;  %2059 = vmatpush1.bf16.msra.mxu1 %v2006_v32  ;;  %v370_v32 = vld [vmem:[%s2148_s7 + $0x608] sm:$0xff] }
  0x35   : > { %2008 = vmatprep.subr.bf16.mxu0 %v2084_v3  ;;  %2044 = vmatprep.subr.bf16.mxu1 %v2084_v3 }
  0x38   : > { %2010 = vmatpush1.bf16.msra.mxu0 %v2009_v35  ;;  %2060 = vmatpush1.bf16.msra.mxu1 %v2009_v35  ;;  %v211_v35 = vld [vmem:[%s2148_s7 + $0x110] sm:$0xff] }
  0x39   : > { %2011 = vmatprep.subr.bf16.mxu0 %v2084_v3  ;;  %2045 = vmatprep.subr.bf16.mxu1 %v2084_v3 }
  0x3c   : > { %2013 = vmatpush1.bf16.msra.mxu0 %v2012_v38  ;;  %2061 = vmatpush1.bf16.msra.mxu1 %v2012_v38  ;;  %v372_v38 = vld [vmem:[%s2148_s7 + $0x618] sm:$0xff] }
  0x3d   : > { %2014 = vmatprep.subr.bf16.mxu0 %v2084_v3  ;;  %2046 = vmatprep.subr.bf16.mxu1 %v2084_v3 }
  0x40   : > { %2016 = vmatpush1.bf16.msra.mxu0 %v2015_v41  ;;  %2062 = vmatpush1.bf16.msra.mxu1 %v2015_v41  ;;  %v213_v41 = vld [vmem:[%s2148_s7 + $0x120] sm:$0xff] }
  0x41   : > { %2017 = vmatprep.subr.bf16.mxu0 %v2084_v3  ;;  %2047 = vmatprep.subr.bf16.mxu1 %v2084_v3 }
  0x44   : > { %2019 = vmatpush1.bf16.msra.mxu0 %v2018_v44  ;;  %2063 = vmatpush1.bf16.msra.mxu1 %v2018_v44  ;;  %v379_v44 = vld [vmem:[%s2148_s7 + $0x650] sm:$0xff] }
  0x45   : > { %2020 = vmatprep.subr.bf16.mxu0 %v2084_v3  ;;  %2048 = vmatprep.subr.bf16.mxu1 %v2084_v3 }
  0x48   : > { %2022 = vmatpush1.bf16.msra.mxu0 %v2021_v47  ;;  %2064 = vmatpush1.bf16.msra.mxu1 %v2021_v47  ;;  %v220_v47 = vld [vmem:[%s2148_s7 + $0x158] sm:$0xff] }
  0x49   : > { %2023 = vmatprep.subr.bf16.mxu0 %v2084_v3  ;;  %2049 = vmatprep.subr.bf16.mxu1 %v2084_v3  ;;  %v187_v3 = vld [vmem:[%s2148_s7 + $0x50] sm:$0xff] }
  0x4c   : > { %2025 = vmatpush1.bf16.msra.mxu0 %v2024_v52  ;;  %2065 = vmatpush1.bf16.msra.mxu1 %v2024_v52  ;;  %v385_v52 = vld [vmem:[%s2148_s7 + $0x680] sm:$0xff] }
  0x4d   : > { %2027 = vmatprep.subr.bf16.mxu1 %v2026_v53 }
  0x4f   : > { %718 = vmatmul.mubr.f32.vlgmr.msra.gmra.mrb[0].mxu0 %v177_v56  ;;  %988 = vmatmul.mubr.f32.vlgmr.msra.gmra.mrb[0].mxu1 %v339_v57  ;;  %v388_v56 = vld [vmem:[%s2148_s7 + $0x698] sm:$0xff]  ;;  %v225_v57 = vld [vmem:[%s2148_s7 + $0x180] sm:$0xff] }
  0x50   : > { %2029 = vmatpush3.bf16.msra.mxu1 %v2026_v53  ;;  %722 = vmatprep.mubr.f32.mxu0 %v181_v58  ;;  %v222_v53 = vld [vmem:[%s2148_s7 + $0x168] sm:$0xff]  ;;  %v387_v58 = vld [vmem:[%s2148_s7 + $0x690] sm:$0xff] }
  0x51   : > { %992 = vmatprep.mubr.f32.mxu1 %v343_v60  ;;  %2031 = vmatprep.subr.bf16.mxu1 %v2030_v59  ;;  %v391_v60 = vld [vmem:[%s2148_s7 + $0x6b0] sm:$0xff] }
  0x53   : > { %723 = vmatmul.mubr.f32.gmra.mrb[2].mxu0 %v180_v61  ;;  %993 = vmatmul.mubr.f32.gmra.mrb[2].mxu1 %v342_v62  ;;  %v228_v61 = vld [vmem:[%s2148_s7 + $0x198] sm:$0xff]  ;;  %v390_v62 = vld [vmem:[%s2148_s7 + $0x6a8] sm:$0xff] }
  0x54   : > { %727 = vmatprep.mubr.f32.mxu0 %v184_v63  ;;  %997 = vmatprep.mubr.f32.mxu1 %v346_v0  ;;  %v232_v63 = vld [vmem:[%s2148_s7 + $0x1b8] sm:$0xff]  ;;  %v179_v0 = vld [vmem:[%s2148_s7 + $0x10] sm:$0xff] }
  0x55   : > { %2033 = vmatpush3.bf16.msra.mxu1 %v2030_v59  ;;  %v229_v59 = vld [vmem:[%s2148_s7 + $0x1a0] sm:$0xff] }
  0x57   : > { %728 = vmatmul.mubr.f32.gmra.mrb[4].mxu0 %v183_v1  ;;  %998 = vmatmul.mubr.f32.gmra.mrb[4].mxu1 %v345_v2  ;;  %v231_v1 = vld [vmem:[%s2148_s7 + $0x1b0] sm:$0xff]  ;;  %v182_v2 = vld [vmem:[%s2148_s7 + $0x28] sm:$0xff] }
  0x58   : > { %732 = vmatprep.mubr.f32.mxu0 %v187_v3  ;;  %1002 = vmatprep.mubr.f32.mxu1 %v349_v4  ;;  %v235_v3 = vld [vmem:[%s2148_s7 + $0x1d0] sm:$0xff]  ;;  %v185_v4 = vld [vmem:[%s2148_s7 + $0x40] sm:$0xff] }
  0x5b   : > { %733 = vmatmul.mubr.f32.gmra.mrb[6].mxu0 %v186_v5  ;;  %1003 = vmatmul.mubr.f32.gmra.mrb[6].mxu1 %v348_v6  ;;  %v234_v5 = vld [vmem:[%s2148_s7 + $0x1c8] sm:$0xff]  ;;  %v188_v6 = vld [vmem:[%s2148_s7 + $0x58] sm:$0xff] }
  0x5c   : > { %737 = vmatprep.mubr.f32.mxu0 %v190_v7  ;;  %1007 = vmatprep.mubr.f32.mxu1 %v352_v8  ;;  %v238_v7 = vld [vmem:[%s2148_s7 + $0x1e8] sm:$0xff]  ;;  %v191_v8 = vld [vmem:[%s2148_s7 + $0x70] sm:$0xff] }
  0x5f   : > { %738 = vmatmul.mubr.f32.gmra.mrb[8].mxu0 %v189_v9  ;;  %1008 = vmatmul.mubr.f32.gmra.mrb[8].mxu1 %v351_v10  ;;  %v237_v9 = vld [vmem:[%s2148_s7 + $0x1e0] sm:$0xff]  ;;  %v194_v10 = vld [vmem:[%s2148_s7 + $0x88] sm:$0xff] }
  0x60   : > { %742 = vmatprep.mubr.f32.mxu0 %v193_v11  ;;  %1012 = vmatprep.mubr.f32.mxu1 %v355_v12  ;;  %v241_v11 = vld [vmem:[%s2148_s7 + $0x200] sm:$0xff] }
  0x61   : > { %v197_v12 = vld [vmem:[%s2148_s7 + $0xa0] sm:$0xff] }
  0x63   : > { %743 = vmatmul.mubr.f32.gmra.mrb[10].mxu0 %v192_v13  ;;  %1013 = vmatmul.mubr.f32.gmra.mrb[10].mxu1 %v354_v14  ;;  %v240_v13 = vld [vmem:[%s2148_s7 + $0x1f8] sm:$0xff] }
  0x64   : > { %747 = vmatprep.mubr.f32.mxu0 %v196_v15  ;;  %1017 = vmatprep.mubr.f32.mxu1 %v358_v16  ;;  %v200_v14 = vld [vmem:[%s2148_s7 + $0xb8] sm:$0xff]  ;;  %v203_v16 = vld [vmem:[%s2148_s7 + $0xd0] sm:$0xff] }
  0x65   : > { %v244_v15 = vld [vmem:[%s2148_s7 + $0x218] sm:$0xff] }
  0x67   : > { %748 = vmatmul.mubr.f32.gmra.mrb[12].mxu0 %v195_v17  ;;  %1018 = vmatmul.mubr.f32.gmra.mrb[12].mxu1 %v357_v18  ;;  %v243_v17 = vld [vmem:[%s2148_s7 + $0x210] sm:$0xff]  ;;  %v206_v18 = vld [vmem:[%s2148_s7 + $0xe8] sm:$0xff] }
  0x68   : > { %752 = vmatprep.mubr.f32.mxu0 %v199_v19  ;;  %1022 = vmatprep.mubr.f32.mxu1 %v361_v20  ;;  %v247_v19 = vld [vmem:[%s2148_s7 + $0x230] sm:$0xff]  ;;  %v209_v20 = vld [vmem:[%s2148_s7 + $0x100] sm:$0xff] }
  0x6b   : > { %753 = vmatmul.mubr.f32.gmra.mrb[14].mxu0 %v198_v21  ;;  %1023 = vmatmul.mubr.f32.gmra.mrb[14].mxu1 %v360_v22  ;;  %v246_v21 = vld [vmem:[%s2148_s7 + $0x228] sm:$0xff]  ;;  %v212_v22 = vld [vmem:[%s2148_s7 + $0x118] sm:$0xff] }
  0x6c   : > { %757 = vmatprep.mubr.f32.mxu0 %v202_v23  ;;  %1027 = vmatprep.mubr.f32.mxu1 %v364_v24  ;;  %v250_v23 = vld [vmem:[%s2148_s7 + $0x248] sm:$0xff]  ;;  %v215_v24 = vld [vmem:[%s2148_s7 + $0x130] sm:$0xff] }
  0x6f   : > { %758 = vmatmul.mubr.f32.gmra.mrb[16].mxu0 %v201_v25  ;;  %1028 = vmatmul.mubr.f32.gmra.mrb[16].mxu1 %v363_v26  ;;  %v249_v25 = vld [vmem:[%s2148_s7 + $0x240] sm:$0xff]  ;;  %v218_v26 = vld [vmem:[%s2148_s7 + $0x148] sm:$0xff] }
  0x70   : > { %762 = vmatprep.mubr.f32.mxu0 %v205_v27  ;;  %1032 = vmatprep.mubr.f32.mxu1 %v367_v28  ;;  %v253_v27 = vld [vmem:[%s2148_s7 + $0x260] sm:$0xff] }
  0x71   : > { %v221_v28 = vld [vmem:[%s2148_s7 + $0x160] sm:$0xff] }
  0x73   : > { %763 = vmatmul.mubr.f32.gmra.mrb[18].mxu0 %v204_v29  ;;  %1033 = vmatmul.mubr.f32.gmra.mrb[18].mxu1 %v366_v30  ;;  %v252_v29 = vld [vmem:[%s2148_s7 + $0x258] sm:$0xff] }
  0x74   : > { %767 = vmatprep.mubr.f32.mxu0 %v208_v31  ;;  %1037 = vmatprep.mubr.f32.mxu1 %v370_v32  ;;  %v224_v30 = vld [vmem:[%s2148_s7 + $0x178] sm:$0xff]  ;;  %v227_v32 = vld [vmem:[%s2148_s7 + $0x190] sm:$0xff] }
  0x75   : > { %v256_v31 = vld [vmem:[%s2148_s7 + $0x278] sm:$0xff] }
  0x77   : > { %768 = vmatmul.mubr.f32.gmra.mrb[20].mxu0 %v207_v33  ;;  %1038 = vmatmul.mubr.f32.gmra.mrb[20].mxu1 %v369_v34  ;;  %v255_v33 = vld [vmem:[%s2148_s7 + $0x270] sm:$0xff]  ;;  %v230_v34 = vld [vmem:[%s2148_s7 + $0x1a8] sm:$0xff] }
  0x78   : > { %772 = vmatprep.mubr.f32.mxu0 %v211_v35  ;;  %1042 = vmatprep.mubr.f32.mxu1 %v373_v36  ;;  %v259_v35 = vld [vmem:[%s2148_s7 + $0x290] sm:$0xff]  ;;  %v233_v36 = vld [vmem:[%s2148_s7 + $0x1c0] sm:$0xff] }
  0x7b   : > { %773 = vmatmul.mubr.f32.gmra.mrb[22].mxu0 %v210_v37  ;;  %1043 = vmatmul.mubr.f32.gmra.mrb[22].mxu1 %v372_v38  ;;  %v258_v37 = vld [vmem:[%s2148_s7 + $0x288] sm:$0xff]  ;;  %v236_v38 = vld [vmem:[%s2148_s7 + $0x1d8] sm:$0xff] }
  0x7c   : > { %777 = vmatprep.mubr.f32.mxu0 %v214_v39  ;;  %1047 = vmatprep.mubr.f32.mxu1 %v376_v40  ;;  %v262_v39 = vld [vmem:[%s2148_s7 + $0x2a8] sm:$0xff]  ;;  %v239_v40 = vld [vmem:[%s2148_s7 + $0x1f0] sm:$0xff] }
  0x7f   : > { %778 = vmatmul.mubr.f32.gmra.mrb[24].mxu0 %v213_v41  ;;  %1048 = vmatmul.mubr.f32.gmra.mrb[24].mxu1 %v375_v42  ;;  %v261_v41 = vld [vmem:[%s2148_s7 + $0x2a0] sm:$0xff]  ;;  %v242_v42 = vld [vmem:[%s2148_s7 + $0x208] sm:$0xff] }
  0x80   : > { %782 = vmatprep.mubr.f32.mxu0 %v217_v43  ;;  %1052 = vmatprep.mubr.f32.mxu1 %v379_v44  ;;  %v265_v43 = vld [vmem:[%s2148_s7 + $0x2c0] sm:$0xff] }
  0x81   : > { %v245_v44 = vld [vmem:[%s2148_s7 + $0x220] sm:$0xff] }
  0x83   : > { %783 = vmatmul.mubr.f32.gmra.mrb[26].mxu0 %v216_v45  ;;  %1053 = vmatmul.mubr.f32.gmra.mrb[26].mxu1 %v378_v46  ;;  %v264_v45 = vld [vmem:[%s2148_s7 + $0x2b8] sm:$0xff] }
  0x84   : > { %787 = vmatprep.mubr.f32.mxu0 %v220_v47  ;;  %1057 = vmatprep.mubr.f32.mxu1 %v382_v48  ;;  %v248_v46 = vld [vmem:[%s2148_s7 + $0x238] sm:$0xff]  ;;  %v251_v48 = vld [vmem:[%s2148_s7 + $0x250] sm:$0xff] }
  0x85   : > { %v268_v47 = vld [vmem:[%s2148_s7 + $0x2d8] sm:$0xff] }
  0x87   : > { %788 = vmatmul.mubr.f32.gmra.mrb[28].mxu0 %v219_v49  ;;  %1058 = vmatmul.mubr.f32.gmra.mrb[28].mxu1 %v381_v50  ;;  %v267_v49 = vld [vmem:[%s2148_s7 + $0x2d0] sm:$0xff]  ;;  %v254_v50 = vld [vmem:[%s2148_s7 + $0x268] sm:$0xff] }
  0x88   : > { %792 = vmatprep.mubr.f32.mxu0 %v223_v51  ;;  %1062 = vmatprep.mubr.f32.mxu1 %v385_v52  ;;  %v271_v51 = vld [vmem:[%s2148_s7 + $0x2f0] sm:$0xff]  ;;  %v257_v52 = vld [vmem:[%s2148_s7 + $0x280] sm:$0xff] }
  0x8b   : > { %793 = vmatmul.mubr.f32.gmra.mrb[30].mxu0 %v222_v53  ;;  %1063 = vmatmul.mubr.f32.gmra.mrb[30].mxu1 %v384_v54  ;;  %v270_v53 = vld [vmem:[%s2148_s7 + $0x2e8] sm:$0xff]  ;;  %v260_v54 = vld [vmem:[%s2148_s7 + $0x298] sm:$0xff] }
  0x8c   : > { %797 = vmatprep.mubr.f32.mxu0 %v226_v55  ;;  %1067 = vmatprep.mubr.f32.mxu1 %v388_v56  ;;  %v274_v55 = vld [vmem:[%s2148_s7 + $0x308] sm:$0xff]  ;;  %v263_v56 = vld [vmem:[%s2148_s7 + $0x2b0] sm:$0xff] }
  0x8f   : > { %798 = vmatmul.mubr.f32.gmra.mrb[32].mxu0 %v225_v57  ;;  %1068 = vmatmul.mubr.f32.gmra.mrb[32].mxu1 %v387_v58  ;;  %v273_v57 = vld [vmem:[%s2148_s7 + $0x300] sm:$0xff]  ;;  %v266_v58 = vld [vmem:[%s2148_s7 + $0x2c8] sm:$0xff] }
  0x90   : > { %802 = vmatprep.mubr.f32.mxu0 %v229_v59  ;;  %1072 = vmatprep.mubr.f32.mxu1 %v391_v60  ;;  %v277_v59 = vld [vmem:[%s2148_s7 + $0x320] sm:$0xff] }
  0x91   : > { %v269_v60 = vld [vmem:[%s2148_s7 + $0x2e0] sm:$0xff] }
  0x93   : > { %803 = vmatmul.mubr.f32.gmra.mrb[34].mxu0 %v228_v61  ;;  %1073 = vmatmul.mubr.f32.gmra.mrb[34].mxu1 %v390_v62  ;;  %v276_v61 = vld [vmem:[%s2148_s7 + $0x318] sm:$0xff] }
  0x94   : > { %807 = vmatprep.mubr.f32.mxu0 %v232_v63  ;;  %1870 = vmatprep.mubr.msk.f32.mxu1 %vm436_vm0, %v179_v0  ;;  %v272_v62 = vld [vmem:[%s2148_s7 + $0x2f8] sm:$0xff]  ;;  %v275_v0 = vld [vmem:[%s2148_s7 + $0x310] sm:$0xff] }
  0x95   : > { %v280_v63 = vld [vmem:[%s2148_s7 + $0x338] sm:$0xff] }
  0x97   : > { %808 = vmatmul.mubr.f32.gmra.mrb[36].mxu0 %v231_v1  ;;  %1871 = vmatmul.mubr.msk.f32.vlgmr.msra.gmra.mrb[36].mxu1 %vm436_vm0, %v182_v2  ;;  %v279_v1 = vld [vmem:[%s2148_s7 + $0x330] sm:$0xff]  ;;  %v278_v2 = vld [vmem:[%s2148_s7 + $0x328] sm:$0xff] }
  0x98   : > { %812 = vmatprep.mubr.f32.mxu0 %v235_v3  ;;  %1873 = vmatprep.mubr.msk.f32.mxu1 %vm436_vm0, %v185_v4  ;;  %v283_v3 = vld [vmem:[%s2148_s7 + $0x350] sm:$0xff]  ;;  %v281_v4 = vld [vmem:[%s2148_s7 + $0x340] sm:$0xff] }
  0x9b   : > { %813 = vmatmul.mubr.f32.gmra.mrb[38].mxu0 %v234_v5  ;;  %1874 = vmatmul.mubr.msk.f32.gmra.mrb[38].mxu1 %vm436_vm0, %v188_v6  ;;  %v282_v5 = vld [vmem:[%s2148_s7 + $0x348] sm:$0xff]  ;;  %v284_v6 = vld [vmem:[%s2148_s7 + $0x358] sm:$0xff] }
  0x9c   : > { %817 = vmatprep.mubr.f32.mxu0 %v238_v7  ;;  %1876 = vmatprep.mubr.msk.f32.mxu1 %vm436_vm0, %v191_v8  ;;  %v286_v7 = vld [vmem:[%s2148_s7 + $0x368] sm:$0xff]  ;;  %v287_v8 = vld [vmem:[%s2148_s7 + $0x370] sm:$0xff] }
  0x9f   : > { %818 = vmatmul.mubr.f32.gmra.mrb[40].mxu0 %v237_v9  ;;  %1877 = vmatmul.mubr.msk.f32.gmra.mrb[40].mxu1 %vm436_vm0, %v194_v10  ;;  %v285_v9 = vld [vmem:[%s2148_s7 + $0x360] sm:$0xff]  ;;  %v290_v10 = vld [vmem:[%s2148_s7 + $0x388] sm:$0xff] }
  0xa0   : > { %822 = vmatprep.mubr.f32.mxu0 %v241_v11  ;;  %1879 = vmatprep.mubr.msk.f32.mxu1 %vm436_vm0, %v197_v12  ;;  %v289_v11 = vld [vmem:[%s2148_s7 + $0x380] sm:$0xff] }
  0xa1   : > { %v293_v12 = vld [vmem:[%s2148_s7 + $0x3a0] sm:$0xff] }
  0xa3   : > { %823 = vmatmul.mubr.f32.gmra.mrb[42].mxu0 %v240_v13  ;;  %1880 = vmatmul.mubr.msk.f32.gmra.mrb[42].mxu1 %vm436_vm0, %v200_v14  ;;  %v288_v13 = vld [vmem:[%s2148_s7 + $0x378] sm:$0xff] }
  0xa4   : > { %827 = vmatprep.mubr.f32.mxu0 %v244_v15  ;;  %1882 = vmatprep.mubr.msk.f32.mxu1 %vm436_vm0, %v203_v16  ;;  %v296_v14 = vld [vmem:[%s2148_s7 + $0x3b8] sm:$0xff]  ;;  %v299_v16 = vld [vmem:[%s2148_s7 + $0x3d0] sm:$0xff] }
  0xa5   : > { %v292_v15 = vld [vmem:[%s2148_s7 + $0x398] sm:$0xff] }
  0xa7   : > { %828 = vmatmul.mubr.f32.gmra.mrb[44].mxu0 %v243_v17  ;;  %1883 = vmatmul.mubr.msk.f32.gmra.mrb[44].mxu1 %vm436_vm0, %v206_v18  ;;  %v291_v17 = vld [vmem:[%s2148_s7 + $0x390] sm:$0xff]  ;;  %v302_v18 = vld [vmem:[%s2148_s7 + $0x3e8] sm:$0xff] }
  0xa8   : > { %832 = vmatprep.mubr.f32.mxu0 %v247_v19  ;;  %1885 = vmatprep.mubr.msk.f32.mxu1 %vm436_vm0, %v209_v20  ;;  %v295_v19 = vld [vmem:[%s2148_s7 + $0x3b0] sm:$0xff]  ;;  %v305_v20 = vld [vmem:[%s2148_s7 + $0x400] sm:$0xff] }
  0xab   : > { %833 = vmatmul.mubr.f32.gmra.mrb[46].mxu0 %v246_v21  ;;  %1886 = vmatmul.mubr.msk.f32.gmra.mrb[46].mxu1 %vm436_vm0, %v212_v22  ;;  %v294_v21 = vld [vmem:[%s2148_s7 + $0x3a8] sm:$0xff]  ;;  %v308_v22 = vld [vmem:[%s2148_s7 + $0x418] sm:$0xff] }
  0xac   : > { %837 = vmatprep.mubr.f32.mxu0 %v250_v23  ;;  %1888 = vmatprep.mubr.msk.f32.mxu1 %vm436_vm0, %v215_v24  ;;  %v298_v23 = vld [vmem:[%s2148_s7 + $0x3c8] sm:$0xff]  ;;  %v311_v24 = vld [vmem:[%s2148_s7 + $0x430] sm:$0xff] }
  0xaf   : > { %838 = vmatmul.mubr.f32.gmra.mrb[48].mxu0 %v249_v25  ;;  %1889 = vmatmul.mubr.msk.f32.gmra.mrb[48].mxu1 %vm436_vm0, %v218_v26  ;;  %v297_v25 = vld [vmem:[%s2148_s7 + $0x3c0] sm:$0xff]  ;;  %v314_v26 = vld [vmem:[%s2148_s7 + $0x448] sm:$0xff] }
  0xb0   : > { %842 = vmatprep.mubr.f32.mxu0 %v253_v27  ;;  %1891 = vmatprep.mubr.msk.f32.mxu1 %vm436_vm0, %v221_v28  ;;  %v301_v27 = vld [vmem:[%s2148_s7 + $0x3e0] sm:$0xff] }
  0xb1   : > { %v317_v28 = vld [vmem:[%s2148_s7 + $0x460] sm:$0xff] }
  0xb3   : > { %843 = vmatmul.mubr.f32.gmra.mrb[50].mxu0 %v252_v29  ;;  %1892 = vmatmul.mubr.msk.f32.gmra.mrb[50].mxu1 %vm436_vm0, %v224_v30  ;;  %v300_v29 = vld [vmem:[%s2148_s7 + $0x3d8] sm:$0xff] }
  0xb4   : > { %847 = vmatprep.mubr.f32.mxu0 %v256_v31  ;;  %1894 = vmatprep.mubr.msk.f32.mxu1 %vm436_vm0, %v227_v32  ;;  %v320_v30 = vld [vmem:[%s2148_s7 + $0x478] sm:$0xff]  ;;  %v323_v32 = vld [vmem:[%s2148_s7 + $0x490] sm:$0xff] }
  0xb5   : > { %v304_v31 = vld [vmem:[%s2148_s7 + $0x3f8] sm:$0xff] }
  0xb7   : > { %848 = vmatmul.mubr.f32.gmra.mrb[52].mxu0 %v255_v33  ;;  %1895 = vmatmul.mubr.msk.f32.gmra.mrb[52].mxu1 %vm436_vm0, %v230_v34  ;;  %v303_v33 = vld [vmem:[%s2148_s7 + $0x3f0] sm:$0xff]  ;;  %v326_v34 = vld [vmem:[%s2148_s7 + $0x4a8] sm:$0xff] }
  0xb8   : > { %852 = vmatprep.mubr.f32.mxu0 %v259_v35  ;;  %1897 = vmatprep.mubr.msk.f32.mxu1 %vm436_vm0, %v233_v36  ;;  %v307_v35 = vld [vmem:[%s2148_s7 + $0x410] sm:$0xff]  ;;  %v329_v36 = vld [vmem:[%s2148_s7 + $0x4c0] sm:$0xff] }
  0xbb   : > { %853 = vmatmul.mubr.f32.gmra.mrb[54].mxu0 %v258_v37  ;;  %1898 = vmatmul.mubr.msk.f32.gmra.mrb[54].mxu1 %vm436_vm0, %v236_v38  ;;  %v306_v37 = vld [vmem:[%s2148_s7 + $0x408] sm:$0xff]  ;;  %v332_v38 = vld [vmem:[%s2148_s7 + $0x4d8] sm:$0xff] }
  0xbc   : > { %857 = vmatprep.mubr.f32.mxu0 %v262_v39  ;;  %1900 = vmatprep.mubr.msk.f32.mxu1 %vm436_vm0, %v239_v40  ;;  %v310_v39 = vld [vmem:[%s2148_s7 + $0x428] sm:$0xff]  ;;  %v335_v40 = vld [vmem:[%s2148_s7 + $0x4f0] sm:$0xff] }
  0xbf   : > { %858 = vmatmul.mubr.f32.gmra.mrb[56].mxu0 %v261_v41  ;;  %1901 = vmatmul.mubr.msk.f32.gmra.mrb[56].mxu1 %vm436_vm0, %v242_v42  ;;  %v309_v41 = vld [vmem:[%s2148_s7 + $0x420] sm:$0xff]  ;;  %v338_v42 = vld [vmem:[%s2148_s7 + $0x508] sm:$0xff] }
  0xc0   : > { %862 = vmatprep.mubr.f32.mxu0 %v265_v43  ;;  %1903 = vmatprep.mubr.msk.f32.mxu1 %vm436_vm0, %v245_v44  ;;  %v313_v43 = vld [vmem:[%s2148_s7 + $0x440] sm:$0xff] }
  0xc1   : > { %v341_v44 = vld [vmem:[%s2148_s7 + $0x520] sm:$0xff] }
  0xc3   : > { %863 = vmatmul.mubr.f32.gmra.mrb[58].mxu0 %v264_v45  ;;  %1904 = vmatmul.mubr.msk.f32.gmra.mrb[58].mxu1 %vm436_vm0, %v248_v46  ;;  %v312_v45 = vld [vmem:[%s2148_s7 + $0x438] sm:$0xff] }
  0xc4   : > { %867 = vmatprep.mubr.f32.mxu0 %v268_v47  ;;  %1906 = vmatprep.mubr.msk.f32.mxu1 %vm436_vm0, %v251_v48  ;;  %v344_v46 = vld [vmem:[%s2148_s7 + $0x538] sm:$0xff]  ;;  %v347_v48 = vld [vmem:[%s2148_s7 + $0x550] sm:$0xff] }
  0xc5   : > { %v316_v47 = vld [vmem:[%s2148_s7 + $0x458] sm:$0xff] }
  0xc7   : > { %868 = vmatmul.mubr.f32.gmra.mrb[60].mxu0 %v267_v49  ;;  %1907 = vmatmul.mubr.msk.f32.gmra.mrb[60].mxu1 %vm436_vm0, %v254_v50  ;;  %v315_v49 = vld [vmem:[%s2148_s7 + $0x450] sm:$0xff]  ;;  %v350_v50 = vld [vmem:[%s2148_s7 + $0x568] sm:$0xff] }
  0xc8   : > { %872 = vmatprep.mubr.f32.mxu0 %v271_v51  ;;  %1909 = vmatprep.mubr.msk.f32.mxu1 %vm436_vm0, %v257_v52  ;;  %v319_v51 = vld [vmem:[%s2148_s7 + $0x470] sm:$0xff]  ;;  %v353_v52 = vld [vmem:[%s2148_s7 + $0x580] sm:$0xff] }
  0xcb   : > { %873 = vmatmul.mubr.f32.gmra.mrb[62].mxu0 %v270_v53  ;;  %1910 = vmatmul.mubr.msk.f32.gmra.mrb[62].mxu1 %vm436_vm0, %v260_v54  ;;  %v318_v53 = vld [vmem:[%s2148_s7 + $0x468] sm:$0xff]  ;;  %v356_v54 = vld [vmem:[%s2148_s7 + $0x598] sm:$0xff] }
  0xcc   : > { %877 = vmatprep.mubr.f32.mxu0 %v274_v55  ;;  %1912 = vmatprep.mubr.msk.f32.mxu1 %vm436_vm0, %v263_v56  ;;  %v322_v55 = vld [vmem:[%s2148_s7 + $0x488] sm:$0xff]  ;;  %v359_v56 = vld [vmem:[%s2148_s7 + $0x5b0] sm:$0xff] }
  0xcf   : > { %878 = vmatmul.mubr.f32.gmra.mrb[64].mxu0 %v273_v57  ;;  %1913 = vmatmul.mubr.msk.f32.gmra.mrb[64].mxu1 %vm436_vm0, %v266_v58  ;;  %v321_v57 = vld [vmem:[%s2148_s7 + $0x480] sm:$0xff]  ;;  %v362_v58 = vld [vmem:[%s2148_s7 + $0x5c8] sm:$0xff] }
  0xd0   : > { %882 = vmatprep.mubr.f32.mxu0 %v277_v59  ;;  %1915 = vmatprep.mubr.msk.f32.mxu1 %vm436_vm0, %v269_v60  ;;  %v325_v59 = vld [vmem:[%s2148_s7 + $0x4a0] sm:$0xff] }
  0xd1   : > { %v365_v60 = vld [vmem:[%s2148_s7 + $0x5e0] sm:$0xff] }
  0xd3   : > { %883 = vmatmul.mubr.f32.gmra.mrb[66].mxu0 %v276_v61  ;;  %1916 = vmatmul.mubr.msk.f32.gmra.mrb[66].mxu1 %vm436_vm0, %v272_v62  ;;  %v324_v61 = vld [vmem:[%s2148_s7 + $0x498] sm:$0xff] }
  0xd4   : > { %887 = vmatprep.mubr.f32.mxu0 %v280_v63  ;;  %1918 = vmatprep.mubr.msk.f32.mxu1 %vm436_vm0, %v275_v0  ;;  %v368_v62 = vld [vmem:[%s2148_s7 + $0x5f8] sm:$0xff]  ;;  %v371_v0 = vld [vmem:[%s2148_s7 + $0x610] sm:$0xff] }
  0xd5   : > { %v328_v63 = vld [vmem:[%s2148_s7 + $0x4b8] sm:$0xff] }
  0xd7   : > { %888 = vmatmul.mubr.f32.gmra.mrb[68].mxu0 %v279_v1  ;;  %1919 = vmatmul.mubr.msk.f32.gmra.mrb[68].mxu1 %vm436_vm0, %v278_v2  ;;  %v327_v1 = vld [vmem:[%s2148_s7 + $0x4b0] sm:$0xff]  ;;  %v374_v2 = vld [vmem:[%s2148_s7 + $0x628] sm:$0xff] }
  0xd8   : > { %892 = vmatprep.mubr.f32.mxu0 %v283_v3  ;;  %1921 = vmatprep.mubr.msk.f32.mxu1 %vm436_vm0, %v281_v4  ;;  %v331_v3 = vld [vmem:[%s2148_s7 + $0x4d0] sm:$0xff]  ;;  %v377_v4 = vld [vmem:[%s2148_s7 + $0x640] sm:$0xff] }
  0xdb   : > { %893 = vmatmul.mubr.f32.gmra.mrb[70].mxu0 %v282_v5  ;;  %1922 = vmatmul.mubr.msk.f32.gmra.mrb[70].mxu1 %vm436_vm0, %v284_v6  ;;  %v330_v5 = vld [vmem:[%s2148_s7 + $0x4c8] sm:$0xff]  ;;  %v380_v6 = vld [vmem:[%s2148_s7 + $0x658] sm:$0xff] }
  0xdc   : > { %897 = vmatprep.mubr.f32.mxu0 %v286_v7  ;;  %1924 = vmatprep.mubr.msk.f32.mxu1 %vm436_vm0, %v287_v8  ;;  %v334_v7 = vld [vmem:[%s2148_s7 + $0x4e8] sm:$0xff]  ;;  %v383_v8 = vld [vmem:[%s2148_s7 + $0x670] sm:$0xff] }
  0xdf   : > { %898 = vmatmul.mubr.f32.gmra.mrb[72].mxu0 %v285_v9  ;;  %1925 = vmatmul.mubr.msk.f32.gmra.mrb[72].mxu1 %vm436_vm0, %v290_v10  ;;  %v333_v9 = vld [vmem:[%s2148_s7 + $0x4e0] sm:$0xff]  ;;  %v386_v10 = vld [vmem:[%s2148_s7 + $0x688] sm:$0xff] }
  0xe0   : > { %902 = vmatprep.mubr.f32.mxu0 %v289_v11  ;;  %1927 = vmatprep.mubr.msk.f32.mxu1 %vm436_vm0, %v293_v12  ;;  %v337_v11 = vld [vmem:[%s2148_s7 + $0x500] sm:$0xff] }
  0xe1   : > { %v389_v12 = vld [vmem:[%s2148_s7 + $0x6a0] sm:$0xff] }
  0xe3   : > { %903 = vmatmul.mubr.f32.gmra.mrb[74].mxu0 %v288_v13  ;;  %1928 = vmatmul.mubr.msk.f32.gmra.mrb[74].mxu1 %vm436_vm0, %v296_v14  ;;  %v336_v13 = vld [vmem:[%s2148_s7 + $0x4f8] sm:$0xff] }
  0xe4   : > { %907 = vmatprep.mubr.f32.mxu0 %v292_v15  ;;  %1930 = vmatprep.mubr.msk.f32.mxu1 %vm436_vm0, %v299_v16  ;;  %v392_v14 = vld [vmem:[%s2148_s7 + $0x6b8] sm:$0xff] }
  0xe7   : > { %908 = vmatmul.mubr.f32.gmra.mrb[76].mxu0 %v291_v17  ;;  %1931 = vmatmul.mubr.msk.f32.gmra.mrb[76].mxu1 %vm436_vm0, %v302_v18 }
  0xe8   : > { %912 = vmatprep.mubr.f32.mxu0 %v295_v19  ;;  %1933 = vmatprep.mubr.msk.f32.mxu1 %vm436_vm0, %v305_v20 }
  0xeb   : > { %913 = vmatmul.mubr.f32.gmra.mrb[78].mxu0 %v294_v21  ;;  %1934 = vmatmul.mubr.msk.f32.gmra.mrb[78].mxu1 %vm436_vm0, %v308_v22 }
  0xec   : > { %917 = vmatprep.mubr.f32.mxu0 %v298_v23  ;;  %1936 = vmatprep.mubr.msk.f32.mxu1 %vm436_vm0, %v311_v24 }
  0xef   : > { %918 = vmatmul.mubr.f32.gmra.mrb[80].mxu0 %v297_v25  ;;  %1937 = vmatmul.mubr.msk.f32.gmra.mrb[80].mxu1 %vm436_vm0, %v314_v26 }
  0xf0   : > { %922 = vmatprep.mubr.f32.mxu0 %v301_v27  ;;  %1939 = vmatprep.mubr.msk.f32.mxu1 %vm436_vm0, %v317_v28 }
  0xf3   : > { %923 = vmatmul.mubr.f32.gmra.mrb[82].mxu0 %v300_v29  ;;  %1940 = vmatmul.mubr.msk.f32.gmra.mrb[82].mxu1 %vm436_vm0, %v320_v30 }
  0xf4   : > { %927 = vmatprep.mubr.f32.mxu0 %v304_v31  ;;  %1942 = vmatprep.mubr.msk.f32.mxu1 %vm436_vm0, %v323_v32 }
  0xf7   : > { %928 = vmatmul.mubr.f32.gmra.mrb[84].mxu0 %v303_v33  ;;  %1943 = vmatmul.mubr.msk.f32.gmra.mrb[84].mxu1 %vm436_vm0, %v326_v34 }
  0xf8   : > { %932 = vmatprep.mubr.f32.mxu0 %v307_v35  ;;  %1945 = vmatprep.mubr.msk.f32.mxu1 %vm436_vm0, %v329_v36 }
  0xfb   : > { %933 = vmatmul.mubr.f32.gmra.mrb[86].mxu0 %v306_v37  ;;  %1946 = vmatmul.mubr.msk.f32.gmra.mrb[86].mxu1 %vm436_vm0, %v332_v38 }
  0xfc   : > { %937 = vmatprep.mubr.f32.mxu0 %v310_v39  ;;  %1948 = vmatprep.mubr.msk.f32.mxu1 %vm436_vm0, %v335_v40 }
  0xff   : > { %938 = vmatmul.mubr.f32.gmra.mrb[88].mxu0 %v309_v41  ;;  %1949 = vmatmul.mubr.msk.f32.gmra.mrb[88].mxu1 %vm436_vm0, %v338_v42 }
 0x100   : > { %942 = vmatprep.mubr.f32.mxu0 %v313_v43  ;;  %1951 = vmatprep.mubr.msk.f32.mxu1 %vm436_vm0, %v341_v44 }
 0x103   : > { %943 = vmatmul.mubr.f32.gmra.mrb[90].mxu0 %v312_v45  ;;  %1952 = vmatmul.mubr.msk.f32.gmra.mrb[90].mxu1 %vm436_vm0, %v344_v46 }
 0x104   : > { %947 = vmatprep.mubr.f32.mxu0 %v316_v47  ;;  %1954 = vmatprep.mubr.msk.f32.mxu1 %vm436_vm0, %v347_v48 }
 0x107   : > { %948 = vmatmul.mubr.f32.gmra.mrb[92].mxu0 %v315_v49  ;;  %1955 = vmatmul.mubr.msk.f32.gmra.mrb[92].mxu1 %vm436_vm0, %v350_v50 }
 0x108   : > { %952 = vmatprep.mubr.f32.mxu0 %v319_v51  ;;  %1957 = vmatprep.mubr.msk.f32.mxu1 %vm436_vm0, %v353_v52 }
 0x10b   : > { %953 = vmatmul.mubr.f32.gmra.mrb[94].mxu0 %v318_v53  ;;  %1958 = vmatmul.mubr.msk.f32.gmra.mrb[94].mxu1 %vm436_vm0, %v356_v54 }
 0x10c   : > { %957 = vmatprep.mubr.f32.mxu0 %v322_v55  ;;  %1960 = vmatprep.mubr.msk.f32.mxu1 %vm436_vm0, %v359_v56 }
 0x10f   : > { %958 = vmatmul.mubr.f32.gmra.mrb[96].mxu0 %v321_v57  ;;  %1961 = vmatmul.mubr.msk.f32.gmra.mrb[96].mxu1 %vm436_vm0, %v362_v58 }
 0x110   : > { %962 = vmatprep.mubr.f32.mxu0 %v325_v59  ;;  %1963 = vmatprep.mubr.msk.f32.mxu1 %vm436_vm0, %v365_v60 }
 0x113   : > { %963 = vmatmul.mubr.f32.gmra.mrb[98].mxu0 %v324_v61  ;;  %1964 = vmatmul.mubr.msk.f32.gmra.mrb[98].mxu1 %vm436_vm0, %v368_v62 }
 0x114   : > { %967 = vmatprep.mubr.f32.mxu0 %v328_v63  ;;  %1966 = vmatprep.mubr.msk.f32.mxu1 %vm436_vm0, %v371_v0 }
 0x117   : > { %968 = vmatmul.mubr.f32.gmra.mrb[100].mxu0 %v327_v1  ;;  %1967 = vmatmul.mubr.msk.f32.gmra.mrb[100].mxu1 %vm436_vm0, %v374_v2 }
 0x118   : > { %972 = vmatprep.mubr.f32.mxu0 %v331_v3  ;;  %1969 = vmatprep.mubr.msk.f32.mxu1 %vm436_vm0, %v377_v4 }
 0x11b   : > { %973 = vmatmul.mubr.f32.gmra.mrb[102].mxu0 %v330_v5  ;;  %1970 = vmatmul.mubr.msk.f32.gmra.mrb[102].mxu1 %vm436_vm0, %v380_v6 }
 0x11c   : > { %977 = vmatprep.mubr.f32.mxu0 %v334_v7  ;;  %1972 = vmatprep.mubr.msk.f32.mxu1 %vm436_vm0, %v383_v8 }
 0x11f   : > { %978 = vmatmul.mubr.f32.gmra.mrb[104].mxu0 %v333_v9  ;;  %1973 = vmatmul.mubr.msk.f32.gmra.mrb[104].mxu1 %vm436_vm0, %v386_v10 }
 0x120   : > { %982 = vmatprep.mubr.f32.mxu0 %v337_v11  ;;  %1975 = vmatprep.mubr.msk.f32.mxu1 %vm436_vm0, %v389_v12 }
 0x122   : > { %v2547_v15 = vpop.f32.mrb[0].mxu0  ;;  %v2549_v16 = vpop.f32.mrb[0].mxu1 }
 0x123   : > { %v721_v17 = vpop.f32.mrb[1].mxu0  ;;  %983 = vmatmul.mubr.f32.gmra.mrb[106].mxu0 %v336_v13  ;;  %v991_v18 = vpop.f32.mrb[1].mxu1  ;;  %1976 = vmatmul.mubr.msk.f32.gmra.mrb[106].mxu1 %vm436_vm0, %v392_v14 }
 0x126   : > { %v2552_v19 = vpop.f32.mrb[2].mxu0  ;;  %v2554_v20 = vpop.f32.mrb[2].mxu1 }
 0x127   : > { %v726_v21 = vpop.f32.mrb[3].mxu0  ;;  %v996_v22 = vpop.f32.mrb[3].mxu1 }
 0x12a   : > { %v2556_v23 = vpop.f32.mrb[4].mxu0  ;;  %v2558_v24 = vpop.f32.mrb[4].mxu1 }
 0x12b   : > { %v731_v25 = vpop.f32.mrb[5].mxu0  ;;  %v1001_v26 = vpop.f32.mrb[5].mxu1 }
 0x12e   : > { %v2560_v27 = vpop.f32.mrb[6].mxu0  ;;  %v2562_v28 = vpop.f32.mrb[6].mxu1 }
 0x12f   : > { %v736_v29 = vpop.f32.mrb[7].mxu0  ;;  %v1006_v30 = vpop.f32.mrb[7].mxu1 }
 0x130   : > { %v2623_v29 = vld [vmem:[%s2958_s2] ss:$0 sm:$0xff] }
 0x132   : > { %v2564_v31 = vpop.f32.mrb[8].mxu0  ;;  %v2566_v32 = vpop.f32.mrb[8].mxu1 }
 0x133   : > { %v741_v33 = vpop.f32.mrb[9].mxu0  ;;  %v1011_v34 = vpop.f32.mrb[9].mxu1 }
 0x134   : > { %v725_v34 = vadd.f32 %v2623_v29, %v2552_v19 }
 0x136   : > { %v2568_v35 = vpop.f32.mrb[10].mxu0  ;;  %v2570_v36 = vpop.f32.mrb[10].mxu1 }
 0x137   : > { %v746_v37 = vpop.f32.mrb[11].mxu0  ;;  %v1016_v38 = vpop.f32.mrb[11].mxu1 }
 0x138   : > { %v720_v37 = vadd.f32 %v2623_v29, %v2547_v15 }
 0x13a   : > { %v2572_v39 = vpop.f32.mrb[12].mxu0  ;;  %v2574_v40 = vpop.f32.mrb[12].mxu1 }
 0x13b   : > { %v751_v41 = vpop.f32.mrb[13].mxu0  ;;  %v1021_v42 = vpop.f32.mrb[13].mxu1 }
 0x13e   : > { %v2576_v43 = vpop.f32.mrb[14].mxu0  ;;  %v2578_v44 = vpop.f32.mrb[14].mxu1 }
 0x13f   : > { %v756_v45 = vpop.f32.mrb[15].mxu0  ;;  %v1026_v46 = vpop.f32.mrb[15].mxu1 }
 0x142   : > { %v2580_v47 = vpop.f32.mrb[16].mxu0  ;;  %v2582_v48 = vpop.f32.mrb[16].mxu1 }
 0x143   : > { %v761_v49 = vpop.f32.mrb[17].mxu0  ;;  %v1031_v50 = vpop.f32.mrb[17].mxu1 }
 0x144   : > { %v735_v50 = vadd.f32 %v2623_v29, %v2560_v27 }
 0x146   : > { %v2584_v51 = vpop.f32.mrb[18].mxu0  ;;  %v2586_v52 = vpop.f32.mrb[18].mxu1 }
 0x147   : > { %v766_v53 = vpop.f32.mrb[19].mxu0  ;;  %v1036_v54 = vpop.f32.mrb[19].mxu1 }
 0x148   : > { %v730_v53 = vadd.f32 %v2623_v29, %v2556_v23 }
 0x14a   : > { %v2588_v55 = vpop.f32.mrb[20].mxu0  ;;  %v2590_v56 = vpop.f32.mrb[20].mxu1 }
 0x14b   : > { %v771_v57 = vpop.f32.mrb[21].mxu0  ;;  %v1041_v58 = vpop.f32.mrb[21].mxu1 }
 0x14e   : > { %v2592_v59 = vpop.f32.mrb[22].mxu0  ;;  %v2594_v60 = vpop.f32.mrb[22].mxu1 }
 0x14f   : > { %v776_v61 = vpop.f32.mrb[23].mxu0  ;;  %v1046_v62 = vpop.f32.mrb[23].mxu1 }
 0x150   : > { %v745_v62 = vadd.f32 %v2623_v29, %v2568_v35 }
 0x152   : > { %v2596_v63 = vpop.f32.mrb[24].mxu0  ;;  %v2598_v0 = vpop.f32.mrb[24].mxu1 }
 0x153   : > { %v781_v1 = vpop.f32.mrb[25].mxu0  ;;  %v1051_v2 = vpop.f32.mrb[25].mxu1 }
 0x154   : > { %v740_v1 = vadd.f32 %v2623_v29, %v2564_v31 }
 0x156   : > { %v2600_v3 = vpop.f32.mrb[26].mxu0  ;;  %v2602_v4 = vpop.f32.mrb[26].mxu1 }
 0x157   : > { %v786_v5 = vpop.f32.mrb[27].mxu0  ;;  %v1056_v6 = vpop.f32.mrb[27].mxu1 }
 0x15a   : > { %v2604_v7 = vpop.f32.mrb[28].mxu0  ;;  %v2606_v8 = vpop.f32.mrb[28].mxu1 }
 0x15b   : > { %v791_v9 = vpop.f32.mrb[29].mxu0  ;;  %v1061_v10 = vpop.f32.mrb[29].mxu1 }
 0x15c   : > { %v755_v10 = vadd.f32 %v2623_v29, %v2576_v43 }
 0x15e   : > { %v2608_v11 = vpop.f32.mrb[30].mxu0  ;;  %v2610_v12 = vpop.f32.mrb[30].mxu1 }
 0x15f   : > { %v796_v13 = vpop.f32.mrb[31].mxu0  ;;  %v1066_v14 = vpop.f32.mrb[31].mxu1 }
 0x160   : > { %v750_v13 = vadd.f32 %v2623_v29, %v2572_v39 }
 0x162   : > { %v2612_v17 = vpop.f32.mrb[32].mxu0  ;;  %v2614_v18 = vpop.f32.mrb[32].mxu1 }
 0x163   : > { %v801_v21 = vpop.f32.mrb[33].mxu0  ;;  %v1071_v22 = vpop.f32.mrb[33].mxu1 }
 0x166   : > { %v2616_v25 = vpop.f32.mrb[34].mxu0  ;;  %v2618_v26 = vpop.f32.mrb[34].mxu1 }
 0x167   : > { %v806_v30 = vpop.f32.mrb[35].mxu0  ;;  %v1076_v33 = vpop.f32.mrb[35].mxu1 }
 0x168   : > { %v765_v33 = vadd.f32 %v2623_v29, %v2584_v51 }
 0x16a   : > { %v2629_v38 = vpop.f32.mrb[36].mxu0  ;;  %v1872_v41 = vpop.f32.mrb[36].mxu1 }
 0x16b   : > { %v2631_v42 = vadd.f32 %v1872_v41, %v725_v34  ;;  %v811_v45 = vpop.f32.mrb[37].mxu0  ;;  %v1144_v46 = vpop.f32.mrb[37].mxu1  ;;  %v760_v34 = vadd.f32 %v2623_v29, %v2580_v47 }
 0x16c   : > { %v2633_v49 = vadd.f32 %v1144_v46, %v720_v37 }
 0x16e   : > { %v814_v54 = vpop.f32.mrb[38].mxu0  ;;  %v1875_v19 = vpop.f32.mrb[38].mxu1 }
 0x16f   : > { %v2639_v57 = vadd.f32 %v1875_v19, %v735_v50  ;;  %v816_v15 = vpop.f32.mrb[39].mxu0  ;;  %v1154_v58 = vpop.f32.mrb[39].mxu1  ;;  %v775_v50 = vadd.f32 %v2623_v29, %v2592_v59 }
 0x170   : > { %v2641_v61 = vadd.f32 %v1154_v58, %v730_v53  ;;  %v770_v53 = vadd.f32 %v2623_v29, %v2588_v55 }
 0x172   : > { %v2647_v2 = vpop.f32.mrb[40].mxu0  ;;  %v1878_v27 = vpop.f32.mrb[40].mxu1 }
 0x173   : > { %v2649_v5 = vadd.f32 %v1878_v27, %v745_v62  ;;  %v821_v23 = vpop.f32.mrb[41].mxu0  ;;  %v1164_v6 = vpop.f32.mrb[41].mxu1  ;;  %v780_v27 = vadd.f32 %v2623_v29, %v2596_v63 }
 0x174   : > { %v2651_v9 = vadd.f32 %v1164_v6, %v740_v1  ;;  %v785_v1 = vadd.f32 %v2623_v29, %v2600_v3 }
 0x176   : > { %v824_v14 = vpop.f32.mrb[42].mxu0  ;;  %v1881_v35 = vpop.f32.mrb[42].mxu1 }
 0x177   : > { %v2657_v21 = vadd.f32 %v1881_v35, %v755_v10  ;;  %v826_v31 = vpop.f32.mrb[43].mxu0  ;;  %v1174_v22 = vpop.f32.mrb[43].mxu1  ;;  %v795_v35 = vadd.f32 %v2623_v29, %v2608_v11 }
 0x178   : > { %v2659_v30 = vadd.f32 %v1174_v22, %v750_v13  ;;  %v790_v31 = vadd.f32 %v2623_v29, %v2604_v7 }
 0x17a   : > { %v2665_v37 = vpop.f32.mrb[44].mxu0  ;;  %v1884_v43 = vpop.f32.mrb[44].mxu1 }
 0x17b   : > { %v2667_v41 = vadd.f32 %v1884_v43, %v765_v33  ;;  %v831_v39 = vpop.f32.mrb[45].mxu0  ;;  %v1184_v45 = vpop.f32.mrb[45].mxu1 }
 0x17c   : > { %v2669_v46 = vadd.f32 %v1184_v45, %v760_v34  ;;  %v805_v39 = vadd.f32 %v2623_v29, %v2616_v25  ;;  %v800_v45 = vadd.f32 %v2623_v29, %v2612_v17  ;;  %v1504_v17 = vmax.f32 %v2631_v42, 0.0 }
 0x17d   : > { %v1506_v42 = vmax.f32 %v2639_v57, 0.0  ;;  %v1508_v57 = vmax.f32 %v2649_v5, 0.0  ;;  %v1510_v5 = vmax.f32 %v2657_v21, 0.0  ;;  %v1512_v21 = vmax.f32 %v2667_v41, 0.0 }
 0x17e   : > { %v834_v19 = vpop.f32.mrb[46].mxu0  ;;  %v1887_v51 = vpop.f32.mrb[46].mxu1 }
 0x17f   : > { %v2675_v15 = vadd.f32 %v1887_v51, %v775_v50  ;;  %v836_v47 = vpop.f32.mrb[47].mxu0  ;;  %v1194_v58 = vpop.f32.mrb[47].mxu1 }
 0x180   : > { %v2677_v62 = vadd.f32 %v1194_v58, %v770_v53  ;;  %v815_v58 = vadd.f32 %v2623_v29, %v814_v54 }
 0x181   : > { %v1514_v41 = vmax.f32 %v2675_v15, 0.0 }
 0x182   : > { %v839_v23 = vpop.f32.mrb[48].mxu0  ;;  %v1890_v6 = vpop.f32.mrb[48].mxu1 }
 0x183   : > { %v2683_v59 = vadd.f32 %v1890_v6, %v785_v1  ;;  %v841_v10 = vpop.f32.mrb[49].mxu0  ;;  %v1204_v55 = vpop.f32.mrb[49].mxu1  ;;  %v810_v1 = vadd.f32 %v2623_v29, %v2629_v38 }
 0x184   : > { %v2685_v13 = vadd.f32 %v1204_v55, %v780_v27 }
 0x185   : > { %v1516_v15 = vmax.f32 %v2683_v59, 0.0 }
 0x186   : > { %v844_v22 = vpop.f32.mrb[50].mxu0  ;;  %v1893_v33 = vpop.f32.mrb[50].mxu1 }
 0x187   : > { %v2691_v3 = vadd.f32 %v1893_v33, %v795_v35  ;;  %v846_v34 = vpop.f32.mrb[51].mxu0  ;;  %v1214_v63 = vpop.f32.mrb[51].mxu1 }
 0x188   : > { %v2693_v43 = vadd.f32 %v1214_v63, %v790_v31  ;;  %v825_v31 = vadd.f32 %v2623_v29, %v824_v14  ;;  %v1503_v34 = vmax.f32 %v2633_v49, 0.0  ;;  %v820_v63 = vadd.f32 %v2623_v29, %v2647_v2 }
 0x189   : > { %v835_v14 = vadd.f32 %v2623_v29, %v834_v19  ;;  %v1505_v49 = vmax.f32 %v2641_v61, 0.0  ;;  %v830_v2 = vadd.f32 %v2623_v29, %v2665_v37  ;;  %v845_v19 = vadd.f32 %v2623_v29, %v844_v22 }
 0x18a   : > { %v849_v50 = vpop.f32.mrb[52].mxu0  ;;  %v1896_v53 = vpop.f32.mrb[52].mxu1  ;;  %v1507_v61 = vmax.f32 %v2651_v9, 0.0  ;;  %v840_v37 = vadd.f32 %v2623_v29, %v839_v23  ;;  %v1509_v9 = vmax.f32 %v2659_v30, 0.0  ;;  %v1511_v30 = vmax.f32 %v2669_v46, 0.0 }
 0x18b   : > { %v2699_v11 = vadd.f32 %v1896_v53, %v805_v39  ;;  %v851_v51 = vpop.f32.mrb[53].mxu0  ;;  %v1224_v7 = vpop.f32.mrb[53].mxu1  ;;  %v850_v23 = vadd.f32 %v2623_v29, %v849_v50  ;;  %v1513_v46 = vmax.f32 %v2677_v62, 0.0  ;;  %v1515_v62 = vmax.f32 %v2685_v13, 0.0 }
 0x18c   : > { %v2701_v47 = vadd.f32 %v1224_v7, %v800_v45  ;;  %v1518_v59 = vmax.f32 %v2691_v3, 0.0 }
 0x18e   : > { %v854_v27 = vpop.f32.mrb[54].mxu0  ;;  %v1899_v6 = vpop.f32.mrb[54].mxu1  ;;  %v1519_v3 = vmax.f32 %v2701_v47, 0.0 }
 0x18f   : > { %v1240_v10 = vadd.f32 %v1899_v6, %v815_v58  ;;  %v856_v25 = vpop.f32.mrb[55].mxu0  ;;  %v1234_v55 = vpop.f32.mrb[55].mxu1  ;;  %v855_v22 = vadd.f32 %v2623_v29, %v854_v27 }
 0x190   : > { %v1235_v35 = vadd.f32 %v1234_v55, %v810_v1 }
 0x191   : > { %v1522_v33 = vmax.f32 %v1240_v10, 0.0 }
 0x192   : > { %v1521_v54 = vmax.f32 %v1235_v35, 0.0  ;;  %v859_v39 = vpop.f32.mrb[56].mxu0  ;;  %v1902_v45 = vpop.f32.mrb[56].mxu1 }
 0x193   : > { %v2711_v38 = vmax.f32 %v1504_v17, %v1522_v33  ;;  %v1250_v53 = vadd.f32 %v1902_v45, %v825_v31  ;;  %v861_v51 = vpop.f32.mrb[57].mxu0  ;;  %v1244_v7 = vpop.f32.mrb[57].mxu1  ;;  %v860_v50 = vadd.f32 %v2623_v29, %v859_v39 }
 0x194   : > { %v2713_v58 = vmax.f32 %v1503_v34, %v1521_v54  ;;  %v1245_v1 = vadd.f32 %v1244_v7, %v820_v63 }
 0x195   : > { %v1524_v6 = vmax.f32 %v1250_v53, 0.0 }
 0x196   : > { %v1523_v10 = vmax.f32 %v1245_v1, 0.0  ;;  %v864_v25 = vpop.f32.mrb[58].mxu0  ;;  %v1905_v55 = vpop.f32.mrb[58].mxu1 }
 0x197   : > { %v2720_v35 = vmax.f32 %v1506_v42, %v1524_v6  ;;  %v1260_v17 = vadd.f32 %v1905_v55, %v835_v14  ;;  %v866_v31 = vpop.f32.mrb[59].mxu0  ;;  %v1254_v33 = vpop.f32.mrb[59].mxu1  ;;  %v865_v27 = vadd.f32 %v2623_v29, %v864_v25 }
 0x198   : > { %v2722_v34 = vmax.f32 %v1505_v49, %v1523_v10  ;;  %v1255_v63 = vadd.f32 %v1254_v33, %v830_v2 }
 0x199   : > { %v1526_v54 = vmax.f32 %v1260_v17, 0.0 }
 0x19a   : > { %v1525_v45 = vmax.f32 %v1255_v63, 0.0  ;;  %v869_v53 = vpop.f32.mrb[60].mxu0  ;;  %v1908_v51 = vpop.f32.mrb[60].mxu1 }
 0x19b   : > { %v2728_v7 = vmax.f32 %v1508_v57, %v1526_v54  ;;  %v1270_v1 = vadd.f32 %v1908_v51, %v845_v19  ;;  %v871_v42 = vpop.f32.mrb[61].mxu0  ;;  %v1264_v14 = vpop.f32.mrb[61].mxu1  ;;  %v870_v39 = vadd.f32 %v2623_v29, %v869_v53 }
 0x19c   : > { %v2730_v6 = vmax.f32 %v1507_v61, %v1525_v45  ;;  %v1265_v49 = vadd.f32 %v1264_v14, %v840_v37 }
 0x19d   : > { %v1528_v2 = vmax.f32 %v1270_v1, 0.0 }
 0x19e   : > { %v1527_v10 = vmax.f32 %v1265_v49, 0.0  ;;  %v874_v55 = vpop.f32.mrb[62].mxu0  ;;  %v1911_v17 = vpop.f32.mrb[62].mxu1 }
 0x19f   : > { %v2736_v31 = vmax.f32 %v1510_v5, %v1528_v2  ;;  %v1280_v33 = vadd.f32 %v1911_v17, %v855_v22  ;;  %v876_v63 = vpop.f32.mrb[63].mxu0  ;;  %v1274_v57 = vpop.f32.mrb[63].mxu1  ;;  %v875_v25 = vadd.f32 %v2623_v29, %v874_v55 }
 0x1a0   : > { %v2738_v19 = vmax.f32 %v1509_v9, %v1527_v10  ;;  %v1275_v54 = vadd.f32 %v1274_v57, %v850_v23 }
 0x1a1   : > { %v1530_v61 = vmax.f32 %v1280_v33, 0.0 }
 0x1a2   : > { %v1529_v37 = vmax.f32 %v1275_v54, 0.0  ;;  %v879_v45 = vpop.f32.mrb[64].mxu0  ;;  %v1914_v51 = vpop.f32.mrb[64].mxu1 }
 0x1a3   : > { %v2744_v1 = vmax.f32 %v1512_v21, %v1530_v61  ;;  %v1290_v42 = vadd.f32 %v1914_v51, %v865_v27  ;;  %v881_v14 = vpop.f32.mrb[65].mxu0  ;;  %v1284_v49 = vpop.f32.mrb[65].mxu1  ;;  %v880_v53 = vadd.f32 %v2623_v29, %v879_v45 }
 0x1a4   : > { %v2746_v5 = vmax.f32 %v1511_v30, %v1529_v37  ;;  %v1285_v22 = vadd.f32 %v1284_v49, %v860_v50 }
 0x1a5   : > { %v1532_v2 = vmax.f32 %v1290_v42, 0.0 }
 0x1a6   : > { %v1531_v9 = vmax.f32 %v1285_v22, 0.0  ;;  %v884_v23 = vpop.f32.mrb[66].mxu0  ;;  %v1917_v10 = vpop.f32.mrb[66].mxu1 }
 0x1a7   : > { %v2752_v17 = vmax.f32 %v1514_v41, %v1532_v2  ;;  %v1300_v33 = vadd.f32 %v1917_v10, %v875_v25  ;;  %v886_v63 = vpop.f32.mrb[67].mxu0  ;;  %v1294_v57 = vpop.f32.mrb[67].mxu1  ;;  %v885_v55 = vadd.f32 %v2623_v29, %v884_v23  ;;  %v1517_v25 = vmax.f32 %v2693_v43, 0.0 }
 0x1a8   : > { %v2754_v54 = vmax.f32 %v1513_v46, %v1531_v9  ;;  %v1295_v21 = vadd.f32 %v1294_v57, %v870_v39 }
 0x1a9   : > { %v1534_v27 = vmax.f32 %v1300_v33, 0.0 }
 0x1aa   : > { %v1533_v61 = vmax.f32 %v1295_v21, 0.0  ;;  %v889_v30 = vpop.f32.mrb[68].mxu0  ;;  %v1920_v50 = vpop.f32.mrb[68].mxu1 }
 0x1ab   : > { %v2760_v37 = vmax.f32 %v1516_v15, %v1534_v27  ;;  %v1310_v51 = vadd.f32 %v1920_v50, %v885_v55  ;;  %v891_v42 = vpop.f32.mrb[69].mxu0  ;;  %v1304_v14 = vpop.f32.mrb[69].mxu1  ;;  %v890_v13 = vadd.f32 %v2623_v29, %v889_v30  ;;  %v1520_v55 = vmax.f32 %v2699_v11, 0.0 }
 0x1ac   : > { %v2762_v49 = vmax.f32 %v1515_v62, %v1533_v61  ;;  %v1305_v22 = vadd.f32 %v1304_v14, %v880_v53 }
 0x1ad   : > { %v1536_v41 = vmax.f32 %v1310_v51, 0.0 }
 0x1ae   : > { %v1535_v2 = vmax.f32 %v1305_v22, 0.0  ;;  %v894_v45 = vpop.f32.mrb[70].mxu0  ;;  %v1923_v46 = vpop.f32.mrb[70].mxu1 }
 0x1af   : > { %v2767_v39 = vmax.f32 %v1518_v59, %v1536_v41  ;;  %v895_v9 = vadd.f32 %v2623_v29, %v894_v45  ;;  %v896_v23 = vpop.f32.mrb[71].mxu0  ;;  %v1314_v10 = vpop.f32.mrb[71].mxu1 }
 0x1b0   : > { %v2770_v33 = vmax.f32 %v1517_v25, %v1535_v2  ;;  %v1315_v63 = vadd.f32 %v1314_v10, %v890_v13 }
 0x1b1   : > { %2960 = vst [vmem:[#allocation2_spill] sm:$0xff] %v2767_v39  ;;  %v1320_v57 = vadd.f32 %v1923_v46, %v895_v9 }
 0x1b2   : > { %2961 = vst [vmem:[#allocation3_spill] sm:$0xff] %v2770_v33  ;;  %v1537_v21 = vmax.f32 %v1315_v63, 0.0  ;;  %v899_v15 = vpop.f32.mrb[72].mxu0  ;;  %v1926_v43 = vpop.f32.mrb[72].mxu1 }
 0x1b3   : > { %v1538_v27 = vmax.f32 %v1320_v57, 0.0  ;;  %v900_v62 = vadd.f32 %v2623_v29, %v899_v15  ;;  %v901_v53 = vpop.f32.mrb[73].mxu0  ;;  %v1324_v61 = vpop.f32.mrb[73].mxu1 }
 0x1b4   : > { %v2775_v30 = vmax.f32 %v1519_v3, %v1537_v21 }
 0x1b5   : > { %v2777_v50 = vmax.f32 %v1520_v55, %v1538_v27  ;;  %v2779_v51 = vadd.f32 %v1324_v61, %v900_v62 }
 0x1b6   : > { %2962 = vst [vmem:[#allocation4_spill] sm:$0xff] %v2775_v30  ;;  %v904_v42 = vpop.f32.mrb[74].mxu0  ;;  %v1929_v14 = vpop.f32.mrb[74].mxu1 }
 0x1b7   : > { %2963 = vst [vmem:[#allocation5_spill] sm:$0xff] %v2777_v50  ;;  %v905_v47 = vadd.f32 %v2623_v29, %v904_v42  ;;  %v906_v22 = vpop.f32.mrb[75].mxu0  ;;  %v1334_v59 = vpop.f32.mrb[75].mxu1 }
 0x1b9   : > { %v2782_v41 = vadd.f32 %v1926_v43, %v905_v47 }
 0x1ba   : > { %v909_v11 = vpop.f32.mrb[76].mxu0  ;;  %v1932_v25 = vpop.f32.mrb[76].mxu1 }
 0x1bb   : > { %v910_v13 = vadd.f32 %v2623_v29, %v909_v11  ;;  %v911_v2 = vpop.f32.mrb[77].mxu0  ;;  %v1344_v45 = vpop.f32.mrb[77].mxu1 }
 0x1bd   : > { %v2785_v46 = vadd.f32 %v1334_v59, %v910_v13 }
 0x1be   : > { %v914_v9 = vpop.f32.mrb[78].mxu0  ;;  %v1935_v23 = vpop.f32.mrb[78].mxu1 }
 0x1bf   : > { %v915_v10 = vadd.f32 %v2623_v29, %v914_v9  ;;  %v916_v63 = vpop.f32.mrb[79].mxu0  ;;  %v1354_v57 = vpop.f32.mrb[79].mxu1 }
 0x1c1   : > { %v2788_v3 = vadd.f32 %v1929_v14, %v915_v10 }
 0x1c2   : > { %v919_v21 = vpop.f32.mrb[80].mxu0  ;;  %v1938_v15 = vpop.f32.mrb[80].mxu1 }
 0x1c3   : > { %v920_v43 = vadd.f32 %v2623_v29, %v919_v21  ;;  %v921_v55 = vpop.f32.mrb[81].mxu0  ;;  %v1364_v27 = vpop.f32.mrb[81].mxu1 }
 0x1c5   : > { %v2791_v62 = vadd.f32 %v1344_v45, %v920_v43 }
 0x1c6   : > { %v924_v53 = vpop.f32.mrb[82].mxu0  ;;  %v2793_v61 = vpop.f32.mrb[82].mxu1 }
 0x1c7   : > { %v925_v42 = vadd.f32 %v2623_v29, %v924_v53  ;;  %v926_v47 = vpop.f32.mrb[83].mxu0  ;;  %v1374_v22 = vpop.f32.mrb[83].mxu1 }
 0x1c9   : > { %v2796_v59 = vadd.f32 %v1932_v25, %v925_v42 }
 0x1ca   : > { %v929_v14 = vpop.f32.mrb[84].mxu0  ;;  %v2798_v11 = vpop.f32.mrb[84].mxu1 }
 0x1cb   : > { %v930_v13 = vadd.f32 %v2623_v29, %v929_v14  ;;  %v931_v2 = vpop.f32.mrb[85].mxu0  ;;  %v2801_v9 = vpop.f32.mrb[85].mxu1 }
 0x1cd   : > { %v2803_v10 = vadd.f32 %v1354_v57, %v930_v13  ;;  %v995_v13 = vadd.f32 %v2623_v29, %v2554_v20 }
 0x1ce   : > { %v934_v45 = vpop.f32.mrb[86].mxu0  ;;  %v2807_v63 = vpop.f32.mrb[86].mxu1 }
 0x1cf   : > { %v935_v21 = vadd.f32 %v2623_v29, %v934_v45  ;;  %v936_v43 = vpop.f32.mrb[87].mxu0  ;;  %v2810_v25 = vpop.f32.mrb[87].mxu1  ;;  %v990_v45 = vadd.f32 %v2623_v29, %v2549_v16  ;;  %v1000_v16 = vadd.f32 %v2623_v29, %v2558_v24 }
 0x1d1   : > { %v2812_v55 = vadd.f32 %v1935_v23, %v935_v21 }
 0x1d2   : > { %v939_v53 = vpop.f32.mrb[88].mxu0  ;;  %v2814_v42 = vpop.f32.mrb[88].mxu1 }
 0x1d3   : > { %2964 = vst [vmem:[#allocation6_spill] sm:$0xff] %v2814_v42  ;;  %v940_v47 = vadd.f32 %v2623_v29, %v939_v53  ;;  %v941_v57 = vpop.f32.mrb[89].mxu0  ;;  %v2817_v14 = vpop.f32.mrb[89].mxu1  ;;  %v1540_v42 = vmax.f32 %v2782_v41, 0.0  ;;  %v1015_v41 = vadd.f32 %v2623_v29, %v2570_v36  ;;  %v1010_v36 = vadd.f32 %v2623_v29, %v2566_v32 }
 0x1d4   : > { %v1005_v57 = vadd.f32 %v2623_v29, %v2562_v28 }
 0x1d5   : > { %v2821_v2 = vadd.f32 %v1364_v27, %v940_v47  ;;  %v1539_v47 = vmax.f32 %v2779_v51, 0.0  ;;  %v1542_v51 = vmax.f32 %v2788_v3, 0.0 }
 0x1d6   : > { %v944_v23 = vpop.f32.mrb[90].mxu0  ;;  %v1953_v21 = vpop.f32.mrb[90].mxu1 }
 0x1d7   : > { %v945_v43 = vadd.f32 %v2623_v29, %v944_v23  ;;  %v1420_v50 = vadd.f32 %v1953_v21, %v995_v13  ;;  %v946_v30 = vpop.f32.mrb[91].mxu0  ;;  %v1414_v33 = vpop.f32.mrb[91].mxu1 }
 0x1d8   : > { %v1415_v53 = vadd.f32 %v1414_v33, %v990_v45 }
 0x1d9   : > { %v2829_v20 = vadd.f32 %v1938_v15, %v945_v43  ;;  %v1558_v27 = vmax.f32 %v1420_v50, 0.0 }
 0x1da   : > { %v1557_v39 = vmax.f32 %v1415_v53, 0.0  ;;  %v949_v23 = vpop.f32.mrb[92].mxu0  ;;  %v1956_v13 = vpop.f32.mrb[92].mxu1  ;;  %v1541_v53 = vmax.f32 %v2785_v46, 0.0 }
 0x1db   : > { %v1594_v30 = vmax.f32 %v1540_v42, %v1558_v27  ;;  %v950_v33 = vadd.f32 %v2623_v29, %v949_v23  ;;  %v1430_v45 = vadd.f32 %v1956_v13, %v1005_v57  ;;  %v951_v21 = vpop.f32.mrb[93].mxu0  ;;  %v1424_v28 = vpop.f32.mrb[93].mxu1 }
 0x1dc   : > { %v1593_v24 = vmax.f32 %v1539_v47, %v1557_v39  ;;  %v1425_v50 = vadd.f32 %v1424_v28, %v1000_v16  ;;  %v1025_v47 = vadd.f32 %v2623_v29, %v2578_v44  ;;  %v1020_v21 = vadd.f32 %v2623_v29, %v2574_v40 }
 0x1dd   : > { %v1612_v15 = vmax.f32 %v2711_v38, %v1594_v30  ;;  %v2844_v42 = vadd.f32 %v1374_v22, %v950_v33  ;;  %v1560_v43 = vmax.f32 %v1430_v45, 0.0  ;;  %v1543_v28 = vmax.f32 %v2791_v62, 0.0 }
 0x1de   : > { %v1611_v57 = vmax.f32 %v2713_v58, %v1593_v24  ;;  %v1559_v27 = vmax.f32 %v1425_v50, 0.0  ;;  %v954_v23 = vpop.f32.mrb[94].mxu0  ;;  %v1959_v13 = vpop.f32.mrb[94].mxu1  ;;  %v1544_v58 = vmax.f32 %v2796_v59, 0.0 }
 0x1df   : > { %1631 = vst.msk [vmem:[%s2840_s22 + $0x8] sm:$0xff] %vm1629_vm1, %v1612_v15  ;;  %v1596_v39 = vmax.f32 %v1542_v51, %v1560_v43  ;;  %v955_v3 = vadd.f32 %v2623_v29, %v954_v23  ;;  %v1440_v38 = vadd.f32 %v1959_v13, %v1015_v41  ;;  %v956_v16 = vpop.f32.mrb[95].mxu0  ;;  %v1434_v22 = vpop.f32.mrb[95].mxu1  ;;  %v1035_v43 = vadd.f32 %v2623_v29, %v2586_v52 }
 0x1e0   : > { %1630 = vst.msk [vmem:[%s2840_s22] sm:$0xff] %vm1629_vm1, %v1611_v57  ;;  %v1595_v32 = vmax.f32 %v1541_v53, %v1559_v27  ;;  %v1435_v46 = vadd.f32 %v1434_v22, %v1010_v36  ;;  %v1030_v27 = vadd.f32 %v2623_v29, %v2582_v48  ;;  %v1545_v23 = vmax.f32 %v2803_v10, 0.0 }
 0x1e1   : > { %v1614_v30 = vmax.f32 %v2720_v35, %v1596_v39  ;;  %v2860_v33 = vadd.f32 %v2793_v61, %v955_v3  ;;  %v1562_v45 = vmax.f32 %v1440_v38, 0.0  ;;  %v1045_v22 = vadd.f32 %v2623_v29, %v2594_v60 }
 0x1e2   : > { %v1613_v44 = vmax.f32 %v2722_v34, %v1595_v32  ;;  %v1561_v41 = vmax.f32 %v1435_v46, 0.0  ;;  %v959_v24 = vpop.f32.mrb[96].mxu0  ;;  %v1962_v50 = vpop.f32.mrb[96].mxu1  ;;  %v1546_v34 = vmax.f32 %v2812_v55, 0.0 }
 0x1e3   : > { %1633 = vst.msk [vmem:[%s2840_s22 + $0x18] sm:$0xff] %vm1629_vm1, %v1614_v30  ;;  %v1598_v59 = vmax.f32 %v1544_v58, %v1562_v45  ;;  %v960_v35 = vadd.f32 %v2623_v29, %v959_v24  ;;  %v1450_v51 = vadd.f32 %v1962_v50, %v1025_v47  ;;  %v961_v15 = vpop.f32.mrb[97].mxu0  ;;  %v1444_v61 = vpop.f32.mrb[97].mxu1  ;;  %v1040_v58 = vadd.f32 %v2623_v29, %v2590_v56 }
 0x1e4   : > { %1632 = vst.msk [vmem:[%s2840_s22 + $0x10] sm:$0xff] %vm1629_vm1, %v1613_v44  ;;  %v1597_v40 = vmax.f32 %v1543_v28, %v1561_v41  ;;  %v1445_v62 = vadd.f32 %v1444_v61, %v1020_v21  ;;  %v1547_v30 = vmax.f32 %v2821_v2, 0.0  ;;  %v1055_v24 = vadd.f32 %v2623_v29, %v2602_v4 }
 0x1e5   : > { %v1616_v36 = vmax.f32 %v2728_v7, %v1598_v59  ;;  %v2876_v53 = vadd.f32 %v2801_v9, %v960_v35  ;;  %v1564_v57 = vmax.f32 %v1450_v51, 0.0  ;;  %v1050_v51 = vadd.f32 %v2623_v29, %v2598_v0 }
 0x1e6   : > { %v1615_v52 = vmax.f32 %v2730_v6, %v1597_v40  ;;  %v1563_v13 = vmax.f32 %v1445_v62, 0.0  ;;  %v964_v39 = vpop.f32.mrb[98].mxu0  ;;  %v1965_v3 = vpop.f32.mrb[98].mxu1  ;;  %v1548_v6 = vmax.f32 %v2829_v20, 0.0  ;;  %v1549_v15 = vmax.f32 %v2844_v42, 0.0 }
 0x1e7   : > { %1635 = vst.msk [vmem:[%s2840_s22 + $0x28] sm:$0xff] %vm1629_vm1, %v1616_v36  ;;  %v1600_v55 = vmax.f32 %v1546_v34, %v1564_v57  ;;  %v965_v7 = vadd.f32 %v2623_v29, %v964_v39  ;;  %v1460_v38 = vadd.f32 %v1965_v3, %v1035_v43  ;;  %v966_v16 = vpop.f32.mrb[99].mxu0  ;;  %v1454_v9 = vpop.f32.mrb[99].mxu1  ;;  %v1065_v36 = vadd.f32 %v2623_v29, %v2610_v12 }
 0x1e8   : > { %1634 = vst.msk [vmem:[%s2840_s22 + $0x20] sm:$0xff] %vm1629_vm1, %v1615_v52  ;;  %v1599_v48 = vmax.f32 %v1545_v23, %v1563_v13  ;;  %v1455_v10 = vadd.f32 %v1454_v9, %v1030_v27  ;;  %v1060_v52 = vadd.f32 %v2623_v29, %v2606_v8  ;;  %v1551_v13 = vmax.f32 %v2876_v53, 0.0 }
 0x1e9   : > { %v1618_v47 = vmax.f32 %v2736_v31, %v1600_v55  ;;  %v1390_v32 = vadd.f32 %v2798_v11, %v965_v7  ;;  %v1566_v46 = vmax.f32 %v1460_v38, 0.0  ;;  %v1075_v9 = vadd.f32 %v2623_v29, %v2618_v26 }
 0x1ea   : > { %v1617_v45 = vmax.f32 %v2738_v19, %v1599_v48  ;;  %v1565_v60 = vmax.f32 %v1455_v10, 0.0  ;;  %v969_v21 = vpop.f32.mrb[100].mxu0  ;;  %v1968_v28 = vpop.f32.mrb[100].mxu1  ;;  %v1550_v19 = vmax.f32 %v2860_v33, 0.0 }
 0x1eb   : > { %1637 = vst.msk [vmem:[%s2840_s22 + $0x38] sm:$0xff] %vm1629_vm1, %v1618_v47  ;;  %v1602_v44 = vmax.f32 %v1548_v6, %v1566_v46  ;;  %v970_v20 = vadd.f32 %v2623_v29, %v969_v21  ;;  %v1470_v31 = vadd.f32 %v1968_v28, %v1045_v22  ;;  %v971_v41 = vpop.f32.mrb[101].mxu0  ;;  %v1464_v11 = vpop.f32.mrb[101].mxu1  ;;  %v1070_v6 = vadd.f32 %v2623_v29, %v2614_v18 }
 0x1ec   : > { %1636 = vst.msk [vmem:[%s2840_s22 + $0x30] sm:$0xff] %vm1629_vm1, %v1617_v45  ;;  %v1601_v56 = vmax.f32 %v1547_v30, %v1565_v60  ;;  %v1465_v2 = vadd.f32 %v1464_v11, %v1040_v58  ;;  %v2967_v41 = vld [vmem:[#allocation3_spill] sm:$0xff] }
 0x1ed   : > { %v1620_v50 = vmax.f32 %v2744_v1, %v1602_v44  ;;  %v1395_v59 = vadd.f32 %v2810_v25, %v970_v20  ;;  %v1568_v35 = vmax.f32 %v1470_v31, 0.0  ;;  %v2966_v44 = vld [vmem:[#allocation6_spill] sm:$0xff] }
 0x1ee   : > { %v1619_v61 = vmax.f32 %v2746_v5, %v1601_v56  ;;  %v1567_v4 = vmax.f32 %v1465_v2, 0.0  ;;  %v974_v43 = vpop.f32.mrb[102].mxu0  ;;  %v1971_v40 = vpop.f32.mrb[102].mxu1  ;;  %v1552_v5 = vmax.f32 %v1390_v32, 0.0 }
 0x1ef   : > { %1639 = vst.msk [vmem:[%s2840_s22 + $0x48] sm:$0xff] %vm1629_vm1, %v1620_v50  ;;  %v1604_v62 = vmax.f32 %v1550_v19, %v1568_v35  ;;  %v975_v33 = vadd.f32 %v2623_v29, %v974_v43  ;;  %v1480_v1 = vadd.f32 %v1971_v40, %v1055_v24  ;;  %v976_v34 = vpop.f32.mrb[103].mxu0  ;;  %v1474_v25 = vpop.f32.mrb[103].mxu1  ;;  %v1553_v47 = vmax.f32 %v1395_v59, 0.0  ;;  %v2968_v50 = vld [vmem:[#allocation4_spill] sm:$0xff]  ;;  %v2969_v35 = vld [vmem:[#allocation5_spill] sm:$0xff] }
 0x1f0   : > { %1638 = vst.msk [vmem:[%s2840_s22 + $0x40] sm:$0xff] %vm1629_vm1, %v1619_v61  ;;  %v1603_v0 = vmax.f32 %v1549_v15, %v1567_v4  ;;  %v1475_v42 = vadd.f32 %v1474_v25, %v1050_v51 }
 0x1f1   : > { %v1622_v57 = vmax.f32 %v2752_v17, %v1604_v62  ;;  %v1400_v27 = vadd.f32 %v2807_v63, %v975_v33  ;;  %v1570_v23 = vmax.f32 %v1480_v1, 0.0 }
 0x1f2   : > { %v1621_v39 = vmax.f32 %v2754_v54, %v1603_v0  ;;  %v1569_v3 = vmax.f32 %v1475_v42, 0.0  ;;  %v979_v12 = vpop.f32.mrb[104].mxu0  ;;  %v1974_v55 = vpop.f32.mrb[104].mxu1 }
 0x1f3   : > { %1641 = vst.msk [vmem:[%s2840_s22 + $0x58] sm:$0xff] %vm1629_vm1, %v1622_v57  ;;  %v1606_v7 = vmax.f32 %v1552_v5, %v1570_v23  ;;  %v980_v38 = vadd.f32 %v2623_v29, %v979_v12  ;;  %v1490_v17 = vadd.f32 %v1974_v55, %v1065_v36  ;;  %v981_v16 = vpop.f32.mrb[105].mxu0  ;;  %v1484_v63 = vpop.f32.mrb[105].mxu1  ;;  %v1554_v54 = vmax.f32 %v1400_v27, 0.0 }
 0x1f4   : > { %1640 = vst.msk [vmem:[%s2840_s22 + $0x50] sm:$0xff] %vm1629_vm1, %v1621_v39  ;;  %v1605_v8 = vmax.f32 %v1551_v13, %v1569_v3  ;;  %v1485_v53 = vadd.f32 %v1484_v63, %v1060_v52 }
 0x1f5   : > { %v1624_v22 = vmax.f32 %v2760_v37, %v1606_v7  ;;  %v1405_v48 = vadd.f32 %v2817_v14, %v980_v38  ;;  %v1572_v10 = vmax.f32 %v1490_v17, 0.0 }
 0x1f6   : > { %v1623_v32 = vmax.f32 %v2762_v49, %v1605_v8  ;;  %v1571_v46 = vmax.f32 %v1485_v53, 0.0  ;;  %v984_v58 = vpop.f32.mrb[106].mxu0  ;;  %v1977_v26 = vpop.f32.mrb[106].mxu1  ;;  %v2965_v49 = vld [vmem:[#allocation2_spill] sm:$0xff] }
 0x1f7   : > { %1643 = vst.msk [vmem:[%s2840_s22 + $0x68] sm:$0xff] %vm1629_vm1, %v1624_v22  ;;  %v1608_v30 = vmax.f32 %v1554_v54, %v1572_v10  ;;  %v985_v45 = vadd.f32 %v2623_v29, %v984_v58  ;;  %v1500_v37 = vadd.f32 %v1977_v26, %v1075_v9  ;;  %v986_v60 = vpop.f32.mrb[107].mxu0  ;;  %v1494_v14 = vpop.f32.mrb[107].mxu1  ;;  %v1555_v31 = vmax.f32 %v1405_v48, 0.0 }
 0x1f8   : > { %1642 = vst.msk [vmem:[%s2840_s22 + $0x60] sm:$0xff] %vm1629_vm1, %v1623_v32  ;;  %v1607_v18 = vmax.f32 %v1553_v47, %v1571_v46  ;;  %v1495_v21 = vadd.f32 %v1494_v14, %v1070_v6 }
 0x1f9   : > { %v1626_v28 = vmax.f32 %v2965_v49, %v1608_v30  ;;  %v1410_v20 = vadd.f32 %v2966_v44, %v985_v45  ;;  %v1574_v56 = vmax.f32 %v1500_v37, 0.0 }
 0x1fa   : > { %v1625_v11 = vmax.f32 %v2967_v41, %v1607_v18  ;;  %v1573_v24 = vmax.f32 %v1495_v21, 0.0 }
 0x1fb   : > { %1645 = vst.msk [vmem:[%s2840_s22 + $0x78] sm:$0xff] %vm1629_vm1, %v1626_v28  ;;  %v1556_v29 = vmax.f32 %v1410_v20, 0.0 }
 0x1fc   : > { %1644 = vst.msk [vmem:[%s2840_s22 + $0x70] sm:$0xff] %vm1629_vm1, %v1625_v11  ;;  %v1609_v2 = vmax.f32 %v1555_v31, %v1573_v24 }
 0x1fd   : > { %v1610_v19 = vmax.f32 %v1556_v29, %v1574_v56 }
 0x1fe   : > { %v1627_v59 = vmax.f32 %v2968_v50, %v1609_v2 }
 0x1ff   : > { %v1628_v51 = vmax.f32 %v2969_v35, %v1610_v19 }
 0x200   : > { %1646 = vst.msk [vmem:[%s2840_s22 + $0x80] sm:$0xff] %vm1629_vm1, %v1627_v59 }
 0x201   : > { %1647 = vst.msk [vmem:[%s2840_s22 + $0x88] sm:$0xff] %vm1629_vm1, %v1628_v51 }
 0x202 PF: > { %s13_s12 = sadd.s32 1, %s2082_s12  }
 0x203   : > { %p10_p5 = scmp.ge.s32.totalorder %s13_s12, 4  }
 0x205   :  { %12 = sbr.rel (!%p10_p5) target bundleno = 1 (0x1), region = 62 }

// kernel: cnn_forward.7
= control target key start
LH: loop header
LB: loop body
LE: loop exit
PB: predicated region body
PF: predicated region fallthrough
CT: control target
= control target key end

     0   :  { %v442_v47 = vmov 1983009808   ;;  %v92_v49 = vlaneseq  ;;  %s678_s0 = inlined_call_operand.vmem [shape: f32[2,512], index: 0, kind: input, shape index: {}]   ;;  %s679_s1 = inlined_call_operand.vmem [shape: f32[512,10], index: 1, kind: input, shape index: {}]   ;;  %s680_s2 = inlined_call_operand.vmem [shape: f32[1,10], index: 2, kind: input, shape index: {}]   ;;  %s681_s3 = inlined_call_operand.hbm [shape: f32[2,10], index: 3, kind: output, shape index: {}]  }
   0x1   :  { %v39_v0 = vld [vmem:[%s679_s1 + $0x80] sm:$0xff]  ;;  %v40_v1 = vld [vmem:[%s679_s1 + $0x88] sm:$0xff]  ;;  %v41_v11 = vld [vmem:[%s679_s1 + $0x90] sm:$0xff]  ;;  %v90_v48 = vunpack.c.l.s4 %v442_v47 }
   0x2   :  { %v71_v2 = vld [vmem:[%s679_s1 + $0x180] sm:$0xff]  ;;  %v350_v3 = vpack.c.bf16 %v40_v1, %v39_v0  ;;  %v72_v4 = vld [vmem:[%s679_s1 + $0x188] sm:$0xff]  ;;  %v42_v13 = vld [vmem:[%s679_s1 + $0x98] sm:$0xff]  ;;  %v93_v0 = vshrl.u32 %v92_v49, 7 }
   0x3   :  { %v23_v5 = vld [vmem:[%s679_s1] sm:$0xff]  ;;  %v24_v6 = vld [vmem:[%s679_s1 + $0x8] sm:$0xff]  ;;  %v382_v7 = vpack.c.bf16 %v72_v4, %v71_v2  ;;  %v73_v14 = vld [vmem:[%s679_s1 + $0x190] sm:$0xff]  ;;  %v354_v16 = vpack.c.bf16 %v42_v13, %v41_v11  ;;  %v91_v63 = vunpack.c.0.s8 %v90_v48 }
   0x4   :  { %v352_v8 = vpack.c.bf16 %v24_v6, %v23_v5  ;;  %v55_v9 = vld [vmem:[%s679_s1 + $0x100] sm:$0xff]  ;;  %v56_v10 = vld [vmem:[%s679_s1 + $0x108] sm:$0xff]  ;;  %351 = vmatprep.subr.bf16.mxu0 %v350_v3  ;;  %v74_v15 = vld [vmem:[%s679_s1 + $0x198] sm:$0xff] }
   0x5   :  { %v384_v12 = vpack.c.bf16 %v56_v10, %v55_v9  ;;  %383 = vmatprep.subr.bf16.mxu1 %v382_v7  ;;  %v386_v17 = vpack.c.bf16 %v74_v15, %v73_v14  ;;  %v25_v18 = vld [vmem:[%s679_s1 + $0x10] sm:$0xff]  ;;  %v26_v19 = vld [vmem:[%s679_s1 + $0x18] sm:$0xff]  ;;  %v43_v23 = vld [vmem:[%s679_s1 + $0xa0] sm:$0xff]  ;;  %v94_v13 = vsub.s32 %v91_v63, %v93_v0 }
   0x6   :  { %353 = vmatpush3.bf16.msra.mxu0 %v352_v8  ;;  %v57_v20 = vld [vmem:[%s679_s1 + $0x110] sm:$0xff]  ;;  %v356_v21 = vpack.c.bf16 %v26_v19, %v25_v18  ;;  %v58_v22 = vld [vmem:[%s679_s1 + $0x118] sm:$0xff]  ;;  %v44_v24 = vld [vmem:[%s679_s1 + $0xa8] sm:$0xff] }
   0x7   :  { %385 = vmatpush3.bf16.msra.mxu1 %v384_v12  ;;  %355 = vmatprep.subr.bf16.mxu0 %v354_v16  ;;  %v388_v25 = vpack.c.bf16 %v58_v22, %v57_v20  ;;  %v358_v26 = vpack.c.bf16 %v44_v24, %v43_v23  ;;  %v75_v27 = vld [vmem:[%s679_s1 + $0x1a0] sm:$0xff]  ;;  %v76_v28 = vld [vmem:[%s679_s1 + $0x1a8] sm:$0xff]  ;;  %v45_v35 = vld [vmem:[%s679_s1 + $0xb0] sm:$0xff] }
   0x8   :  { %387 = vmatprep.subr.bf16.mxu1 %v386_v17  ;;  %v27_v29 = vld [vmem:[%s679_s1 + $0x20] sm:$0xff]  ;;  %v390_v30 = vpack.c.bf16 %v76_v28, %v75_v27  ;;  %v28_v31 = vld [vmem:[%s679_s1 + $0x28] sm:$0xff]  ;;  %v46_v36 = vld [vmem:[%s679_s1 + $0xb8] sm:$0xff] }
   0x9   :  { %v59_v32 = vld [vmem:[%s679_s1 + $0x120] sm:$0xff]  ;;  %v60_v33 = vld [vmem:[%s679_s1 + $0x128] sm:$0xff]  ;;  %v360_v34 = vpack.c.bf16 %v28_v31, %v27_v29  ;;  %v77_v37 = vld [vmem:[%s679_s1 + $0x1b0] sm:$0xff]  ;;  %v362_v39 = vpack.c.bf16 %v46_v36, %v45_v35 }
   0xa   :  { %357 = vmatpush3.bf16.msra.mxu0 %v356_v21  ;;  %v392_v38 = vpack.c.bf16 %v60_v33, %v59_v32  ;;  %v78_v40 = vld [vmem:[%s679_s1 + $0x1b8] sm:$0xff]  ;;  %v29_v41 = vld [vmem:[%s679_s1 + $0x30] sm:$0xff]  ;;  %v47_v46 = vld [vmem:[%s679_s1 + $0xc0] sm:$0xff] }
   0xb   :  { %389 = vmatpush3.bf16.msra.mxu1 %v388_v25  ;;  %359 = vmatprep.subr.bf16.mxu0 %v358_v26  ;;  %v30_v42 = vld [vmem:[%s679_s1 + $0x38] sm:$0xff]  ;;  %v394_v43 = vpack.c.bf16 %v78_v40, %v77_v37  ;;  %v61_v44 = vld [vmem:[%s679_s1 + $0x130] sm:$0xff]  ;;  %v48_v50 = vld [vmem:[%s679_s1 + $0xc8] sm:$0xff] }
   0xc   :  { %391 = vmatprep.subr.bf16.mxu1 %v390_v30  ;;  %v62_v45 = vld [vmem:[%s679_s1 + $0x138] sm:$0xff]  ;;  %v79_v51 = vld [vmem:[%s679_s1 + $0x1c0] sm:$0xff]  ;;  %v80_v52 = vld [vmem:[%s679_s1 + $0x1c8] sm:$0xff]  ;;  %v364_v53 = vpack.c.bf16 %v30_v42, %v29_v41  ;;  %v366_v55 = vpack.c.bf16 %v48_v50, %v47_v46 }
   0xd   :  { %v396_v54 = vpack.c.bf16 %v62_v45, %v61_v44  ;;  %v31_v56 = vld [vmem:[%s679_s1 + $0x40] sm:$0xff]  ;;  %v32_v57 = vld [vmem:[%s679_s1 + $0x48] sm:$0xff]  ;;  %v398_v59 = vpack.c.bf16 %v80_v52, %v79_v51  ;;  %v49_v61 = vld [vmem:[%s679_s1 + $0xd0] sm:$0xff] }
   0xe   :  { %361 = vmatpush3.bf16.msra.mxu0 %v360_v34  ;;  %v63_v58 = vld [vmem:[%s679_s1 + $0x140] sm:$0xff]  ;;  %v64_v60 = vld [vmem:[%s679_s1 + $0x148] sm:$0xff]  ;;  %v50_v62 = vld [vmem:[%s679_s1 + $0xd8] sm:$0xff]  ;;  %v368_v3 = vpack.c.bf16 %v32_v57, %v31_v56 }
   0xf   :  { %393 = vmatpush3.bf16.msra.mxu1 %v392_v38  ;;  %363 = vmatprep.subr.bf16.mxu0 %v362_v39  ;;  %v81_v1 = vld [vmem:[%s679_s1 + $0x1d0] sm:$0xff]  ;;  %v82_v2 = vld [vmem:[%s679_s1 + $0x1d8] sm:$0xff]  ;;  %v400_v4 = vpack.c.bf16 %v64_v60, %v63_v58  ;;  %v370_v5 = vpack.c.bf16 %v50_v62, %v49_v61  ;;  %v51_v11 = vld [vmem:[%s679_s1 + $0xe0] sm:$0xff] }
  0x10   :  { %395 = vmatprep.subr.bf16.mxu1 %v394_v43  ;;  %v33_v6 = vld [vmem:[%s679_s1 + $0x50] sm:$0xff]  ;;  %v34_v7 = vld [vmem:[%s679_s1 + $0x58] sm:$0xff]  ;;  %v402_v9 = vpack.c.bf16 %v82_v2, %v81_v1  ;;  %v52_v12 = vld [vmem:[%s679_s1 + $0xe8] sm:$0xff] }
  0x11   :  { %v65_v8 = vld [vmem:[%s679_s1 + $0x150] sm:$0xff]  ;;  %v66_v10 = vld [vmem:[%s679_s1 + $0x158] sm:$0xff]  ;;  %v83_v14 = vld [vmem:[%s679_s1 + $0x1e0] sm:$0xff]  ;;  %v372_v16 = vpack.c.bf16 %v34_v7, %v33_v6  ;;  %v374_v20 = vpack.c.bf16 %v52_v12, %v51_v11 }
  0x12   :  { %365 = vmatpush3.bf16.msra.mxu0 %v364_v53  ;;  %v84_v15 = vld [vmem:[%s679_s1 + $0x1e8] sm:$0xff]  ;;  %v35_v17 = vld [vmem:[%s679_s1 + $0x60] sm:$0xff]  ;;  %v404_v19 = vpack.c.bf16 %v66_v10, %v65_v8 }
  0x13   :  { %397 = vmatpush3.bf16.msra.mxu1 %v396_v54  ;;  %367 = vmatprep.subr.bf16.mxu0 %v366_v55  ;;  %v36_v18 = vld [vmem:[%s679_s1 + $0x68] sm:$0xff]  ;;  %v67_v21 = vld [vmem:[%s679_s1 + $0x160] sm:$0xff] }
  0x14   :  { %399 = vmatprep.subr.bf16.mxu1 %v398_v59  ;;  %v22_v22 = vld [vmem:[%s678_s0] sm:$0xff] }
  0x16   :  { %369 = vmatpush3.bf16.msra.mxu0 %v368_v3 }
  0x17   :  { %401 = vmatpush3.bf16.msra.mxu1 %v400_v4  ;;  %371 = vmatprep.subr.bf16.mxu0 %v370_v5 }
  0x18   :  { %8 = vsyncpa [#allocation4], 0  ;;  %403 = vmatprep.subr.bf16.mxu1 %v402_v9  ;;  %v406_v23 = vpack.c.bf16 %v84_v15, %v83_v14  ;;  %v68_v24 = vld [vmem:[%s679_s1 + $0x168] sm:$0xff]  ;;  %v53_v25 = vld [vmem:[%s679_s1 + $0xf0] sm:$0xff]  ;;  %v95_v27 = vrot.slane %v22_v22, %v94_v13  ;;  %v88_v28 = vcombine.high %v22_v22, %v22_v22  ;;  %v376_v31 = vpack.c.bf16 %v36_v18, %v35_v17  ;;  %s444_s7 = smov [#allocation3]  }
  0x19   :  { %v54_v26 = vld [vmem:[%s679_s1 + $0xf8] sm:$0xff]  ;;  %v85_v29 = vld [vmem:[%s679_s1 + $0x1f0] sm:$0xff]  ;;  %v408_v34 = vpack.c.bf16 %v68_v24, %v67_v21  ;;  %vm19_vm0 = vcmask 74752   ;;  %v443_v44 = vmov 0.0   ;;  %v279_v54 = vld [vmem:[%s680_s2] ss:$0 sm:$0xff] }
  0x1a   :  { %v86_v30 = vld [vmem:[%s679_s1 + $0x1f8] sm:$0xff]  ;;  %373 = vmatpush3.bf16.msra.mxu0 %v372_v16  ;;  %v103_v32 = vcombine.high %v95_v27, %v95_v27  ;;  %v102_v33 = vrot.slane %v88_v28, %v94_v13  ;;  %v378_v35 = vpack.c.bf16 %v54_v26, %v53_v25  ;;  %v37_v36 = vld [vmem:[%s679_s1 + $0x70] sm:$0xff]  ;;  %20 = vst.msk [vmem:[#allocation2] sm:$0x3] %vm19_vm0, %v443_v44  ;;  %s271_s8 = sshll.u32 %s444_s7, 4  ;;  %s272_s8 = int_to_ptr.vmem [resolvable:$true] %s271_s8 }
  0x1b   :  { %405 = vmatpush3.bf16.msra.mxu1 %v404_v19  ;;  %375 = vmatprep.subr.bf16.mxu0 %v374_v20  ;;  %v38_v37 = vld [vmem:[%s679_s1 + $0x78] sm:$0xff]  ;;  %v410_v38 = vpack.c.bf16 %v86_v30, %v85_v29  ;;  %v69_v39 = vld [vmem:[%s679_s1 + $0x170] sm:$0xff]  ;;  %s418_s9 = scalar_lea.vmem %s272_s8, 32  ;;  %p423_p1 = scmp.lt.s32.totalorder %s272_s8, %s272_s8 }
  0x1c   :  { %407 = vmatprep.subr.bf16.mxu1 %v406_v23  ;;  %v70_v40 = vld [vmem:[%s679_s1 + $0x178] sm:$0xff]  ;;  %173 = vmatprep.mubr.f32.mxu0 %v103_v32  ;;  %v104_v41 = vcombine.high %v102_v33, %v102_v33  ;;  %v380_v42 = vpack.c.bf16 %v38_v37, %v37_v36  ;;  %p419_p0 = scmp.ne.s32.totalorder %s272_s8, %s418_s9  ;;  %p424_p2 = scmp.lt.s32.totalorder %s418_s9, %s418_s9 }
  0x1d   :  { %v412_v43 = vpack.c.bf16 %v70_v40, %v69_v39 }
  0x1e   :  { %377 = vmatpush3.bf16.msra.mxu0 %v376_v31  ;;  %243 = vmatprep.mubr.f32.mxu1 %v104_v41  ;;  %p425_p3 = por %p424_p2, %p423_p1 }
  0x1f   :  { %409 = vmatpush3.bf16.msra.mxu1 %v408_v34  ;;  %379 = vmatprep.subr.bf16.mxu0 %v378_v35 }
  0x20   :  { %411 = vmatprep.subr.bf16.mxu1 %v410_v38  ;;  %p426_p4 = pnand %p425_p3, %p419_p0 }
  0x21   :  { %v21_v51 = vld [vmem:[#allocation2] sm:$0x3] }
  0x22   :  { %381 = vmatpush3.bf16.msra.mxu0 %v380_v42 }
  0x23   :  { %413 = vmatpush3.bf16.msra.mxu1 %v412_v43 }
  0x25   :  { %174 = vmatmul.mubr.f32.vlgmr.msra.gmra.mrb[0].mxu0 %v95_v27 }
  0x26   :  { %244 = vmatmul.mubr.f32.vlgmr.msra.gmra.mrb[0].mxu1 %v102_v33 }
  0xf8   :  { %v312_v45 = vpop.f32.mrb[0].mxu0 }
  0xf9   :  { %v347_v46 = vpop.f32.mrb[0].mxu1  ;;  %v313_v47 = vpop.f32.mrb[1].mxu0 }
  0xfa   :  { %v314_v48 = vadd.f32 %v313_v47, %v312_v45  ;;  %v348_v49 = vpop.f32.mrb[1].mxu1 }
  0xfb   :  { %v349_v50 = vadd.f32 %v348_v49, %v347_v46 }
  0xfd   :  { %v246_v52 = vadd.f32 %v349_v50, %v314_v48 }
  0xff   :  { %v249_v53 = vadd.f32 %v246_v52, %v21_v51 }
 0x101   :  { %251 = vst.msk [vmem:[#allocation2] sm:$0x3] %vm19_vm0, %v249_v53 }
 0x108   :  { %v255_v55 = vld [vmem:[#allocation2] sm:$0x3] }
 0x109   :  { %v263_v56 = vadd.f32 %v279_v54, %v255_v55 }
 0x10b   :  { %264 = vst.msk [vmem:[#allocation3] sm:$0x3] %vm19_vm0, %v263_v56 }
 0x10c   :  { %429 = shalt.err (!%p426_p4)
}
 0x10d   :  { %s430_s12 = scalar_lea.hbm %s681_s3, 32 }
 0x10e   :  { %p431_p5 = scmp.ne.s32.totalorder %s681_s3, %s430_s12  ;;  %p434_p6 = scmp.lt.u32.totalorder %s430_s12, %s681_s3 }
 0x110   :  { %p436_p7 = pnand %p434_p6, %p431_p5 }
 0x112   :  { %439 = shalt.err (!%p436_p7)
}
 0x113   :  { %274 = dma.vmem_to_hbm [thread:$0]  %s272_s8, 32, %s681_s3, [#allocation4]  }
 0x114   :  { %440 = dma.done.wait [#allocation4], 32  }
 0x115   :  { %441 = vsyncadd [#allocation4], 4294967264 }
 0x116   :  { %278 = vsyncpa [#allocation4], 1 }

// kernel: cnn_forward.6
= control target key start
LH: loop header
LB: loop body
LE: loop exit
PB: predicated region body
PF: predicated region fallthrough
CT: control target
= control target key end

     0   :  { %s11172_s12 = smov 0   ;;  %s11174_s13 = smov 0   ;;  %s13190_s0 = inlined_call_operand.vmem [shape: f32[2,9216], index: 0, kind: input, shape index: {}]   ;;  %s13191_s1 = inlined_call_operand.vmem [shape: bf16[9216,512], index: 1, kind: input, shape index: {}]   ;;  %s13192_s2 = inlined_call_operand.vmem [shape: f32[1,512], index: 2, kind: input, shape index: {}]   ;;  %s13193_s3 = inlined_call_operand.vmem [shape: f32[2,512], index: 3, kind: output, shape index: {}]  }
   0x1   :  { %s11176_s14 = smov 0   ;;  %s11178_s15 = smov 0  }
   0x2   :  { %s11180_s16 = smov 0   ;;  %s11182_s17 = smov 0  }
   0x3   :  { %s11184_s18 = smov 0  }
   0x4 LB: > { %s22_s19 = sadd.s32 1, %s11140_s16  ;;  %s25_s20 = sadd.s32 1, %s11144_s17  ;;  %s11148_s18 = sphi %s11184_s18, %s13_s18   ;;  %s11144_s17 = sphi %s11182_s17, %s13199_s17   ;;  %s11140_s16 = sphi %s11180_s16, %s13198_s16   ;;  %s11136_s15 = sphi %s11178_s15, %s13197_s15   ;;  %s11132_s14 = sphi %s11176_s14, %s13196_s14   ;;  %s11128_s13 = sphi %s11174_s13, %s13195_s13   ;;  %s11124_s12 = sphi %s11172_s12, %s13194_s12  }
   0x5   : > { %p23_p0 = scmp.ge.s32.totalorder %s22_s19, 2  ;;  %p67_p1 = scmp.ne.s32.totalorder %s11128_s13, %s11124_s12 }
   0x6   : > { %p68_p2 = scmp.eq.s32.totalorder %s11148_s18, 0  ;;  %s60_s24 = sadd.s32 1, %s11128_s13 }
   0x7   : > { %s13201_s19 = smov (%p23_p0, %s22_s19), 0  ;;  %s13203_s20 = smov (!%p23_p0, %s25_s20), %s11144_s17 }
   0x8   : > { %p69_p3 = por %p68_p2, %p67_p1  ;;  %p27_p4 = scmp.ge.s32.totalorder %s13203_s20, 2 }
   0x9   : > { %s55_s21 = ssub.s32 %s11140_s16, %s13201_s19  ;;  %p9503_p6 = scmp.ge.s32.totalorder %s11148_s18, 4 }
   0xa   : > { %s13205_s20 = smov (%p27_p4, %s13203_s20), 0 }
   0xb   : > { %s56_s22 = ssub.s32 %s11144_s17, %s13205_s20  ;;  %145 = sbr.rel (%p9503_p6) target bundleno = 314 (0x13a), region = 16 }
   0xc   : > { %s57_s23 = sor.u32 %s56_s22, %s55_s21 }
   0xd   : > { %p58_p5 = scmp.eq.s32.totalorder %s57_s23, 0 }
   0xf   : > { %s11223_s25 = scalar_select %p58_p5, %s11128_s13, %s60_s24  }
  0x12   : > { %157 = sbr.rel (!%p69_p3) target bundleno = 314 (0x13a), region = 24  ;;  %s159_s26 = sand.u32 (%p69_p3), 1, %s11128_s13  }
  0x13   : > { %s10159_s27 = smul.u32 (%p69_p3), 4608, %s159_s26  ;;  %s9504_s28 = sshll.u32 (%p69_p3), %s11144_s17, 1 }
  0x14   : > { %s10092_s29 = smul.u32 (%p69_p3), 2304, %s11140_s16 }
  0x15   : > { %s11237_s8 = scalar_lea.vmem (%p69_p3), [#allocation3], %s10159_s27 }
  0x16   : > { %s165_s30 = sadd.s32 (%p69_p3), %s10092_s29, %s9504_s28 }
  0x17   : > { %s9506_s4 = sshll.u32 (%p69_p3), %s165_s30, 2 }
  0x18   : > { %s11232_s7 = scalar_lea.vmem (%p69_p3), %s13191_s1, %s9506_s4 }
  0x19   : > { %v1348_v0 = vld [vmem:[%s11232_s7] sm:$0xff]  ;;  %v1350_v1 = vld [vmem:[%s11232_s7 + $0x10] sm:$0xff] }
  0x1a   : > { %v1352_v2 = vld [vmem:[%s11232_s7 + $0x20] sm:$0xff]  ;;  %1349 = vst [vmem:[%s11237_s8] sm:$0xff] %v1348_v0  ;;  %1351 = vst [vmem:[%s11237_s8 + $0x8] sm:$0xff] %v1350_v1  ;;  %v1354_v3 = vld [vmem:[%s11232_s7 + $0x30] sm:$0xff] }
  0x1b   : > { %1353 = vst [vmem:[%s11237_s8 + $0x10] sm:$0xff] %v1352_v2  ;;  %v1356_v4 = vld [vmem:[%s11232_s7 + $0x40] sm:$0xff]  ;;  %v1358_v5 = vld [vmem:[%s11232_s7 + $0x50] sm:$0xff]  ;;  %1355 = vst [vmem:[%s11237_s8 + $0x18] sm:$0xff] %v1354_v3 }
  0x1c   : > { %1357 = vst [vmem:[%s11237_s8 + $0x20] sm:$0xff] %v1356_v4  ;;  %1359 = vst [vmem:[%s11237_s8 + $0x28] sm:$0xff] %v1358_v5  ;;  %v1360_v6 = vld [vmem:[%s11232_s7 + $0x60] sm:$0xff]  ;;  %v1362_v7 = vld [vmem:[%s11232_s7 + $0x70] sm:$0xff] }
  0x1d   : > { %v1364_v8 = vld [vmem:[%s11232_s7 + $0x80] sm:$0xff]  ;;  %1361 = vst [vmem:[%s11237_s8 + $0x30] sm:$0xff] %v1360_v6  ;;  %1363 = vst [vmem:[%s11237_s8 + $0x38] sm:$0xff] %v1362_v7  ;;  %v1366_v9 = vld [vmem:[%s11232_s7 + $0x90] sm:$0xff] }
  0x1e   : > { %1365 = vst [vmem:[%s11237_s8 + $0x40] sm:$0xff] %v1364_v8  ;;  %v1368_v10 = vld [vmem:[%s11232_s7 + $0xa0] sm:$0xff]  ;;  %v1370_v11 = vld [vmem:[%s11232_s7 + $0xb0] sm:$0xff]  ;;  %1367 = vst [vmem:[%s11237_s8 + $0x48] sm:$0xff] %v1366_v9 }
  0x1f   : > { %1369 = vst [vmem:[%s11237_s8 + $0x50] sm:$0xff] %v1368_v10  ;;  %1371 = vst [vmem:[%s11237_s8 + $0x58] sm:$0xff] %v1370_v11  ;;  %v1372_v12 = vld [vmem:[%s11232_s7 + $0xc0] sm:$0xff]  ;;  %v1374_v13 = vld [vmem:[%s11232_s7 + $0xd0] sm:$0xff] }
  0x20   : > { %v1376_v14 = vld [vmem:[%s11232_s7 + $0xe0] sm:$0xff]  ;;  %1373 = vst [vmem:[%s11237_s8 + $0x60] sm:$0xff] %v1372_v12  ;;  %1375 = vst [vmem:[%s11237_s8 + $0x68] sm:$0xff] %v1374_v13  ;;  %v1378_v15 = vld [vmem:[%s11232_s7 + $0xf0] sm:$0xff] }
  0x21   : > { %1377 = vst [vmem:[%s11237_s8 + $0x70] sm:$0xff] %v1376_v14  ;;  %v1380_v16 = vld [vmem:[%s11232_s7 + $0x100] sm:$0xff]  ;;  %v1382_v17 = vld [vmem:[%s11232_s7 + $0x110] sm:$0xff]  ;;  %1379 = vst [vmem:[%s11237_s8 + $0x78] sm:$0xff] %v1378_v15 }
  0x22   : > { %1381 = vst [vmem:[%s11237_s8 + $0x80] sm:$0xff] %v1380_v16  ;;  %1383 = vst [vmem:[%s11237_s8 + $0x88] sm:$0xff] %v1382_v17  ;;  %v1384_v18 = vld [vmem:[%s11232_s7 + $0x120] sm:$0xff]  ;;  %v1386_v19 = vld [vmem:[%s11232_s7 + $0x130] sm:$0xff] }
  0x23   : > { %v1388_v20 = vld [vmem:[%s11232_s7 + $0x140] sm:$0xff]  ;;  %1385 = vst [vmem:[%s11237_s8 + $0x90] sm:$0xff] %v1384_v18  ;;  %1387 = vst [vmem:[%s11237_s8 + $0x98] sm:$0xff] %v1386_v19  ;;  %v1390_v21 = vld [vmem:[%s11232_s7 + $0x150] sm:$0xff] }
  0x24   : > { %1389 = vst [vmem:[%s11237_s8 + $0xa0] sm:$0xff] %v1388_v20  ;;  %v1392_v22 = vld [vmem:[%s11232_s7 + $0x160] sm:$0xff]  ;;  %v1394_v23 = vld [vmem:[%s11232_s7 + $0x170] sm:$0xff]  ;;  %1391 = vst [vmem:[%s11237_s8 + $0xa8] sm:$0xff] %v1390_v21 }
  0x25   : > { %1393 = vst [vmem:[%s11237_s8 + $0xb0] sm:$0xff] %v1392_v22  ;;  %1395 = vst [vmem:[%s11237_s8 + $0xb8] sm:$0xff] %v1394_v23  ;;  %v1396_v24 = vld [vmem:[%s11232_s7 + $0x180] sm:$0xff]  ;;  %v1398_v25 = vld [vmem:[%s11232_s7 + $0x190] sm:$0xff] }
  0x26   : > { %v1400_v26 = vld [vmem:[%s11232_s7 + $0x1a0] sm:$0xff]  ;;  %1397 = vst [vmem:[%s11237_s8 + $0xc0] sm:$0xff] %v1396_v24  ;;  %1399 = vst [vmem:[%s11237_s8 + $0xc8] sm:$0xff] %v1398_v25  ;;  %v1402_v27 = vld [vmem:[%s11232_s7 + $0x1b0] sm:$0xff] }
  0x27   : > { %1401 = vst [vmem:[%s11237_s8 + $0xd0] sm:$0xff] %v1400_v26  ;;  %v1404_v28 = vld [vmem:[%s11232_s7 + $0x1c0] sm:$0xff]  ;;  %v1406_v29 = vld [vmem:[%s11232_s7 + $0x1d0] sm:$0xff]  ;;  %1403 = vst [vmem:[%s11237_s8 + $0xd8] sm:$0xff] %v1402_v27 }
  0x28   : > { %1405 = vst [vmem:[%s11237_s8 + $0xe0] sm:$0xff] %v1404_v28  ;;  %1407 = vst [vmem:[%s11237_s8 + $0xe8] sm:$0xff] %v1406_v29  ;;  %v1408_v30 = vld [vmem:[%s11232_s7 + $0x1e0] sm:$0xff]  ;;  %v1410_v31 = vld [vmem:[%s11232_s7 + $0x1f0] sm:$0xff] }
  0x29   : > { %v1412_v32 = vld [vmem:[%s11232_s7 + $0x200] sm:$0xff]  ;;  %1409 = vst [vmem:[%s11237_s8 + $0xf0] sm:$0xff] %v1408_v30  ;;  %1411 = vst [vmem:[%s11237_s8 + $0xf8] sm:$0xff] %v1410_v31  ;;  %v1414_v33 = vld [vmem:[%s11232_s7 + $0x210] sm:$0xff] }
  0x2a   : > { %1413 = vst [vmem:[%s11237_s8 + $0x100] sm:$0xff] %v1412_v32  ;;  %v1416_v34 = vld [vmem:[%s11232_s7 + $0x220] sm:$0xff]  ;;  %v1418_v35 = vld [vmem:[%s11232_s7 + $0x230] sm:$0xff]  ;;  %1415 = vst [vmem:[%s11237_s8 + $0x108] sm:$0xff] %v1414_v33 }
  0x2b   : > { %1417 = vst [vmem:[%s11237_s8 + $0x110] sm:$0xff] %v1416_v34  ;;  %1419 = vst [vmem:[%s11237_s8 + $0x118] sm:$0xff] %v1418_v35  ;;  %v1420_v36 = vld [vmem:[%s11232_s7 + $0x240] sm:$0xff]  ;;  %v1422_v37 = vld [vmem:[%s11232_s7 + $0x250] sm:$0xff] }
  0x2c   : > { %v1424_v38 = vld [vmem:[%s11232_s7 + $0x260] sm:$0xff]  ;;  %1421 = vst [vmem:[%s11237_s8 + $0x120] sm:$0xff] %v1420_v36  ;;  %1423 = vst [vmem:[%s11237_s8 + $0x128] sm:$0xff] %v1422_v37  ;;  %v1426_v39 = vld [vmem:[%s11232_s7 + $0x270] sm:$0xff] }
  0x2d   : > { %1425 = vst [vmem:[%s11237_s8 + $0x130] sm:$0xff] %v1424_v38  ;;  %v1428_v40 = vld [vmem:[%s11232_s7 + $0x280] sm:$0xff]  ;;  %v1430_v41 = vld [vmem:[%s11232_s7 + $0x290] sm:$0xff]  ;;  %1427 = vst [vmem:[%s11237_s8 + $0x138] sm:$0xff] %v1426_v39 }
  0x2e   : > { %1429 = vst [vmem:[%s11237_s8 + $0x140] sm:$0xff] %v1428_v40  ;;  %1431 = vst [vmem:[%s11237_s8 + $0x148] sm:$0xff] %v1430_v41  ;;  %v1432_v42 = vld [vmem:[%s11232_s7 + $0x2a0] sm:$0xff]  ;;  %v1434_v43 = vld [vmem:[%s11232_s7 + $0x2b0] sm:$0xff] }
  0x2f   : > { %v1436_v44 = vld [vmem:[%s11232_s7 + $0x2c0] sm:$0xff]  ;;  %1433 = vst [vmem:[%s11237_s8 + $0x150] sm:$0xff] %v1432_v42  ;;  %1435 = vst [vmem:[%s11237_s8 + $0x158] sm:$0xff] %v1434_v43  ;;  %v1438_v45 = vld [vmem:[%s11232_s7 + $0x2d0] sm:$0xff] }
  0x30   : > { %1437 = vst [vmem:[%s11237_s8 + $0x160] sm:$0xff] %v1436_v44  ;;  %v1440_v46 = vld [vmem:[%s11232_s7 + $0x2e0] sm:$0xff]  ;;  %v1442_v47 = vld [vmem:[%s11232_s7 + $0x2f0] sm:$0xff]  ;;  %1439 = vst [vmem:[%s11237_s8 + $0x168] sm:$0xff] %v1438_v45 }
  0x31   : > { %1441 = vst [vmem:[%s11237_s8 + $0x170] sm:$0xff] %v1440_v46  ;;  %1443 = vst [vmem:[%s11237_s8 + $0x178] sm:$0xff] %v1442_v47  ;;  %v1444_v48 = vld [vmem:[%s11232_s7 + $0x300] sm:$0xff]  ;;  %v1446_v49 = vld [vmem:[%s11232_s7 + $0x310] sm:$0xff] }
  0x32   : > { %v1448_v50 = vld [vmem:[%s11232_s7 + $0x320] sm:$0xff]  ;;  %1445 = vst [vmem:[%s11237_s8 + $0x180] sm:$0xff] %v1444_v48  ;;  %1447 = vst [vmem:[%s11237_s8 + $0x188] sm:$0xff] %v1446_v49  ;;  %v1450_v51 = vld [vmem:[%s11232_s7 + $0x330] sm:$0xff] }
  0x33   : > { %1449 = vst [vmem:[%s11237_s8 + $0x190] sm:$0xff] %v1448_v50  ;;  %v1452_v52 = vld [vmem:[%s11232_s7 + $0x340] sm:$0xff]  ;;  %v1454_v53 = vld [vmem:[%s11232_s7 + $0x350] sm:$0xff]  ;;  %1451 = vst [vmem:[%s11237_s8 + $0x198] sm:$0xff] %v1450_v51 }
  0x34   : > { %1453 = vst [vmem:[%s11237_s8 + $0x1a0] sm:$0xff] %v1452_v52  ;;  %1455 = vst [vmem:[%s11237_s8 + $0x1a8] sm:$0xff] %v1454_v53  ;;  %v1456_v54 = vld [vmem:[%s11232_s7 + $0x360] sm:$0xff]  ;;  %v1458_v55 = vld [vmem:[%s11232_s7 + $0x370] sm:$0xff] }
  0x35   : > { %v1460_v56 = vld [vmem:[%s11232_s7 + $0x380] sm:$0xff]  ;;  %1457 = vst [vmem:[%s11237_s8 + $0x1b0] sm:$0xff] %v1456_v54  ;;  %1459 = vst [vmem:[%s11237_s8 + $0x1b8] sm:$0xff] %v1458_v55  ;;  %v1462_v57 = vld [vmem:[%s11232_s7 + $0x390] sm:$0xff] }
  0x36   : > { %1461 = vst [vmem:[%s11237_s8 + $0x1c0] sm:$0xff] %v1460_v56  ;;  %v1464_v58 = vld [vmem:[%s11232_s7 + $0x3a0] sm:$0xff]  ;;  %v1466_v59 = vld [vmem:[%s11232_s7 + $0x3b0] sm:$0xff]  ;;  %1463 = vst [vmem:[%s11237_s8 + $0x1c8] sm:$0xff] %v1462_v57 }
  0x37   : > { %1465 = vst [vmem:[%s11237_s8 + $0x1d0] sm:$0xff] %v1464_v58  ;;  %1467 = vst [vmem:[%s11237_s8 + $0x1d8] sm:$0xff] %v1466_v59  ;;  %v1468_v60 = vld [vmem:[%s11232_s7 + $0x3c0] sm:$0xff]  ;;  %v1470_v61 = vld [vmem:[%s11232_s7 + $0x3d0] sm:$0xff] }
  0x38   : > { %v1472_v62 = vld [vmem:[%s11232_s7 + $0x3e0] sm:$0xff]  ;;  %1469 = vst [vmem:[%s11237_s8 + $0x1e0] sm:$0xff] %v1468_v60  ;;  %1471 = vst [vmem:[%s11237_s8 + $0x1e8] sm:$0xff] %v1470_v61  ;;  %v1474_v63 = vld [vmem:[%s11232_s7 + $0x3f0] sm:$0xff] }
  0x39   : > { %1473 = vst [vmem:[%s11237_s8 + $0x1f0] sm:$0xff] %v1472_v62  ;;  %v1476_v0 = vld [vmem:[%s11232_s7 + $0x400] sm:$0xff]  ;;  %v1478_v1 = vld [vmem:[%s11232_s7 + $0x410] sm:$0xff]  ;;  %1475 = vst [vmem:[%s11237_s8 + $0x1f8] sm:$0xff] %v1474_v63 }
  0x3a   : > { %1477 = vst [vmem:[%s11237_s8 + $0x200] sm:$0xff] %v1476_v0  ;;  %1479 = vst [vmem:[%s11237_s8 + $0x208] sm:$0xff] %v1478_v1  ;;  %v1480_v2 = vld [vmem:[%s11232_s7 + $0x420] sm:$0xff]  ;;  %v1482_v3 = vld [vmem:[%s11232_s7 + $0x430] sm:$0xff] }
  0x3b   : > { %v1484_v4 = vld [vmem:[%s11232_s7 + $0x440] sm:$0xff]  ;;  %1481 = vst [vmem:[%s11237_s8 + $0x210] sm:$0xff] %v1480_v2  ;;  %1483 = vst [vmem:[%s11237_s8 + $0x218] sm:$0xff] %v1482_v3  ;;  %v1486_v5 = vld [vmem:[%s11232_s7 + $0x450] sm:$0xff] }
  0x3c   : > { %1485 = vst [vmem:[%s11237_s8 + $0x220] sm:$0xff] %v1484_v4  ;;  %v1488_v6 = vld [vmem:[%s11232_s7 + $0x460] sm:$0xff]  ;;  %v1490_v7 = vld [vmem:[%s11232_s7 + $0x470] sm:$0xff]  ;;  %1487 = vst [vmem:[%s11237_s8 + $0x228] sm:$0xff] %v1486_v5 }
  0x3d   : > { %1489 = vst [vmem:[%s11237_s8 + $0x230] sm:$0xff] %v1488_v6  ;;  %1491 = vst [vmem:[%s11237_s8 + $0x238] sm:$0xff] %v1490_v7  ;;  %v1492_v8 = vld [vmem:[%s11232_s7 + $0x480] sm:$0xff]  ;;  %v1494_v9 = vld [vmem:[%s11232_s7 + $0x490] sm:$0xff] }
  0x3e   : > { %v1496_v10 = vld [vmem:[%s11232_s7 + $0x4a0] sm:$0xff]  ;;  %1493 = vst [vmem:[%s11237_s8 + $0x240] sm:$0xff] %v1492_v8  ;;  %1495 = vst [vmem:[%s11237_s8 + $0x248] sm:$0xff] %v1494_v9  ;;  %v1498_v11 = vld [vmem:[%s11232_s7 + $0x4b0] sm:$0xff] }
  0x3f   : > { %1497 = vst [vmem:[%s11237_s8 + $0x250] sm:$0xff] %v1496_v10  ;;  %v1500_v12 = vld [vmem:[%s11232_s7 + $0x4c0] sm:$0xff]  ;;  %v1502_v13 = vld [vmem:[%s11232_s7 + $0x4d0] sm:$0xff]  ;;  %1499 = vst [vmem:[%s11237_s8 + $0x258] sm:$0xff] %v1498_v11 }
  0x40   : > { %1501 = vst [vmem:[%s11237_s8 + $0x260] sm:$0xff] %v1500_v12  ;;  %1503 = vst [vmem:[%s11237_s8 + $0x268] sm:$0xff] %v1502_v13  ;;  %v1504_v14 = vld [vmem:[%s11232_s7 + $0x4e0] sm:$0xff]  ;;  %v1506_v15 = vld [vmem:[%s11232_s7 + $0x4f0] sm:$0xff] }
  0x41   : > { %v1508_v16 = vld [vmem:[%s11232_s7 + $0x500] sm:$0xff]  ;;  %1505 = vst [vmem:[%s11237_s8 + $0x270] sm:$0xff] %v1504_v14  ;;  %1507 = vst [vmem:[%s11237_s8 + $0x278] sm:$0xff] %v1506_v15  ;;  %v1510_v17 = vld [vmem:[%s11232_s7 + $0x510] sm:$0xff] }
  0x42   : > { %1509 = vst [vmem:[%s11237_s8 + $0x280] sm:$0xff] %v1508_v16  ;;  %v1512_v18 = vld [vmem:[%s11232_s7 + $0x520] sm:$0xff]  ;;  %v1514_v19 = vld [vmem:[%s11232_s7 + $0x530] sm:$0xff]  ;;  %1511 = vst [vmem:[%s11237_s8 + $0x288] sm:$0xff] %v1510_v17 }
  0x43   : > { %1513 = vst [vmem:[%s11237_s8 + $0x290] sm:$0xff] %v1512_v18  ;;  %1515 = vst [vmem:[%s11237_s8 + $0x298] sm:$0xff] %v1514_v19  ;;  %v1516_v20 = vld [vmem:[%s11232_s7 + $0x540] sm:$0xff]  ;;  %v1518_v21 = vld [vmem:[%s11232_s7 + $0x550] sm:$0xff] }
  0x44   : > { %v1520_v22 = vld [vmem:[%s11232_s7 + $0x560] sm:$0xff]  ;;  %1517 = vst [vmem:[%s11237_s8 + $0x2a0] sm:$0xff] %v1516_v20  ;;  %1519 = vst [vmem:[%s11237_s8 + $0x2a8] sm:$0xff] %v1518_v21  ;;  %v1522_v23 = vld [vmem:[%s11232_s7 + $0x570] sm:$0xff] }
  0x45   : > { %1521 = vst [vmem:[%s11237_s8 + $0x2b0] sm:$0xff] %v1520_v22  ;;  %v1524_v24 = vld [vmem:[%s11232_s7 + $0x580] sm:$0xff]  ;;  %v1526_v25 = vld [vmem:[%s11232_s7 + $0x590] sm:$0xff]  ;;  %1523 = vst [vmem:[%s11237_s8 + $0x2b8] sm:$0xff] %v1522_v23 }
  0x46   : > { %1525 = vst [vmem:[%s11237_s8 + $0x2c0] sm:$0xff] %v1524_v24  ;;  %1527 = vst [vmem:[%s11237_s8 + $0x2c8] sm:$0xff] %v1526_v25  ;;  %v1528_v26 = vld [vmem:[%s11232_s7 + $0x5a0] sm:$0xff]  ;;  %v1530_v27 = vld [vmem:[%s11232_s7 + $0x5b0] sm:$0xff] }
  0x47   : > { %v1532_v28 = vld [vmem:[%s11232_s7 + $0x5c0] sm:$0xff]  ;;  %1529 = vst [vmem:[%s11237_s8 + $0x2d0] sm:$0xff] %v1528_v26  ;;  %1531 = vst [vmem:[%s11237_s8 + $0x2d8] sm:$0xff] %v1530_v27  ;;  %v1534_v29 = vld [vmem:[%s11232_s7 + $0x5d0] sm:$0xff] }
  0x48   : > { %1533 = vst [vmem:[%s11237_s8 + $0x2e0] sm:$0xff] %v1532_v28  ;;  %v1536_v30 = vld [vmem:[%s11232_s7 + $0x5e0] sm:$0xff]  ;;  %v1538_v31 = vld [vmem:[%s11232_s7 + $0x5f0] sm:$0xff]  ;;  %1535 = vst [vmem:[%s11237_s8 + $0x2e8] sm:$0xff] %v1534_v29 }
  0x49   : > { %1537 = vst [vmem:[%s11237_s8 + $0x2f0] sm:$0xff] %v1536_v30  ;;  %1539 = vst [vmem:[%s11237_s8 + $0x2f8] sm:$0xff] %v1538_v31  ;;  %v1540_v32 = vld [vmem:[%s11232_s7 + $0x600] sm:$0xff]  ;;  %v1542_v33 = vld [vmem:[%s11232_s7 + $0x610] sm:$0xff] }
  0x4a   : > { %v1544_v34 = vld [vmem:[%s11232_s7 + $0x620] sm:$0xff]  ;;  %1541 = vst [vmem:[%s11237_s8 + $0x300] sm:$0xff] %v1540_v32  ;;  %1543 = vst [vmem:[%s11237_s8 + $0x308] sm:$0xff] %v1542_v33  ;;  %v1546_v35 = vld [vmem:[%s11232_s7 + $0x630] sm:$0xff] }
  0x4b   : > { %1545 = vst [vmem:[%s11237_s8 + $0x310] sm:$0xff] %v1544_v34  ;;  %v1548_v36 = vld [vmem:[%s11232_s7 + $0x640] sm:$0xff]  ;;  %v1550_v37 = vld [vmem:[%s11232_s7 + $0x650] sm:$0xff]  ;;  %1547 = vst [vmem:[%s11237_s8 + $0x318] sm:$0xff] %v1546_v35 }
  0x4c   : > { %1549 = vst [vmem:[%s11237_s8 + $0x320] sm:$0xff] %v1548_v36  ;;  %1551 = vst [vmem:[%s11237_s8 + $0x328] sm:$0xff] %v1550_v37  ;;  %v1552_v38 = vld [vmem:[%s11232_s7 + $0x660] sm:$0xff]  ;;  %v1554_v39 = vld [vmem:[%s11232_s7 + $0x670] sm:$0xff] }
  0x4d   : > { %v1556_v40 = vld [vmem:[%s11232_s7 + $0x680] sm:$0xff]  ;;  %1553 = vst [vmem:[%s11237_s8 + $0x330] sm:$0xff] %v1552_v38  ;;  %1555 = vst [vmem:[%s11237_s8 + $0x338] sm:$0xff] %v1554_v39  ;;  %v1558_v41 = vld [vmem:[%s11232_s7 + $0x690] sm:$0xff] }
  0x4e   : > { %1557 = vst [vmem:[%s11237_s8 + $0x340] sm:$0xff] %v1556_v40  ;;  %v1560_v42 = vld [vmem:[%s11232_s7 + $0x6a0] sm:$0xff]  ;;  %v1562_v43 = vld [vmem:[%s11232_s7 + $0x6b0] sm:$0xff]  ;;  %1559 = vst [vmem:[%s11237_s8 + $0x348] sm:$0xff] %v1558_v41 }
  0x4f   : > { %1561 = vst [vmem:[%s11237_s8 + $0x350] sm:$0xff] %v1560_v42  ;;  %1563 = vst [vmem:[%s11237_s8 + $0x358] sm:$0xff] %v1562_v43  ;;  %v1564_v44 = vld [vmem:[%s11232_s7 + $0x6c0] sm:$0xff]  ;;  %v1566_v45 = vld [vmem:[%s11232_s7 + $0x6d0] sm:$0xff] }
  0x50   : > { %v1568_v46 = vld [vmem:[%s11232_s7 + $0x6e0] sm:$0xff]  ;;  %1565 = vst [vmem:[%s11237_s8 + $0x360] sm:$0xff] %v1564_v44  ;;  %1567 = vst [vmem:[%s11237_s8 + $0x368] sm:$0xff] %v1566_v45  ;;  %v1570_v47 = vld [vmem:[%s11232_s7 + $0x6f0] sm:$0xff] }
  0x51   : > { %1569 = vst [vmem:[%s11237_s8 + $0x370] sm:$0xff] %v1568_v46  ;;  %v1572_v48 = vld [vmem:[%s11232_s7 + $0x700] sm:$0xff]  ;;  %v1574_v49 = vld [vmem:[%s11232_s7 + $0x710] sm:$0xff]  ;;  %1571 = vst [vmem:[%s11237_s8 + $0x378] sm:$0xff] %v1570_v47 }
  0x52   : > { %1573 = vst [vmem:[%s11237_s8 + $0x380] sm:$0xff] %v1572_v48  ;;  %1575 = vst [vmem:[%s11237_s8 + $0x388] sm:$0xff] %v1574_v49  ;;  %v1576_v50 = vld [vmem:[%s11232_s7 + $0x720] sm:$0xff]  ;;  %v1578_v51 = vld [vmem:[%s11232_s7 + $0x730] sm:$0xff] }
  0x53   : > { %v1580_v52 = vld [vmem:[%s11232_s7 + $0x740] sm:$0xff]  ;;  %1577 = vst [vmem:[%s11237_s8 + $0x390] sm:$0xff] %v1576_v50  ;;  %1579 = vst [vmem:[%s11237_s8 + $0x398] sm:$0xff] %v1578_v51  ;;  %v1582_v53 = vld [vmem:[%s11232_s7 + $0x750] sm:$0xff] }
  0x54   : > { %1581 = vst [vmem:[%s11237_s8 + $0x3a0] sm:$0xff] %v1580_v52  ;;  %v1584_v54 = vld [vmem:[%s11232_s7 + $0x760] sm:$0xff]  ;;  %v1586_v55 = vld [vmem:[%s11232_s7 + $0x770] sm:$0xff]  ;;  %1583 = vst [vmem:[%s11237_s8 + $0x3a8] sm:$0xff] %v1582_v53 }
  0x55   : > { %1585 = vst [vmem:[%s11237_s8 + $0x3b0] sm:$0xff] %v1584_v54  ;;  %1587 = vst [vmem:[%s11237_s8 + $0x3b8] sm:$0xff] %v1586_v55  ;;  %v1588_v56 = vld [vmem:[%s11232_s7 + $0x780] sm:$0xff]  ;;  %v1590_v57 = vld [vmem:[%s11232_s7 + $0x790] sm:$0xff] }
  0x56   : > { %v1592_v58 = vld [vmem:[%s11232_s7 + $0x7a0] sm:$0xff]  ;;  %1589 = vst [vmem:[%s11237_s8 + $0x3c0] sm:$0xff] %v1588_v56  ;;  %1591 = vst [vmem:[%s11237_s8 + $0x3c8] sm:$0xff] %v1590_v57  ;;  %v1594_v59 = vld [vmem:[%s11232_s7 + $0x7b0] sm:$0xff] }
  0x57   : > { %1593 = vst [vmem:[%s11237_s8 + $0x3d0] sm:$0xff] %v1592_v58  ;;  %v1596_v60 = vld [vmem:[%s11232_s7 + $0x7c0] sm:$0xff]  ;;  %v1598_v61 = vld [vmem:[%s11232_s7 + $0x7d0] sm:$0xff]  ;;  %1595 = vst [vmem:[%s11237_s8 + $0x3d8] sm:$0xff] %v1594_v59 }
  0x58   : > { %1597 = vst [vmem:[%s11237_s8 + $0x3e0] sm:$0xff] %v1596_v60  ;;  %1599 = vst [vmem:[%s11237_s8 + $0x3e8] sm:$0xff] %v1598_v61  ;;  %v1600_v62 = vld [vmem:[%s11232_s7 + $0x7e0] sm:$0xff]  ;;  %v1602_v63 = vld [vmem:[%s11232_s7 + $0x7f0] sm:$0xff] }
  0x59   : > { %v1604_v0 = vld [vmem:[%s11232_s7 + $0x800] sm:$0xff]  ;;  %1601 = vst [vmem:[%s11237_s8 + $0x3f0] sm:$0xff] %v1600_v62  ;;  %1603 = vst [vmem:[%s11237_s8 + $0x3f8] sm:$0xff] %v1602_v63  ;;  %v1606_v1 = vld [vmem:[%s11232_s7 + $0x810] sm:$0xff] }
  0x5a   : > { %1605 = vst [vmem:[%s11237_s8 + $0x400] sm:$0xff] %v1604_v0  ;;  %v1608_v2 = vld [vmem:[%s11232_s7 + $0x820] sm:$0xff]  ;;  %v1610_v3 = vld [vmem:[%s11232_s7 + $0x830] sm:$0xff]  ;;  %1607 = vst [vmem:[%s11237_s8 + $0x408] sm:$0xff] %v1606_v1 }
  0x5b   : > { %1609 = vst [vmem:[%s11237_s8 + $0x410] sm:$0xff] %v1608_v2  ;;  %1611 = vst [vmem:[%s11237_s8 + $0x418] sm:$0xff] %v1610_v3  ;;  %v1612_v4 = vld [vmem:[%s11232_s7 + $0x840] sm:$0xff]  ;;  %v1614_v5 = vld [vmem:[%s11232_s7 + $0x850] sm:$0xff] }
  0x5c   : > { %v1616_v6 = vld [vmem:[%s11232_s7 + $0x860] sm:$0xff]  ;;  %1613 = vst [vmem:[%s11237_s8 + $0x420] sm:$0xff] %v1612_v4  ;;  %1615 = vst [vmem:[%s11237_s8 + $0x428] sm:$0xff] %v1614_v5  ;;  %v1618_v7 = vld [vmem:[%s11232_s7 + $0x870] sm:$0xff] }
  0x5d   : > { %1617 = vst [vmem:[%s11237_s8 + $0x430] sm:$0xff] %v1616_v6  ;;  %v1620_v8 = vld [vmem:[%s11232_s7 + $0x880] sm:$0xff]  ;;  %v1622_v9 = vld [vmem:[%s11232_s7 + $0x890] sm:$0xff]  ;;  %1619 = vst [vmem:[%s11237_s8 + $0x438] sm:$0xff] %v1618_v7 }
  0x5e   : > { %1621 = vst [vmem:[%s11237_s8 + $0x440] sm:$0xff] %v1620_v8  ;;  %1623 = vst [vmem:[%s11237_s8 + $0x448] sm:$0xff] %v1622_v9  ;;  %v1624_v10 = vld [vmem:[%s11232_s7 + $0x8a0] sm:$0xff]  ;;  %v1626_v11 = vld [vmem:[%s11232_s7 + $0x8b0] sm:$0xff] }
  0x5f   : > { %v1628_v12 = vld [vmem:[%s11232_s7 + $0x8c0] sm:$0xff]  ;;  %1625 = vst [vmem:[%s11237_s8 + $0x450] sm:$0xff] %v1624_v10  ;;  %1627 = vst [vmem:[%s11237_s8 + $0x458] sm:$0xff] %v1626_v11  ;;  %v1630_v13 = vld [vmem:[%s11232_s7 + $0x8d0] sm:$0xff] }
  0x60   : > { %1629 = vst [vmem:[%s11237_s8 + $0x460] sm:$0xff] %v1628_v12  ;;  %v1632_v14 = vld [vmem:[%s11232_s7 + $0x8e0] sm:$0xff]  ;;  %v1634_v15 = vld [vmem:[%s11232_s7 + $0x8f0] sm:$0xff]  ;;  %1631 = vst [vmem:[%s11237_s8 + $0x468] sm:$0xff] %v1630_v13 }
  0x61   : > { %1633 = vst [vmem:[%s11237_s8 + $0x470] sm:$0xff] %v1632_v14  ;;  %1635 = vst [vmem:[%s11237_s8 + $0x478] sm:$0xff] %v1634_v15  ;;  %v1636_v16 = vld [vmem:[%s11232_s7 + $0x900] sm:$0xff]  ;;  %v1638_v17 = vld [vmem:[%s11232_s7 + $0x910] sm:$0xff] }
  0x62   : > { %v1640_v18 = vld [vmem:[%s11232_s7 + $0x920] sm:$0xff]  ;;  %1637 = vst [vmem:[%s11237_s8 + $0x480] sm:$0xff] %v1636_v16  ;;  %1639 = vst [vmem:[%s11237_s8 + $0x488] sm:$0xff] %v1638_v17  ;;  %v1642_v19 = vld [vmem:[%s11232_s7 + $0x930] sm:$0xff] }
  0x63   : > { %1641 = vst [vmem:[%s11237_s8 + $0x490] sm:$0xff] %v1640_v18  ;;  %v1644_v20 = vld [vmem:[%s11232_s7 + $0x940] sm:$0xff]  ;;  %v1646_v21 = vld [vmem:[%s11232_s7 + $0x950] sm:$0xff]  ;;  %1643 = vst [vmem:[%s11237_s8 + $0x498] sm:$0xff] %v1642_v19 }
  0x64   : > { %1645 = vst [vmem:[%s11237_s8 + $0x4a0] sm:$0xff] %v1644_v20  ;;  %1647 = vst [vmem:[%s11237_s8 + $0x4a8] sm:$0xff] %v1646_v21  ;;  %v1648_v22 = vld [vmem:[%s11232_s7 + $0x960] sm:$0xff]  ;;  %v1650_v23 = vld [vmem:[%s11232_s7 + $0x970] sm:$0xff] }
  0x65   : > { %v1652_v24 = vld [vmem:[%s11232_s7 + $0x980] sm:$0xff]  ;;  %1649 = vst [vmem:[%s11237_s8 + $0x4b0] sm:$0xff] %v1648_v22  ;;  %1651 = vst [vmem:[%s11237_s8 + $0x4b8] sm:$0xff] %v1650_v23  ;;  %v1654_v25 = vld [vmem:[%s11232_s7 + $0x990] sm:$0xff] }
  0x66   : > { %1653 = vst [vmem:[%s11237_s8 + $0x4c0] sm:$0xff] %v1652_v24  ;;  %v1656_v26 = vld [vmem:[%s11232_s7 + $0x9a0] sm:$0xff]  ;;  %v1658_v27 = vld [vmem:[%s11232_s7 + $0x9b0] sm:$0xff]  ;;  %1655 = vst [vmem:[%s11237_s8 + $0x4c8] sm:$0xff] %v1654_v25 }
  0x67   : > { %1657 = vst [vmem:[%s11237_s8 + $0x4d0] sm:$0xff] %v1656_v26  ;;  %1659 = vst [vmem:[%s11237_s8 + $0x4d8] sm:$0xff] %v1658_v27  ;;  %v1660_v28 = vld [vmem:[%s11232_s7 + $0x9c0] sm:$0xff]  ;;  %v1662_v29 = vld [vmem:[%s11232_s7 + $0x9d0] sm:$0xff] }
  0x68   : > { %v1664_v30 = vld [vmem:[%s11232_s7 + $0x9e0] sm:$0xff]  ;;  %1661 = vst [vmem:[%s11237_s8 + $0x4e0] sm:$0xff] %v1660_v28  ;;  %1663 = vst [vmem:[%s11237_s8 + $0x4e8] sm:$0xff] %v1662_v29  ;;  %v1666_v31 = vld [vmem:[%s11232_s7 + $0x9f0] sm:$0xff] }
  0x69   : > { %1665 = vst [vmem:[%s11237_s8 + $0x4f0] sm:$0xff] %v1664_v30  ;;  %v1668_v32 = vld [vmem:[%s11232_s7 + $0xa00] sm:$0xff]  ;;  %v1670_v33 = vld [vmem:[%s11232_s7 + $0xa10] sm:$0xff]  ;;  %1667 = vst [vmem:[%s11237_s8 + $0x4f8] sm:$0xff] %v1666_v31 }
  0x6a   : > { %1669 = vst [vmem:[%s11237_s8 + $0x500] sm:$0xff] %v1668_v32  ;;  %1671 = vst [vmem:[%s11237_s8 + $0x508] sm:$0xff] %v1670_v33  ;;  %v1672_v34 = vld [vmem:[%s11232_s7 + $0xa20] sm:$0xff]  ;;  %v1674_v35 = vld [vmem:[%s11232_s7 + $0xa30] sm:$0xff] }
  0x6b   : > { %v1676_v36 = vld [vmem:[%s11232_s7 + $0xa40] sm:$0xff]  ;;  %1673 = vst [vmem:[%s11237_s8 + $0x510] sm:$0xff] %v1672_v34  ;;  %1675 = vst [vmem:[%s11237_s8 + $0x518] sm:$0xff] %v1674_v35  ;;  %v1678_v37 = vld [vmem:[%s11232_s7 + $0xa50] sm:$0xff] }
  0x6c   : > { %1677 = vst [vmem:[%s11237_s8 + $0x520] sm:$0xff] %v1676_v36  ;;  %v1680_v38 = vld [vmem:[%s11232_s7 + $0xa60] sm:$0xff]  ;;  %v1682_v39 = vld [vmem:[%s11232_s7 + $0xa70] sm:$0xff]  ;;  %1679 = vst [vmem:[%s11237_s8 + $0x528] sm:$0xff] %v1678_v37 }
  0x6d   : > { %1681 = vst [vmem:[%s11237_s8 + $0x530] sm:$0xff] %v1680_v38  ;;  %1683 = vst [vmem:[%s11237_s8 + $0x538] sm:$0xff] %v1682_v39  ;;  %v1684_v40 = vld [vmem:[%s11232_s7 + $0xa80] sm:$0xff]  ;;  %v1686_v41 = vld [vmem:[%s11232_s7 + $0xa90] sm:$0xff] }
  0x6e   : > { %v1688_v42 = vld [vmem:[%s11232_s7 + $0xaa0] sm:$0xff]  ;;  %1685 = vst [vmem:[%s11237_s8 + $0x540] sm:$0xff] %v1684_v40  ;;  %1687 = vst [vmem:[%s11237_s8 + $0x548] sm:$0xff] %v1686_v41  ;;  %v1690_v43 = vld [vmem:[%s11232_s7 + $0xab0] sm:$0xff] }
  0x6f   : > { %1689 = vst [vmem:[%s11237_s8 + $0x550] sm:$0xff] %v1688_v42  ;;  %v1692_v44 = vld [vmem:[%s11232_s7 + $0xac0] sm:$0xff]  ;;  %v1694_v45 = vld [vmem:[%s11232_s7 + $0xad0] sm:$0xff]  ;;  %1691 = vst [vmem:[%s11237_s8 + $0x558] sm:$0xff] %v1690_v43 }
  0x70   : > { %1693 = vst [vmem:[%s11237_s8 + $0x560] sm:$0xff] %v1692_v44  ;;  %1695 = vst [vmem:[%s11237_s8 + $0x568] sm:$0xff] %v1694_v45  ;;  %v1696_v46 = vld [vmem:[%s11232_s7 + $0xae0] sm:$0xff]  ;;  %v1698_v47 = vld [vmem:[%s11232_s7 + $0xaf0] sm:$0xff] }
  0x71   : > { %v1700_v48 = vld [vmem:[%s11232_s7 + $0xb00] sm:$0xff]  ;;  %1697 = vst [vmem:[%s11237_s8 + $0x570] sm:$0xff] %v1696_v46  ;;  %1699 = vst [vmem:[%s11237_s8 + $0x578] sm:$0xff] %v1698_v47  ;;  %v1702_v49 = vld [vmem:[%s11232_s7 + $0xb10] sm:$0xff] }
  0x72   : > { %1701 = vst [vmem:[%s11237_s8 + $0x580] sm:$0xff] %v1700_v48  ;;  %v1704_v50 = vld [vmem:[%s11232_s7 + $0xb20] sm:$0xff]  ;;  %v1706_v51 = vld [vmem:[%s11232_s7 + $0xb30] sm:$0xff]  ;;  %1703 = vst [vmem:[%s11237_s8 + $0x588] sm:$0xff] %v1702_v49 }
  0x73   : > { %1705 = vst [vmem:[%s11237_s8 + $0x590] sm:$0xff] %v1704_v50  ;;  %1707 = vst [vmem:[%s11237_s8 + $0x598] sm:$0xff] %v1706_v51  ;;  %v1708_v52 = vld [vmem:[%s11232_s7 + $0xb40] sm:$0xff]  ;;  %v1710_v53 = vld [vmem:[%s11232_s7 + $0xb50] sm:$0xff] }
  0x74   : > { %v1712_v54 = vld [vmem:[%s11232_s7 + $0xb60] sm:$0xff]  ;;  %1709 = vst [vmem:[%s11237_s8 + $0x5a0] sm:$0xff] %v1708_v52  ;;  %1711 = vst [vmem:[%s11237_s8 + $0x5a8] sm:$0xff] %v1710_v53  ;;  %v1714_v55 = vld [vmem:[%s11232_s7 + $0xb70] sm:$0xff] }
  0x75   : > { %1713 = vst [vmem:[%s11237_s8 + $0x5b0] sm:$0xff] %v1712_v54  ;;  %v1716_v56 = vld [vmem:[%s11232_s7 + $0xb80] sm:$0xff]  ;;  %v1718_v57 = vld [vmem:[%s11232_s7 + $0xb90] sm:$0xff]  ;;  %1715 = vst [vmem:[%s11237_s8 + $0x5b8] sm:$0xff] %v1714_v55 }
  0x76   : > { %1717 = vst [vmem:[%s11237_s8 + $0x5c0] sm:$0xff] %v1716_v56  ;;  %1719 = vst [vmem:[%s11237_s8 + $0x5c8] sm:$0xff] %v1718_v57  ;;  %v1720_v58 = vld [vmem:[%s11232_s7 + $0xba0] sm:$0xff]  ;;  %v1722_v59 = vld [vmem:[%s11232_s7 + $0xbb0] sm:$0xff] }
  0x77   : > { %v1724_v60 = vld [vmem:[%s11232_s7 + $0xbc0] sm:$0xff]  ;;  %1721 = vst [vmem:[%s11237_s8 + $0x5d0] sm:$0xff] %v1720_v58  ;;  %1723 = vst [vmem:[%s11237_s8 + $0x5d8] sm:$0xff] %v1722_v59  ;;  %v1726_v61 = vld [vmem:[%s11232_s7 + $0xbd0] sm:$0xff] }
  0x78   : > { %1725 = vst [vmem:[%s11237_s8 + $0x5e0] sm:$0xff] %v1724_v60  ;;  %v1728_v62 = vld [vmem:[%s11232_s7 + $0xbe0] sm:$0xff]  ;;  %v1730_v63 = vld [vmem:[%s11232_s7 + $0xbf0] sm:$0xff]  ;;  %1727 = vst [vmem:[%s11237_s8 + $0x5e8] sm:$0xff] %v1726_v61 }
  0x79   : > { %1729 = vst [vmem:[%s11237_s8 + $0x5f0] sm:$0xff] %v1728_v62  ;;  %1731 = vst [vmem:[%s11237_s8 + $0x5f8] sm:$0xff] %v1730_v63  ;;  %v1732_v0 = vld [vmem:[%s11232_s7 + $0xc00] sm:$0xff]  ;;  %v1734_v1 = vld [vmem:[%s11232_s7 + $0xc10] sm:$0xff] }
  0x7a   : > { %v1736_v2 = vld [vmem:[%s11232_s7 + $0xc20] sm:$0xff]  ;;  %1733 = vst [vmem:[%s11237_s8 + $0x600] sm:$0xff] %v1732_v0  ;;  %1735 = vst [vmem:[%s11237_s8 + $0x608] sm:$0xff] %v1734_v1  ;;  %v1738_v3 = vld [vmem:[%s11232_s7 + $0xc30] sm:$0xff] }
  0x7b   : > { %1737 = vst [vmem:[%s11237_s8 + $0x610] sm:$0xff] %v1736_v2  ;;  %v1740_v4 = vld [vmem:[%s11232_s7 + $0xc40] sm:$0xff]  ;;  %v1742_v5 = vld [vmem:[%s11232_s7 + $0xc50] sm:$0xff]  ;;  %1739 = vst [vmem:[%s11237_s8 + $0x618] sm:$0xff] %v1738_v3 }
  0x7c   : > { %1741 = vst [vmem:[%s11237_s8 + $0x620] sm:$0xff] %v1740_v4  ;;  %1743 = vst [vmem:[%s11237_s8 + $0x628] sm:$0xff] %v1742_v5  ;;  %v1744_v6 = vld [vmem:[%s11232_s7 + $0xc60] sm:$0xff]  ;;  %v1746_v7 = vld [vmem:[%s11232_s7 + $0xc70] sm:$0xff] }
  0x7d   : > { %v1748_v8 = vld [vmem:[%s11232_s7 + $0xc80] sm:$0xff]  ;;  %1745 = vst [vmem:[%s11237_s8 + $0x630] sm:$0xff] %v1744_v6  ;;  %1747 = vst [vmem:[%s11237_s8 + $0x638] sm:$0xff] %v1746_v7  ;;  %v1750_v9 = vld [vmem:[%s11232_s7 + $0xc90] sm:$0xff] }
  0x7e   : > { %1749 = vst [vmem:[%s11237_s8 + $0x640] sm:$0xff] %v1748_v8  ;;  %v1752_v10 = vld [vmem:[%s11232_s7 + $0xca0] sm:$0xff]  ;;  %v1754_v11 = vld [vmem:[%s11232_s7 + $0xcb0] sm:$0xff]  ;;  %1751 = vst [vmem:[%s11237_s8 + $0x648] sm:$0xff] %v1750_v9 }
  0x7f   : > { %1753 = vst [vmem:[%s11237_s8 + $0x650] sm:$0xff] %v1752_v10  ;;  %1755 = vst [vmem:[%s11237_s8 + $0x658] sm:$0xff] %v1754_v11  ;;  %v1756_v12 = vld [vmem:[%s11232_s7 + $0xcc0] sm:$0xff]  ;;  %v1758_v13 = vld [vmem:[%s11232_s7 + $0xcd0] sm:$0xff] }
  0x80   : > { %v1760_v14 = vld [vmem:[%s11232_s7 + $0xce0] sm:$0xff]  ;;  %1757 = vst [vmem:[%s11237_s8 + $0x660] sm:$0xff] %v1756_v12  ;;  %1759 = vst [vmem:[%s11237_s8 + $0x668] sm:$0xff] %v1758_v13  ;;  %v1762_v15 = vld [vmem:[%s11232_s7 + $0xcf0] sm:$0xff] }
  0x81   : > { %1761 = vst [vmem:[%s11237_s8 + $0x670] sm:$0xff] %v1760_v14  ;;  %v1764_v16 = vld [vmem:[%s11232_s7 + $0xd00] sm:$0xff]  ;;  %v1766_v17 = vld [vmem:[%s11232_s7 + $0xd10] sm:$0xff]  ;;  %1763 = vst [vmem:[%s11237_s8 + $0x678] sm:$0xff] %v1762_v15 }
  0x82   : > { %1765 = vst [vmem:[%s11237_s8 + $0x680] sm:$0xff] %v1764_v16  ;;  %1767 = vst [vmem:[%s11237_s8 + $0x688] sm:$0xff] %v1766_v17  ;;  %v1768_v18 = vld [vmem:[%s11232_s7 + $0xd20] sm:$0xff]  ;;  %v1770_v19 = vld [vmem:[%s11232_s7 + $0xd30] sm:$0xff] }
  0x83   : > { %v1772_v20 = vld [vmem:[%s11232_s7 + $0xd40] sm:$0xff]  ;;  %1769 = vst [vmem:[%s11237_s8 + $0x690] sm:$0xff] %v1768_v18  ;;  %1771 = vst [vmem:[%s11237_s8 + $0x698] sm:$0xff] %v1770_v19  ;;  %v1774_v21 = vld [vmem:[%s11232_s7 + $0xd50] sm:$0xff] }
  0x84   : > { %1773 = vst [vmem:[%s11237_s8 + $0x6a0] sm:$0xff] %v1772_v20  ;;  %v1776_v22 = vld [vmem:[%s11232_s7 + $0xd60] sm:$0xff]  ;;  %v1778_v23 = vld [vmem:[%s11232_s7 + $0xd70] sm:$0xff]  ;;  %1775 = vst [vmem:[%s11237_s8 + $0x6a8] sm:$0xff] %v1774_v21 }
  0x85   : > { %1777 = vst [vmem:[%s11237_s8 + $0x6b0] sm:$0xff] %v1776_v22  ;;  %1779 = vst [vmem:[%s11237_s8 + $0x6b8] sm:$0xff] %v1778_v23  ;;  %v1780_v24 = vld [vmem:[%s11232_s7 + $0xd80] sm:$0xff]  ;;  %v1782_v25 = vld [vmem:[%s11232_s7 + $0xd90] sm:$0xff] }
  0x86   : > { %v1784_v26 = vld [vmem:[%s11232_s7 + $0xda0] sm:$0xff]  ;;  %1781 = vst [vmem:[%s11237_s8 + $0x6c0] sm:$0xff] %v1780_v24  ;;  %1783 = vst [vmem:[%s11237_s8 + $0x6c8] sm:$0xff] %v1782_v25  ;;  %v1786_v27 = vld [vmem:[%s11232_s7 + $0xdb0] sm:$0xff] }
  0x87   : > { %1785 = vst [vmem:[%s11237_s8 + $0x6d0] sm:$0xff] %v1784_v26  ;;  %v1788_v28 = vld [vmem:[%s11232_s7 + $0xdc0] sm:$0xff]  ;;  %v1790_v29 = vld [vmem:[%s11232_s7 + $0xdd0] sm:$0xff]  ;;  %1787 = vst [vmem:[%s11237_s8 + $0x6d8] sm:$0xff] %v1786_v27 }
  0x88   : > { %1789 = vst [vmem:[%s11237_s8 + $0x6e0] sm:$0xff] %v1788_v28  ;;  %1791 = vst [vmem:[%s11237_s8 + $0x6e8] sm:$0xff] %v1790_v29  ;;  %v1792_v30 = vld [vmem:[%s11232_s7 + $0xde0] sm:$0xff]  ;;  %v1794_v31 = vld [vmem:[%s11232_s7 + $0xdf0] sm:$0xff] }
  0x89   : > { %v1796_v32 = vld [vmem:[%s11232_s7 + $0xe00] sm:$0xff]  ;;  %1793 = vst [vmem:[%s11237_s8 + $0x6f0] sm:$0xff] %v1792_v30  ;;  %1795 = vst [vmem:[%s11237_s8 + $0x6f8] sm:$0xff] %v1794_v31  ;;  %v1798_v33 = vld [vmem:[%s11232_s7 + $0xe10] sm:$0xff] }
  0x8a   : > { %1797 = vst [vmem:[%s11237_s8 + $0x700] sm:$0xff] %v1796_v32  ;;  %v1800_v34 = vld [vmem:[%s11232_s7 + $0xe20] sm:$0xff]  ;;  %v1802_v35 = vld [vmem:[%s11232_s7 + $0xe30] sm:$0xff]  ;;  %1799 = vst [vmem:[%s11237_s8 + $0x708] sm:$0xff] %v1798_v33 }
  0x8b   : > { %1801 = vst [vmem:[%s11237_s8 + $0x710] sm:$0xff] %v1800_v34  ;;  %1803 = vst [vmem:[%s11237_s8 + $0x718] sm:$0xff] %v1802_v35  ;;  %v1804_v36 = vld [vmem:[%s11232_s7 + $0xe40] sm:$0xff]  ;;  %v1806_v37 = vld [vmem:[%s11232_s7 + $0xe50] sm:$0xff] }
  0x8c   : > { %v1808_v38 = vld [vmem:[%s11232_s7 + $0xe60] sm:$0xff]  ;;  %1805 = vst [vmem:[%s11237_s8 + $0x720] sm:$0xff] %v1804_v36  ;;  %1807 = vst [vmem:[%s11237_s8 + $0x728] sm:$0xff] %v1806_v37  ;;  %v1810_v39 = vld [vmem:[%s11232_s7 + $0xe70] sm:$0xff] }
  0x8d   : > { %1809 = vst [vmem:[%s11237_s8 + $0x730] sm:$0xff] %v1808_v38  ;;  %v1812_v40 = vld [vmem:[%s11232_s7 + $0xe80] sm:$0xff]  ;;  %v1814_v41 = vld [vmem:[%s11232_s7 + $0xe90] sm:$0xff]  ;;  %1811 = vst [vmem:[%s11237_s8 + $0x738] sm:$0xff] %v1810_v39 }
  0x8e   : > { %1813 = vst [vmem:[%s11237_s8 + $0x740] sm:$0xff] %v1812_v40  ;;  %1815 = vst [vmem:[%s11237_s8 + $0x748] sm:$0xff] %v1814_v41  ;;  %v1816_v42 = vld [vmem:[%s11232_s7 + $0xea0] sm:$0xff]  ;;  %v1818_v43 = vld [vmem:[%s11232_s7 + $0xeb0] sm:$0xff] }
  0x8f   : > { %v1820_v44 = vld [vmem:[%s11232_s7 + $0xec0] sm:$0xff]  ;;  %1817 = vst [vmem:[%s11237_s8 + $0x750] sm:$0xff] %v1816_v42  ;;  %1819 = vst [vmem:[%s11237_s8 + $0x758] sm:$0xff] %v1818_v43  ;;  %v1822_v45 = vld [vmem:[%s11232_s7 + $0xed0] sm:$0xff] }
  0x90   : > { %1821 = vst [vmem:[%s11237_s8 + $0x760] sm:$0xff] %v1820_v44  ;;  %v1824_v46 = vld [vmem:[%s11232_s7 + $0xee0] sm:$0xff]  ;;  %v1826_v47 = vld [vmem:[%s11232_s7 + $0xef0] sm:$0xff]  ;;  %1823 = vst [vmem:[%s11237_s8 + $0x768] sm:$0xff] %v1822_v45 }
  0x91   : > { %1825 = vst [vmem:[%s11237_s8 + $0x770] sm:$0xff] %v1824_v46  ;;  %1827 = vst [vmem:[%s11237_s8 + $0x778] sm:$0xff] %v1826_v47  ;;  %v1828_v48 = vld [vmem:[%s11232_s7 + $0xf00] sm:$0xff]  ;;  %v1830_v49 = vld [vmem:[%s11232_s7 + $0xf10] sm:$0xff] }
  0x92   : > { %v1832_v50 = vld [vmem:[%s11232_s7 + $0xf20] sm:$0xff]  ;;  %1829 = vst [vmem:[%s11237_s8 + $0x780] sm:$0xff] %v1828_v48  ;;  %1831 = vst [vmem:[%s11237_s8 + $0x788] sm:$0xff] %v1830_v49  ;;  %v1834_v51 = vld [vmem:[%s11232_s7 + $0xf30] sm:$0xff] }
  0x93   : > { %1833 = vst [vmem:[%s11237_s8 + $0x790] sm:$0xff] %v1832_v50  ;;  %v1836_v52 = vld [vmem:[%s11232_s7 + $0xf40] sm:$0xff]  ;;  %v1838_v53 = vld [vmem:[%s11232_s7 + $0xf50] sm:$0xff]  ;;  %1835 = vst [vmem:[%s11237_s8 + $0x798] sm:$0xff] %v1834_v51 }
  0x94   : > { %1837 = vst [vmem:[%s11237_s8 + $0x7a0] sm:$0xff] %v1836_v52  ;;  %1839 = vst [vmem:[%s11237_s8 + $0x7a8] sm:$0xff] %v1838_v53  ;;  %v1840_v54 = vld [vmem:[%s11232_s7 + $0xf60] sm:$0xff]  ;;  %v1842_v55 = vld [vmem:[%s11232_s7 + $0xf70] sm:$0xff] }
  0x95   : > { %v1844_v56 = vld [vmem:[%s11232_s7 + $0xf80] sm:$0xff]  ;;  %1841 = vst [vmem:[%s11237_s8 + $0x7b0] sm:$0xff] %v1840_v54  ;;  %1843 = vst [vmem:[%s11237_s8 + $0x7b8] sm:$0xff] %v1842_v55  ;;  %v1846_v57 = vld [vmem:[%s11232_s7 + $0xf90] sm:$0xff] }
  0x96   : > { %1845 = vst [vmem:[%s11237_s8 + $0x7c0] sm:$0xff] %v1844_v56  ;;  %v1848_v58 = vld [vmem:[%s11232_s7 + $0xfa0] sm:$0xff]  ;;  %v1850_v59 = vld [vmem:[%s11232_s7 + $0xfb0] sm:$0xff]  ;;  %1847 = vst [vmem:[%s11237_s8 + $0x7c8] sm:$0xff] %v1846_v57 }
  0x97   : > { %1849 = vst [vmem:[%s11237_s8 + $0x7d0] sm:$0xff] %v1848_v58  ;;  %1851 = vst [vmem:[%s11237_s8 + $0x7d8] sm:$0xff] %v1850_v59  ;;  %v1852_v60 = vld [vmem:[%s11232_s7 + $0xfc0] sm:$0xff]  ;;  %v1854_v61 = vld [vmem:[%s11232_s7 + $0xfd0] sm:$0xff] }
  0x98   : > { %v1856_v62 = vld [vmem:[%s11232_s7 + $0xfe0] sm:$0xff]  ;;  %1853 = vst [vmem:[%s11237_s8 + $0x7e0] sm:$0xff] %v1852_v60  ;;  %1855 = vst [vmem:[%s11237_s8 + $0x7e8] sm:$0xff] %v1854_v61  ;;  %v1858_v63 = vld [vmem:[%s11232_s7 + $0xff0] sm:$0xff] }
  0x99   : > { %1857 = vst [vmem:[%s11237_s8 + $0x7f0] sm:$0xff] %v1856_v62  ;;  %v1860_v0 = vld [vmem:[%s11232_s7 + $0x1000] sm:$0xff]  ;;  %v1862_v1 = vld [vmem:[%s11232_s7 + $0x1010] sm:$0xff]  ;;  %1859 = vst [vmem:[%s11237_s8 + $0x7f8] sm:$0xff] %v1858_v63 }
  0x9a   : > { %1861 = vst [vmem:[%s11237_s8 + $0x800] sm:$0xff] %v1860_v0  ;;  %1863 = vst [vmem:[%s11237_s8 + $0x808] sm:$0xff] %v1862_v1  ;;  %v1864_v2 = vld [vmem:[%s11232_s7 + $0x1020] sm:$0xff]  ;;  %v1866_v3 = vld [vmem:[%s11232_s7 + $0x1030] sm:$0xff] }
  0x9b   : > { %v1868_v4 = vld [vmem:[%s11232_s7 + $0x1040] sm:$0xff]  ;;  %1865 = vst [vmem:[%s11237_s8 + $0x810] sm:$0xff] %v1864_v2  ;;  %1867 = vst [vmem:[%s11237_s8 + $0x818] sm:$0xff] %v1866_v3  ;;  %v1870_v5 = vld [vmem:[%s11232_s7 + $0x1050] sm:$0xff] }
  0x9c   : > { %1869 = vst [vmem:[%s11237_s8 + $0x820] sm:$0xff] %v1868_v4  ;;  %v1872_v6 = vld [vmem:[%s11232_s7 + $0x1060] sm:$0xff]  ;;  %v1874_v7 = vld [vmem:[%s11232_s7 + $0x1070] sm:$0xff]  ;;  %1871 = vst [vmem:[%s11237_s8 + $0x828] sm:$0xff] %v1870_v5 }
  0x9d   : > { %1873 = vst [vmem:[%s11237_s8 + $0x830] sm:$0xff] %v1872_v6  ;;  %1875 = vst [vmem:[%s11237_s8 + $0x838] sm:$0xff] %v1874_v7  ;;  %v1876_v8 = vld [vmem:[%s11232_s7 + $0x1080] sm:$0xff]  ;;  %v1878_v9 = vld [vmem:[%s11232_s7 + $0x1090] sm:$0xff] }
  0x9e   : > { %v1880_v10 = vld [vmem:[%s11232_s7 + $0x10a0] sm:$0xff]  ;;  %1877 = vst [vmem:[%s11237_s8 + $0x840] sm:$0xff] %v1876_v8  ;;  %1879 = vst [vmem:[%s11237_s8 + $0x848] sm:$0xff] %v1878_v9  ;;  %v1882_v11 = vld [vmem:[%s11232_s7 + $0x10b0] sm:$0xff] }
  0x9f   : > { %1881 = vst [vmem:[%s11237_s8 + $0x850] sm:$0xff] %v1880_v10  ;;  %v1884_v12 = vld [vmem:[%s11232_s7 + $0x10c0] sm:$0xff]  ;;  %v1886_v13 = vld [vmem:[%s11232_s7 + $0x10d0] sm:$0xff]  ;;  %1883 = vst [vmem:[%s11237_s8 + $0x858] sm:$0xff] %v1882_v11 }
  0xa0   : > { %1885 = vst [vmem:[%s11237_s8 + $0x860] sm:$0xff] %v1884_v12  ;;  %1887 = vst [vmem:[%s11237_s8 + $0x868] sm:$0xff] %v1886_v13  ;;  %v1888_v14 = vld [vmem:[%s11232_s7 + $0x10e0] sm:$0xff]  ;;  %v1890_v15 = vld [vmem:[%s11232_s7 + $0x10f0] sm:$0xff] }
  0xa1   : > { %v1892_v16 = vld [vmem:[%s11232_s7 + $0x1100] sm:$0xff]  ;;  %1889 = vst [vmem:[%s11237_s8 + $0x870] sm:$0xff] %v1888_v14  ;;  %1891 = vst [vmem:[%s11237_s8 + $0x878] sm:$0xff] %v1890_v15  ;;  %v1894_v17 = vld [vmem:[%s11232_s7 + $0x1110] sm:$0xff] }
  0xa2   : > { %1893 = vst [vmem:[%s11237_s8 + $0x880] sm:$0xff] %v1892_v16  ;;  %v1896_v18 = vld [vmem:[%s11232_s7 + $0x1120] sm:$0xff]  ;;  %v1898_v19 = vld [vmem:[%s11232_s7 + $0x1130] sm:$0xff]  ;;  %1895 = vst [vmem:[%s11237_s8 + $0x888] sm:$0xff] %v1894_v17 }
  0xa3   : > { %1897 = vst [vmem:[%s11237_s8 + $0x890] sm:$0xff] %v1896_v18  ;;  %1899 = vst [vmem:[%s11237_s8 + $0x898] sm:$0xff] %v1898_v19  ;;  %v1900_v20 = vld [vmem:[%s11232_s7 + $0x1140] sm:$0xff]  ;;  %v1902_v21 = vld [vmem:[%s11232_s7 + $0x1150] sm:$0xff] }
  0xa4   : > { %v1904_v22 = vld [vmem:[%s11232_s7 + $0x1160] sm:$0xff]  ;;  %1901 = vst [vmem:[%s11237_s8 + $0x8a0] sm:$0xff] %v1900_v20  ;;  %1903 = vst [vmem:[%s11237_s8 + $0x8a8] sm:$0xff] %v1902_v21  ;;  %v1906_v23 = vld [vmem:[%s11232_s7 + $0x1170] sm:$0xff] }
  0xa5   : > { %1905 = vst [vmem:[%s11237_s8 + $0x8b0] sm:$0xff] %v1904_v22  ;;  %v1908_v24 = vld [vmem:[%s11232_s7 + $0x1180] sm:$0xff]  ;;  %v1910_v25 = vld [vmem:[%s11232_s7 + $0x1190] sm:$0xff]  ;;  %1907 = vst [vmem:[%s11237_s8 + $0x8b8] sm:$0xff] %v1906_v23 }
  0xa6   : > { %1909 = vst [vmem:[%s11237_s8 + $0x8c0] sm:$0xff] %v1908_v24  ;;  %1911 = vst [vmem:[%s11237_s8 + $0x8c8] sm:$0xff] %v1910_v25  ;;  %v1912_v26 = vld [vmem:[%s11232_s7 + $0x11a0] sm:$0xff]  ;;  %v1914_v27 = vld [vmem:[%s11232_s7 + $0x11b0] sm:$0xff] }
  0xa7   : > { %v1916_v28 = vld [vmem:[%s11232_s7 + $0x11c0] sm:$0xff]  ;;  %1913 = vst [vmem:[%s11237_s8 + $0x8d0] sm:$0xff] %v1912_v26  ;;  %1915 = vst [vmem:[%s11237_s8 + $0x8d8] sm:$0xff] %v1914_v27  ;;  %v1918_v29 = vld [vmem:[%s11232_s7 + $0x11d0] sm:$0xff] }
  0xa8   : > { %1917 = vst [vmem:[%s11237_s8 + $0x8e0] sm:$0xff] %v1916_v28  ;;  %v1920_v30 = vld [vmem:[%s11232_s7 + $0x11e0] sm:$0xff]  ;;  %v1922_v31 = vld [vmem:[%s11232_s7 + $0x11f0] sm:$0xff]  ;;  %1919 = vst [vmem:[%s11237_s8 + $0x8e8] sm:$0xff] %v1918_v29 }
  0xa9   : > { %1921 = vst [vmem:[%s11237_s8 + $0x8f0] sm:$0xff] %v1920_v30  ;;  %1923 = vst [vmem:[%s11237_s8 + $0x8f8] sm:$0xff] %v1922_v31  ;;  %v1924_v32 = vld [vmem:[%s11232_s7 + $0x1200] sm:$0xff]  ;;  %v1926_v33 = vld [vmem:[%s11232_s7 + $0x1210] sm:$0xff] }
  0xaa   : > { %v1928_v34 = vld [vmem:[%s11232_s7 + $0x1220] sm:$0xff]  ;;  %1925 = vst [vmem:[%s11237_s8 + $0x900] sm:$0xff] %v1924_v32  ;;  %1927 = vst [vmem:[%s11237_s8 + $0x908] sm:$0xff] %v1926_v33  ;;  %v1930_v35 = vld [vmem:[%s11232_s7 + $0x1230] sm:$0xff] }
  0xab   : > { %1929 = vst [vmem:[%s11237_s8 + $0x910] sm:$0xff] %v1928_v34  ;;  %v1932_v36 = vld [vmem:[%s11232_s7 + $0x1240] sm:$0xff]  ;;  %v1934_v37 = vld [vmem:[%s11232_s7 + $0x1250] sm:$0xff]  ;;  %1931 = vst [vmem:[%s11237_s8 + $0x918] sm:$0xff] %v1930_v35 }
  0xac   : > { %1933 = vst [vmem:[%s11237_s8 + $0x920] sm:$0xff] %v1932_v36  ;;  %1935 = vst [vmem:[%s11237_s8 + $0x928] sm:$0xff] %v1934_v37  ;;  %v1936_v38 = vld [vmem:[%s11232_s7 + $0x1260] sm:$0xff]  ;;  %v1938_v39 = vld [vmem:[%s11232_s7 + $0x1270] sm:$0xff] }
  0xad   : > { %v1940_v40 = vld [vmem:[%s11232_s7 + $0x1280] sm:$0xff]  ;;  %1937 = vst [vmem:[%s11237_s8 + $0x930] sm:$0xff] %v1936_v38  ;;  %1939 = vst [vmem:[%s11237_s8 + $0x938] sm:$0xff] %v1938_v39  ;;  %v1942_v41 = vld [vmem:[%s11232_s7 + $0x1290] sm:$0xff] }
  0xae   : > { %1941 = vst [vmem:[%s11237_s8 + $0x940] sm:$0xff] %v1940_v40  ;;  %v1944_v42 = vld [vmem:[%s11232_s7 + $0x12a0] sm:$0xff]  ;;  %v1946_v43 = vld [vmem:[%s11232_s7 + $0x12b0] sm:$0xff]  ;;  %1943 = vst [vmem:[%s11237_s8 + $0x948] sm:$0xff] %v1942_v41 }
  0xaf   : > { %1945 = vst [vmem:[%s11237_s8 + $0x950] sm:$0xff] %v1944_v42  ;;  %1947 = vst [vmem:[%s11237_s8 + $0x958] sm:$0xff] %v1946_v43  ;;  %v1948_v44 = vld [vmem:[%s11232_s7 + $0x12c0] sm:$0xff]  ;;  %v1950_v45 = vld [vmem:[%s11232_s7 + $0x12d0] sm:$0xff] }
  0xb0   : > { %v1952_v46 = vld [vmem:[%s11232_s7 + $0x12e0] sm:$0xff]  ;;  %1949 = vst [vmem:[%s11237_s8 + $0x960] sm:$0xff] %v1948_v44  ;;  %1951 = vst [vmem:[%s11237_s8 + $0x968] sm:$0xff] %v1950_v45  ;;  %v1954_v47 = vld [vmem:[%s11232_s7 + $0x12f0] sm:$0xff] }
  0xb1   : > { %1953 = vst [vmem:[%s11237_s8 + $0x970] sm:$0xff] %v1952_v46  ;;  %v1956_v48 = vld [vmem:[%s11232_s7 + $0x1300] sm:$0xff]  ;;  %v1958_v49 = vld [vmem:[%s11232_s7 + $0x1310] sm:$0xff]  ;;  %1955 = vst [vmem:[%s11237_s8 + $0x978] sm:$0xff] %v1954_v47 }
  0xb2   : > { %1957 = vst [vmem:[%s11237_s8 + $0x980] sm:$0xff] %v1956_v48  ;;  %1959 = vst [vmem:[%s11237_s8 + $0x988] sm:$0xff] %v1958_v49  ;;  %v1960_v50 = vld [vmem:[%s11232_s7 + $0x1320] sm:$0xff]  ;;  %v1962_v51 = vld [vmem:[%s11232_s7 + $0x1330] sm:$0xff] }
  0xb3   : > { %v1964_v52 = vld [vmem:[%s11232_s7 + $0x1340] sm:$0xff]  ;;  %1961 = vst [vmem:[%s11237_s8 + $0x990] sm:$0xff] %v1960_v50  ;;  %1963 = vst [vmem:[%s11237_s8 + $0x998] sm:$0xff] %v1962_v51  ;;  %v1966_v53 = vld [vmem:[%s11232_s7 + $0x1350] sm:$0xff] }
  0xb4   : > { %1965 = vst [vmem:[%s11237_s8 + $0x9a0] sm:$0xff] %v1964_v52  ;;  %v1968_v54 = vld [vmem:[%s11232_s7 + $0x1360] sm:$0xff]  ;;  %v1970_v55 = vld [vmem:[%s11232_s7 + $0x1370] sm:$0xff]  ;;  %1967 = vst [vmem:[%s11237_s8 + $0x9a8] sm:$0xff] %v1966_v53 }
  0xb5   : > { %1969 = vst [vmem:[%s11237_s8 + $0x9b0] sm:$0xff] %v1968_v54  ;;  %1971 = vst [vmem:[%s11237_s8 + $0x9b8] sm:$0xff] %v1970_v55  ;;  %v1972_v56 = vld [vmem:[%s11232_s7 + $0x1380] sm:$0xff]  ;;  %v1974_v57 = vld [vmem:[%s11232_s7 + $0x1390] sm:$0xff] }
  0xb6   : > { %v1976_v58 = vld [vmem:[%s11232_s7 + $0x13a0] sm:$0xff]  ;;  %1973 = vst [vmem:[%s11237_s8 + $0x9c0] sm:$0xff] %v1972_v56  ;;  %1975 = vst [vmem:[%s11237_s8 + $0x9c8] sm:$0xff] %v1974_v57  ;;  %v1978_v59 = vld [vmem:[%s11232_s7 + $0x13b0] sm:$0xff] }
  0xb7   : > { %1977 = vst [vmem:[%s11237_s8 + $0x9d0] sm:$0xff] %v1976_v58  ;;  %v1980_v60 = vld [vmem:[%s11232_s7 + $0x13c0] sm:$0xff]  ;;  %v1982_v61 = vld [vmem:[%s11232_s7 + $0x13d0] sm:$0xff]  ;;  %1979 = vst [vmem:[%s11237_s8 + $0x9d8] sm:$0xff] %v1978_v59 }
  0xb8   : > { %1981 = vst [vmem:[%s11237_s8 + $0x9e0] sm:$0xff] %v1980_v60  ;;  %1983 = vst [vmem:[%s11237_s8 + $0x9e8] sm:$0xff] %v1982_v61  ;;  %v1984_v62 = vld [vmem:[%s11232_s7 + $0x13e0] sm:$0xff]  ;;  %v1986_v63 = vld [vmem:[%s11232_s7 + $0x13f0] sm:$0xff] }
  0xb9   : > { %v1988_v0 = vld [vmem:[%s11232_s7 + $0x1400] sm:$0xff]  ;;  %1985 = vst [vmem:[%s11237_s8 + $0x9f0] sm:$0xff] %v1984_v62  ;;  %1987 = vst [vmem:[%s11237_s8 + $0x9f8] sm:$0xff] %v1986_v63  ;;  %v1990_v1 = vld [vmem:[%s11232_s7 + $0x1410] sm:$0xff] }
  0xba   : > { %1989 = vst [vmem:[%s11237_s8 + $0xa00] sm:$0xff] %v1988_v0  ;;  %v1992_v2 = vld [vmem:[%s11232_s7 + $0x1420] sm:$0xff]  ;;  %v1994_v3 = vld [vmem:[%s11232_s7 + $0x1430] sm:$0xff]  ;;  %1991 = vst [vmem:[%s11237_s8 + $0xa08] sm:$0xff] %v1990_v1 }
  0xbb   : > { %1993 = vst [vmem:[%s11237_s8 + $0xa10] sm:$0xff] %v1992_v2  ;;  %1995 = vst [vmem:[%s11237_s8 + $0xa18] sm:$0xff] %v1994_v3  ;;  %v1996_v4 = vld [vmem:[%s11232_s7 + $0x1440] sm:$0xff]  ;;  %v1998_v5 = vld [vmem:[%s11232_s7 + $0x1450] sm:$0xff] }
  0xbc   : > { %v2000_v6 = vld [vmem:[%s11232_s7 + $0x1460] sm:$0xff]  ;;  %1997 = vst [vmem:[%s11237_s8 + $0xa20] sm:$0xff] %v1996_v4  ;;  %1999 = vst [vmem:[%s11237_s8 + $0xa28] sm:$0xff] %v1998_v5  ;;  %v2002_v7 = vld [vmem:[%s11232_s7 + $0x1470] sm:$0xff] }
  0xbd   : > { %2001 = vst [vmem:[%s11237_s8 + $0xa30] sm:$0xff] %v2000_v6  ;;  %v2004_v8 = vld [vmem:[%s11232_s7 + $0x1480] sm:$0xff]  ;;  %v2006_v9 = vld [vmem:[%s11232_s7 + $0x1490] sm:$0xff]  ;;  %2003 = vst [vmem:[%s11237_s8 + $0xa38] sm:$0xff] %v2002_v7 }
  0xbe   : > { %2005 = vst [vmem:[%s11237_s8 + $0xa40] sm:$0xff] %v2004_v8  ;;  %2007 = vst [vmem:[%s11237_s8 + $0xa48] sm:$0xff] %v2006_v9  ;;  %v2008_v10 = vld [vmem:[%s11232_s7 + $0x14a0] sm:$0xff]  ;;  %v2010_v11 = vld [vmem:[%s11232_s7 + $0x14b0] sm:$0xff] }
  0xbf   : > { %v2012_v12 = vld [vmem:[%s11232_s7 + $0x14c0] sm:$0xff]  ;;  %2009 = vst [vmem:[%s11237_s8 + $0xa50] sm:$0xff] %v2008_v10  ;;  %2011 = vst [vmem:[%s11237_s8 + $0xa58] sm:$0xff] %v2010_v11  ;;  %v2014_v13 = vld [vmem:[%s11232_s7 + $0x14d0] sm:$0xff] }
  0xc0   : > { %2013 = vst [vmem:[%s11237_s8 + $0xa60] sm:$0xff] %v2012_v12  ;;  %v2016_v14 = vld [vmem:[%s11232_s7 + $0x14e0] sm:$0xff]  ;;  %v2018_v15 = vld [vmem:[%s11232_s7 + $0x14f0] sm:$0xff]  ;;  %2015 = vst [vmem:[%s11237_s8 + $0xa68] sm:$0xff] %v2014_v13 }
  0xc1   : > { %2017 = vst [vmem:[%s11237_s8 + $0xa70] sm:$0xff] %v2016_v14  ;;  %2019 = vst [vmem:[%s11237_s8 + $0xa78] sm:$0xff] %v2018_v15  ;;  %v2020_v16 = vld [vmem:[%s11232_s7 + $0x1500] sm:$0xff]  ;;  %v2022_v17 = vld [vmem:[%s11232_s7 + $0x1510] sm:$0xff] }
  0xc2   : > { %v2024_v18 = vld [vmem:[%s11232_s7 + $0x1520] sm:$0xff]  ;;  %2021 = vst [vmem:[%s11237_s8 + $0xa80] sm:$0xff] %v2020_v16  ;;  %2023 = vst [vmem:[%s11237_s8 + $0xa88] sm:$0xff] %v2022_v17  ;;  %v2026_v19 = vld [vmem:[%s11232_s7 + $0x1530] sm:$0xff] }
  0xc3   : > { %2025 = vst [vmem:[%s11237_s8 + $0xa90] sm:$0xff] %v2024_v18  ;;  %v2028_v20 = vld [vmem:[%s11232_s7 + $0x1540] sm:$0xff]  ;;  %v2030_v21 = vld [vmem:[%s11232_s7 + $0x1550] sm:$0xff]  ;;  %2027 = vst [vmem:[%s11237_s8 + $0xa98] sm:$0xff] %v2026_v19 }
  0xc4   : > { %2029 = vst [vmem:[%s11237_s8 + $0xaa0] sm:$0xff] %v2028_v20  ;;  %2031 = vst [vmem:[%s11237_s8 + $0xaa8] sm:$0xff] %v2030_v21  ;;  %v2032_v22 = vld [vmem:[%s11232_s7 + $0x1560] sm:$0xff]  ;;  %v2034_v23 = vld [vmem:[%s11232_s7 + $0x1570] sm:$0xff] }
  0xc5   : > { %v2036_v24 = vld [vmem:[%s11232_s7 + $0x1580] sm:$0xff]  ;;  %2033 = vst [vmem:[%s11237_s8 + $0xab0] sm:$0xff] %v2032_v22  ;;  %2035 = vst [vmem:[%s11237_s8 + $0xab8] sm:$0xff] %v2034_v23  ;;  %v2038_v25 = vld [vmem:[%s11232_s7 + $0x1590] sm:$0xff] }
  0xc6   : > { %2037 = vst [vmem:[%s11237_s8 + $0xac0] sm:$0xff] %v2036_v24  ;;  %v2040_v26 = vld [vmem:[%s11232_s7 + $0x15a0] sm:$0xff]  ;;  %v2042_v27 = vld [vmem:[%s11232_s7 + $0x15b0] sm:$0xff]  ;;  %2039 = vst [vmem:[%s11237_s8 + $0xac8] sm:$0xff] %v2038_v25 }
  0xc7   : > { %2041 = vst [vmem:[%s11237_s8 + $0xad0] sm:$0xff] %v2040_v26  ;;  %2043 = vst [vmem:[%s11237_s8 + $0xad8] sm:$0xff] %v2042_v27  ;;  %v2044_v28 = vld [vmem:[%s11232_s7 + $0x15c0] sm:$0xff]  ;;  %v2046_v29 = vld [vmem:[%s11232_s7 + $0x15d0] sm:$0xff] }
  0xc8   : > { %v2048_v30 = vld [vmem:[%s11232_s7 + $0x15e0] sm:$0xff]  ;;  %2045 = vst [vmem:[%s11237_s8 + $0xae0] sm:$0xff] %v2044_v28  ;;  %2047 = vst [vmem:[%s11237_s8 + $0xae8] sm:$0xff] %v2046_v29  ;;  %v2050_v31 = vld [vmem:[%s11232_s7 + $0x15f0] sm:$0xff] }
  0xc9   : > { %2049 = vst [vmem:[%s11237_s8 + $0xaf0] sm:$0xff] %v2048_v30  ;;  %v2052_v32 = vld [vmem:[%s11232_s7 + $0x1600] sm:$0xff]  ;;  %v2054_v33 = vld [vmem:[%s11232_s7 + $0x1610] sm:$0xff]  ;;  %2051 = vst [vmem:[%s11237_s8 + $0xaf8] sm:$0xff] %v2050_v31 }
  0xca   : > { %2053 = vst [vmem:[%s11237_s8 + $0xb00] sm:$0xff] %v2052_v32  ;;  %2055 = vst [vmem:[%s11237_s8 + $0xb08] sm:$0xff] %v2054_v33  ;;  %v2056_v34 = vld [vmem:[%s11232_s7 + $0x1620] sm:$0xff]  ;;  %v2058_v35 = vld [vmem:[%s11232_s7 + $0x1630] sm:$0xff] }
  0xcb   : > { %v2060_v36 = vld [vmem:[%s11232_s7 + $0x1640] sm:$0xff]  ;;  %2057 = vst [vmem:[%s11237_s8 + $0xb10] sm:$0xff] %v2056_v34  ;;  %2059 = vst [vmem:[%s11237_s8 + $0xb18] sm:$0xff] %v2058_v35  ;;  %v2062_v37 = vld [vmem:[%s11232_s7 + $0x1650] sm:$0xff] }
  0xcc   : > { %2061 = vst [vmem:[%s11237_s8 + $0xb20] sm:$0xff] %v2060_v36  ;;  %v2064_v38 = vld [vmem:[%s11232_s7 + $0x1660] sm:$0xff]  ;;  %v2066_v39 = vld [vmem:[%s11232_s7 + $0x1670] sm:$0xff]  ;;  %2063 = vst [vmem:[%s11237_s8 + $0xb28] sm:$0xff] %v2062_v37 }
  0xcd   : > { %2065 = vst [vmem:[%s11237_s8 + $0xb30] sm:$0xff] %v2064_v38  ;;  %2067 = vst [vmem:[%s11237_s8 + $0xb38] sm:$0xff] %v2066_v39  ;;  %v2068_v40 = vld [vmem:[%s11232_s7 + $0x1680] sm:$0xff]  ;;  %v2070_v41 = vld [vmem:[%s11232_s7 + $0x1690] sm:$0xff] }
  0xce   : > { %v2072_v42 = vld [vmem:[%s11232_s7 + $0x16a0] sm:$0xff]  ;;  %2069 = vst [vmem:[%s11237_s8 + $0xb40] sm:$0xff] %v2068_v40  ;;  %2071 = vst [vmem:[%s11237_s8 + $0xb48] sm:$0xff] %v2070_v41  ;;  %v2074_v43 = vld [vmem:[%s11232_s7 + $0x16b0] sm:$0xff] }
  0xcf   : > { %2073 = vst [vmem:[%s11237_s8 + $0xb50] sm:$0xff] %v2072_v42  ;;  %v2076_v44 = vld [vmem:[%s11232_s7 + $0x16c0] sm:$0xff]  ;;  %v2078_v45 = vld [vmem:[%s11232_s7 + $0x16d0] sm:$0xff]  ;;  %2075 = vst [vmem:[%s11237_s8 + $0xb58] sm:$0xff] %v2074_v43 }
  0xd0   : > { %2077 = vst [vmem:[%s11237_s8 + $0xb60] sm:$0xff] %v2076_v44  ;;  %2079 = vst [vmem:[%s11237_s8 + $0xb68] sm:$0xff] %v2078_v45  ;;  %v2080_v46 = vld [vmem:[%s11232_s7 + $0x16e0] sm:$0xff]  ;;  %v2082_v47 = vld [vmem:[%s11232_s7 + $0x16f0] sm:$0xff] }
  0xd1   : > { %v2084_v48 = vld [vmem:[%s11232_s7 + $0x1700] sm:$0xff]  ;;  %2081 = vst [vmem:[%s11237_s8 + $0xb70] sm:$0xff] %v2080_v46  ;;  %2083 = vst [vmem:[%s11237_s8 + $0xb78] sm:$0xff] %v2082_v47  ;;  %v2086_v49 = vld [vmem:[%s11232_s7 + $0x1710] sm:$0xff] }
  0xd2   : > { %2085 = vst [vmem:[%s11237_s8 + $0xb80] sm:$0xff] %v2084_v48  ;;  %v2088_v50 = vld [vmem:[%s11232_s7 + $0x1720] sm:$0xff]  ;;  %v2090_v51 = vld [vmem:[%s11232_s7 + $0x1730] sm:$0xff]  ;;  %2087 = vst [vmem:[%s11237_s8 + $0xb88] sm:$0xff] %v2086_v49 }
  0xd3   : > { %2089 = vst [vmem:[%s11237_s8 + $0xb90] sm:$0xff] %v2088_v50  ;;  %2091 = vst [vmem:[%s11237_s8 + $0xb98] sm:$0xff] %v2090_v51  ;;  %v2092_v52 = vld [vmem:[%s11232_s7 + $0x1740] sm:$0xff]  ;;  %v2094_v53 = vld [vmem:[%s11232_s7 + $0x1750] sm:$0xff] }
  0xd4   : > { %v2096_v54 = vld [vmem:[%s11232_s7 + $0x1760] sm:$0xff]  ;;  %2093 = vst [vmem:[%s11237_s8 + $0xba0] sm:$0xff] %v2092_v52  ;;  %2095 = vst [vmem:[%s11237_s8 + $0xba8] sm:$0xff] %v2094_v53  ;;  %v2098_v55 = vld [vmem:[%s11232_s7 + $0x1770] sm:$0xff] }
  0xd5   : > { %2097 = vst [vmem:[%s11237_s8 + $0xbb0] sm:$0xff] %v2096_v54  ;;  %v2100_v56 = vld [vmem:[%s11232_s7 + $0x1780] sm:$0xff]  ;;  %v2102_v57 = vld [vmem:[%s11232_s7 + $0x1790] sm:$0xff]  ;;  %2099 = vst [vmem:[%s11237_s8 + $0xbb8] sm:$0xff] %v2098_v55 }
  0xd6   : > { %2101 = vst [vmem:[%s11237_s8 + $0xbc0] sm:$0xff] %v2100_v56  ;;  %2103 = vst [vmem:[%s11237_s8 + $0xbc8] sm:$0xff] %v2102_v57  ;;  %v2104_v58 = vld [vmem:[%s11232_s7 + $0x17a0] sm:$0xff]  ;;  %v2106_v59 = vld [vmem:[%s11232_s7 + $0x17b0] sm:$0xff] }
  0xd7   : > { %v2108_v60 = vld [vmem:[%s11232_s7 + $0x17c0] sm:$0xff]  ;;  %2105 = vst [vmem:[%s11237_s8 + $0xbd0] sm:$0xff] %v2104_v58  ;;  %2107 = vst [vmem:[%s11237_s8 + $0xbd8] sm:$0xff] %v2106_v59  ;;  %v2110_v61 = vld [vmem:[%s11232_s7 + $0x17d0] sm:$0xff] }
  0xd8   : > { %2109 = vst [vmem:[%s11237_s8 + $0xbe0] sm:$0xff] %v2108_v60  ;;  %v2112_v62 = vld [vmem:[%s11232_s7 + $0x17e0] sm:$0xff]  ;;  %v2114_v63 = vld [vmem:[%s11232_s7 + $0x17f0] sm:$0xff]  ;;  %2111 = vst [vmem:[%s11237_s8 + $0xbe8] sm:$0xff] %v2110_v61 }
  0xd9   : > { %2113 = vst [vmem:[%s11237_s8 + $0xbf0] sm:$0xff] %v2112_v62  ;;  %2115 = vst [vmem:[%s11237_s8 + $0xbf8] sm:$0xff] %v2114_v63  ;;  %v2116_v0 = vld [vmem:[%s11232_s7 + $0x1800] sm:$0xff]  ;;  %v2118_v1 = vld [vmem:[%s11232_s7 + $0x1810] sm:$0xff] }
  0xda   : > { %v2120_v2 = vld [vmem:[%s11232_s7 + $0x1820] sm:$0xff]  ;;  %2117 = vst [vmem:[%s11237_s8 + $0xc00] sm:$0xff] %v2116_v0  ;;  %2119 = vst [vmem:[%s11237_s8 + $0xc08] sm:$0xff] %v2118_v1  ;;  %v2122_v3 = vld [vmem:[%s11232_s7 + $0x1830] sm:$0xff] }
  0xdb   : > { %2121 = vst [vmem:[%s11237_s8 + $0xc10] sm:$0xff] %v2120_v2  ;;  %v2124_v4 = vld [vmem:[%s11232_s7 + $0x1840] sm:$0xff]  ;;  %v2126_v5 = vld [vmem:[%s11232_s7 + $0x1850] sm:$0xff]  ;;  %2123 = vst [vmem:[%s11237_s8 + $0xc18] sm:$0xff] %v2122_v3 }
  0xdc   : > { %2125 = vst [vmem:[%s11237_s8 + $0xc20] sm:$0xff] %v2124_v4  ;;  %2127 = vst [vmem:[%s11237_s8 + $0xc28] sm:$0xff] %v2126_v5  ;;  %v2128_v6 = vld [vmem:[%s11232_s7 + $0x1860] sm:$0xff]  ;;  %v2130_v7 = vld [vmem:[%s11232_s7 + $0x1870] sm:$0xff] }
  0xdd   : > { %v2132_v8 = vld [vmem:[%s11232_s7 + $0x1880] sm:$0xff]  ;;  %2129 = vst [vmem:[%s11237_s8 + $0xc30] sm:$0xff] %v2128_v6  ;;  %2131 = vst [vmem:[%s11237_s8 + $0xc38] sm:$0xff] %v2130_v7  ;;  %v2134_v9 = vld [vmem:[%s11232_s7 + $0x1890] sm:$0xff] }
  0xde   : > { %2133 = vst [vmem:[%s11237_s8 + $0xc40] sm:$0xff] %v2132_v8  ;;  %v2136_v10 = vld [vmem:[%s11232_s7 + $0x18a0] sm:$0xff]  ;;  %v2138_v11 = vld [vmem:[%s11232_s7 + $0x18b0] sm:$0xff]  ;;  %2135 = vst [vmem:[%s11237_s8 + $0xc48] sm:$0xff] %v2134_v9 }
  0xdf   : > { %2137 = vst [vmem:[%s11237_s8 + $0xc50] sm:$0xff] %v2136_v10  ;;  %2139 = vst [vmem:[%s11237_s8 + $0xc58] sm:$0xff] %v2138_v11  ;;  %v2140_v12 = vld [vmem:[%s11232_s7 + $0x18c0] sm:$0xff]  ;;  %v2142_v13 = vld [vmem:[%s11232_s7 + $0x18d0] sm:$0xff] }
  0xe0   : > { %v2144_v14 = vld [vmem:[%s11232_s7 + $0x18e0] sm:$0xff]  ;;  %2141 = vst [vmem:[%s11237_s8 + $0xc60] sm:$0xff] %v2140_v12  ;;  %2143 = vst [vmem:[%s11237_s8 + $0xc68] sm:$0xff] %v2142_v13  ;;  %v2146_v15 = vld [vmem:[%s11232_s7 + $0x18f0] sm:$0xff] }
  0xe1   : > { %2145 = vst [vmem:[%s11237_s8 + $0xc70] sm:$0xff] %v2144_v14  ;;  %v2148_v16 = vld [vmem:[%s11232_s7 + $0x1900] sm:$0xff]  ;;  %v2150_v17 = vld [vmem:[%s11232_s7 + $0x1910] sm:$0xff]  ;;  %2147 = vst [vmem:[%s11237_s8 + $0xc78] sm:$0xff] %v2146_v15 }
  0xe2   : > { %2149 = vst [vmem:[%s11237_s8 + $0xc80] sm:$0xff] %v2148_v16  ;;  %2151 = vst [vmem:[%s11237_s8 + $0xc88] sm:$0xff] %v2150_v17  ;;  %v2152_v18 = vld [vmem:[%s11232_s7 + $0x1920] sm:$0xff]  ;;  %v2154_v19 = vld [vmem:[%s11232_s7 + $0x1930] sm:$0xff] }
  0xe3   : > { %v2156_v20 = vld [vmem:[%s11232_s7 + $0x1940] sm:$0xff]  ;;  %2153 = vst [vmem:[%s11237_s8 + $0xc90] sm:$0xff] %v2152_v18  ;;  %2155 = vst [vmem:[%s11237_s8 + $0xc98] sm:$0xff] %v2154_v19  ;;  %v2158_v21 = vld [vmem:[%s11232_s7 + $0x1950] sm:$0xff] }
  0xe4   : > { %2157 = vst [vmem:[%s11237_s8 + $0xca0] sm:$0xff] %v2156_v20  ;;  %v2160_v22 = vld [vmem:[%s11232_s7 + $0x1960] sm:$0xff]  ;;  %v2162_v23 = vld [vmem:[%s11232_s7 + $0x1970] sm:$0xff]  ;;  %2159 = vst [vmem:[%s11237_s8 + $0xca8] sm:$0xff] %v2158_v21 }
  0xe5   : > { %2161 = vst [vmem:[%s11237_s8 + $0xcb0] sm:$0xff] %v2160_v22  ;;  %2163 = vst [vmem:[%s11237_s8 + $0xcb8] sm:$0xff] %v2162_v23  ;;  %v2164_v24 = vld [vmem:[%s11232_s7 + $0x1980] sm:$0xff]  ;;  %v2166_v25 = vld [vmem:[%s11232_s7 + $0x1990] sm:$0xff] }
  0xe6   : > { %v2168_v26 = vld [vmem:[%s11232_s7 + $0x19a0] sm:$0xff]  ;;  %2165 = vst [vmem:[%s11237_s8 + $0xcc0] sm:$0xff] %v2164_v24  ;;  %2167 = vst [vmem:[%s11237_s8 + $0xcc8] sm:$0xff] %v2166_v25  ;;  %v2170_v27 = vld [vmem:[%s11232_s7 + $0x19b0] sm:$0xff] }
  0xe7   : > { %2169 = vst [vmem:[%s11237_s8 + $0xcd0] sm:$0xff] %v2168_v26  ;;  %v2172_v28 = vld [vmem:[%s11232_s7 + $0x19c0] sm:$0xff]  ;;  %v2174_v29 = vld [vmem:[%s11232_s7 + $0x19d0] sm:$0xff]  ;;  %2171 = vst [vmem:[%s11237_s8 + $0xcd8] sm:$0xff] %v2170_v27 }
  0xe8   : > { %2173 = vst [vmem:[%s11237_s8 + $0xce0] sm:$0xff] %v2172_v28  ;;  %2175 = vst [vmem:[%s11237_s8 + $0xce8] sm:$0xff] %v2174_v29  ;;  %v2176_v30 = vld [vmem:[%s11232_s7 + $0x19e0] sm:$0xff]  ;;  %v2178_v31 = vld [vmem:[%s11232_s7 + $0x19f0] sm:$0xff] }
  0xe9   : > { %v2180_v32 = vld [vmem:[%s11232_s7 + $0x1a00] sm:$0xff]  ;;  %2177 = vst [vmem:[%s11237_s8 + $0xcf0] sm:$0xff] %v2176_v30  ;;  %2179 = vst [vmem:[%s11237_s8 + $0xcf8] sm:$0xff] %v2178_v31  ;;  %v2182_v33 = vld [vmem:[%s11232_s7 + $0x1a10] sm:$0xff] }
  0xea   : > { %2181 = vst [vmem:[%s11237_s8 + $0xd00] sm:$0xff] %v2180_v32  ;;  %v2184_v34 = vld [vmem:[%s11232_s7 + $0x1a20] sm:$0xff]  ;;  %v2186_v35 = vld [vmem:[%s11232_s7 + $0x1a30] sm:$0xff]  ;;  %2183 = vst [vmem:[%s11237_s8 + $0xd08] sm:$0xff] %v2182_v33 }
  0xeb   : > { %2185 = vst [vmem:[%s11237_s8 + $0xd10] sm:$0xff] %v2184_v34  ;;  %2187 = vst [vmem:[%s11237_s8 + $0xd18] sm:$0xff] %v2186_v35  ;;  %v2188_v36 = vld [vmem:[%s11232_s7 + $0x1a40] sm:$0xff]  ;;  %v2190_v37 = vld [vmem:[%s11232_s7 + $0x1a50] sm:$0xff] }
  0xec   : > { %v2192_v38 = vld [vmem:[%s11232_s7 + $0x1a60] sm:$0xff]  ;;  %2189 = vst [vmem:[%s11237_s8 + $0xd20] sm:$0xff] %v2188_v36  ;;  %2191 = vst [vmem:[%s11237_s8 + $0xd28] sm:$0xff] %v2190_v37  ;;  %v2194_v39 = vld [vmem:[%s11232_s7 + $0x1a70] sm:$0xff] }
  0xed   : > { %2193 = vst [vmem:[%s11237_s8 + $0xd30] sm:$0xff] %v2192_v38  ;;  %v2196_v40 = vld [vmem:[%s11232_s7 + $0x1a80] sm:$0xff]  ;;  %v2198_v41 = vld [vmem:[%s11232_s7 + $0x1a90] sm:$0xff]  ;;  %2195 = vst [vmem:[%s11237_s8 + $0xd38] sm:$0xff] %v2194_v39 }
  0xee   : > { %2197 = vst [vmem:[%s11237_s8 + $0xd40] sm:$0xff] %v2196_v40  ;;  %2199 = vst [vmem:[%s11237_s8 + $0xd48] sm:$0xff] %v2198_v41  ;;  %v2200_v42 = vld [vmem:[%s11232_s7 + $0x1aa0] sm:$0xff]  ;;  %v2202_v43 = vld [vmem:[%s11232_s7 + $0x1ab0] sm:$0xff] }
  0xef   : > { %v2204_v44 = vld [vmem:[%s11232_s7 + $0x1ac0] sm:$0xff]  ;;  %2201 = vst [vmem:[%s11237_s8 + $0xd50] sm:$0xff] %v2200_v42  ;;  %2203 = vst [vmem:[%s11237_s8 + $0xd58] sm:$0xff] %v2202_v43  ;;  %v2206_v45 = vld [vmem:[%s11232_s7 + $0x1ad0] sm:$0xff] }
  0xf0   : > { %2205 = vst [vmem:[%s11237_s8 + $0xd60] sm:$0xff] %v2204_v44  ;;  %v2208_v46 = vld [vmem:[%s11232_s7 + $0x1ae0] sm:$0xff]  ;;  %v2210_v47 = vld [vmem:[%s11232_s7 + $0x1af0] sm:$0xff]  ;;  %2207 = vst [vmem:[%s11237_s8 + $0xd68] sm:$0xff] %v2206_v45 }
  0xf1   : > { %2209 = vst [vmem:[%s11237_s8 + $0xd70] sm:$0xff] %v2208_v46  ;;  %2211 = vst [vmem:[%s11237_s8 + $0xd78] sm:$0xff] %v2210_v47  ;;  %v2212_v48 = vld [vmem:[%s11232_s7 + $0x1b00] sm:$0xff]  ;;  %v2214_v49 = vld [vmem:[%s11232_s7 + $0x1b10] sm:$0xff] }
  0xf2   : > { %v2216_v50 = vld [vmem:[%s11232_s7 + $0x1b20] sm:$0xff]  ;;  %2213 = vst [vmem:[%s11237_s8 + $0xd80] sm:$0xff] %v2212_v48  ;;  %2215 = vst [vmem:[%s11237_s8 + $0xd88] sm:$0xff] %v2214_v49  ;;  %v2218_v51 = vld [vmem:[%s11232_s7 + $0x1b30] sm:$0xff] }
  0xf3   : > { %2217 = vst [vmem:[%s11237_s8 + $0xd90] sm:$0xff] %v2216_v50  ;;  %v2220_v52 = vld [vmem:[%s11232_s7 + $0x1b40] sm:$0xff]  ;;  %v2222_v53 = vld [vmem:[%s11232_s7 + $0x1b50] sm:$0xff]  ;;  %2219 = vst [vmem:[%s11237_s8 + $0xd98] sm:$0xff] %v2218_v51 }
  0xf4   : > { %2221 = vst [vmem:[%s11237_s8 + $0xda0] sm:$0xff] %v2220_v52  ;;  %2223 = vst [vmem:[%s11237_s8 + $0xda8] sm:$0xff] %v2222_v53  ;;  %v2224_v54 = vld [vmem:[%s11232_s7 + $0x1b60] sm:$0xff]  ;;  %v2226_v55 = vld [vmem:[%s11232_s7 + $0x1b70] sm:$0xff] }
  0xf5   : > { %v2228_v56 = vld [vmem:[%s11232_s7 + $0x1b80] sm:$0xff]  ;;  %2225 = vst [vmem:[%s11237_s8 + $0xdb0] sm:$0xff] %v2224_v54  ;;  %2227 = vst [vmem:[%s11237_s8 + $0xdb8] sm:$0xff] %v2226_v55  ;;  %v2230_v57 = vld [vmem:[%s11232_s7 + $0x1b90] sm:$0xff] }
  0xf6   : > { %2229 = vst [vmem:[%s11237_s8 + $0xdc0] sm:$0xff] %v2228_v56  ;;  %v2232_v58 = vld [vmem:[%s11232_s7 + $0x1ba0] sm:$0xff]  ;;  %v2234_v59 = vld [vmem:[%s11232_s7 + $0x1bb0] sm:$0xff]  ;;  %2231 = vst [vmem:[%s11237_s8 + $0xdc8] sm:$0xff] %v2230_v57 }
  0xf7   : > { %2233 = vst [vmem:[%s11237_s8 + $0xdd0] sm:$0xff] %v2232_v58  ;;  %2235 = vst [vmem:[%s11237_s8 + $0xdd8] sm:$0xff] %v2234_v59  ;;  %v2236_v60 = vld [vmem:[%s11232_s7 + $0x1bc0] sm:$0xff]  ;;  %v2238_v61 = vld [vmem:[%s11232_s7 + $0x1bd0] sm:$0xff] }
  0xf8   : > { %v2240_v62 = vld [vmem:[%s11232_s7 + $0x1be0] sm:$0xff]  ;;  %2237 = vst [vmem:[%s11237_s8 + $0xde0] sm:$0xff] %v2236_v60  ;;  %2239 = vst [vmem:[%s11237_s8 + $0xde8] sm:$0xff] %v2238_v61  ;;  %v2242_v63 = vld [vmem:[%s11232_s7 + $0x1bf0] sm:$0xff] }
  0xf9   : > { %2241 = vst [vmem:[%s11237_s8 + $0xdf0] sm:$0xff] %v2240_v62  ;;  %v2244_v0 = vld [vmem:[%s11232_s7 + $0x1c00] sm:$0xff]  ;;  %v2246_v1 = vld [vmem:[%s11232_s7 + $0x1c10] sm:$0xff]  ;;  %2243 = vst [vmem:[%s11237_s8 + $0xdf8] sm:$0xff] %v2242_v63 }
  0xfa   : > { %2245 = vst [vmem:[%s11237_s8 + $0xe00] sm:$0xff] %v2244_v0  ;;  %2247 = vst [vmem:[%s11237_s8 + $0xe08] sm:$0xff] %v2246_v1  ;;  %v2248_v2 = vld [vmem:[%s11232_s7 + $0x1c20] sm:$0xff]  ;;  %v2250_v3 = vld [vmem:[%s11232_s7 + $0x1c30] sm:$0xff] }
  0xfb   : > { %v2252_v4 = vld [vmem:[%s11232_s7 + $0x1c40] sm:$0xff]  ;;  %2249 = vst [vmem:[%s11237_s8 + $0xe10] sm:$0xff] %v2248_v2  ;;  %2251 = vst [vmem:[%s11237_s8 + $0xe18] sm:$0xff] %v2250_v3  ;;  %v2254_v5 = vld [vmem:[%s11232_s7 + $0x1c50] sm:$0xff] }
  0xfc   : > { %2253 = vst [vmem:[%s11237_s8 + $0xe20] sm:$0xff] %v2252_v4  ;;  %v2256_v6 = vld [vmem:[%s11232_s7 + $0x1c60] sm:$0xff]  ;;  %v2258_v7 = vld [vmem:[%s11232_s7 + $0x1c70] sm:$0xff]  ;;  %2255 = vst [vmem:[%s11237_s8 + $0xe28] sm:$0xff] %v2254_v5 }
  0xfd   : > { %2257 = vst [vmem:[%s11237_s8 + $0xe30] sm:$0xff] %v2256_v6  ;;  %2259 = vst [vmem:[%s11237_s8 + $0xe38] sm:$0xff] %v2258_v7  ;;  %v2260_v8 = vld [vmem:[%s11232_s7 + $0x1c80] sm:$0xff]  ;;  %v2262_v9 = vld [vmem:[%s11232_s7 + $0x1c90] sm:$0xff] }
  0xfe   : > { %v2264_v10 = vld [vmem:[%s11232_s7 + $0x1ca0] sm:$0xff]  ;;  %2261 = vst [vmem:[%s11237_s8 + $0xe40] sm:$0xff] %v2260_v8  ;;  %2263 = vst [vmem:[%s11237_s8 + $0xe48] sm:$0xff] %v2262_v9  ;;  %v2266_v11 = vld [vmem:[%s11232_s7 + $0x1cb0] sm:$0xff] }
  0xff   : > { %2265 = vst [vmem:[%s11237_s8 + $0xe50] sm:$0xff] %v2264_v10  ;;  %v2268_v12 = vld [vmem:[%s11232_s7 + $0x1cc0] sm:$0xff]  ;;  %v2270_v13 = vld [vmem:[%s11232_s7 + $0x1cd0] sm:$0xff]  ;;  %2267 = vst [vmem:[%s11237_s8 + $0xe58] sm:$0xff] %v2266_v11 }
 0x100   : > { %2269 = vst [vmem:[%s11237_s8 + $0xe60] sm:$0xff] %v2268_v12  ;;  %2271 = vst [vmem:[%s11237_s8 + $0xe68] sm:$0xff] %v2270_v13  ;;  %v2272_v14 = vld [vmem:[%s11232_s7 + $0x1ce0] sm:$0xff]  ;;  %v2274_v15 = vld [vmem:[%s11232_s7 + $0x1cf0] sm:$0xff] }
 0x101   : > { %v2276_v16 = vld [vmem:[%s11232_s7 + $0x1d00] sm:$0xff]  ;;  %2273 = vst [vmem:[%s11237_s8 + $0xe70] sm:$0xff] %v2272_v14  ;;  %2275 = vst [vmem:[%s11237_s8 + $0xe78] sm:$0xff] %v2274_v15  ;;  %v2278_v17 = vld [vmem:[%s11232_s7 + $0x1d10] sm:$0xff] }
 0x102   : > { %2277 = vst [vmem:[%s11237_s8 + $0xe80] sm:$0xff] %v2276_v16  ;;  %v2280_v18 = vld [vmem:[%s11232_s7 + $0x1d20] sm:$0xff]  ;;  %v2282_v19 = vld [vmem:[%s11232_s7 + $0x1d30] sm:$0xff]  ;;  %2279 = vst [vmem:[%s11237_s8 + $0xe88] sm:$0xff] %v2278_v17 }
 0x103   : > { %2281 = vst [vmem:[%s11237_s8 + $0xe90] sm:$0xff] %v2280_v18  ;;  %2283 = vst [vmem:[%s11237_s8 + $0xe98] sm:$0xff] %v2282_v19  ;;  %v2284_v20 = vld [vmem:[%s11232_s7 + $0x1d40] sm:$0xff]  ;;  %v2286_v21 = vld [vmem:[%s11232_s7 + $0x1d50] sm:$0xff] }
 0x104   : > { %v2288_v22 = vld [vmem:[%s11232_s7 + $0x1d60] sm:$0xff]  ;;  %2285 = vst [vmem:[%s11237_s8 + $0xea0] sm:$0xff] %v2284_v20  ;;  %2287 = vst [vmem:[%s11237_s8 + $0xea8] sm:$0xff] %v2286_v21  ;;  %v2290_v23 = vld [vmem:[%s11232_s7 + $0x1d70] sm:$0xff] }
 0x105   : > { %2289 = vst [vmem:[%s11237_s8 + $0xeb0] sm:$0xff] %v2288_v22  ;;  %v2292_v24 = vld [vmem:[%s11232_s7 + $0x1d80] sm:$0xff]  ;;  %v2294_v25 = vld [vmem:[%s11232_s7 + $0x1d90] sm:$0xff]  ;;  %2291 = vst [vmem:[%s11237_s8 + $0xeb8] sm:$0xff] %v2290_v23 }
 0x106   : > { %2293 = vst [vmem:[%s11237_s8 + $0xec0] sm:$0xff] %v2292_v24  ;;  %2295 = vst [vmem:[%s11237_s8 + $0xec8] sm:$0xff] %v2294_v25  ;;  %v2296_v26 = vld [vmem:[%s11232_s7 + $0x1da0] sm:$0xff]  ;;  %v2298_v27 = vld [vmem:[%s11232_s7 + $0x1db0] sm:$0xff] }
 0x107   : > { %v2300_v28 = vld [vmem:[%s11232_s7 + $0x1dc0] sm:$0xff]  ;;  %2297 = vst [vmem:[%s11237_s8 + $0xed0] sm:$0xff] %v2296_v26  ;;  %2299 = vst [vmem:[%s11237_s8 + $0xed8] sm:$0xff] %v2298_v27  ;;  %v2302_v29 = vld [vmem:[%s11232_s7 + $0x1dd0] sm:$0xff] }
 0x108   : > { %2301 = vst [vmem:[%s11237_s8 + $0xee0] sm:$0xff] %v2300_v28  ;;  %v2304_v30 = vld [vmem:[%s11232_s7 + $0x1de0] sm:$0xff]  ;;  %v2306_v31 = vld [vmem:[%s11232_s7 + $0x1df0] sm:$0xff]  ;;  %2303 = vst [vmem:[%s11237_s8 + $0xee8] sm:$0xff] %v2302_v29 }
 0x109   : > { %2305 = vst [vmem:[%s11237_s8 + $0xef0] sm:$0xff] %v2304_v30  ;;  %2307 = vst [vmem:[%s11237_s8 + $0xef8] sm:$0xff] %v2306_v31  ;;  %v2308_v32 = vld [vmem:[%s11232_s7 + $0x1e00] sm:$0xff]  ;;  %v2310_v33 = vld [vmem:[%s11232_s7 + $0x1e10] sm:$0xff] }
 0x10a   : > { %v2312_v34 = vld [vmem:[%s11232_s7 + $0x1e20] sm:$0xff]  ;;  %2309 = vst [vmem:[%s11237_s8 + $0xf00] sm:$0xff] %v2308_v32  ;;  %2311 = vst [vmem:[%s11237_s8 + $0xf08] sm:$0xff] %v2310_v33  ;;  %v2314_v35 = vld [vmem:[%s11232_s7 + $0x1e30] sm:$0xff] }
 0x10b   : > { %2313 = vst [vmem:[%s11237_s8 + $0xf10] sm:$0xff] %v2312_v34  ;;  %v2316_v36 = vld [vmem:[%s11232_s7 + $0x1e40] sm:$0xff]  ;;  %v2318_v37 = vld [vmem:[%s11232_s7 + $0x1e50] sm:$0xff]  ;;  %2315 = vst [vmem:[%s11237_s8 + $0xf18] sm:$0xff] %v2314_v35 }
 0x10c   : > { %2317 = vst [vmem:[%s11237_s8 + $0xf20] sm:$0xff] %v2316_v36  ;;  %2319 = vst [vmem:[%s11237_s8 + $0xf28] sm:$0xff] %v2318_v37  ;;  %v2320_v38 = vld [vmem:[%s11232_s7 + $0x1e60] sm:$0xff]  ;;  %v2322_v39 = vld [vmem:[%s11232_s7 + $0x1e70] sm:$0xff] }
 0x10d   : > { %v2324_v40 = vld [vmem:[%s11232_s7 + $0x1e80] sm:$0xff]  ;;  %2321 = vst [vmem:[%s11237_s8 + $0xf30] sm:$0xff] %v2320_v38  ;;  %2323 = vst [vmem:[%s11237_s8 + $0xf38] sm:$0xff] %v2322_v39  ;;  %v2326_v41 = vld [vmem:[%s11232_s7 + $0x1e90] sm:$0xff] }
 0x10e   : > { %2325 = vst [vmem:[%s11237_s8 + $0xf40] sm:$0xff] %v2324_v40  ;;  %v2328_v42 = vld [vmem:[%s11232_s7 + $0x1ea0] sm:$0xff]  ;;  %v2330_v43 = vld [vmem:[%s11232_s7 + $0x1eb0] sm:$0xff]  ;;  %2327 = vst [vmem:[%s11237_s8 + $0xf48] sm:$0xff] %v2326_v41 }
 0x10f   : > { %2329 = vst [vmem:[%s11237_s8 + $0xf50] sm:$0xff] %v2328_v42  ;;  %2331 = vst [vmem:[%s11237_s8 + $0xf58] sm:$0xff] %v2330_v43  ;;  %v2332_v44 = vld [vmem:[%s11232_s7 + $0x1ec0] sm:$0xff]  ;;  %v2334_v45 = vld [vmem:[%s11232_s7 + $0x1ed0] sm:$0xff] }
 0x110   : > { %v2336_v46 = vld [vmem:[%s11232_s7 + $0x1ee0] sm:$0xff]  ;;  %2333 = vst [vmem:[%s11237_s8 + $0xf60] sm:$0xff] %v2332_v44  ;;  %2335 = vst [vmem:[%s11237_s8 + $0xf68] sm:$0xff] %v2334_v45  ;;  %v2338_v47 = vld [vmem:[%s11232_s7 + $0x1ef0] sm:$0xff] }
 0x111   : > { %2337 = vst [vmem:[%s11237_s8 + $0xf70] sm:$0xff] %v2336_v46  ;;  %v2340_v48 = vld [vmem:[%s11232_s7 + $0x1f00] sm:$0xff]  ;;  %v2342_v49 = vld [vmem:[%s11232_s7 + $0x1f10] sm:$0xff]  ;;  %2339 = vst [vmem:[%s11237_s8 + $0xf78] sm:$0xff] %v2338_v47 }
 0x112   : > { %2341 = vst [vmem:[%s11237_s8 + $0xf80] sm:$0xff] %v2340_v48  ;;  %2343 = vst [vmem:[%s11237_s8 + $0xf88] sm:$0xff] %v2342_v49  ;;  %v2344_v50 = vld [vmem:[%s11232_s7 + $0x1f20] sm:$0xff]  ;;  %v2346_v51 = vld [vmem:[%s11232_s7 + $0x1f30] sm:$0xff] }
 0x113   : > { %v2348_v52 = vld [vmem:[%s11232_s7 + $0x1f40] sm:$0xff]  ;;  %2345 = vst [vmem:[%s11237_s8 + $0xf90] sm:$0xff] %v2344_v50  ;;  %2347 = vst [vmem:[%s11237_s8 + $0xf98] sm:$0xff] %v2346_v51  ;;  %v2350_v53 = vld [vmem:[%s11232_s7 + $0x1f50] sm:$0xff] }
 0x114   : > { %2349 = vst [vmem:[%s11237_s8 + $0xfa0] sm:$0xff] %v2348_v52  ;;  %v2352_v54 = vld [vmem:[%s11232_s7 + $0x1f60] sm:$0xff]  ;;  %v2354_v55 = vld [vmem:[%s11232_s7 + $0x1f70] sm:$0xff]  ;;  %2351 = vst [vmem:[%s11237_s8 + $0xfa8] sm:$0xff] %v2350_v53 }
 0x115   : > { %2353 = vst [vmem:[%s11237_s8 + $0xfb0] sm:$0xff] %v2352_v54  ;;  %2355 = vst [vmem:[%s11237_s8 + $0xfb8] sm:$0xff] %v2354_v55  ;;  %v2356_v56 = vld [vmem:[%s11232_s7 + $0x1f80] sm:$0xff]  ;;  %v2358_v57 = vld [vmem:[%s11232_s7 + $0x1f90] sm:$0xff] }
 0x116   : > { %v2360_v58 = vld [vmem:[%s11232_s7 + $0x1fa0] sm:$0xff]  ;;  %2357 = vst [vmem:[%s11237_s8 + $0xfc0] sm:$0xff] %v2356_v56  ;;  %2359 = vst [vmem:[%s11237_s8 + $0xfc8] sm:$0xff] %v2358_v57  ;;  %v2362_v59 = vld [vmem:[%s11232_s7 + $0x1fb0] sm:$0xff] }
 0x117   : > { %2361 = vst [vmem:[%s11237_s8 + $0xfd0] sm:$0xff] %v2360_v58  ;;  %v2364_v60 = vld [vmem:[%s11232_s7 + $0x1fc0] sm:$0xff]  ;;  %v2366_v61 = vld [vmem:[%s11232_s7 + $0x1fd0] sm:$0xff]  ;;  %2363 = vst [vmem:[%s11237_s8 + $0xfd8] sm:$0xff] %v2362_v59 }
 0x118   : > { %2365 = vst [vmem:[%s11237_s8 + $0xfe0] sm:$0xff] %v2364_v60  ;;  %2367 = vst [vmem:[%s11237_s8 + $0xfe8] sm:$0xff] %v2366_v61  ;;  %v2368_v62 = vld [vmem:[%s11232_s7 + $0x1fe0] sm:$0xff]  ;;  %v2370_v63 = vld [vmem:[%s11232_s7 + $0x1ff0] sm:$0xff] }
 0x119   : > { %v2372_v0 = vld [vmem:[%s11232_s7 + $0x2000] sm:$0xff]  ;;  %2369 = vst [vmem:[%s11237_s8 + $0xff0] sm:$0xff] %v2368_v62  ;;  %2371 = vst [vmem:[%s11237_s8 + $0xff8] sm:$0xff] %v2370_v63  ;;  %v2374_v1 = vld [vmem:[%s11232_s7 + $0x2010] sm:$0xff] }
 0x11a   : > { %2373 = vst [vmem:[%s11237_s8 + $0x1000] sm:$0xff] %v2372_v0  ;;  %v2376_v2 = vld [vmem:[%s11232_s7 + $0x2020] sm:$0xff]  ;;  %v2378_v3 = vld [vmem:[%s11232_s7 + $0x2030] sm:$0xff]  ;;  %2375 = vst [vmem:[%s11237_s8 + $0x1008] sm:$0xff] %v2374_v1 }
 0x11b   : > { %2377 = vst [vmem:[%s11237_s8 + $0x1010] sm:$0xff] %v2376_v2  ;;  %2379 = vst [vmem:[%s11237_s8 + $0x1018] sm:$0xff] %v2378_v3  ;;  %v2380_v4 = vld [vmem:[%s11232_s7 + $0x2040] sm:$0xff]  ;;  %v2382_v5 = vld [vmem:[%s11232_s7 + $0x2050] sm:$0xff] }
 0x11c   : > { %v2384_v6 = vld [vmem:[%s11232_s7 + $0x2060] sm:$0xff]  ;;  %2381 = vst [vmem:[%s11237_s8 + $0x1020] sm:$0xff] %v2380_v4  ;;  %2383 = vst [vmem:[%s11237_s8 + $0x1028] sm:$0xff] %v2382_v5  ;;  %v2386_v7 = vld [vmem:[%s11232_s7 + $0x2070] sm:$0xff] }
 0x11d   : > { %2385 = vst [vmem:[%s11237_s8 + $0x1030] sm:$0xff] %v2384_v6  ;;  %v2388_v8 = vld [vmem:[%s11232_s7 + $0x2080] sm:$0xff]  ;;  %v2390_v9 = vld [vmem:[%s11232_s7 + $0x2090] sm:$0xff]  ;;  %2387 = vst [vmem:[%s11237_s8 + $0x1038] sm:$0xff] %v2386_v7 }
 0x11e   : > { %2389 = vst [vmem:[%s11237_s8 + $0x1040] sm:$0xff] %v2388_v8  ;;  %2391 = vst [vmem:[%s11237_s8 + $0x1048] sm:$0xff] %v2390_v9  ;;  %v2392_v10 = vld [vmem:[%s11232_s7 + $0x20a0] sm:$0xff]  ;;  %v2394_v11 = vld [vmem:[%s11232_s7 + $0x20b0] sm:$0xff] }
 0x11f   : > { %v2396_v12 = vld [vmem:[%s11232_s7 + $0x20c0] sm:$0xff]  ;;  %2393 = vst [vmem:[%s11237_s8 + $0x1050] sm:$0xff] %v2392_v10  ;;  %2395 = vst [vmem:[%s11237_s8 + $0x1058] sm:$0xff] %v2394_v11  ;;  %v2398_v13 = vld [vmem:[%s11232_s7 + $0x20d0] sm:$0xff] }
 0x120   : > { %2397 = vst [vmem:[%s11237_s8 + $0x1060] sm:$0xff] %v2396_v12  ;;  %v2400_v14 = vld [vmem:[%s11232_s7 + $0x20e0] sm:$0xff]  ;;  %v2402_v15 = vld [vmem:[%s11232_s7 + $0x20f0] sm:$0xff]  ;;  %2399 = vst [vmem:[%s11237_s8 + $0x1068] sm:$0xff] %v2398_v13 }
 0x121   : > { %2401 = vst [vmem:[%s11237_s8 + $0x1070] sm:$0xff] %v2400_v14  ;;  %2403 = vst [vmem:[%s11237_s8 + $0x1078] sm:$0xff] %v2402_v15  ;;  %v2404_v16 = vld [vmem:[%s11232_s7 + $0x2100] sm:$0xff]  ;;  %v2406_v17 = vld [vmem:[%s11232_s7 + $0x2110] sm:$0xff] }
 0x122   : > { %v2408_v18 = vld [vmem:[%s11232_s7 + $0x2120] sm:$0xff]  ;;  %2405 = vst [vmem:[%s11237_s8 + $0x1080] sm:$0xff] %v2404_v16  ;;  %2407 = vst [vmem:[%s11237_s8 + $0x1088] sm:$0xff] %v2406_v17  ;;  %v2410_v19 = vld [vmem:[%s11232_s7 + $0x2130] sm:$0xff] }
 0x123   : > { %2409 = vst [vmem:[%s11237_s8 + $0x1090] sm:$0xff] %v2408_v18  ;;  %v2412_v20 = vld [vmem:[%s11232_s7 + $0x2140] sm:$0xff]  ;;  %v2414_v21 = vld [vmem:[%s11232_s7 + $0x2150] sm:$0xff]  ;;  %2411 = vst [vmem:[%s11237_s8 + $0x1098] sm:$0xff] %v2410_v19 }
 0x124   : > { %2413 = vst [vmem:[%s11237_s8 + $0x10a0] sm:$0xff] %v2412_v20  ;;  %2415 = vst [vmem:[%s11237_s8 + $0x10a8] sm:$0xff] %v2414_v21  ;;  %v2416_v22 = vld [vmem:[%s11232_s7 + $0x2160] sm:$0xff]  ;;  %v2418_v23 = vld [vmem:[%s11232_s7 + $0x2170] sm:$0xff] }
 0x125   : > { %v2420_v24 = vld [vmem:[%s11232_s7 + $0x2180] sm:$0xff]  ;;  %2417 = vst [vmem:[%s11237_s8 + $0x10b0] sm:$0xff] %v2416_v22  ;;  %2419 = vst [vmem:[%s11237_s8 + $0x10b8] sm:$0xff] %v2418_v23  ;;  %v2422_v25 = vld [vmem:[%s11232_s7 + $0x2190] sm:$0xff] }
 0x126   : > { %2421 = vst [vmem:[%s11237_s8 + $0x10c0] sm:$0xff] %v2420_v24  ;;  %v2424_v26 = vld [vmem:[%s11232_s7 + $0x21a0] sm:$0xff]  ;;  %v2426_v27 = vld [vmem:[%s11232_s7 + $0x21b0] sm:$0xff]  ;;  %2423 = vst [vmem:[%s11237_s8 + $0x10c8] sm:$0xff] %v2422_v25 }
 0x127   : > { %2425 = vst [vmem:[%s11237_s8 + $0x10d0] sm:$0xff] %v2424_v26  ;;  %2427 = vst [vmem:[%s11237_s8 + $0x10d8] sm:$0xff] %v2426_v27  ;;  %v2428_v28 = vld [vmem:[%s11232_s7 + $0x21c0] sm:$0xff]  ;;  %v2430_v29 = vld [vmem:[%s11232_s7 + $0x21d0] sm:$0xff] }
 0x128   : > { %v2432_v30 = vld [vmem:[%s11232_s7 + $0x21e0] sm:$0xff]  ;;  %2429 = vst [vmem:[%s11237_s8 + $0x10e0] sm:$0xff] %v2428_v28  ;;  %2431 = vst [vmem:[%s11237_s8 + $0x10e8] sm:$0xff] %v2430_v29  ;;  %v2434_v31 = vld [vmem:[%s11232_s7 + $0x21f0] sm:$0xff] }
 0x129   : > { %2433 = vst [vmem:[%s11237_s8 + $0x10f0] sm:$0xff] %v2432_v30  ;;  %v2436_v32 = vld [vmem:[%s11232_s7 + $0x2200] sm:$0xff]  ;;  %v2438_v33 = vld [vmem:[%s11232_s7 + $0x2210] sm:$0xff]  ;;  %2435 = vst [vmem:[%s11237_s8 + $0x10f8] sm:$0xff] %v2434_v31 }
 0x12a   : > { %2437 = vst [vmem:[%s11237_s8 + $0x1100] sm:$0xff] %v2436_v32  ;;  %2439 = vst [vmem:[%s11237_s8 + $0x1108] sm:$0xff] %v2438_v33  ;;  %v2440_v34 = vld [vmem:[%s11232_s7 + $0x2220] sm:$0xff]  ;;  %v2442_v35 = vld [vmem:[%s11232_s7 + $0x2230] sm:$0xff] }
 0x12b   : > { %v2444_v36 = vld [vmem:[%s11232_s7 + $0x2240] sm:$0xff]  ;;  %2441 = vst [vmem:[%s11237_s8 + $0x1110] sm:$0xff] %v2440_v34  ;;  %2443 = vst [vmem:[%s11237_s8 + $0x1118] sm:$0xff] %v2442_v35  ;;  %v2446_v37 = vld [vmem:[%s11232_s7 + $0x2250] sm:$0xff] }
 0x12c   : > { %2445 = vst [vmem:[%s11237_s8 + $0x1120] sm:$0xff] %v2444_v36  ;;  %v2448_v38 = vld [vmem:[%s11232_s7 + $0x2260] sm:$0xff]  ;;  %v2450_v39 = vld [vmem:[%s11232_s7 + $0x2270] sm:$0xff]  ;;  %2447 = vst [vmem:[%s11237_s8 + $0x1128] sm:$0xff] %v2446_v37 }
 0x12d   : > { %2449 = vst [vmem:[%s11237_s8 + $0x1130] sm:$0xff] %v2448_v38  ;;  %2451 = vst [vmem:[%s11237_s8 + $0x1138] sm:$0xff] %v2450_v39  ;;  %v2452_v40 = vld [vmem:[%s11232_s7 + $0x2280] sm:$0xff]  ;;  %v2454_v41 = vld [vmem:[%s11232_s7 + $0x2290] sm:$0xff] }
 0x12e   : > { %v2456_v42 = vld [vmem:[%s11232_s7 + $0x22a0] sm:$0xff]  ;;  %2453 = vst [vmem:[%s11237_s8 + $0x1140] sm:$0xff] %v2452_v40  ;;  %2455 = vst [vmem:[%s11237_s8 + $0x1148] sm:$0xff] %v2454_v41  ;;  %v2458_v43 = vld [vmem:[%s11232_s7 + $0x22b0] sm:$0xff] }
 0x12f   : > { %2457 = vst [vmem:[%s11237_s8 + $0x1150] sm:$0xff] %v2456_v42  ;;  %v2460_v44 = vld [vmem:[%s11232_s7 + $0x22c0] sm:$0xff]  ;;  %v2462_v45 = vld [vmem:[%s11232_s7 + $0x22d0] sm:$0xff]  ;;  %2459 = vst [vmem:[%s11237_s8 + $0x1158] sm:$0xff] %v2458_v43 }
 0x130   : > { %2461 = vst [vmem:[%s11237_s8 + $0x1160] sm:$0xff] %v2460_v44  ;;  %2463 = vst [vmem:[%s11237_s8 + $0x1168] sm:$0xff] %v2462_v45  ;;  %v2464_v46 = vld [vmem:[%s11232_s7 + $0x22e0] sm:$0xff]  ;;  %v2466_v47 = vld [vmem:[%s11232_s7 + $0x22f0] sm:$0xff] }
 0x131   : > { %v2468_v48 = vld [vmem:[%s11232_s7 + $0x2300] sm:$0xff]  ;;  %2465 = vst [vmem:[%s11237_s8 + $0x1170] sm:$0xff] %v2464_v46  ;;  %2467 = vst [vmem:[%s11237_s8 + $0x1178] sm:$0xff] %v2466_v47  ;;  %v2470_v49 = vld [vmem:[%s11232_s7 + $0x2310] sm:$0xff] }
 0x132   : > { %2469 = vst [vmem:[%s11237_s8 + $0x1180] sm:$0xff] %v2468_v48  ;;  %v2472_v50 = vld [vmem:[%s11232_s7 + $0x2320] sm:$0xff]  ;;  %v2474_v51 = vld [vmem:[%s11232_s7 + $0x2330] sm:$0xff]  ;;  %2471 = vst [vmem:[%s11237_s8 + $0x1188] sm:$0xff] %v2470_v49 }
 0x133   : > { %2473 = vst [vmem:[%s11237_s8 + $0x1190] sm:$0xff] %v2472_v50  ;;  %2475 = vst [vmem:[%s11237_s8 + $0x1198] sm:$0xff] %v2474_v51  ;;  %v2476_v52 = vld [vmem:[%s11232_s7 + $0x2340] sm:$0xff]  ;;  %v2478_v53 = vld [vmem:[%s11232_s7 + $0x2350] sm:$0xff] }
 0x134   : > { %v2480_v54 = vld [vmem:[%s11232_s7 + $0x2360] sm:$0xff]  ;;  %2477 = vst [vmem:[%s11237_s8 + $0x11a0] sm:$0xff] %v2476_v52  ;;  %2479 = vst [vmem:[%s11237_s8 + $0x11a8] sm:$0xff] %v2478_v53  ;;  %v2482_v55 = vld [vmem:[%s11232_s7 + $0x2370] sm:$0xff] }
 0x135   : > { %2481 = vst [vmem:[%s11237_s8 + $0x11b0] sm:$0xff] %v2480_v54  ;;  %v2484_v56 = vld [vmem:[%s11232_s7 + $0x2380] sm:$0xff]  ;;  %v2486_v57 = vld [vmem:[%s11232_s7 + $0x2390] sm:$0xff]  ;;  %2483 = vst [vmem:[%s11237_s8 + $0x11b8] sm:$0xff] %v2482_v55 }
 0x136   : > { %2485 = vst [vmem:[%s11237_s8 + $0x11c0] sm:$0xff] %v2484_v56  ;;  %2487 = vst [vmem:[%s11237_s8 + $0x11c8] sm:$0xff] %v2486_v57  ;;  %v2488_v58 = vld [vmem:[%s11232_s7 + $0x23a0] sm:$0xff]  ;;  %v2490_v59 = vld [vmem:[%s11232_s7 + $0x23b0] sm:$0xff] }
 0x137   : > { %v2492_v60 = vld [vmem:[%s11232_s7 + $0x23c0] sm:$0xff]  ;;  %2489 = vst [vmem:[%s11237_s8 + $0x11d0] sm:$0xff] %v2488_v58  ;;  %2491 = vst [vmem:[%s11237_s8 + $0x11d8] sm:$0xff] %v2490_v59  ;;  %v2494_v61 = vld [vmem:[%s11232_s7 + $0x23d0] sm:$0xff] }
 0x138   : > { %2493 = vst [vmem:[%s11237_s8 + $0x11e0] sm:$0xff] %v2492_v60  ;;  %v2496_v62 = vld [vmem:[%s11232_s7 + $0x23e0] sm:$0xff]  ;;  %v2498_v63 = vld [vmem:[%s11232_s7 + $0x23f0] sm:$0xff]  ;;  %2495 = vst [vmem:[%s11237_s8 + $0x11e8] sm:$0xff] %v2494_v61 }
 0x139   : > { %2497 = vst [vmem:[%s11237_s8 + $0x11f0] sm:$0xff] %v2496_v62  ;;  %2499 = vst [vmem:[%s11237_s8 + $0x11f8] sm:$0xff] %v2498_v63 }
 0x13a PF: > { %p9507_p7 = scmp.ge.s32.totalorder %s11148_s18, 1  ;;  %p4852_p8 = scmp.lt.s32.totalorder %s11148_s18, 5 }
 0x13c   : > { %p4853_p9 = pnand %p9507_p7, %p4852_p8 }
 0x13d   : > { %s4859_s9 = sand.u32 (!%p4853_p9), 1, %s11124_s12   ;;  %s4891_s10 = smul.u32 (!%p4853_p9), 36, %s11132_s14 }
 0x13e   : > { %4856 = sbr.rel (%p4853_p9) target bundleno = 1147 (0x47b), region = 80  ;;  %s9509_s21 = sshll.u32 (!%p4853_p9), %s11136_s15, 1 }
 0x13f   : > { %s10160_s11 = smul.u32 (!%p4853_p9), 4608, %s4859_s9  ;;  %p4892_p10 = scmp.lt.s32.totalorder (!%p4853_p9), %s4891_s10, 71 }
 0x140   : > { %p4900_p11 = scmp.lt.s32.totalorder (!%p4853_p9), %s9509_s21, 3  ;;  %p9512_p12 = scmp.ne.s32.totalorder (!%p4853_p9), %s11132_s14, 0 }
 0x141   : > { %s12410_s5 = scalar_lea.vmem (!%p4853_p9), [#allocation3], %s10160_s11 }
 0x145   : > { %s13207_s10 = smov (!%p4892_p10, %s4891_s10), 71  ;;  %s13209_s21 = smov (!%p4900_p11, %s9509_s21), 3 }
 0x146   : > { %s9508_s22 = sshll.u32 %s13207_s10, 1  ;;  %s4902_s12 = scalar_lea.vmem %s13192_s2, %s13209_s21  ;;  %v11150_v0 = vmov (!%p9512_p12), 0.0  }
 0x147   : > { %s12398_s26 = scalar_lea.vmem %s13190_s0, %s9508_s22  ;;  %s9511_s29 = sshll.u32 %s13209_s21, 1  ;;  %4914 = vst [vmem:[#allocation2] sm:$0xf] (!%p9512_p12), %v11150_v0 }
 0x148   : > { %s12408_s4 = scalar_lea.vmem %s13193_s3, %s9511_s29  ;;  %4913 = sbr.rel (%p9512_p12) target bundleno = 335 (0x14f), region = 88 }
 0x14f PF: > { %v10219_v1 = vld [vmem:[%s12410_s5 + $0x4] ss:$8 sps:$4 sm:$0xff]   ;;  %v10223_v3 = vld [vmem:[%s12410_s5] ss:$8 sps:$4 sm:$0xff]   ;;  %v10225_v5 = vld [vmem:[%s12410_s5 + $0x14] ss:$8 sps:$4 sm:$0xff]   ;;  %v4938_v39 = vlaneseq }
 0x150   : > { %v10221_v2 = vld [vmem:[%s12410_s5 + $0x904] ss:$8 sps:$4 sm:$0xff]   ;;  %8615 = vmatprep.subr.bf16.mxu1 %v10219_v1  ;;  %v10224_v4 = vld [vmem:[%s12410_s5 + $0x900] ss:$8 sps:$4 sm:$0xff]   ;;  %v10227_v6 = vld [vmem:[%s12410_s5 + $0x914] ss:$8 sps:$4 sm:$0xff]  }
 0x151   : > { %8984 = vmatprep.subr.bf16.mxu0 %v10221_v2  ;;  %8616 = vmatpush1.bf16.msra.mxu1 %v10223_v3  ;;  %v10229_v7 = vld [vmem:[%s12410_s5 + $0x10] ss:$8 sps:$4 sm:$0xff]   ;;  %v10231_v9 = vld [vmem:[%s12410_s5 + $0x24] ss:$8 sps:$4 sm:$0xff]   ;;  %v10235_v11 = vld [vmem:[%s12410_s5 + $0x20] ss:$8 sps:$4 sm:$0xff]  }
 0x152   : > { %8985 = vmatpush1.bf16.msra.mxu0 %v10224_v4  ;;  %8617 = vmatprep.subr.bf16.mxu1 %v10225_v5  ;;  %v10230_v8 = vld [vmem:[%s12410_s5 + $0x910] ss:$8 sps:$4 sm:$0xff]   ;;  %v10233_v10 = vld [vmem:[%s12410_s5 + $0x924] ss:$8 sps:$4 sm:$0xff]   ;;  %v10236_v12 = vld [vmem:[%s12410_s5 + $0x920] ss:$8 sps:$4 sm:$0xff]  }
 0x153   : > { %8986 = vmatprep.subr.bf16.mxu0 %v10227_v6  ;;  %v10237_v13 = vld [vmem:[%s12410_s5 + $0x34] ss:$8 sps:$4 sm:$0xff]   ;;  %v10241_v15 = vld [vmem:[%s12410_s5 + $0x30] ss:$8 sps:$4 sm:$0xff]   ;;  %v10243_v17 = vld [vmem:[%s12410_s5 + $0x44] ss:$8 sps:$4 sm:$0xff]  }
 0x154   : > { %v10239_v14 = vld [vmem:[%s12410_s5 + $0x934] ss:$8 sps:$4 sm:$0xff]   ;;  %v10242_v16 = vld [vmem:[%s12410_s5 + $0x930] ss:$8 sps:$4 sm:$0xff]   ;;  %v10245_v18 = vld [vmem:[%s12410_s5 + $0x944] ss:$8 sps:$4 sm:$0xff]  }
 0x155   : > { %8618 = vmatpush1.bf16.msra.mxu1 %v10229_v7  ;;  %v10247_v19 = vld [vmem:[%s12410_s5 + $0x40] ss:$8 sps:$4 sm:$0xff]   ;;  %v10249_v21 = vld [vmem:[%s12410_s5 + $0x54] ss:$8 sps:$4 sm:$0xff]   ;;  %v10253_v23 = vld [vmem:[%s12410_s5 + $0x50] ss:$8 sps:$4 sm:$0xff]  }
 0x156   : > { %8987 = vmatpush1.bf16.msra.mxu0 %v10230_v8  ;;  %8619 = vmatprep.subr.bf16.mxu1 %v10231_v9  ;;  %v10248_v20 = vld [vmem:[%s12410_s5 + $0x940] ss:$8 sps:$4 sm:$0xff]   ;;  %v10251_v22 = vld [vmem:[%s12410_s5 + $0x954] ss:$8 sps:$4 sm:$0xff]   ;;  %v10254_v24 = vld [vmem:[%s12410_s5 + $0x950] ss:$8 sps:$4 sm:$0xff]  }
 0x157   : > { %8988 = vmatprep.subr.bf16.mxu0 %v10233_v10  ;;  %v10255_v25 = vld [vmem:[%s12410_s5 + $0x64] ss:$8 sps:$4 sm:$0xff]   ;;  %v10259_v27 = vld [vmem:[%s12410_s5 + $0x60] ss:$8 sps:$4 sm:$0xff]   ;;  %v10261_v29 = vld [vmem:[%s12410_s5 + $0x74] ss:$8 sps:$4 sm:$0xff]  }
 0x158   : > { %v10257_v26 = vld [vmem:[%s12410_s5 + $0x964] ss:$8 sps:$4 sm:$0xff]   ;;  %v10260_v28 = vld [vmem:[%s12410_s5 + $0x960] ss:$8 sps:$4 sm:$0xff]   ;;  %v10263_v30 = vld [vmem:[%s12410_s5 + $0x974] ss:$8 sps:$4 sm:$0xff]  }
 0x159   : > { %8620 = vmatpush1.bf16.msra.mxu1 %v10235_v11  ;;  %v10265_v31 = vld [vmem:[%s12410_s5 + $0x70] ss:$8 sps:$4 sm:$0xff]   ;;  %v10267_v33 = vld [vmem:[%s12410_s5 + $0x84] ss:$8 sps:$4 sm:$0xff]   ;;  %v10271_v35 = vld [vmem:[%s12410_s5 + $0x80] ss:$8 sps:$4 sm:$0xff]  }
 0x15a   : > { %8989 = vmatpush1.bf16.msra.mxu0 %v10236_v12  ;;  %8621 = vmatprep.subr.bf16.mxu1 %v10237_v13  ;;  %v10266_v32 = vld [vmem:[%s12410_s5 + $0x970] ss:$8 sps:$4 sm:$0xff]   ;;  %v10269_v34 = vld [vmem:[%s12410_s5 + $0x984] ss:$8 sps:$4 sm:$0xff]   ;;  %v10272_v36 = vld [vmem:[%s12410_s5 + $0x980] ss:$8 sps:$4 sm:$0xff]  }
 0x15b   : > { %8990 = vmatprep.subr.bf16.mxu0 %v10239_v14  ;;  %v11151_v37 = vmov 1983009808   ;;  %v10273_v40 = vld [vmem:[%s12410_s5 + $0x94] ss:$8 sps:$4 sm:$0xff]   ;;  %v10277_v42 = vld [vmem:[%s12410_s5 + $0x90] ss:$8 sps:$4 sm:$0xff]  }
 0x15c   : > { %v4936_v38 = vunpack.c.l.s4 %v11151_v37  ;;  %v10275_v41 = vld [vmem:[%s12410_s5 + $0x994] ss:$8 sps:$4 sm:$0xff]   ;;  %v12452_v44 = vshrl.u32 %v4938_v39, 7  ;;  %v10278_v45 = vld [vmem:[%s12410_s5 + $0x990] ss:$8 sps:$4 sm:$0xff]   ;;  %p10089_p13 = scmp.ne.s32.totalorder %s11132_s14, 1 }
 0x15d   : > { %8622 = vmatpush1.bf16.msra.mxu1 %v10241_v15  ;;  %v10279_v46 = vld [vmem:[%s12410_s5 + $0xa4] ss:$8 sps:$4 sm:$0xff]   ;;  %v10283_v48 = vld [vmem:[%s12410_s5 + $0xa0] ss:$8 sps:$4 sm:$0xff]   ;;  %v10285_v51 = vld [vmem:[%s12410_s5 + $0xb4] ss:$8 sps:$4 sm:$0xff]  }
 0x15e   : > { %8991 = vmatpush1.bf16.msra.mxu0 %v10242_v16  ;;  %8623 = vmatprep.subr.bf16.mxu1 %v10243_v17  ;;  %v4937_v43 = vunpack.c.0.s8 %v4936_v38  ;;  %v10281_v47 = vld [vmem:[%s12410_s5 + $0x9a4] ss:$8 sps:$4 sm:$0xff]   ;;  %v10284_v49 = vld [vmem:[%s12410_s5 + $0x9a0] ss:$8 sps:$4 sm:$0xff]   ;;  %v10287_v52 = vld [vmem:[%s12410_s5 + $0x9b4] ss:$8 sps:$4 sm:$0xff]  }
 0x15f   : > { %8992 = vmatprep.subr.bf16.mxu0 %v10245_v18  ;;  %v4916_v53 = vld [vmem:[%s12398_s26] sm:$0xff]  ;;  %v10289_v54 = vld [vmem:[%s12410_s5 + $0xb0] ss:$8 sps:$4 sm:$0xff]   ;;  %v10291_v58 = vld [vmem:[%s12410_s5 + $0xc4] ss:$8 sps:$4 sm:$0xff]  }
 0x160   : > { %v12460_v50 = vsub.s32 %v4937_v43, %v12452_v44  ;;  %v10290_v56 = vld [vmem:[%s12410_s5 + $0x9b0] ss:$8 sps:$4 sm:$0xff]   ;;  %v4920_v57 = vld [vmem:[%s12398_s26 + $0x20] sm:$0xff]  ;;  %v10293_v59 = vld [vmem:[%s12410_s5 + $0x9c4] ss:$8 sps:$4 sm:$0xff]   ;;  %v4934_v10 = vcombine.high %v4916_v53, %v4916_v53 }
 0x161   : > { %8624 = vmatpush1.bf16.msra.mxu1 %v10247_v19  ;;  %v5002_v61 = vcombine.high %v4920_v57, %v4920_v57  ;;  %v10295_v0 = vld [vmem:[%s12410_s5 + $0xc0] ss:$8 sps:$4 sm:$0xff]   ;;  %v10297_v2 = vld [vmem:[%s12410_s5 + $0xd4] ss:$8 sps:$4 sm:$0xff]   ;;  %v10301_v6 = vld [vmem:[%s12410_s5 + $0xd0] ss:$8 sps:$4 sm:$0xff]  }
 0x162   : > { %8993 = vmatpush1.bf16.msra.mxu0 %v10248_v20  ;;  %8625 = vmatprep.subr.bf16.mxu1 %v10249_v21  ;;  %v12467_v55 = vrot.slane %v4916_v53, %v12460_v50  ;;  %v10296_v1 = vld [vmem:[%s12410_s5 + $0x9c0] ss:$8 sps:$4 sm:$0xff]   ;;  %v10299_v3 = vld [vmem:[%s12410_s5 + $0x9d4] ss:$8 sps:$4 sm:$0xff]   ;;  %v10302_v7 = vld [vmem:[%s12410_s5 + $0x9d0] ss:$8 sps:$4 sm:$0xff]   ;;  %v12489_v15 = vrot.slane %v4934_v10, %v12460_v50 }
 0x163   : > { %8994 = vmatprep.subr.bf16.mxu0 %v10251_v22  ;;  %v5016_v63 = vrot.slane %v5002_v61, %v12460_v50  ;;  %v10303_v8 = vld [vmem:[%s12410_s5 + $0xe4] ss:$8 sps:$4 sm:$0xff]   ;;  %v10307_v11 = vld [vmem:[%s12410_s5 + $0xe0] ss:$8 sps:$4 sm:$0xff]   ;;  %v10309_v13 = vld [vmem:[%s12410_s5 + $0xf4] ss:$8 sps:$4 sm:$0xff]  }
 0x164   : > { %v4949_v60 = vcombine.high %v12467_v55, %v12467_v55  ;;  %v10305_v9 = vld [vmem:[%s12410_s5 + $0x9e4] ss:$8 sps:$4 sm:$0xff]   ;;  %v10308_v12 = vld [vmem:[%s12410_s5 + $0x9e0] ss:$8 sps:$4 sm:$0xff]   ;;  %v10311_v14 = vld [vmem:[%s12410_s5 + $0x9f4] ss:$8 sps:$4 sm:$0xff]   ;;  %v4950_v20 = vcombine.high %v12489_v15, %v12489_v15  ;;  %v5123_v21 = vpack.c.bf16 %v12467_v55, %v12467_v55 }
 0x165   : > { %8626 = vmatpush1.bf16.msra.mxu1 %v10253_v23  ;;  %v5018_v4 = vcombine.high %v5016_v63, %v5016_v63  ;;  %v10313_v16 = vld [vmem:[%s12410_s5 + $0xf0] ss:$8 sps:$4 sm:$0xff]   ;;  %v10318_v18 = vld [vmem:[%s12410_s5 + $0x104] ss:$8 sps:$4 sm:$0xff]   ;;  %v5141_v22 = vpack.c.bf16 %v5016_v63, %v5016_v63  ;;  %v10316_v23 = vld [vmem:[%s12410_s5 + $0x100] ss:$8 sps:$4 sm:$0xff]  }
 0x166   : > { %8995 = vmatpush1.bf16.msra.mxu0 %v10254_v24  ;;  %8627 = vmatprep.subr.bf16.mxu1 %v10255_v25  ;;  %v5124_v62 = vpack.c.bf16 %v4949_v60, %v4949_v60  ;;  %v10314_v17 = vld [vmem:[%s12410_s5 + $0x9f0] ss:$8 sps:$4 sm:$0xff]   ;;  %v10322_v19 = vld [vmem:[%s12410_s5 + $0xa04] ss:$8 sps:$4 sm:$0xff]   ;;  %v10320_v24 = vld [vmem:[%s12410_s5 + $0xa00] ss:$8 sps:$4 sm:$0xff]  }
 0x167   : > { %8996 = vmatprep.subr.bf16.mxu0 %v10257_v26  ;;  %v5142_v5 = vpack.c.bf16 %v5018_v4, %v5018_v4  ;;  %v10325_v25 = vld [vmem:[%s12410_s5 + $0x114] ss:$8 sps:$4 sm:$0xff]   ;;  %v10338_v37 = vld [vmem:[%s12410_s5 + $0xa30] ss:$8 sps:$4 sm:$0xff]   ;;  %v10343_v38 = vld [vmem:[%s12410_s5 + $0x144] ss:$8 sps:$4 sm:$0xff]  }
 0x168   : > { %8647 = vmatprep.mubr.bf16.mxu1 %v5124_v62  ;;  %v10328_v26 = vld [vmem:[%s12410_s5 + $0xa14] ss:$8 sps:$4 sm:$0xff]   ;;  %v10346_v39 = vld [vmem:[%s12410_s5 + $0xa44] ss:$8 sps:$4 sm:$0xff]   ;;  %v10359_v57 = vld [vmem:[%s12410_s5 + $0x170] ss:$8 sps:$4 sm:$0xff]  }
 0x169   : > { %8628 = vmatpush1.bf16.msra.mxu1 %v10259_v27  ;;  %9016 = vmatprep.mubr.bf16.mxu0 %v5142_v5  ;;  %v5126_v27 = vpack.c.bf16 %v4950_v20, %v4950_v20  ;;  %v10352_v43 = vld [vmem:[%s12410_s5 + $0xa54] ss:$8 sps:$4 sm:$0xff]   ;;  %v10370_v61 = vld [vmem:[%s12410_s5 + $0xa84] ss:$8 sps:$4 sm:$0xff]   ;;  %v10365_v62 = vld [vmem:[%s12410_s5 + $0x180] ss:$8 sps:$4 sm:$0xff]  }
 0x16a   : > { %8997 = vmatpush1.bf16.msra.mxu0 %v10260_v28  ;;  %8629 = vmatprep.subr.bf16.mxu1 %v10261_v29  ;;  %v10323_v28 = vld [vmem:[%s12410_s5 + $0x110] ss:$8 sps:$4 sm:$0xff]   ;;  %v10361_v53 = vld [vmem:[%s12410_s5 + $0x174] ss:$8 sps:$4 sm:$0xff]   ;;  %v10368_v63 = vld [vmem:[%s12410_s5 + $0xa80] ss:$8 sps:$4 sm:$0xff]  }
 0x16b   : > { %8998 = vmatprep.subr.bf16.mxu0 %v10263_v30  ;;  %v10326_v29 = vld [vmem:[%s12410_s5 + $0xa10] ss:$8 sps:$4 sm:$0xff]   ;;  %v10331_v30 = vld [vmem:[%s12410_s5 + $0x124] ss:$8 sps:$4 sm:$0xff]   ;;  %v10364_v55 = vld [vmem:[%s12410_s5 + $0xa74] ss:$8 sps:$4 sm:$0xff]  }
 0x16c   : > { %v10379_v4 = vld [vmem:[%s12410_s5 + $0x1a4] ss:$8 sps:$4 sm:$0xff]   ;;  %v10383_v10 = vld [vmem:[%s12410_s5 + $0x1b0] ss:$8 sps:$4 sm:$0xff]  }
 0x16d   : > { %8630 = vmatpush1.bf16.msra.mxu1 %v10265_v31  ;;  %v10334_v31 = vld [vmem:[%s12410_s5 + $0xa24] ss:$8 sps:$4 sm:$0xff]   ;;  %v10398_v20 = vld [vmem:[%s12410_s5 + $0xad0] ss:$8 sps:$4 sm:$0xff]  }
 0x16e   : > { %8999 = vmatpush1.bf16.msra.mxu0 %v10266_v32  ;;  %8631 = vmatprep.subr.bf16.mxu1 %v10267_v33  ;;  %v10329_v32 = vld [vmem:[%s12410_s5 + $0x120] ss:$8 sps:$4 sm:$0xff]   ;;  %v10382_v5 = vld [vmem:[%s12410_s5 + $0xaa4] ss:$8 sps:$4 sm:$0xff]  }
 0x16f   : > { %9000 = vmatprep.subr.bf16.mxu0 %v10269_v34  ;;  %v10332_v33 = vld [vmem:[%s12410_s5 + $0xa20] ss:$8 sps:$4 sm:$0xff]   ;;  %v10337_v34 = vld [vmem:[%s12410_s5 + $0x134] ss:$8 sps:$4 sm:$0xff]  }
 0x171   : > { %8632 = vmatpush1.bf16.msra.mxu1 %v10271_v35  ;;  %v10340_v35 = vld [vmem:[%s12410_s5 + $0xa34] ss:$8 sps:$4 sm:$0xff]  }
 0x172   : > { %9001 = vmatpush1.bf16.msra.mxu0 %v10272_v36  ;;  %8633 = vmatprep.subr.bf16.mxu1 %v10273_v40  ;;  %v10335_v36 = vld [vmem:[%s12410_s5 + $0x130] ss:$8 sps:$4 sm:$0xff]   ;;  %v10341_v40 = vld [vmem:[%s12410_s5 + $0x140] ss:$8 sps:$4 sm:$0xff]  }
 0x173   : > { %9002 = vmatprep.subr.bf16.mxu0 %v10275_v41  ;;  %v10344_v41 = vld [vmem:[%s12410_s5 + $0xa40] ss:$8 sps:$4 sm:$0xff]  }
 0x175   : > { %8634 = vmatpush1.bf16.msra.mxu1 %v10277_v42  ;;  %v10349_v42 = vld [vmem:[%s12410_s5 + $0x154] ss:$8 sps:$4 sm:$0xff]  }
 0x176   : > { %9003 = vmatpush1.bf16.msra.mxu0 %v10278_v45  ;;  %8635 = vmatprep.subr.bf16.mxu1 %v10279_v46  ;;  %v10347_v45 = vld [vmem:[%s12410_s5 + $0x150] ss:$8 sps:$4 sm:$0xff]  }
 0x177   : > { %9004 = vmatprep.subr.bf16.mxu0 %v10281_v47  ;;  %v10350_v46 = vld [vmem:[%s12410_s5 + $0xa50] ss:$8 sps:$4 sm:$0xff]   ;;  %v10355_v47 = vld [vmem:[%s12410_s5 + $0x164] ss:$8 sps:$4 sm:$0xff]  }
 0x179   : > { %8636 = vmatpush1.bf16.msra.mxu1 %v10283_v48  ;;  %v10358_v48 = vld [vmem:[%s12410_s5 + $0xa64] ss:$8 sps:$4 sm:$0xff]  }
 0x17a   : > { %9005 = vmatpush1.bf16.msra.mxu0 %v10284_v49  ;;  %8637 = vmatprep.subr.bf16.mxu1 %v10285_v51  ;;  %v10353_v49 = vld [vmem:[%s12410_s5 + $0x160] ss:$8 sps:$4 sm:$0xff]  }
 0x17b   : > { %9006 = vmatprep.subr.bf16.mxu0 %v10287_v52  ;;  %v12525_v51 = vld [vmem:[%s12398_s26 + $0x28] sm:$0xff] }
 0x17c   : > { %v10356_v52 = vld [vmem:[%s12410_s5 + $0xa60] ss:$8 sps:$4 sm:$0xff]  }
 0x17d   : > { %8638 = vmatpush1.bf16.msra.mxu1 %v10289_v54  ;;  %v12531_v54 = vrot.slane %v12525_v51, %v12460_v50 }
 0x17e   : > { %9007 = vmatpush1.bf16.msra.mxu0 %v10290_v56  ;;  %8639 = vmatprep.subr.bf16.mxu1 %v10291_v58  ;;  %v10362_v58 = vld [vmem:[%s12410_s5 + $0xa70] ss:$8 sps:$4 sm:$0xff]  }
 0x17f   : > { %9008 = vmatprep.subr.bf16.mxu0 %v10293_v59  ;;  %v5034_v56 = vcombine.high %v12531_v54, %v12531_v54  ;;  %v10367_v59 = vld [vmem:[%s12410_s5 + $0x184] ss:$8 sps:$4 sm:$0xff]  }
 0x181   : > { %8640 = vmatpush1.bf16.msra.mxu1 %v10295_v0  ;;  %v5144_v60 = vpack.c.bf16 %v5034_v56, %v5034_v56  ;;  %v10373_v0 = vld [vmem:[%s12410_s5 + $0x194] ss:$8 sps:$4 sm:$0xff]   ;;  %v10439_v56 = vld [vmem:[%s12410_s5 + $0x244] ss:$8 sps:$4 sm:$0xff]  }
 0x182   : > { %9009 = vmatpush1.bf16.msra.mxu0 %v10296_v1  ;;  %8641 = vmatprep.subr.bf16.mxu1 %v10297_v2  ;;  %v10376_v1 = vld [vmem:[%s12410_s5 + $0xa94] ss:$8 sps:$4 sm:$0xff]   ;;  %v10371_v2 = vld [vmem:[%s12410_s5 + $0x190] ss:$8 sps:$4 sm:$0xff]  }
 0x183   : > { %9010 = vmatprep.subr.bf16.mxu0 %v10299_v3  ;;  %v10374_v3 = vld [vmem:[%s12410_s5 + $0xa90] ss:$8 sps:$4 sm:$0xff]  }
 0x185   : > { %8642 = vmatpush1.bf16.msra.mxu1 %v10301_v6  ;;  %v10377_v6 = vld [vmem:[%s12410_s5 + $0x1a0] ss:$8 sps:$4 sm:$0xff]  }
 0x186   : > { %9011 = vmatpush1.bf16.msra.mxu0 %v10302_v7  ;;  %8643 = vmatprep.subr.bf16.mxu1 %v10303_v8  ;;  %v10380_v7 = vld [vmem:[%s12410_s5 + $0xaa0] ss:$8 sps:$4 sm:$0xff]   ;;  %v10385_v8 = vld [vmem:[%s12410_s5 + $0x1b4] ss:$8 sps:$4 sm:$0xff]  }
 0x187   : > { %9012 = vmatprep.subr.bf16.mxu0 %v10305_v9  ;;  %v10388_v9 = vld [vmem:[%s12410_s5 + $0xab4] ss:$8 sps:$4 sm:$0xff]  }
 0x189   : > { %8644 = vmatpush1.bf16.msra.mxu1 %v10307_v11  ;;  %v10386_v11 = vld [vmem:[%s12410_s5 + $0xab0] ss:$8 sps:$4 sm:$0xff]  }
 0x18a   : > { %9013 = vmatpush1.bf16.msra.mxu0 %v10308_v12  ;;  %8645 = vmatprep.subr.bf16.mxu1 %v10309_v13  ;;  %v10391_v12 = vld [vmem:[%s12410_s5 + $0x1c4] ss:$8 sps:$4 sm:$0xff]  }
 0x18b   : > { %9014 = vmatprep.subr.bf16.mxu0 %v10311_v14  ;;  %v10394_v13 = vld [vmem:[%s12410_s5 + $0xac4] ss:$8 sps:$4 sm:$0xff]   ;;  %v10389_v14 = vld [vmem:[%s12410_s5 + $0x1c0] ss:$8 sps:$4 sm:$0xff]  }
 0x18d   : > { %8646 = vmatpush1.bf16.msra.mxu1 %v10313_v16  ;;  %v10392_v16 = vld [vmem:[%s12410_s5 + $0xac0] ss:$8 sps:$4 sm:$0xff]  }
 0x18e   : > { %9015 = vmatpush1.bf16.msra.mxu0 %v10314_v17  ;;  %8656 = vmatprep.subr.bf16.mxu1 %v10318_v18  ;;  %v10397_v17 = vld [vmem:[%s12410_s5 + $0x1d4] ss:$8 sps:$4 sm:$0xff]  }
 0x18f   : > { %9025 = vmatprep.subr.bf16.mxu0 %v10322_v19  ;;  %v10400_v18 = vld [vmem:[%s12410_s5 + $0xad4] ss:$8 sps:$4 sm:$0xff]   ;;  %v10395_v19 = vld [vmem:[%s12410_s5 + $0x1d0] ss:$8 sps:$4 sm:$0xff]  }
 0x190   : > { %8648 = vmatmul.mubr.bf16.vlgmr.msra.gmra.mrb[0].mxu1 %v5123_v21  ;;  %v10403_v21 = vld [vmem:[%s12410_s5 + $0x1e4] ss:$8 sps:$4 sm:$0xff]  }
 0x191   : > { %9017 = vmatmul.mubr.bf16.vlgmr.msra.gmra.mrb[0].mxu0 %v5141_v22  ;;  %8657 = vmatpush1.bf16.msra.mxu1 %v10316_v23  ;;  %v10406_v22 = vld [vmem:[%s12410_s5 + $0xae4] ss:$8 sps:$4 sm:$0xff]   ;;  %v5019_v23 = vcombine.high %v12525_v51, %v12525_v51  ;;  %v10428_v51 = vld [vmem:[%s12410_s5 + $0xb20] ss:$8 sps:$4 sm:$0xff]  }
 0x192   : > { %9026 = vmatpush1.bf16.msra.mxu0 %v10320_v24  ;;  %8658 = vmatprep.subr.bf16.mxu1 %v10325_v25  ;;  %v10401_v24 = vld [vmem:[%s12410_s5 + $0x1e0] ss:$8 sps:$4 sm:$0xff]  }
 0x193   : > { %9027 = vmatprep.subr.bf16.mxu0 %v10328_v26  ;;  %8688 = vmatprep.mubr.bf16.mxu1 %v5126_v27  ;;  %v10404_v25 = vld [vmem:[%s12410_s5 + $0xae0] ss:$8 sps:$4 sm:$0xff]   ;;  %v10409_v26 = vld [vmem:[%s12410_s5 + $0x1f4] ss:$8 sps:$4 sm:$0xff]  }
 0x194   : > { %9057 = vmatprep.mubr.bf16.mxu0 %v5144_v60  ;;  %v10412_v27 = vld [vmem:[%s12410_s5 + $0xaf4] ss:$8 sps:$4 sm:$0xff]  }
 0x195   : > { %8659 = vmatpush1.bf16.msra.mxu1 %v10323_v28  ;;  %v12571_v28 = vrot.slane %v5019_v23, %v12460_v50  ;;  %v10445_v60 = vld [vmem:[%s12410_s5 + $0x254] ss:$8 sps:$4 sm:$0xff]   ;;  %v10479_v23 = vld [vmem:[%s12410_s5 + $0x2b0] ss:$8 sps:$4 sm:$0xff]  }
 0x196   : > { %9028 = vmatpush1.bf16.msra.mxu0 %v10326_v29  ;;  %8660 = vmatprep.subr.bf16.mxu1 %v10331_v30  ;;  %v10407_v29 = vld [vmem:[%s12410_s5 + $0x1f0] ss:$8 sps:$4 sm:$0xff]  }
 0x197   : > { %9029 = vmatprep.subr.bf16.mxu0 %v10334_v31  ;;  %v10410_v30 = vld [vmem:[%s12410_s5 + $0xaf0] ss:$8 sps:$4 sm:$0xff]   ;;  %v10415_v31 = vld [vmem:[%s12410_s5 + $0x204] ss:$8 sps:$4 sm:$0xff]  }
 0x199   : > { %8661 = vmatpush1.bf16.msra.mxu1 %v10329_v32  ;;  %v10418_v32 = vld [vmem:[%s12410_s5 + $0xb04] ss:$8 sps:$4 sm:$0xff]  }
 0x19a   : > { %9030 = vmatpush1.bf16.msra.mxu0 %v10332_v33  ;;  %8662 = vmatprep.subr.bf16.mxu1 %v10337_v34  ;;  %v5035_v33 = vcombine.high %v12571_v28, %v12571_v28  ;;  %v10413_v34 = vld [vmem:[%s12410_s5 + $0x200] ss:$8 sps:$4 sm:$0xff]  }
 0x19b   : > { %9031 = vmatprep.subr.bf16.mxu0 %v10340_v35  ;;  %v10416_v35 = vld [vmem:[%s12410_s5 + $0xb00] ss:$8 sps:$4 sm:$0xff]  }
 0x19d   : > { %8663 = vmatpush1.bf16.msra.mxu1 %v10335_v36  ;;  %v5125_v36 = vpack.c.bf16 %v12489_v15, %v12489_v15  ;;  %v5146_v15 = vpack.c.bf16 %v5035_v33, %v5035_v33  ;;  %v10494_v33 = vld [vmem:[%s12410_s5 + $0xbd0] ss:$8 sps:$4 sm:$0xff]  }
 0x19e   : > { %9032 = vmatpush1.bf16.msra.mxu0 %v10338_v37  ;;  %8664 = vmatprep.subr.bf16.mxu1 %v10343_v38  ;;  %v5143_v37 = vpack.c.bf16 %v12531_v54, %v12531_v54  ;;  %v10421_v38 = vld [vmem:[%s12410_s5 + $0x214] ss:$8 sps:$4 sm:$0xff]   ;;  %v10431_v54 = vld [vmem:[%s12410_s5 + $0x230] ss:$8 sps:$4 sm:$0xff]  }
 0x19f   : > { %9033 = vmatprep.subr.bf16.mxu0 %v10346_v39  ;;  %v10424_v39 = vld [vmem:[%s12410_s5 + $0xb14] ss:$8 sps:$4 sm:$0xff]  }
 0x1a1   : > { %8665 = vmatpush1.bf16.msra.mxu1 %v10341_v40  ;;  %v12588_v40 = vld [vmem:[%s12398_s26 + $0x8] sm:$0xff] }
 0x1a2   : > { %9034 = vmatpush1.bf16.msra.mxu0 %v10344_v41  ;;  %8666 = vmatprep.subr.bf16.mxu1 %v10349_v42  ;;  %v12592_v41 = vrot.slane %v12588_v40, %v12460_v50  ;;  %v10419_v42 = vld [vmem:[%s12410_s5 + $0x210] ss:$8 sps:$4 sm:$0xff]  }
 0x1a3   : > { %9035 = vmatprep.subr.bf16.mxu0 %v10352_v43  ;;  %v10422_v43 = vld [vmem:[%s12410_s5 + $0xb10] ss:$8 sps:$4 sm:$0xff]  }
 0x1a5   : > { %8667 = vmatpush1.bf16.msra.mxu1 %v10347_v45  ;;  %v10427_v45 = vld [vmem:[%s12410_s5 + $0x224] ss:$8 sps:$4 sm:$0xff]  }
 0x1a6   : > { %9036 = vmatpush1.bf16.msra.mxu0 %v10350_v46  ;;  %8668 = vmatprep.subr.bf16.mxu1 %v10355_v47  ;;  %v4966_v46 = vcombine.high %v12592_v41, %v12592_v41  ;;  %v10430_v47 = vld [vmem:[%s12410_s5 + $0xb24] ss:$8 sps:$4 sm:$0xff]  }
 0x1a7   : > { %9037 = vmatprep.subr.bf16.mxu0 %v10358_v48 }
 0x1a8   : > { %v5128_v48 = vpack.c.bf16 %v4966_v46, %v4966_v46  ;;  %v10506_v46 = vld [vmem:[%s12410_s5 + $0xbf0] ss:$8 sps:$4 sm:$0xff]  }
 0x1a9   : > { %8669 = vmatpush1.bf16.msra.mxu1 %v10353_v49  ;;  %v10425_v49 = vld [vmem:[%s12410_s5 + $0x220] ss:$8 sps:$4 sm:$0xff]  }
 0x1aa   : > { %9038 = vmatpush1.bf16.msra.mxu0 %v10356_v52  ;;  %8670 = vmatprep.subr.bf16.mxu1 %v10361_v53  ;;  %v10433_v52 = vld [vmem:[%s12410_s5 + $0x234] ss:$8 sps:$4 sm:$0xff]  }
 0x1ab   : > { %9039 = vmatprep.subr.bf16.mxu0 %v10364_v55  ;;  %v10436_v53 = vld [vmem:[%s12410_s5 + $0xb34] ss:$8 sps:$4 sm:$0xff]   ;;  %v10434_v55 = vld [vmem:[%s12410_s5 + $0xb30] ss:$8 sps:$4 sm:$0xff]  }
 0x1ad   : > { %8671 = vmatpush1.bf16.msra.mxu1 %v10359_v57  ;;  %v10442_v57 = vld [vmem:[%s12410_s5 + $0xb44] ss:$8 sps:$4 sm:$0xff]  }
 0x1ae   : > { %9040 = vmatpush1.bf16.msra.mxu0 %v10362_v58  ;;  %8672 = vmatprep.subr.bf16.mxu1 %v10367_v59  ;;  %v10437_v58 = vld [vmem:[%s12410_s5 + $0x240] ss:$8 sps:$4 sm:$0xff]  }
 0x1af   : > { %9041 = vmatprep.subr.bf16.mxu0 %v10370_v61  ;;  %v10440_v59 = vld [vmem:[%s12410_s5 + $0xb40] ss:$8 sps:$4 sm:$0xff]   ;;  %v10448_v61 = vld [vmem:[%s12410_s5 + $0xb54] ss:$8 sps:$4 sm:$0xff]  }
 0x1b1   : > { %8673 = vmatpush1.bf16.msra.mxu1 %v10365_v62  ;;  %v10443_v62 = vld [vmem:[%s12410_s5 + $0x250] ss:$8 sps:$4 sm:$0xff]  }
 0x1b2   : > { %9042 = vmatpush1.bf16.msra.mxu0 %v10368_v63  ;;  %8674 = vmatprep.subr.bf16.mxu1 %v10373_v0  ;;  %v10446_v63 = vld [vmem:[%s12410_s5 + $0xb50] ss:$8 sps:$4 sm:$0xff]   ;;  %v10451_v0 = vld [vmem:[%s12410_s5 + $0x264] ss:$8 sps:$4 sm:$0xff]  }
 0x1b3   : > { %9043 = vmatprep.subr.bf16.mxu0 %v10376_v1  ;;  %v10454_v1 = vld [vmem:[%s12410_s5 + $0xb64] ss:$8 sps:$4 sm:$0xff]  }
 0x1b5   : > { %8675 = vmatpush1.bf16.msra.mxu1 %v10371_v2  ;;  %v10449_v2 = vld [vmem:[%s12410_s5 + $0x260] ss:$8 sps:$4 sm:$0xff]  }
 0x1b6   : > { %9044 = vmatpush1.bf16.msra.mxu0 %v10374_v3  ;;  %8676 = vmatprep.subr.bf16.mxu1 %v10379_v4  ;;  %v10452_v3 = vld [vmem:[%s12410_s5 + $0xb60] ss:$8 sps:$4 sm:$0xff]   ;;  %v10457_v4 = vld [vmem:[%s12410_s5 + $0x274] ss:$8 sps:$4 sm:$0xff]  }
 0x1b7   : > { %9045 = vmatprep.subr.bf16.mxu0 %v10382_v5  ;;  %v10460_v5 = vld [vmem:[%s12410_s5 + $0xb74] ss:$8 sps:$4 sm:$0xff]  }
 0x1b9   : > { %8677 = vmatpush1.bf16.msra.mxu1 %v10377_v6  ;;  %v10455_v6 = vld [vmem:[%s12410_s5 + $0x270] ss:$8 sps:$4 sm:$0xff]  }
 0x1ba   : > { %9046 = vmatpush1.bf16.msra.mxu0 %v10380_v7  ;;  %8678 = vmatprep.subr.bf16.mxu1 %v10385_v8  ;;  %v10458_v7 = vld [vmem:[%s12410_s5 + $0xb70] ss:$8 sps:$4 sm:$0xff]   ;;  %v10463_v8 = vld [vmem:[%s12410_s5 + $0x284] ss:$8 sps:$4 sm:$0xff]  }
 0x1bb   : > { %9047 = vmatprep.subr.bf16.mxu0 %v10388_v9  ;;  %v10466_v9 = vld [vmem:[%s12410_s5 + $0xb84] ss:$8 sps:$4 sm:$0xff]  }
 0x1bd   : > { %8679 = vmatpush1.bf16.msra.mxu1 %v10383_v10  ;;  %v10461_v10 = vld [vmem:[%s12410_s5 + $0x280] ss:$8 sps:$4 sm:$0xff]  }
 0x1be   : > { %9048 = vmatpush1.bf16.msra.mxu0 %v10386_v11  ;;  %8680 = vmatprep.subr.bf16.mxu1 %v10391_v12  ;;  %v10464_v11 = vld [vmem:[%s12410_s5 + $0xb80] ss:$8 sps:$4 sm:$0xff]   ;;  %v10469_v12 = vld [vmem:[%s12410_s5 + $0x294] ss:$8 sps:$4 sm:$0xff]  }
 0x1bf   : > { %9049 = vmatprep.subr.bf16.mxu0 %v10394_v13  ;;  %v10472_v13 = vld [vmem:[%s12410_s5 + $0xb94] ss:$8 sps:$4 sm:$0xff]  }
 0x1c1   : > { %8681 = vmatpush1.bf16.msra.mxu1 %v10389_v14  ;;  %v10467_v14 = vld [vmem:[%s12410_s5 + $0x290] ss:$8 sps:$4 sm:$0xff]  }
 0x1c2   : > { %9050 = vmatpush1.bf16.msra.mxu0 %v10392_v16  ;;  %8682 = vmatprep.subr.bf16.mxu1 %v10397_v17  ;;  %v10470_v16 = vld [vmem:[%s12410_s5 + $0xb90] ss:$8 sps:$4 sm:$0xff]   ;;  %v10475_v17 = vld [vmem:[%s12410_s5 + $0x2a4] ss:$8 sps:$4 sm:$0xff]  }
 0x1c3   : > { %9051 = vmatprep.subr.bf16.mxu0 %v10400_v18  ;;  %v10478_v18 = vld [vmem:[%s12410_s5 + $0xba4] ss:$8 sps:$4 sm:$0xff]  }
 0x1c5   : > { %8683 = vmatpush1.bf16.msra.mxu1 %v10395_v19  ;;  %v10473_v19 = vld [vmem:[%s12410_s5 + $0x2a0] ss:$8 sps:$4 sm:$0xff]  }
 0x1c6   : > { %9052 = vmatpush1.bf16.msra.mxu0 %v10398_v20  ;;  %8684 = vmatprep.subr.bf16.mxu1 %v10403_v21  ;;  %v10476_v20 = vld [vmem:[%s12410_s5 + $0xba0] ss:$8 sps:$4 sm:$0xff]   ;;  %v10481_v21 = vld [vmem:[%s12410_s5 + $0x2b4] ss:$8 sps:$4 sm:$0xff]  }
 0x1c7   : > { %9053 = vmatprep.subr.bf16.mxu0 %v10406_v22  ;;  %v10484_v22 = vld [vmem:[%s12410_s5 + $0xbb4] ss:$8 sps:$4 sm:$0xff]  }
 0x1c9   : > { %8685 = vmatpush1.bf16.msra.mxu1 %v10401_v24  ;;  %v10482_v24 = vld [vmem:[%s12410_s5 + $0xbb0] ss:$8 sps:$4 sm:$0xff]  }
 0x1ca   : > { %9054 = vmatpush1.bf16.msra.mxu0 %v10404_v25  ;;  %8686 = vmatprep.subr.bf16.mxu1 %v10409_v26  ;;  %v10487_v25 = vld [vmem:[%s12410_s5 + $0x2c4] ss:$8 sps:$4 sm:$0xff]  }
 0x1cb   : > { %9055 = vmatprep.subr.bf16.mxu0 %v10412_v27  ;;  %v10490_v26 = vld [vmem:[%s12410_s5 + $0xbc4] ss:$8 sps:$4 sm:$0xff]   ;;  %v10485_v27 = vld [vmem:[%s12410_s5 + $0x2c0] ss:$8 sps:$4 sm:$0xff]  }
 0x1cd   : > { %8687 = vmatpush1.bf16.msra.mxu1 %v10407_v29  ;;  %v10488_v29 = vld [vmem:[%s12410_s5 + $0xbc0] ss:$8 sps:$4 sm:$0xff]  }
 0x1ce   : > { %9056 = vmatpush1.bf16.msra.mxu0 %v10410_v30  ;;  %8697 = vmatprep.subr.bf16.mxu1 %v10415_v31  ;;  %v10493_v30 = vld [vmem:[%s12410_s5 + $0x2d4] ss:$8 sps:$4 sm:$0xff]  }
 0x1cf   : > { %9066 = vmatprep.subr.bf16.mxu0 %v10418_v32  ;;  %v10496_v31 = vld [vmem:[%s12410_s5 + $0xbd4] ss:$8 sps:$4 sm:$0xff]   ;;  %v10491_v32 = vld [vmem:[%s12410_s5 + $0x2d0] ss:$8 sps:$4 sm:$0xff]  }
 0x1d0   : > { %8689 = vmatmul.mubr.bf16.vlgmr.msra.gmra.mrb[0].mxu1 %v5125_v36  ;;  %v10497_v36 = vld [vmem:[%s12410_s5 + $0x2e0] ss:$8 sps:$4 sm:$0xff]  }
 0x1d1   : > { %9058 = vmatmul.mubr.bf16.vlgmr.msra.gmra.mrb[0].mxu0 %v5143_v37  ;;  %8698 = vmatpush1.bf16.msra.mxu1 %v10413_v34  ;;  %v10499_v34 = vld [vmem:[%s12410_s5 + $0x2e4] ss:$8 sps:$4 sm:$0xff]   ;;  %v4951_v37 = vcombine.high %v12588_v40, %v12588_v40  ;;  %v10503_v40 = vld [vmem:[%s12410_s5 + $0x2f0] ss:$8 sps:$4 sm:$0xff]  }
 0x1d2   : > { %9067 = vmatpush1.bf16.msra.mxu0 %v10416_v35  ;;  %8699 = vmatprep.subr.bf16.mxu1 %v10421_v38  ;;  %v10502_v35 = vld [vmem:[%s12410_s5 + $0xbe4] ss:$8 sps:$4 sm:$0xff]  }
 0x1d3   : > { %9068 = vmatprep.subr.bf16.mxu0 %v10424_v39  ;;  %9098 = vmatprep.mubr.bf16.mxu0 %v5146_v15  ;;  %v12652_v38 = vld [vmem:[%s12398_s26 + $0x30] sm:$0xff]  ;;  %v10500_v39 = vld [vmem:[%s12410_s5 + $0xbe0] ss:$8 sps:$4 sm:$0xff]   ;;  %v10505_v15 = vld [vmem:[%s12410_s5 + $0x2f4] ss:$8 sps:$4 sm:$0xff]  }
 0x1d4   : > { %8729 = vmatprep.mubr.bf16.mxu1 %v5128_v48  ;;  %v10515_v48 = vld [vmem:[%s12410_s5 + $0xc04] ss:$8 sps:$4 sm:$0xff]  }
 0x1d5   : > { %8700 = vmatpush1.bf16.msra.mxu1 %v10419_v42  ;;  %v10508_v42 = vld [vmem:[%s12410_s5 + $0xbf4] ss:$8 sps:$4 sm:$0xff]  }
 0x1d6   : > { %9069 = vmatpush1.bf16.msra.mxu0 %v10422_v43  ;;  %8701 = vmatprep.subr.bf16.mxu1 %v10427_v45  ;;  %v12658_v43 = vrot.slane %v4951_v37, %v12460_v50  ;;  %v12662_v45 = vrot.slane %v12652_v38, %v12460_v50  ;;  %v10579_v37 = vld [vmem:[%s12410_s5 + $0xcb0] ss:$8 sps:$4 sm:$0xff]  }
 0x1d7   : > { %9070 = vmatprep.subr.bf16.mxu0 %v10430_v47  ;;  %v10511_v47 = vld [vmem:[%s12410_s5 + $0x304] ss:$8 sps:$4 sm:$0xff]  }
 0x1d9   : > { %8702 = vmatpush1.bf16.msra.mxu1 %v10425_v49  ;;  %v4967_v49 = vcombine.high %v12658_v43, %v12658_v43 }
 0x1da   : > { %9071 = vmatpush1.bf16.msra.mxu0 %v10428_v51  ;;  %8703 = vmatprep.subr.bf16.mxu1 %v10433_v52  ;;  %v5051_v51 = vcombine.high %v12662_v45, %v12662_v45  ;;  %v10509_v52 = vld [vmem:[%s12410_s5 + $0x300] ss:$8 sps:$4 sm:$0xff]  }
 0x1db   : > { %9072 = vmatprep.subr.bf16.mxu0 %v10436_v53  ;;  %v5127_v53 = vpack.c.bf16 %v12592_v41, %v12592_v41  ;;  %v10516_v41 = vld [vmem:[%s12410_s5 + $0x310] ss:$8 sps:$4 sm:$0xff]  }
 0x1dd   : > { %8704 = vmatpush1.bf16.msra.mxu1 %v10431_v54  ;;  %v5145_v54 = vpack.c.bf16 %v12571_v28, %v12571_v28  ;;  %v10519_v28 = vld [vmem:[%s12410_s5 + $0xc10] ss:$8 sps:$4 sm:$0xff]  }
 0x1de   : > { %9073 = vmatpush1.bf16.msra.mxu0 %v10434_v55  ;;  %8705 = vmatprep.subr.bf16.mxu1 %v10439_v56  ;;  %v10513_v55 = vld [vmem:[%s12410_s5 + $0xc00] ss:$8 sps:$4 sm:$0xff]   ;;  %v10518_v56 = vld [vmem:[%s12410_s5 + $0x314] ss:$8 sps:$4 sm:$0xff]  }
 0x1df   : > { %9074 = vmatprep.subr.bf16.mxu0 %v10442_v57  ;;  %v10521_v57 = vld [vmem:[%s12410_s5 + $0xc14] ss:$8 sps:$4 sm:$0xff]  }
 0x1e1   : > { %8706 = vmatpush1.bf16.msra.mxu1 %v10437_v58  ;;  %v5130_v58 = vpack.c.bf16 %v4967_v49, %v4967_v49  ;;  %v10591_v49 = vld [vmem:[%s12410_s5 + $0xcd0] ss:$8 sps:$4 sm:$0xff]  }
 0x1e2   : > { %9075 = vmatpush1.bf16.msra.mxu0 %v10440_v59  ;;  %8707 = vmatprep.subr.bf16.mxu1 %v10445_v60  ;;  %v5148_v59 = vpack.c.bf16 %v5051_v51, %v5051_v51  ;;  %v10524_v60 = vld [vmem:[%s12410_s5 + $0x324] ss:$8 sps:$4 sm:$0xff]  }
 0x1e3   : > { %9076 = vmatprep.subr.bf16.mxu0 %v10448_v61  ;;  %v10527_v61 = vld [vmem:[%s12410_s5 + $0xc24] ss:$8 sps:$4 sm:$0xff]  }
 0x1e4   : > { %v10596_v51 = vld [vmem:[%s12410_s5 + $0x3e4] ss:$8 sps:$4 sm:$0xff]  }
 0x1e5   : > { %8708 = vmatpush1.bf16.msra.mxu1 %v10443_v62  ;;  %v10522_v62 = vld [vmem:[%s12410_s5 + $0x320] ss:$8 sps:$4 sm:$0xff]  }
 0x1e6   : > { %9077 = vmatpush1.bf16.msra.mxu0 %v10446_v63  ;;  %8709 = vmatprep.subr.bf16.mxu1 %v10451_v0  ;;  %v10525_v63 = vld [vmem:[%s12410_s5 + $0xc20] ss:$8 sps:$4 sm:$0xff]   ;;  %v10530_v0 = vld [vmem:[%s12410_s5 + $0x334] ss:$8 sps:$4 sm:$0xff]  }
 0x1e7   : > { %9078 = vmatprep.subr.bf16.mxu0 %v10454_v1  ;;  %v10533_v1 = vld [vmem:[%s12410_s5 + $0xc34] ss:$8 sps:$4 sm:$0xff]  }
 0x1e9   : > { %8710 = vmatpush1.bf16.msra.mxu1 %v10449_v2  ;;  %v10528_v2 = vld [vmem:[%s12410_s5 + $0x330] ss:$8 sps:$4 sm:$0xff]  }
 0x1ea   : > { %9079 = vmatpush1.bf16.msra.mxu0 %v10452_v3  ;;  %8711 = vmatprep.subr.bf16.mxu1 %v10457_v4  ;;  %v10531_v3 = vld [vmem:[%s12410_s5 + $0xc30] ss:$8 sps:$4 sm:$0xff]   ;;  %v10536_v4 = vld [vmem:[%s12410_s5 + $0x344] ss:$8 sps:$4 sm:$0xff]  }
 0x1eb   : > { %9080 = vmatprep.subr.bf16.mxu0 %v10460_v5  ;;  %v10539_v5 = vld [vmem:[%s12410_s5 + $0xc44] ss:$8 sps:$4 sm:$0xff]  }
 0x1ed   : > { %8712 = vmatpush1.bf16.msra.mxu1 %v10455_v6  ;;  %v10534_v6 = vld [vmem:[%s12410_s5 + $0x340] ss:$8 sps:$4 sm:$0xff]  }
 0x1ee   : > { %9081 = vmatpush1.bf16.msra.mxu0 %v10458_v7  ;;  %8713 = vmatprep.subr.bf16.mxu1 %v10463_v8  ;;  %v10537_v7 = vld [vmem:[%s12410_s5 + $0xc40] ss:$8 sps:$4 sm:$0xff]   ;;  %v10542_v8 = vld [vmem:[%s12410_s5 + $0x354] ss:$8 sps:$4 sm:$0xff]  }
 0x1ef   : > { %9082 = vmatprep.subr.bf16.mxu0 %v10466_v9  ;;  %v10545_v9 = vld [vmem:[%s12410_s5 + $0xc54] ss:$8 sps:$4 sm:$0xff]  }
 0x1f1   : > { %8714 = vmatpush1.bf16.msra.mxu1 %v10461_v10  ;;  %v10540_v10 = vld [vmem:[%s12410_s5 + $0x350] ss:$8 sps:$4 sm:$0xff]  }
 0x1f2   : > { %9083 = vmatpush1.bf16.msra.mxu0 %v10464_v11  ;;  %8715 = vmatprep.subr.bf16.mxu1 %v10469_v12  ;;  %v10543_v11 = vld [vmem:[%s12410_s5 + $0xc50] ss:$8 sps:$4 sm:$0xff]   ;;  %v10548_v12 = vld [vmem:[%s12410_s5 + $0x364] ss:$8 sps:$4 sm:$0xff]  }
 0x1f3   : > { %9084 = vmatprep.subr.bf16.mxu0 %v10472_v13  ;;  %v10551_v13 = vld [vmem:[%s12410_s5 + $0xc64] ss:$8 sps:$4 sm:$0xff]  }
 0x1f5   : > { %8716 = vmatpush1.bf16.msra.mxu1 %v10467_v14  ;;  %v10546_v14 = vld [vmem:[%s12410_s5 + $0x360] ss:$8 sps:$4 sm:$0xff]  }
 0x1f6   : > { %9085 = vmatpush1.bf16.msra.mxu0 %v10470_v16  ;;  %8717 = vmatprep.subr.bf16.mxu1 %v10475_v17  ;;  %v10549_v16 = vld [vmem:[%s12410_s5 + $0xc60] ss:$8 sps:$4 sm:$0xff]   ;;  %v10554_v17 = vld [vmem:[%s12410_s5 + $0x374] ss:$8 sps:$4 sm:$0xff]  }
 0x1f7   : > { %9086 = vmatprep.subr.bf16.mxu0 %v10478_v18  ;;  %v10557_v18 = vld [vmem:[%s12410_s5 + $0xc74] ss:$8 sps:$4 sm:$0xff]  }
 0x1f9   : > { %8718 = vmatpush1.bf16.msra.mxu1 %v10473_v19  ;;  %v10552_v19 = vld [vmem:[%s12410_s5 + $0x370] ss:$8 sps:$4 sm:$0xff]  }
 0x1fa   : > { %9087 = vmatpush1.bf16.msra.mxu0 %v10476_v20  ;;  %8719 = vmatprep.subr.bf16.mxu1 %v10481_v21  ;;  %v10555_v20 = vld [vmem:[%s12410_s5 + $0xc70] ss:$8 sps:$4 sm:$0xff]   ;;  %v10560_v21 = vld [vmem:[%s12410_s5 + $0x384] ss:$8 sps:$4 sm:$0xff]  }
 0x1fb   : > { %9088 = vmatprep.subr.bf16.mxu0 %v10484_v22  ;;  %v10563_v22 = vld [vmem:[%s12410_s5 + $0xc84] ss:$8 sps:$4 sm:$0xff]  }
 0x1fd   : > { %8720 = vmatpush1.bf16.msra.mxu1 %v10479_v23  ;;  %v10558_v23 = vld [vmem:[%s12410_s5 + $0x380] ss:$8 sps:$4 sm:$0xff]  }
 0x1fe   : > { %9089 = vmatpush1.bf16.msra.mxu0 %v10482_v24  ;;  %8721 = vmatprep.subr.bf16.mxu1 %v10487_v25  ;;  %v10561_v24 = vld [vmem:[%s12410_s5 + $0xc80] ss:$8 sps:$4 sm:$0xff]   ;;  %v10566_v25 = vld [vmem:[%s12410_s5 + $0x394] ss:$8 sps:$4 sm:$0xff]  }
 0x1ff   : > { %9090 = vmatprep.subr.bf16.mxu0 %v10490_v26  ;;  %v10569_v26 = vld [vmem:[%s12410_s5 + $0xc94] ss:$8 sps:$4 sm:$0xff]  }
 0x201   : > { %8722 = vmatpush1.bf16.msra.mxu1 %v10485_v27  ;;  %v10564_v27 = vld [vmem:[%s12410_s5 + $0x390] ss:$8 sps:$4 sm:$0xff]  }
 0x202   : > { %9091 = vmatpush1.bf16.msra.mxu0 %v10488_v29  ;;  %8723 = vmatprep.subr.bf16.mxu1 %v10493_v30  ;;  %v10567_v29 = vld [vmem:[%s12410_s5 + $0xc90] ss:$8 sps:$4 sm:$0xff]   ;;  %v10572_v30 = vld [vmem:[%s12410_s5 + $0x3a4] ss:$8 sps:$4 sm:$0xff]  }
 0x203   : > { %9092 = vmatprep.subr.bf16.mxu0 %v10496_v31  ;;  %v10575_v31 = vld [vmem:[%s12410_s5 + $0xca4] ss:$8 sps:$4 sm:$0xff]  }
 0x205   : > { %8724 = vmatpush1.bf16.msra.mxu1 %v10491_v32  ;;  %v10570_v32 = vld [vmem:[%s12410_s5 + $0x3a0] ss:$8 sps:$4 sm:$0xff]  }
 0x206   : > { %9093 = vmatpush1.bf16.msra.mxu0 %v10494_v33  ;;  %8725 = vmatprep.subr.bf16.mxu1 %v10499_v34  ;;  %v10573_v33 = vld [vmem:[%s12410_s5 + $0xca0] ss:$8 sps:$4 sm:$0xff]   ;;  %v10578_v34 = vld [vmem:[%s12410_s5 + $0x3b4] ss:$8 sps:$4 sm:$0xff]  }
 0x207   : > { %9094 = vmatprep.subr.bf16.mxu0 %v10502_v35  ;;  %v10581_v35 = vld [vmem:[%s12410_s5 + $0xcb4] ss:$8 sps:$4 sm:$0xff]  }
 0x209   : > { %8726 = vmatpush1.bf16.msra.mxu1 %v10497_v36  ;;  %v10576_v36 = vld [vmem:[%s12410_s5 + $0x3b0] ss:$8 sps:$4 sm:$0xff]  }
 0x20a   : > { %9095 = vmatpush1.bf16.msra.mxu0 %v10500_v39  ;;  %8727 = vmatprep.subr.bf16.mxu1 %v10505_v15  ;;  %v10584_v39 = vld [vmem:[%s12410_s5 + $0x3c4] ss:$8 sps:$4 sm:$0xff]  }
 0x20b   : > { %9096 = vmatprep.subr.bf16.mxu0 %v10508_v42  ;;  %v10587_v15 = vld [vmem:[%s12410_s5 + $0xcc4] ss:$8 sps:$4 sm:$0xff]   ;;  %v10582_v42 = vld [vmem:[%s12410_s5 + $0x3c0] ss:$8 sps:$4 sm:$0xff]  }
 0x20d   : > { %8728 = vmatpush1.bf16.msra.mxu1 %v10503_v40  ;;  %v10585_v40 = vld [vmem:[%s12410_s5 + $0xcc0] ss:$8 sps:$4 sm:$0xff]  }
 0x20e   : > { %9097 = vmatpush1.bf16.msra.mxu0 %v10506_v46  ;;  %8738 = vmatprep.subr.bf16.mxu1 %v10511_v47  ;;  %v10590_v46 = vld [vmem:[%s12410_s5 + $0x3d4] ss:$8 sps:$4 sm:$0xff]  }
 0x20f   : > { %9107 = vmatprep.subr.bf16.mxu0 %v10515_v48  ;;  %v10593_v47 = vld [vmem:[%s12410_s5 + $0xcd4] ss:$8 sps:$4 sm:$0xff]   ;;  %v10588_v48 = vld [vmem:[%s12410_s5 + $0x3d0] ss:$8 sps:$4 sm:$0xff]  }
 0x210   : > { %8730 = vmatmul.mubr.bf16.vlgmr.msra.gmra.mrb[0].mxu1 %v5127_v53  ;;  %v5036_v53 = vcombine.high %v12652_v38, %v12652_v38  ;;  %v10600_v38 = vld [vmem:[%s12410_s5 + $0x3f0] ss:$8 sps:$4 sm:$0xff]  }
 0x211   : > { %9099 = vmatmul.mubr.bf16.vlgmr.msra.gmra.mrb[0].mxu0 %v5145_v54  ;;  %8739 = vmatpush1.bf16.msra.mxu1 %v10509_v52  ;;  %v10599_v52 = vld [vmem:[%s12410_s5 + $0xce4] ss:$8 sps:$4 sm:$0xff]  }
 0x212   : > { %9108 = vmatpush1.bf16.msra.mxu0 %v10513_v55  ;;  %8740 = vmatprep.subr.bf16.mxu1 %v10518_v56  ;;  %v12735_v54 = vld [vmem:[%s12398_s26 + $0x10] sm:$0xff]  ;;  %v10594_v55 = vld [vmem:[%s12410_s5 + $0x3e0] ss:$8 sps:$4 sm:$0xff]  }
 0x213   : > { %9109 = vmatprep.subr.bf16.mxu0 %v10521_v57  ;;  %8770 = vmatprep.mubr.bf16.mxu1 %v5130_v58  ;;  %v10597_v56 = vld [vmem:[%s12410_s5 + $0xce0] ss:$8 sps:$4 sm:$0xff]   ;;  %v10602_v57 = vld [vmem:[%s12410_s5 + $0x3f4] ss:$8 sps:$4 sm:$0xff]  }
 0x214   : > { %9139 = vmatprep.mubr.bf16.mxu0 %v5148_v59  ;;  %v10605_v58 = vld [vmem:[%s12410_s5 + $0xcf4] ss:$8 sps:$4 sm:$0xff]   ;;  %v12743_v59 = vrot.slane %v12735_v54, %v12460_v50 }
 0x215   : > { %8741 = vmatpush1.bf16.msra.mxu1 %v10516_v41  ;;  %v12746_v41 = vrot.slane %v5036_v53, %v12460_v50  ;;  %v10673_v53 = vld [vmem:[%s12410_s5 + $0x4b0] ss:$8 sps:$4 sm:$0xff]  }
 0x216   : > { %9110 = vmatpush1.bf16.msra.mxu0 %v10519_v28  ;;  %8742 = vmatprep.subr.bf16.mxu1 %v10524_v60  ;;  %v10603_v28 = vld [vmem:[%s12410_s5 + $0xcf0] ss:$8 sps:$4 sm:$0xff]   ;;  %v10609_v60 = vld [vmem:[%s12410_s5 + $0x404] ss:$8 sps:$4 sm:$0xff]  }
 0x217   : > { %9111 = vmatprep.subr.bf16.mxu0 %v10527_v61  ;;  %v10612_v61 = vld [vmem:[%s12410_s5 + $0xd04] ss:$8 sps:$4 sm:$0xff]  }
 0x219   : > { %8743 = vmatpush1.bf16.msra.mxu1 %v10522_v62  ;;  %v4983_v62 = vcombine.high %v12743_v59, %v12743_v59 }
 0x21a   : > { %9112 = vmatpush1.bf16.msra.mxu0 %v10525_v63  ;;  %8744 = vmatprep.subr.bf16.mxu1 %v10530_v0  ;;  %v5052_v63 = vcombine.high %v12746_v41, %v12746_v41  ;;  %v5129_v0 = vpack.c.bf16 %v12658_v43, %v12658_v43  ;;  %v10613_v43 = vld [vmem:[%s12410_s5 + $0x410] ss:$8 sps:$4 sm:$0xff]  }
 0x21b   : > { %9113 = vmatprep.subr.bf16.mxu0 %v10533_v1  ;;  %v5147_v1 = vpack.c.bf16 %v12662_v45, %v12662_v45  ;;  %v10616_v45 = vld [vmem:[%s12410_s5 + $0xd10] ss:$8 sps:$4 sm:$0xff]  }
 0x21d   : > { %8745 = vmatpush1.bf16.msra.mxu1 %v10528_v2  ;;  %v10607_v2 = vld [vmem:[%s12410_s5 + $0x400] ss:$8 sps:$4 sm:$0xff]  }
 0x21e   : > { %9114 = vmatpush1.bf16.msra.mxu0 %v10531_v3  ;;  %8746 = vmatprep.subr.bf16.mxu1 %v10536_v4  ;;  %v10610_v3 = vld [vmem:[%s12410_s5 + $0xd00] ss:$8 sps:$4 sm:$0xff]   ;;  %v10615_v4 = vld [vmem:[%s12410_s5 + $0x414] ss:$8 sps:$4 sm:$0xff]  }
 0x21f   : > { %9115 = vmatprep.subr.bf16.mxu0 %v10539_v5  ;;  %v10618_v5 = vld [vmem:[%s12410_s5 + $0xd14] ss:$8 sps:$4 sm:$0xff]  }
 0x221   : > { %8747 = vmatpush1.bf16.msra.mxu1 %v10534_v6  ;;  %v5132_v6 = vpack.c.bf16 %v4983_v62, %v4983_v62  ;;  %v10688_v62 = vld [vmem:[%s12410_s5 + $0xdd0] ss:$8 sps:$4 sm:$0xff]  }
 0x222   : > { %9116 = vmatpush1.bf16.msra.mxu0 %v10537_v7  ;;  %8748 = vmatprep.subr.bf16.mxu1 %v10542_v8  ;;  %v5150_v7 = vpack.c.bf16 %v5052_v63, %v5052_v63  ;;  %v10621_v8 = vld [vmem:[%s12410_s5 + $0x424] ss:$8 sps:$4 sm:$0xff]  }
 0x223   : > { %9117 = vmatprep.subr.bf16.mxu0 %v10545_v9  ;;  %v10624_v9 = vld [vmem:[%s12410_s5 + $0xd24] ss:$8 sps:$4 sm:$0xff]  }
 0x224   : > { %v10693_v63 = vld [vmem:[%s12410_s5 + $0x4e4] ss:$8 sps:$4 sm:$0xff]  }
 0x225   : > { %8749 = vmatpush1.bf16.msra.mxu1 %v10540_v10  ;;  %v10619_v10 = vld [vmem:[%s12410_s5 + $0x420] ss:$8 sps:$4 sm:$0xff]  }
 0x226   : > { %9118 = vmatpush1.bf16.msra.mxu0 %v10543_v11  ;;  %8750 = vmatprep.subr.bf16.mxu1 %v10548_v12  ;;  %v10622_v11 = vld [vmem:[%s12410_s5 + $0xd20] ss:$8 sps:$4 sm:$0xff]   ;;  %v10627_v12 = vld [vmem:[%s12410_s5 + $0x434] ss:$8 sps:$4 sm:$0xff]  }
 0x227   : > { %9119 = vmatprep.subr.bf16.mxu0 %v10551_v13  ;;  %v10630_v13 = vld [vmem:[%s12410_s5 + $0xd34] ss:$8 sps:$4 sm:$0xff]  }
 0x229   : > { %8751 = vmatpush1.bf16.msra.mxu1 %v10546_v14  ;;  %v10625_v14 = vld [vmem:[%s12410_s5 + $0x430] ss:$8 sps:$4 sm:$0xff]  }
 0x22a   : > { %9120 = vmatpush1.bf16.msra.mxu0 %v10549_v16  ;;  %8752 = vmatprep.subr.bf16.mxu1 %v10554_v17  ;;  %v10628_v16 = vld [vmem:[%s12410_s5 + $0xd30] ss:$8 sps:$4 sm:$0xff]   ;;  %v10633_v17 = vld [vmem:[%s12410_s5 + $0x444] ss:$8 sps:$4 sm:$0xff]  }
 0x22b   : > { %9121 = vmatprep.subr.bf16.mxu0 %v10557_v18  ;;  %v10636_v18 = vld [vmem:[%s12410_s5 + $0xd44] ss:$8 sps:$4 sm:$0xff]  }
 0x22d   : > { %8753 = vmatpush1.bf16.msra.mxu1 %v10552_v19  ;;  %v10631_v19 = vld [vmem:[%s12410_s5 + $0x440] ss:$8 sps:$4 sm:$0xff]  }
 0x22e   : > { %9122 = vmatpush1.bf16.msra.mxu0 %v10555_v20  ;;  %8754 = vmatprep.subr.bf16.mxu1 %v10560_v21  ;;  %v10634_v20 = vld [vmem:[%s12410_s5 + $0xd40] ss:$8 sps:$4 sm:$0xff]   ;;  %v10639_v21 = vld [vmem:[%s12410_s5 + $0x454] ss:$8 sps:$4 sm:$0xff]  }
 0x22f   : > { %9123 = vmatprep.subr.bf16.mxu0 %v10563_v22  ;;  %v10642_v22 = vld [vmem:[%s12410_s5 + $0xd54] ss:$8 sps:$4 sm:$0xff]  }
 0x231   : > { %8755 = vmatpush1.bf16.msra.mxu1 %v10558_v23  ;;  %v10637_v23 = vld [vmem:[%s12410_s5 + $0x450] ss:$8 sps:$4 sm:$0xff]  }
 0x232   : > { %9124 = vmatpush1.bf16.msra.mxu0 %v10561_v24  ;;  %8756 = vmatprep.subr.bf16.mxu1 %v10566_v25  ;;  %v10640_v24 = vld [vmem:[%s12410_s5 + $0xd50] ss:$8 sps:$4 sm:$0xff]   ;;  %v10645_v25 = vld [vmem:[%s12410_s5 + $0x464] ss:$8 sps:$4 sm:$0xff]  }
 0x233   : > { %9125 = vmatprep.subr.bf16.mxu0 %v10569_v26  ;;  %v10648_v26 = vld [vmem:[%s12410_s5 + $0xd64] ss:$8 sps:$4 sm:$0xff]  }
 0x235   : > { %8757 = vmatpush1.bf16.msra.mxu1 %v10564_v27  ;;  %v10643_v27 = vld [vmem:[%s12410_s5 + $0x460] ss:$8 sps:$4 sm:$0xff]  }
 0x236   : > { %9126 = vmatpush1.bf16.msra.mxu0 %v10567_v29  ;;  %8758 = vmatprep.subr.bf16.mxu1 %v10572_v30  ;;  %v10646_v29 = vld [vmem:[%s12410_s5 + $0xd60] ss:$8 sps:$4 sm:$0xff]   ;;  %v10651_v30 = vld [vmem:[%s12410_s5 + $0x474] ss:$8 sps:$4 sm:$0xff]  }
 0x237   : > { %9127 = vmatprep.subr.bf16.mxu0 %v10575_v31  ;;  %v10654_v31 = vld [vmem:[%s12410_s5 + $0xd74] ss:$8 sps:$4 sm:$0xff]  }
 0x239   : > { %8759 = vmatpush1.bf16.msra.mxu1 %v10570_v32  ;;  %v10649_v32 = vld [vmem:[%s12410_s5 + $0x470] ss:$8 sps:$4 sm:$0xff]  }
 0x23a   : > { %9128 = vmatpush1.bf16.msra.mxu0 %v10573_v33  ;;  %8760 = vmatprep.subr.bf16.mxu1 %v10578_v34  ;;  %v10652_v33 = vld [vmem:[%s12410_s5 + $0xd70] ss:$8 sps:$4 sm:$0xff]   ;;  %v10657_v34 = vld [vmem:[%s12410_s5 + $0x484] ss:$8 sps:$4 sm:$0xff]  }
 0x23b   : > { %9129 = vmatprep.subr.bf16.mxu0 %v10581_v35  ;;  %v10660_v35 = vld [vmem:[%s12410_s5 + $0xd84] ss:$8 sps:$4 sm:$0xff]  }
 0x23d   : > { %8761 = vmatpush1.bf16.msra.mxu1 %v10576_v36  ;;  %v10655_v36 = vld [vmem:[%s12410_s5 + $0x480] ss:$8 sps:$4 sm:$0xff]  }
 0x23e   : > { %9130 = vmatpush1.bf16.msra.mxu0 %v10579_v37  ;;  %8762 = vmatprep.subr.bf16.mxu1 %v10584_v39  ;;  %v10658_v37 = vld [vmem:[%s12410_s5 + $0xd80] ss:$8 sps:$4 sm:$0xff]   ;;  %v10663_v39 = vld [vmem:[%s12410_s5 + $0x494] ss:$8 sps:$4 sm:$0xff]  }
 0x23f   : > { %9131 = vmatprep.subr.bf16.mxu0 %v10587_v15  ;;  %v10666_v15 = vld [vmem:[%s12410_s5 + $0xd94] ss:$8 sps:$4 sm:$0xff]  }
 0x241   : > { %8763 = vmatpush1.bf16.msra.mxu1 %v10582_v42  ;;  %v10661_v42 = vld [vmem:[%s12410_s5 + $0x490] ss:$8 sps:$4 sm:$0xff]  }
 0x242   : > { %9132 = vmatpush1.bf16.msra.mxu0 %v10585_v40  ;;  %8764 = vmatprep.subr.bf16.mxu1 %v10590_v46  ;;  %v10664_v40 = vld [vmem:[%s12410_s5 + $0xd90] ss:$8 sps:$4 sm:$0xff]   ;;  %v10669_v46 = vld [vmem:[%s12410_s5 + $0x4a4] ss:$8 sps:$4 sm:$0xff]  }
 0x243   : > { %9133 = vmatprep.subr.bf16.mxu0 %v10593_v47  ;;  %v10672_v47 = vld [vmem:[%s12410_s5 + $0xda4] ss:$8 sps:$4 sm:$0xff]  }
 0x245   : > { %8765 = vmatpush1.bf16.msra.mxu1 %v10588_v48  ;;  %v10667_v48 = vld [vmem:[%s12410_s5 + $0x4a0] ss:$8 sps:$4 sm:$0xff]  }
 0x246   : > { %9134 = vmatpush1.bf16.msra.mxu0 %v10591_v49  ;;  %8766 = vmatprep.subr.bf16.mxu1 %v10596_v51  ;;  %v10670_v49 = vld [vmem:[%s12410_s5 + $0xda0] ss:$8 sps:$4 sm:$0xff]   ;;  %v10675_v51 = vld [vmem:[%s12410_s5 + $0x4b4] ss:$8 sps:$4 sm:$0xff]  }
 0x247   : > { %9135 = vmatprep.subr.bf16.mxu0 %v10599_v52  ;;  %v10678_v52 = vld [vmem:[%s12410_s5 + $0xdb4] ss:$8 sps:$4 sm:$0xff]  }
 0x249   : > { %8767 = vmatpush1.bf16.msra.mxu1 %v10594_v55  ;;  %v10676_v55 = vld [vmem:[%s12410_s5 + $0xdb0] ss:$8 sps:$4 sm:$0xff]  }
 0x24a   : > { %9136 = vmatpush1.bf16.msra.mxu0 %v10597_v56  ;;  %8768 = vmatprep.subr.bf16.mxu1 %v10602_v57  ;;  %v10681_v56 = vld [vmem:[%s12410_s5 + $0x4c4] ss:$8 sps:$4 sm:$0xff]  }
 0x24b   : > { %9137 = vmatprep.subr.bf16.mxu0 %v10605_v58  ;;  %v10684_v57 = vld [vmem:[%s12410_s5 + $0xdc4] ss:$8 sps:$4 sm:$0xff]   ;;  %v10679_v58 = vld [vmem:[%s12410_s5 + $0x4c0] ss:$8 sps:$4 sm:$0xff]  }
 0x24d   : > { %8769 = vmatpush1.bf16.msra.mxu1 %v10600_v38  ;;  %v10682_v38 = vld [vmem:[%s12410_s5 + $0xdc0] ss:$8 sps:$4 sm:$0xff]  }
 0x24e   : > { %9138 = vmatpush1.bf16.msra.mxu0 %v10603_v28  ;;  %8779 = vmatprep.subr.bf16.mxu1 %v10609_v60  ;;  %v10687_v28 = vld [vmem:[%s12410_s5 + $0x4d4] ss:$8 sps:$4 sm:$0xff]  }
 0x24f   : > { %9148 = vmatprep.subr.bf16.mxu0 %v10612_v61  ;;  %v10690_v60 = vld [vmem:[%s12410_s5 + $0xdd4] ss:$8 sps:$4 sm:$0xff]   ;;  %v10685_v61 = vld [vmem:[%s12410_s5 + $0x4d0] ss:$8 sps:$4 sm:$0xff]  }
 0x250   : > { %8771 = vmatmul.mubr.bf16.vlgmr.msra.gmra.mrb[0].mxu1 %v5129_v0  ;;  %v10696_v0 = vld [vmem:[%s12410_s5 + $0xde4] ss:$8 sps:$4 sm:$0xff]  }
 0x251   : > { %9140 = vmatmul.mubr.bf16.vlgmr.msra.gmra.mrb[0].mxu0 %v5147_v1  ;;  %8780 = vmatpush1.bf16.msra.mxu1 %v10607_v2  ;;  %v12817_v1 = vld [vmem:[%s12398_s26 + $0x38] sm:$0xff]  ;;  %v4968_v2 = vcombine.high %v12735_v54, %v12735_v54 }
 0x252   : > { %9149 = vmatpush1.bf16.msra.mxu0 %v10610_v3  ;;  %8781 = vmatprep.subr.bf16.mxu1 %v10615_v4  ;;  %v10691_v3 = vld [vmem:[%s12410_s5 + $0x4e0] ss:$8 sps:$4 sm:$0xff]   ;;  %v10697_v54 = vld [vmem:[%s12410_s5 + $0x4f0] ss:$8 sps:$4 sm:$0xff]  }
 0x253   : > { %9150 = vmatprep.subr.bf16.mxu0 %v10618_v5  ;;  %8811 = vmatprep.mubr.bf16.mxu1 %v5132_v6  ;;  %v10694_v4 = vld [vmem:[%s12410_s5 + $0xde0] ss:$8 sps:$4 sm:$0xff]   ;;  %v10699_v5 = vld [vmem:[%s12410_s5 + $0x4f4] ss:$8 sps:$4 sm:$0xff]  }
 0x254   : > { %9180 = vmatprep.mubr.bf16.mxu0 %v5150_v7  ;;  %v10702_v6 = vld [vmem:[%s12410_s5 + $0xdf4] ss:$8 sps:$4 sm:$0xff]   ;;  %v12826_v7 = vrot.slane %v4968_v2, %v12460_v50  ;;  %v10770_v2 = vld [vmem:[%s12410_s5 + $0x5b0] ss:$8 sps:$4 sm:$0xff]  }
 0x255   : > { %8782 = vmatpush1.bf16.msra.mxu1 %v10613_v43  ;;  %v12830_v43 = vrot.slane %v12817_v1, %v12460_v50 }
 0x256   : > { %9151 = vmatpush1.bf16.msra.mxu0 %v10616_v45  ;;  %8783 = vmatprep.subr.bf16.mxu1 %v10621_v8  ;;  %v10700_v45 = vld [vmem:[%s12410_s5 + $0xdf0] ss:$8 sps:$4 sm:$0xff]   ;;  %v10705_v8 = vld [vmem:[%s12410_s5 + $0x504] ss:$8 sps:$4 sm:$0xff]  }
 0x257   : > { %9152 = vmatprep.subr.bf16.mxu0 %v10624_v9  ;;  %v10709_v9 = vld [vmem:[%s12410_s5 + $0xe04] ss:$8 sps:$4 sm:$0xff]  }
 0x259   : > { %8784 = vmatpush1.bf16.msra.mxu1 %v10619_v10  ;;  %v4984_v10 = vcombine.high %v12826_v7, %v12826_v7 }
 0x25a   : > { %9153 = vmatpush1.bf16.msra.mxu0 %v10622_v11  ;;  %8785 = vmatprep.subr.bf16.mxu1 %v10627_v12  ;;  %v5068_v11 = vcombine.high %v12830_v43, %v12830_v43  ;;  %v5131_v12 = vpack.c.bf16 %v12743_v59, %v12743_v59  ;;  %v10710_v59 = vld [vmem:[%s12410_s5 + $0x510] ss:$8 sps:$4 sm:$0xff]  }
 0x25b   : > { %9154 = vmatprep.subr.bf16.mxu0 %v10630_v13  ;;  %v5149_v13 = vpack.c.bf16 %v12746_v41, %v12746_v41  ;;  %v10713_v41 = vld [vmem:[%s12410_s5 + $0xe10] ss:$8 sps:$4 sm:$0xff]  }
 0x25d   : > { %8786 = vmatpush1.bf16.msra.mxu1 %v10625_v14  ;;  %v10703_v14 = vld [vmem:[%s12410_s5 + $0x500] ss:$8 sps:$4 sm:$0xff]  }
 0x25e   : > { %9155 = vmatpush1.bf16.msra.mxu0 %v10628_v16  ;;  %8787 = vmatprep.subr.bf16.mxu1 %v10633_v17  ;;  %v10707_v16 = vld [vmem:[%s12410_s5 + $0xe00] ss:$8 sps:$4 sm:$0xff]   ;;  %v10712_v17 = vld [vmem:[%s12410_s5 + $0x514] ss:$8 sps:$4 sm:$0xff]  }
 0x25f   : > { %9156 = vmatprep.subr.bf16.mxu0 %v10636_v18  ;;  %v10715_v18 = vld [vmem:[%s12410_s5 + $0xe14] ss:$8 sps:$4 sm:$0xff]  }
 0x261   : > { %8788 = vmatpush1.bf16.msra.mxu1 %v10631_v19  ;;  %v5134_v19 = vpack.c.bf16 %v4984_v10, %v4984_v10  ;;  %v10785_v10 = vld [vmem:[%s12410_s5 + $0xed0] ss:$8 sps:$4 sm:$0xff]  }
 0x262   : > { %9157 = vmatpush1.bf16.msra.mxu0 %v10634_v20  ;;  %8789 = vmatprep.subr.bf16.mxu1 %v10639_v21  ;;  %v5152_v20 = vpack.c.bf16 %v5068_v11, %v5068_v11  ;;  %v10718_v21 = vld [vmem:[%s12410_s5 + $0x524] ss:$8 sps:$4 sm:$0xff]  }
 0x263   : > { %9158 = vmatprep.subr.bf16.mxu0 %v10642_v22  ;;  %v10721_v22 = vld [vmem:[%s12410_s5 + $0xe24] ss:$8 sps:$4 sm:$0xff]  }
 0x264   : > { %v10790_v11 = vld [vmem:[%s12410_s5 + $0x5e4] ss:$8 sps:$4 sm:$0xff]  }
 0x265   : > { %8790 = vmatpush1.bf16.msra.mxu1 %v10637_v23  ;;  %v10716_v23 = vld [vmem:[%s12410_s5 + $0x520] ss:$8 sps:$4 sm:$0xff]  }
 0x266   : > { %9159 = vmatpush1.bf16.msra.mxu0 %v10640_v24  ;;  %8791 = vmatprep.subr.bf16.mxu1 %v10645_v25  ;;  %v10719_v24 = vld [vmem:[%s12410_s5 + $0xe20] ss:$8 sps:$4 sm:$0xff]   ;;  %v10724_v25 = vld [vmem:[%s12410_s5 + $0x534] ss:$8 sps:$4 sm:$0xff]  }
 0x267   : > { %9160 = vmatprep.subr.bf16.mxu0 %v10648_v26  ;;  %v10727_v26 = vld [vmem:[%s12410_s5 + $0xe34] ss:$8 sps:$4 sm:$0xff]  }
 0x269   : > { %8792 = vmatpush1.bf16.msra.mxu1 %v10643_v27  ;;  %v10722_v27 = vld [vmem:[%s12410_s5 + $0x530] ss:$8 sps:$4 sm:$0xff]  }
 0x26a   : > { %9161 = vmatpush1.bf16.msra.mxu0 %v10646_v29  ;;  %8793 = vmatprep.subr.bf16.mxu1 %v10651_v30  ;;  %v10725_v29 = vld [vmem:[%s12410_s5 + $0xe30] ss:$8 sps:$4 sm:$0xff]   ;;  %v10730_v30 = vld [vmem:[%s12410_s5 + $0x544] ss:$8 sps:$4 sm:$0xff]  }
 0x26b   : > { %9162 = vmatprep.subr.bf16.mxu0 %v10654_v31  ;;  %v10733_v31 = vld [vmem:[%s12410_s5 + $0xe44] ss:$8 sps:$4 sm:$0xff]  }
 0x26d   : > { %8794 = vmatpush1.bf16.msra.mxu1 %v10649_v32  ;;  %v10728_v32 = vld [vmem:[%s12410_s5 + $0x540] ss:$8 sps:$4 sm:$0xff]  }
 0x26e   : > { %9163 = vmatpush1.bf16.msra.mxu0 %v10652_v33  ;;  %8795 = vmatprep.subr.bf16.mxu1 %v10657_v34  ;;  %v10731_v33 = vld [vmem:[%s12410_s5 + $0xe40] ss:$8 sps:$4 sm:$0xff]   ;;  %v10736_v34 = vld [vmem:[%s12410_s5 + $0x554] ss:$8 sps:$4 sm:$0xff]  }
 0x26f   : > { %9164 = vmatprep.subr.bf16.mxu0 %v10660_v35  ;;  %v10739_v35 = vld [vmem:[%s12410_s5 + $0xe54] ss:$8 sps:$4 sm:$0xff]  }
 0x271   : > { %8796 = vmatpush1.bf16.msra.mxu1 %v10655_v36  ;;  %v10734_v36 = vld [vmem:[%s12410_s5 + $0x550] ss:$8 sps:$4 sm:$0xff]  }
 0x272   : > { %9165 = vmatpush1.bf16.msra.mxu0 %v10658_v37  ;;  %8797 = vmatprep.subr.bf16.mxu1 %v10663_v39  ;;  %v10737_v37 = vld [vmem:[%s12410_s5 + $0xe50] ss:$8 sps:$4 sm:$0xff]   ;;  %v10742_v39 = vld [vmem:[%s12410_s5 + $0x564] ss:$8 sps:$4 sm:$0xff]  }
 0x273   : > { %9166 = vmatprep.subr.bf16.mxu0 %v10666_v15  ;;  %v10745_v15 = vld [vmem:[%s12410_s5 + $0xe64] ss:$8 sps:$4 sm:$0xff]  }
 0x275   : > { %8798 = vmatpush1.bf16.msra.mxu1 %v10661_v42  ;;  %v10740_v42 = vld [vmem:[%s12410_s5 + $0x560] ss:$8 sps:$4 sm:$0xff]  }
 0x276   : > { %9167 = vmatpush1.bf16.msra.mxu0 %v10664_v40  ;;  %8799 = vmatprep.subr.bf16.mxu1 %v10669_v46  ;;  %v10743_v40 = vld [vmem:[%s12410_s5 + $0xe60] ss:$8 sps:$4 sm:$0xff]   ;;  %v10748_v46 = vld [vmem:[%s12410_s5 + $0x574] ss:$8 sps:$4 sm:$0xff]  }
 0x277   : > { %9168 = vmatprep.subr.bf16.mxu0 %v10672_v47  ;;  %v10751_v47 = vld [vmem:[%s12410_s5 + $0xe74] ss:$8 sps:$4 sm:$0xff]  }
 0x279   : > { %8800 = vmatpush1.bf16.msra.mxu1 %v10667_v48  ;;  %v10746_v48 = vld [vmem:[%s12410_s5 + $0x570] ss:$8 sps:$4 sm:$0xff]  }
 0x27a   : > { %9169 = vmatpush1.bf16.msra.mxu0 %v10670_v49  ;;  %8801 = vmatprep.subr.bf16.mxu1 %v10675_v51  ;;  %v10749_v49 = vld [vmem:[%s12410_s5 + $0xe70] ss:$8 sps:$4 sm:$0xff]   ;;  %v10754_v51 = vld [vmem:[%s12410_s5 + $0x584] ss:$8 sps:$4 sm:$0xff]  }
 0x27b   : > { %9170 = vmatprep.subr.bf16.mxu0 %v10678_v52  ;;  %v10757_v52 = vld [vmem:[%s12410_s5 + $0xe84] ss:$8 sps:$4 sm:$0xff]  }
 0x27d   : > { %8802 = vmatpush1.bf16.msra.mxu1 %v10673_v53  ;;  %v10752_v53 = vld [vmem:[%s12410_s5 + $0x580] ss:$8 sps:$4 sm:$0xff]  }
 0x27e   : > { %9171 = vmatpush1.bf16.msra.mxu0 %v10676_v55  ;;  %8803 = vmatprep.subr.bf16.mxu1 %v10681_v56  ;;  %v10755_v55 = vld [vmem:[%s12410_s5 + $0xe80] ss:$8 sps:$4 sm:$0xff]   ;;  %v10760_v56 = vld [vmem:[%s12410_s5 + $0x594] ss:$8 sps:$4 sm:$0xff]  }
 0x27f   : > { %9172 = vmatprep.subr.bf16.mxu0 %v10684_v57  ;;  %v10763_v57 = vld [vmem:[%s12410_s5 + $0xe94] ss:$8 sps:$4 sm:$0xff]  }
 0x281   : > { %8804 = vmatpush1.bf16.msra.mxu1 %v10679_v58  ;;  %v10758_v58 = vld [vmem:[%s12410_s5 + $0x590] ss:$8 sps:$4 sm:$0xff]  }
 0x282   : > { %9173 = vmatpush1.bf16.msra.mxu0 %v10682_v38  ;;  %8805 = vmatprep.subr.bf16.mxu1 %v10687_v28  ;;  %v10761_v38 = vld [vmem:[%s12410_s5 + $0xe90] ss:$8 sps:$4 sm:$0xff]   ;;  %v10766_v28 = vld [vmem:[%s12410_s5 + $0x5a4] ss:$8 sps:$4 sm:$0xff]  }
 0x283   : > { %9174 = vmatprep.subr.bf16.mxu0 %v10690_v60  ;;  %v10769_v60 = vld [vmem:[%s12410_s5 + $0xea4] ss:$8 sps:$4 sm:$0xff]  }
 0x285   : > { %8806 = vmatpush1.bf16.msra.mxu1 %v10685_v61  ;;  %v10764_v61 = vld [vmem:[%s12410_s5 + $0x5a0] ss:$8 sps:$4 sm:$0xff]  }
 0x286   : > { %9175 = vmatpush1.bf16.msra.mxu0 %v10688_v62  ;;  %8807 = vmatprep.subr.bf16.mxu1 %v10693_v63  ;;  %v10767_v62 = vld [vmem:[%s12410_s5 + $0xea0] ss:$8 sps:$4 sm:$0xff]   ;;  %v10772_v63 = vld [vmem:[%s12410_s5 + $0x5b4] ss:$8 sps:$4 sm:$0xff]  }
 0x287   : > { %9176 = vmatprep.subr.bf16.mxu0 %v10696_v0  ;;  %v10775_v0 = vld [vmem:[%s12410_s5 + $0xeb4] ss:$8 sps:$4 sm:$0xff]  }
 0x289   : > { %8808 = vmatpush1.bf16.msra.mxu1 %v10691_v3  ;;  %v10773_v3 = vld [vmem:[%s12410_s5 + $0xeb0] ss:$8 sps:$4 sm:$0xff]  }
 0x28a   : > { %9177 = vmatpush1.bf16.msra.mxu0 %v10694_v4  ;;  %8809 = vmatprep.subr.bf16.mxu1 %v10699_v5  ;;  %v10778_v4 = vld [vmem:[%s12410_s5 + $0x5c4] ss:$8 sps:$4 sm:$0xff]  }
 0x28b   : > { %9178 = vmatprep.subr.bf16.mxu0 %v10702_v6  ;;  %v10781_v5 = vld [vmem:[%s12410_s5 + $0xec4] ss:$8 sps:$4 sm:$0xff]   ;;  %v10776_v6 = vld [vmem:[%s12410_s5 + $0x5c0] ss:$8 sps:$4 sm:$0xff]  }
 0x28d   : > { %8810 = vmatpush1.bf16.msra.mxu1 %v10697_v54  ;;  %v10779_v54 = vld [vmem:[%s12410_s5 + $0xec0] ss:$8 sps:$4 sm:$0xff]  }
 0x28e   : > { %9179 = vmatpush1.bf16.msra.mxu0 %v10700_v45  ;;  %8820 = vmatprep.subr.bf16.mxu1 %v10705_v8  ;;  %v10784_v45 = vld [vmem:[%s12410_s5 + $0x5d4] ss:$8 sps:$4 sm:$0xff]  }
 0x28f   : > { %9189 = vmatprep.subr.bf16.mxu0 %v10709_v9  ;;  %v10787_v8 = vld [vmem:[%s12410_s5 + $0xed4] ss:$8 sps:$4 sm:$0xff]   ;;  %v10782_v9 = vld [vmem:[%s12410_s5 + $0x5d0] ss:$8 sps:$4 sm:$0xff]  }
 0x290   : > { %8812 = vmatmul.mubr.bf16.vlgmr.msra.gmra.mrb[0].mxu1 %v5131_v12  ;;  %v10793_v12 = vld [vmem:[%s12410_s5 + $0xee4] ss:$8 sps:$4 sm:$0xff]  }
 0x291   : > { %9181 = vmatmul.mubr.bf16.vlgmr.msra.gmra.mrb[0].mxu0 %v5149_v13  ;;  %8821 = vmatpush1.bf16.msra.mxu1 %v10703_v14  ;;  %v5053_v13 = vcombine.high %v12817_v1, %v12817_v1  ;;  %v12903_v14 = vld [vmem:[%s12398_s26 + $0x18] sm:$0xff] }
 0x292   : > { %9190 = vmatpush1.bf16.msra.mxu0 %v10707_v16  ;;  %8822 = vmatprep.subr.bf16.mxu1 %v10712_v17  ;;  %v10788_v16 = vld [vmem:[%s12410_s5 + $0x5e0] ss:$8 sps:$4 sm:$0xff]   ;;  %v10794_v1 = vld [vmem:[%s12410_s5 + $0x5f0] ss:$8 sps:$4 sm:$0xff]  }
 0x293   : > { %9191 = vmatprep.subr.bf16.mxu0 %v10715_v18  ;;  %8852 = vmatprep.mubr.bf16.mxu1 %v5134_v19  ;;  %v10791_v17 = vld [vmem:[%s12410_s5 + $0xee0] ss:$8 sps:$4 sm:$0xff]   ;;  %v10796_v18 = vld [vmem:[%s12410_s5 + $0x5f4] ss:$8 sps:$4 sm:$0xff]  }
 0x294   : > { %9221 = vmatprep.mubr.bf16.mxu0 %v5152_v20  ;;  %v10799_v19 = vld [vmem:[%s12410_s5 + $0xef4] ss:$8 sps:$4 sm:$0xff]   ;;  %v12911_v20 = vrot.slane %v12903_v14, %v12460_v50 }
 0x295   : > { %8823 = vmatpush1.bf16.msra.mxu1 %v10710_v59  ;;  %v12914_v59 = vrot.slane %v5053_v13, %v12460_v50  ;;  %v10867_v13 = vld [vmem:[%s12410_s5 + $0x6b0] ss:$8 sps:$4 sm:$0xff]  }
 0x296   : > { %9192 = vmatpush1.bf16.msra.mxu0 %v10713_v41  ;;  %8824 = vmatprep.subr.bf16.mxu1 %v10718_v21  ;;  %v10797_v41 = vld [vmem:[%s12410_s5 + $0xef0] ss:$8 sps:$4 sm:$0xff]   ;;  %v10803_v21 = vld [vmem:[%s12410_s5 + $0x604] ss:$8 sps:$4 sm:$0xff]  }
 0x297   : > { %9193 = vmatprep.subr.bf16.mxu0 %v10721_v22  ;;  %v10806_v22 = vld [vmem:[%s12410_s5 + $0xf04] ss:$8 sps:$4 sm:$0xff]  }
 0x299   : > { %8825 = vmatpush1.bf16.msra.mxu1 %v10716_v23  ;;  %v5000_v23 = vcombine.high %v12911_v20, %v12911_v20 }
 0x29a   : > { %9194 = vmatpush1.bf16.msra.mxu0 %v10719_v24  ;;  %8826 = vmatprep.subr.bf16.mxu1 %v10724_v25  ;;  %v5069_v24 = vcombine.high %v12914_v59, %v12914_v59  ;;  %v5133_v25 = vpack.c.bf16 %v12826_v7, %v12826_v7  ;;  %v10807_v7 = vld [vmem:[%s12410_s5 + $0x610] ss:$8 sps:$4 sm:$0xff]  }
 0x29b   : > { %9195 = vmatprep.subr.bf16.mxu0 %v10727_v26  ;;  %v5151_v26 = vpack.c.bf16 %v12830_v43, %v12830_v43  ;;  %v10810_v43 = vld [vmem:[%s12410_s5 + $0xf10] ss:$8 sps:$4 sm:$0xff]  }
 0x29d   : > { %8827 = vmatpush1.bf16.msra.mxu1 %v10722_v27  ;;  %v10801_v27 = vld [vmem:[%s12410_s5 + $0x600] ss:$8 sps:$4 sm:$0xff]  }
 0x29e   : > { %9196 = vmatpush1.bf16.msra.mxu0 %v10725_v29  ;;  %8828 = vmatprep.subr.bf16.mxu1 %v10730_v30  ;;  %v10804_v29 = vld [vmem:[%s12410_s5 + $0xf00] ss:$8 sps:$4 sm:$0xff]   ;;  %v10809_v30 = vld [vmem:[%s12410_s5 + $0x614] ss:$8 sps:$4 sm:$0xff]  }
 0x29f   : > { %9197 = vmatprep.subr.bf16.mxu0 %v10733_v31  ;;  %v10812_v31 = vld [vmem:[%s12410_s5 + $0xf14] ss:$8 sps:$4 sm:$0xff]  }
 0x2a1   : > { %8829 = vmatpush1.bf16.msra.mxu1 %v10728_v32  ;;  %v5136_v32 = vpack.c.bf16 %v5000_v23, %v5000_v23  ;;  %v10882_v23 = vld [vmem:[%s12410_s5 + $0xfd0] ss:$8 sps:$4 sm:$0xff]  }
 0x2a2   : > { %9198 = vmatpush1.bf16.msra.mxu0 %v10731_v33  ;;  %8830 = vmatprep.subr.bf16.mxu1 %v10736_v34  ;;  %v5154_v33 = vpack.c.bf16 %v5069_v24, %v5069_v24  ;;  %v10815_v34 = vld [vmem:[%s12410_s5 + $0x624] ss:$8 sps:$4 sm:$0xff]  }
 0x2a3   : > { %9199 = vmatprep.subr.bf16.mxu0 %v10739_v35  ;;  %v10818_v35 = vld [vmem:[%s12410_s5 + $0xf24] ss:$8 sps:$4 sm:$0xff]  }
 0x2a4   : > { %v10887_v24 = vld [vmem:[%s12410_s5 + $0x6e4] ss:$8 sps:$4 sm:$0xff]  }
 0x2a5   : > { %8831 = vmatpush1.bf16.msra.mxu1 %v10734_v36  ;;  %v10813_v36 = vld [vmem:[%s12410_s5 + $0x620] ss:$8 sps:$4 sm:$0xff]  }
 0x2a6   : > { %9200 = vmatpush1.bf16.msra.mxu0 %v10737_v37  ;;  %8832 = vmatprep.subr.bf16.mxu1 %v10742_v39  ;;  %v10816_v37 = vld [vmem:[%s12410_s5 + $0xf20] ss:$8 sps:$4 sm:$0xff]   ;;  %v10821_v39 = vld [vmem:[%s12410_s5 + $0x634] ss:$8 sps:$4 sm:$0xff]  }
 0x2a7   : > { %9201 = vmatprep.subr.bf16.mxu0 %v10745_v15  ;;  %v10824_v15 = vld [vmem:[%s12410_s5 + $0xf34] ss:$8 sps:$4 sm:$0xff]  }
 0x2a9   : > { %8833 = vmatpush1.bf16.msra.mxu1 %v10740_v42  ;;  %v10819_v42 = vld [vmem:[%s12410_s5 + $0x630] ss:$8 sps:$4 sm:$0xff]  }
 0x2aa   : > { %9202 = vmatpush1.bf16.msra.mxu0 %v10743_v40  ;;  %8834 = vmatprep.subr.bf16.mxu1 %v10748_v46  ;;  %v10822_v40 = vld [vmem:[%s12410_s5 + $0xf30] ss:$8 sps:$4 sm:$0xff]   ;;  %v10827_v46 = vld [vmem:[%s12410_s5 + $0x644] ss:$8 sps:$4 sm:$0xff]  }
 0x2ab   : > { %9203 = vmatprep.subr.bf16.mxu0 %v10751_v47  ;;  %v10830_v47 = vld [vmem:[%s12410_s5 + $0xf44] ss:$8 sps:$4 sm:$0xff]  }
 0x2ad   : > { %8835 = vmatpush1.bf16.msra.mxu1 %v10746_v48  ;;  %v10825_v48 = vld [vmem:[%s12410_s5 + $0x640] ss:$8 sps:$4 sm:$0xff]  }
 0x2ae   : > { %9204 = vmatpush1.bf16.msra.mxu0 %v10749_v49  ;;  %8836 = vmatprep.subr.bf16.mxu1 %v10754_v51  ;;  %v10828_v49 = vld [vmem:[%s12410_s5 + $0xf40] ss:$8 sps:$4 sm:$0xff]   ;;  %v10833_v51 = vld [vmem:[%s12410_s5 + $0x654] ss:$8 sps:$4 sm:$0xff]  }
 0x2af   : > { %9205 = vmatprep.subr.bf16.mxu0 %v10757_v52  ;;  %v10836_v52 = vld [vmem:[%s12410_s5 + $0xf54] ss:$8 sps:$4 sm:$0xff]  }
 0x2b1   : > { %8837 = vmatpush1.bf16.msra.mxu1 %v10752_v53  ;;  %v10831_v53 = vld [vmem:[%s12410_s5 + $0x650] ss:$8 sps:$4 sm:$0xff]  }
 0x2b2   : > { %9206 = vmatpush1.bf16.msra.mxu0 %v10755_v55  ;;  %8838 = vmatprep.subr.bf16.mxu1 %v10760_v56  ;;  %v10834_v55 = vld [vmem:[%s12410_s5 + $0xf50] ss:$8 sps:$4 sm:$0xff]   ;;  %v10839_v56 = vld [vmem:[%s12410_s5 + $0x664] ss:$8 sps:$4 sm:$0xff]  }
 0x2b3   : > { %9207 = vmatprep.subr.bf16.mxu0 %v10763_v57  ;;  %v10842_v57 = vld [vmem:[%s12410_s5 + $0xf64] ss:$8 sps:$4 sm:$0xff]  }
 0x2b5   : > { %8839 = vmatpush1.bf16.msra.mxu1 %v10758_v58  ;;  %v10837_v58 = vld [vmem:[%s12410_s5 + $0x660] ss:$8 sps:$4 sm:$0xff]  }
 0x2b6   : > { %9208 = vmatpush1.bf16.msra.mxu0 %v10761_v38  ;;  %8840 = vmatprep.subr.bf16.mxu1 %v10766_v28  ;;  %v10840_v38 = vld [vmem:[%s12410_s5 + $0xf60] ss:$8 sps:$4 sm:$0xff]   ;;  %v10845_v28 = vld [vmem:[%s12410_s5 + $0x674] ss:$8 sps:$4 sm:$0xff]  }
 0x2b7   : > { %9209 = vmatprep.subr.bf16.mxu0 %v10769_v60  ;;  %v10848_v60 = vld [vmem:[%s12410_s5 + $0xf74] ss:$8 sps:$4 sm:$0xff]  }
 0x2b9   : > { %8841 = vmatpush1.bf16.msra.mxu1 %v10764_v61  ;;  %v10843_v61 = vld [vmem:[%s12410_s5 + $0x670] ss:$8 sps:$4 sm:$0xff]  }
 0x2ba   : > { %9210 = vmatpush1.bf16.msra.mxu0 %v10767_v62  ;;  %8842 = vmatprep.subr.bf16.mxu1 %v10772_v63  ;;  %v10846_v62 = vld [vmem:[%s12410_s5 + $0xf70] ss:$8 sps:$4 sm:$0xff]   ;;  %v10851_v63 = vld [vmem:[%s12410_s5 + $0x684] ss:$8 sps:$4 sm:$0xff]  }
 0x2bb   : > { %9211 = vmatprep.subr.bf16.mxu0 %v10775_v0  ;;  %v10854_v0 = vld [vmem:[%s12410_s5 + $0xf84] ss:$8 sps:$4 sm:$0xff]  }
 0x2bd   : > { %8843 = vmatpush1.bf16.msra.mxu1 %v10770_v2  ;;  %v10849_v2 = vld [vmem:[%s12410_s5 + $0x680] ss:$8 sps:$4 sm:$0xff]  }
 0x2be   : > { %9212 = vmatpush1.bf16.msra.mxu0 %v10773_v3  ;;  %8844 = vmatprep.subr.bf16.mxu1 %v10778_v4  ;;  %v10852_v3 = vld [vmem:[%s12410_s5 + $0xf80] ss:$8 sps:$4 sm:$0xff]   ;;  %v10857_v4 = vld [vmem:[%s12410_s5 + $0x694] ss:$8 sps:$4 sm:$0xff]  }
 0x2bf   : > { %9213 = vmatprep.subr.bf16.mxu0 %v10781_v5  ;;  %v10860_v5 = vld [vmem:[%s12410_s5 + $0xf94] ss:$8 sps:$4 sm:$0xff]  }
 0x2c1   : > { %8845 = vmatpush1.bf16.msra.mxu1 %v10776_v6  ;;  %v10855_v6 = vld [vmem:[%s12410_s5 + $0x690] ss:$8 sps:$4 sm:$0xff]  }
 0x2c2   : > { %9214 = vmatpush1.bf16.msra.mxu0 %v10779_v54  ;;  %8846 = vmatprep.subr.bf16.mxu1 %v10784_v45  ;;  %v10858_v54 = vld [vmem:[%s12410_s5 + $0xf90] ss:$8 sps:$4 sm:$0xff]   ;;  %v10863_v45 = vld [vmem:[%s12410_s5 + $0x6a4] ss:$8 sps:$4 sm:$0xff]  }
 0x2c3   : > { %9215 = vmatprep.subr.bf16.mxu0 %v10787_v8  ;;  %v10866_v8 = vld [vmem:[%s12410_s5 + $0xfa4] ss:$8 sps:$4 sm:$0xff]  }
 0x2c5   : > { %8847 = vmatpush1.bf16.msra.mxu1 %v10782_v9  ;;  %v10861_v9 = vld [vmem:[%s12410_s5 + $0x6a0] ss:$8 sps:$4 sm:$0xff]  }
 0x2c6   : > { %9216 = vmatpush1.bf16.msra.mxu0 %v10785_v10  ;;  %8848 = vmatprep.subr.bf16.mxu1 %v10790_v11  ;;  %v10864_v10 = vld [vmem:[%s12410_s5 + $0xfa0] ss:$8 sps:$4 sm:$0xff]   ;;  %v10869_v11 = vld [vmem:[%s12410_s5 + $0x6b4] ss:$8 sps:$4 sm:$0xff]  }
 0x2c7   : > { %9217 = vmatprep.subr.bf16.mxu0 %v10793_v12  ;;  %v10872_v12 = vld [vmem:[%s12410_s5 + $0xfb4] ss:$8 sps:$4 sm:$0xff]  }
 0x2c9   : > { %8849 = vmatpush1.bf16.msra.mxu1 %v10788_v16  ;;  %v10870_v16 = vld [vmem:[%s12410_s5 + $0xfb0] ss:$8 sps:$4 sm:$0xff]  }
 0x2ca   : > { %9218 = vmatpush1.bf16.msra.mxu0 %v10791_v17  ;;  %8850 = vmatprep.subr.bf16.mxu1 %v10796_v18  ;;  %v10875_v17 = vld [vmem:[%s12410_s5 + $0x6c4] ss:$8 sps:$4 sm:$0xff]  }
 0x2cb   : > { %9219 = vmatprep.subr.bf16.mxu0 %v10799_v19  ;;  %v10878_v18 = vld [vmem:[%s12410_s5 + $0xfc4] ss:$8 sps:$4 sm:$0xff]   ;;  %v10873_v19 = vld [vmem:[%s12410_s5 + $0x6c0] ss:$8 sps:$4 sm:$0xff]  }
 0x2cd   : > { %8851 = vmatpush1.bf16.msra.mxu1 %v10794_v1  ;;  %v10876_v1 = vld [vmem:[%s12410_s5 + $0xfc0] ss:$8 sps:$4 sm:$0xff]  }
 0x2ce   : > { %9220 = vmatpush1.bf16.msra.mxu0 %v10797_v41  ;;  %8861 = vmatprep.subr.bf16.mxu1 %v10803_v21  ;;  %v10881_v41 = vld [vmem:[%s12410_s5 + $0x6d4] ss:$8 sps:$4 sm:$0xff]  }
 0x2cf   : > { %9230 = vmatprep.subr.bf16.mxu0 %v10806_v22  ;;  %v10884_v21 = vld [vmem:[%s12410_s5 + $0xfd4] ss:$8 sps:$4 sm:$0xff]   ;;  %v10879_v22 = vld [vmem:[%s12410_s5 + $0x6d0] ss:$8 sps:$4 sm:$0xff]  }
 0x2d0   : > { %8853 = vmatmul.mubr.bf16.vlgmr.msra.gmra.mrb[0].mxu1 %v5133_v25  ;;  %v10890_v25 = vld [vmem:[%s12410_s5 + $0xfe4] ss:$8 sps:$4 sm:$0xff]  }
 0x2d1   : > { %9222 = vmatmul.mubr.bf16.vlgmr.msra.gmra.mrb[0].mxu0 %v5151_v26  ;;  %8862 = vmatpush1.bf16.msra.mxu1 %v10801_v27  ;;  %v4985_v26 = vcombine.high %v12903_v14, %v12903_v14  ;;  %v12987_v27 = vld [vmem:[%s12398_s26 + $0x40] sm:$0xff]  ;;  %v10891_v14 = vld [vmem:[%s12410_s5 + $0x6f0] ss:$8 sps:$4 sm:$0xff]  }
 0x2d2   : > { %9231 = vmatpush1.bf16.msra.mxu0 %v10804_v29  ;;  %8863 = vmatprep.subr.bf16.mxu1 %v10809_v30  ;;  %v10885_v29 = vld [vmem:[%s12410_s5 + $0x6e0] ss:$8 sps:$4 sm:$0xff]  }
 0x2d3   : > { %9232 = vmatprep.subr.bf16.mxu0 %v10812_v31  ;;  %8893 = vmatprep.mubr.bf16.mxu1 %v5136_v32  ;;  %v10888_v30 = vld [vmem:[%s12410_s5 + $0xfe0] ss:$8 sps:$4 sm:$0xff]   ;;  %v10893_v31 = vld [vmem:[%s12410_s5 + $0x6f4] ss:$8 sps:$4 sm:$0xff]  }
 0x2d4   : > { %9262 = vmatprep.mubr.bf16.mxu0 %v5154_v33  ;;  %v10896_v32 = vld [vmem:[%s12410_s5 + $0xff4] ss:$8 sps:$4 sm:$0xff]   ;;  %v12994_v33 = vrot.slane %v4985_v26, %v12460_v50  ;;  %v10964_v26 = vld [vmem:[%s12410_s5 + $0x7b0] ss:$8 sps:$4 sm:$0xff]  }
 0x2d5   : > { %8864 = vmatpush1.bf16.msra.mxu1 %v10807_v7  ;;  %v12998_v7 = vrot.slane %v12987_v27, %v12460_v50 }
 0x2d6   : > { %9233 = vmatpush1.bf16.msra.mxu0 %v10810_v43  ;;  %8865 = vmatprep.subr.bf16.mxu1 %v10815_v34  ;;  %v10894_v43 = vld [vmem:[%s12410_s5 + $0xff0] ss:$8 sps:$4 sm:$0xff]   ;;  %v10899_v34 = vld [vmem:[%s12410_s5 + $0x704] ss:$8 sps:$4 sm:$0xff]  }
 0x2d7   : > { %9234 = vmatprep.subr.bf16.mxu0 %v10818_v35  ;;  %v10903_v35 = vld [vmem:[%s12410_s5 + $0x1004] ss:$8 sps:$4 sm:$0xff]  }
 0x2d9   : > { %8866 = vmatpush1.bf16.msra.mxu1 %v10813_v36  ;;  %v5001_v36 = vcombine.high %v12994_v33, %v12994_v33 }
 0x2da   : > { %9235 = vmatpush1.bf16.msra.mxu0 %v10816_v37  ;;  %8867 = vmatprep.subr.bf16.mxu1 %v10821_v39  ;;  %v5085_v37 = vcombine.high %v12998_v7, %v12998_v7  ;;  %v5135_v39 = vpack.c.bf16 %v12911_v20, %v12911_v20  ;;  %v10904_v20 = vld [vmem:[%s12410_s5 + $0x710] ss:$8 sps:$4 sm:$0xff]  }
 0x2db   : > { %9236 = vmatprep.subr.bf16.mxu0 %v10824_v15  ;;  %v5153_v15 = vpack.c.bf16 %v12914_v59, %v12914_v59  ;;  %v10907_v59 = vld [vmem:[%s12410_s5 + $0x1010] ss:$8 sps:$4 sm:$0xff]  }
 0x2dd   : > { %8868 = vmatpush1.bf16.msra.mxu1 %v10819_v42  ;;  %v10897_v42 = vld [vmem:[%s12410_s5 + $0x700] ss:$8 sps:$4 sm:$0xff]  }
 0x2de   : > { %9237 = vmatpush1.bf16.msra.mxu0 %v10822_v40  ;;  %8869 = vmatprep.subr.bf16.mxu1 %v10827_v46  ;;  %v10901_v40 = vld [vmem:[%s12410_s5 + $0x1000] ss:$8 sps:$4 sm:$0xff]   ;;  %v10906_v46 = vld [vmem:[%s12410_s5 + $0x714] ss:$8 sps:$4 sm:$0xff]  }
 0x2df   : > { %9238 = vmatprep.subr.bf16.mxu0 %v10830_v47  ;;  %v10909_v47 = vld [vmem:[%s12410_s5 + $0x1014] ss:$8 sps:$4 sm:$0xff]  }
 0x2e1   : > { %8870 = vmatpush1.bf16.msra.mxu1 %v10825_v48  ;;  %v5138_v48 = vpack.c.bf16 %v5001_v36, %v5001_v36  ;;  %v10979_v36 = vld [vmem:[%s12410_s5 + $0x10d0] ss:$8 sps:$4 sm:$0xff]  }
 0x2e2   : > { %9239 = vmatpush1.bf16.msra.mxu0 %v10828_v49  ;;  %8871 = vmatprep.subr.bf16.mxu1 %v10833_v51  ;;  %v5156_v49 = vpack.c.bf16 %v5085_v37, %v5085_v37  ;;  %v10912_v51 = vld [vmem:[%s12410_s5 + $0x724] ss:$8 sps:$4 sm:$0xff]  }
 0x2e3   : > { %9240 = vmatprep.subr.bf16.mxu0 %v10836_v52  ;;  %v10915_v52 = vld [vmem:[%s12410_s5 + $0x1024] ss:$8 sps:$4 sm:$0xff]  }
 0x2e4   : > { %v10984_v37 = vld [vmem:[%s12410_s5 + $0x7e4] ss:$8 sps:$4 sm:$0xff]  }
 0x2e5   : > { %8872 = vmatpush1.bf16.msra.mxu1 %v10831_v53  ;;  %v10910_v53 = vld [vmem:[%s12410_s5 + $0x720] ss:$8 sps:$4 sm:$0xff]  }
 0x2e6   : > { %9241 = vmatpush1.bf16.msra.mxu0 %v10834_v55  ;;  %8873 = vmatprep.subr.bf16.mxu1 %v10839_v56  ;;  %v10913_v55 = vld [vmem:[%s12410_s5 + $0x1020] ss:$8 sps:$4 sm:$0xff]   ;;  %v10918_v56 = vld [vmem:[%s12410_s5 + $0x734] ss:$8 sps:$4 sm:$0xff]  }
 0x2e7   : > { %9242 = vmatprep.subr.bf16.mxu0 %v10842_v57  ;;  %v10921_v57 = vld [vmem:[%s12410_s5 + $0x1034] ss:$8 sps:$4 sm:$0xff]  }
 0x2e9   : > { %8874 = vmatpush1.bf16.msra.mxu1 %v10837_v58  ;;  %v10916_v58 = vld [vmem:[%s12410_s5 + $0x730] ss:$8 sps:$4 sm:$0xff]  }
 0x2ea   : > { %9243 = vmatpush1.bf16.msra.mxu0 %v10840_v38  ;;  %8875 = vmatprep.subr.bf16.mxu1 %v10845_v28  ;;  %v10919_v38 = vld [vmem:[%s12410_s5 + $0x1030] ss:$8 sps:$4 sm:$0xff]   ;;  %v10924_v28 = vld [vmem:[%s12410_s5 + $0x744] ss:$8 sps:$4 sm:$0xff]  }
 0x2eb   : > { %9244 = vmatprep.subr.bf16.mxu0 %v10848_v60  ;;  %v10927_v60 = vld [vmem:[%s12410_s5 + $0x1044] ss:$8 sps:$4 sm:$0xff]  }
 0x2ed   : > { %8876 = vmatpush1.bf16.msra.mxu1 %v10843_v61  ;;  %v10922_v61 = vld [vmem:[%s12410_s5 + $0x740] ss:$8 sps:$4 sm:$0xff]  }
 0x2ee   : > { %9245 = vmatpush1.bf16.msra.mxu0 %v10846_v62  ;;  %8877 = vmatprep.subr.bf16.mxu1 %v10851_v63  ;;  %v10925_v62 = vld [vmem:[%s12410_s5 + $0x1040] ss:$8 sps:$4 sm:$0xff]   ;;  %v10930_v63 = vld [vmem:[%s12410_s5 + $0x754] ss:$8 sps:$4 sm:$0xff]  }
 0x2ef   : > { %9246 = vmatprep.subr.bf16.mxu0 %v10854_v0  ;;  %v10933_v0 = vld [vmem:[%s12410_s5 + $0x1054] ss:$8 sps:$4 sm:$0xff]  }
 0x2f1   : > { %8878 = vmatpush1.bf16.msra.mxu1 %v10849_v2  ;;  %v10928_v2 = vld [vmem:[%s12410_s5 + $0x750] ss:$8 sps:$4 sm:$0xff]  }
 0x2f2   : > { %9247 = vmatpush1.bf16.msra.mxu0 %v10852_v3  ;;  %8879 = vmatprep.subr.bf16.mxu1 %v10857_v4  ;;  %v10931_v3 = vld [vmem:[%s12410_s5 + $0x1050] ss:$8 sps:$4 sm:$0xff]   ;;  %v10936_v4 = vld [vmem:[%s12410_s5 + $0x764] ss:$8 sps:$4 sm:$0xff]  }
 0x2f3   : > { %9248 = vmatprep.subr.bf16.mxu0 %v10860_v5  ;;  %v10939_v5 = vld [vmem:[%s12410_s5 + $0x1064] ss:$8 sps:$4 sm:$0xff]  }
 0x2f5   : > { %8880 = vmatpush1.bf16.msra.mxu1 %v10855_v6  ;;  %v10934_v6 = vld [vmem:[%s12410_s5 + $0x760] ss:$8 sps:$4 sm:$0xff]  }
 0x2f6   : > { %9249 = vmatpush1.bf16.msra.mxu0 %v10858_v54  ;;  %8881 = vmatprep.subr.bf16.mxu1 %v10863_v45  ;;  %v10937_v54 = vld [vmem:[%s12410_s5 + $0x1060] ss:$8 sps:$4 sm:$0xff]   ;;  %v10942_v45 = vld [vmem:[%s12410_s5 + $0x774] ss:$8 sps:$4 sm:$0xff]  }
 0x2f7   : > { %9250 = vmatprep.subr.bf16.mxu0 %v10866_v8  ;;  %v10945_v8 = vld [vmem:[%s12410_s5 + $0x1074] ss:$8 sps:$4 sm:$0xff]  }
 0x2f9   : > { %8882 = vmatpush1.bf16.msra.mxu1 %v10861_v9  ;;  %v10940_v9 = vld [vmem:[%s12410_s5 + $0x770] ss:$8 sps:$4 sm:$0xff]  }
 0x2fa   : > { %9251 = vmatpush1.bf16.msra.mxu0 %v10864_v10  ;;  %8883 = vmatprep.subr.bf16.mxu1 %v10869_v11  ;;  %v10943_v10 = vld [vmem:[%s12410_s5 + $0x1070] ss:$8 sps:$4 sm:$0xff]   ;;  %v10948_v11 = vld [vmem:[%s12410_s5 + $0x784] ss:$8 sps:$4 sm:$0xff]  }
 0x2fb   : > { %9252 = vmatprep.subr.bf16.mxu0 %v10872_v12  ;;  %v10951_v12 = vld [vmem:[%s12410_s5 + $0x1084] ss:$8 sps:$4 sm:$0xff]  }
 0x2fd   : > { %8884 = vmatpush1.bf16.msra.mxu1 %v10867_v13  ;;  %v10946_v13 = vld [vmem:[%s12410_s5 + $0x780] ss:$8 sps:$4 sm:$0xff]  }
 0x2fe   : > { %9253 = vmatpush1.bf16.msra.mxu0 %v10870_v16  ;;  %8885 = vmatprep.subr.bf16.mxu1 %v10875_v17  ;;  %v10949_v16 = vld [vmem:[%s12410_s5 + $0x1080] ss:$8 sps:$4 sm:$0xff]   ;;  %v10954_v17 = vld [vmem:[%s12410_s5 + $0x794] ss:$8 sps:$4 sm:$0xff]  }
 0x2ff   : > { %9254 = vmatprep.subr.bf16.mxu0 %v10878_v18  ;;  %v10957_v18 = vld [vmem:[%s12410_s5 + $0x1094] ss:$8 sps:$4 sm:$0xff]  }
 0x301   : > { %8886 = vmatpush1.bf16.msra.mxu1 %v10873_v19  ;;  %v10952_v19 = vld [vmem:[%s12410_s5 + $0x790] ss:$8 sps:$4 sm:$0xff]  }
 0x302   : > { %9255 = vmatpush1.bf16.msra.mxu0 %v10876_v1  ;;  %8887 = vmatprep.subr.bf16.mxu1 %v10881_v41  ;;  %v10955_v1 = vld [vmem:[%s12410_s5 + $0x1090] ss:$8 sps:$4 sm:$0xff]   ;;  %v10960_v41 = vld [vmem:[%s12410_s5 + $0x7a4] ss:$8 sps:$4 sm:$0xff]  }
 0x303   : > { %9256 = vmatprep.subr.bf16.mxu0 %v10884_v21  ;;  %v10963_v21 = vld [vmem:[%s12410_s5 + $0x10a4] ss:$8 sps:$4 sm:$0xff]  }
 0x305   : > { %8888 = vmatpush1.bf16.msra.mxu1 %v10879_v22  ;;  %v10958_v22 = vld [vmem:[%s12410_s5 + $0x7a0] ss:$8 sps:$4 sm:$0xff]  }
 0x306   : > { %9257 = vmatpush1.bf16.msra.mxu0 %v10882_v23  ;;  %8889 = vmatprep.subr.bf16.mxu1 %v10887_v24  ;;  %v10961_v23 = vld [vmem:[%s12410_s5 + $0x10a0] ss:$8 sps:$4 sm:$0xff]   ;;  %v10966_v24 = vld [vmem:[%s12410_s5 + $0x7b4] ss:$8 sps:$4 sm:$0xff]  }
 0x307   : > { %9258 = vmatprep.subr.bf16.mxu0 %v10890_v25  ;;  %v10969_v25 = vld [vmem:[%s12410_s5 + $0x10b4] ss:$8 sps:$4 sm:$0xff]  }
 0x309   : > { %8890 = vmatpush1.bf16.msra.mxu1 %v10885_v29  ;;  %v10967_v29 = vld [vmem:[%s12410_s5 + $0x10b0] ss:$8 sps:$4 sm:$0xff]  }
 0x30a   : > { %9259 = vmatpush1.bf16.msra.mxu0 %v10888_v30  ;;  %8891 = vmatprep.subr.bf16.mxu1 %v10893_v31  ;;  %v10972_v30 = vld [vmem:[%s12410_s5 + $0x7c4] ss:$8 sps:$4 sm:$0xff]  }
 0x30b   : > { %9260 = vmatprep.subr.bf16.mxu0 %v10896_v32  ;;  %v10975_v31 = vld [vmem:[%s12410_s5 + $0x10c4] ss:$8 sps:$4 sm:$0xff]   ;;  %v10970_v32 = vld [vmem:[%s12410_s5 + $0x7c0] ss:$8 sps:$4 sm:$0xff]  }
 0x30d   : > { %8892 = vmatpush1.bf16.msra.mxu1 %v10891_v14  ;;  %v10973_v14 = vld [vmem:[%s12410_s5 + $0x10c0] ss:$8 sps:$4 sm:$0xff]  }
 0x30e   : > { %9261 = vmatpush1.bf16.msra.mxu0 %v10894_v43  ;;  %8902 = vmatprep.subr.bf16.mxu1 %v10899_v34  ;;  %v10978_v43 = vld [vmem:[%s12410_s5 + $0x7d4] ss:$8 sps:$4 sm:$0xff]  }
 0x30f   : > { %9271 = vmatprep.subr.bf16.mxu0 %v10903_v35  ;;  %v10981_v34 = vld [vmem:[%s12410_s5 + $0x10d4] ss:$8 sps:$4 sm:$0xff]   ;;  %v10976_v35 = vld [vmem:[%s12410_s5 + $0x7d0] ss:$8 sps:$4 sm:$0xff]  }
 0x310   : > { %8894 = vmatmul.mubr.bf16.vlgmr.msra.gmra.mrb[0].mxu1 %v5135_v39  ;;  %v10987_v39 = vld [vmem:[%s12410_s5 + $0x10e4] ss:$8 sps:$4 sm:$0xff]  }
 0x311   : > { %9263 = vmatmul.mubr.bf16.vlgmr.msra.gmra.mrb[0].mxu0 %v5153_v15  ;;  %8903 = vmatpush1.bf16.msra.mxu1 %v10897_v42  ;;  %v5070_v15 = vcombine.high %v12987_v27, %v12987_v27  ;;  %v10982_v42 = vld [vmem:[%s12410_s5 + $0x7e0] ss:$8 sps:$4 sm:$0xff]   ;;  %v10988_v27 = vld [vmem:[%s12410_s5 + $0x7f0] ss:$8 sps:$4 sm:$0xff]  }
 0x312   : > { %9272 = vmatpush1.bf16.msra.mxu0 %v10901_v40  ;;  %8904 = vmatprep.subr.bf16.mxu1 %v10906_v46  ;;  %v10985_v40 = vld [vmem:[%s12410_s5 + $0x10e0] ss:$8 sps:$4 sm:$0xff]   ;;  %v10990_v46 = vld [vmem:[%s12410_s5 + $0x7f4] ss:$8 sps:$4 sm:$0xff]  }
 0x313   : > { %9273 = vmatprep.subr.bf16.mxu0 %v10909_v47  ;;  %8934 = vmatprep.mubr.bf16.mxu1 %v5138_v48  ;;  %v10993_v47 = vld [vmem:[%s12410_s5 + $0x10f4] ss:$8 sps:$4 sm:$0xff]  }
 0x314   : > { %9303 = vmatprep.mubr.bf16.mxu0 %v5156_v49  ;;  %v13075_v48 = vld.sshfl [vmem:[%s12398_s26 + $0x20] sm:$0xff pattern:$0x76325410]  ;;  %v13078_v49 = vrot.slane %v5070_v15, %v12460_v50  ;;  %v11064_v15 = vld [vmem:[%s12410_s5 + $0x11b0] ss:$8 sps:$4 sm:$0xff]  }
 0x315   : > { %8905 = vmatpush1.bf16.msra.mxu1 %v10904_v20  ;;  %v10991_v20 = vld [vmem:[%s12410_s5 + $0x10f0] ss:$8 sps:$4 sm:$0xff]  }
 0x316   : > { %9274 = vmatpush1.bf16.msra.mxu0 %v10907_v59  ;;  %8906 = vmatprep.subr.bf16.mxu1 %v10912_v51  ;;  %v10997_v59 = vld [vmem:[%s12410_s5 + $0x804] ss:$8 sps:$4 sm:$0xff]  }
 0x317   : > { %9275 = vmatprep.subr.bf16.mxu0 %v10915_v52  ;;  %v11000_v51 = vld [vmem:[%s12410_s5 + $0x1104] ss:$8 sps:$4 sm:$0xff]   ;;  %v5017_v52 = vcombine.high %v13075_v48, %v13075_v48 }
 0x319   : > { %8907 = vmatpush1.bf16.msra.mxu1 %v10910_v53  ;;  %v5086_v53 = vcombine.high %v13078_v49, %v13078_v49 }
 0x31a   : > { %9276 = vmatpush1.bf16.msra.mxu0 %v10913_v55  ;;  %8908 = vmatprep.subr.bf16.mxu1 %v10918_v56  ;;  %v5137_v55 = vpack.c.bf16 %v12994_v33, %v12994_v33  ;;  %v5155_v56 = vpack.c.bf16 %v12998_v7, %v12998_v7  ;;  %v11001_v33 = vld [vmem:[%s12410_s5 + $0x810] ss:$8 sps:$4 sm:$0xff]  }
 0x31b   : > { %9277 = vmatprep.subr.bf16.mxu0 %v10921_v57  ;;  %v10995_v57 = vld [vmem:[%s12410_s5 + $0x800] ss:$8 sps:$4 sm:$0xff]   ;;  %v11004_v7 = vld [vmem:[%s12410_s5 + $0x1110] ss:$8 sps:$4 sm:$0xff]  }
 0x31d   : > { %8909 = vmatpush1.bf16.msra.mxu1 %v10916_v58  ;;  %v10998_v58 = vld [vmem:[%s12410_s5 + $0x1100] ss:$8 sps:$4 sm:$0xff]  }
 0x31e   : > { %9278 = vmatpush1.bf16.msra.mxu0 %v10919_v38  ;;  %8910 = vmatprep.subr.bf16.mxu1 %v10924_v28  ;;  %v11003_v38 = vld [vmem:[%s12410_s5 + $0x814] ss:$8 sps:$4 sm:$0xff]  }
 0x31f   : > { %9279 = vmatprep.subr.bf16.mxu0 %v10927_v60  ;;  %v11006_v28 = vld [vmem:[%s12410_s5 + $0x1114] ss:$8 sps:$4 sm:$0xff]   ;;  %v5140_v60 = vpack.c.bf16 %v5017_v52, %v5017_v52  ;;  %v11081_v52 = vld [vmem:[%s12410_s5 + $0x8e4] ss:$8 sps:$4 sm:$0xff]  }
 0x321   : > { %8911 = vmatpush1.bf16.msra.mxu1 %v10922_v61  ;;  %v5158_v61 = vpack.c.bf16 %v5086_v53, %v5086_v53  ;;  %v11084_v53 = vld [vmem:[%s12410_s5 + $0x11e4] ss:$8 sps:$4 sm:$0xff]  }
 0x322   : > { %9280 = vmatpush1.bf16.msra.mxu0 %v10925_v62  ;;  %8912 = vmatprep.subr.bf16.mxu1 %v10930_v63  ;;  %v11009_v62 = vld [vmem:[%s12410_s5 + $0x824] ss:$8 sps:$4 sm:$0xff]  }
 0x323   : > { %9281 = vmatprep.subr.bf16.mxu0 %v10933_v0  ;;  %v11012_v63 = vld [vmem:[%s12410_s5 + $0x1124] ss:$8 sps:$4 sm:$0xff]   ;;  %v11007_v0 = vld [vmem:[%s12410_s5 + $0x820] ss:$8 sps:$4 sm:$0xff]  }
 0x325   : > { %8913 = vmatpush1.bf16.msra.mxu1 %v10928_v2  ;;  %v11010_v2 = vld [vmem:[%s12410_s5 + $0x1120] ss:$8 sps:$4 sm:$0xff]  }
 0x326   : > { %9282 = vmatpush1.bf16.msra.mxu0 %v10931_v3  ;;  %8914 = vmatprep.subr.bf16.mxu1 %v10936_v4  ;;  %v11015_v3 = vld [vmem:[%s12410_s5 + $0x834] ss:$8 sps:$4 sm:$0xff]  }
 0x327   : > { %9283 = vmatprep.subr.bf16.mxu0 %v10939_v5  ;;  %v11018_v4 = vld [vmem:[%s12410_s5 + $0x1134] ss:$8 sps:$4 sm:$0xff]   ;;  %v11013_v5 = vld [vmem:[%s12410_s5 + $0x830] ss:$8 sps:$4 sm:$0xff]  }
 0x329   : > { %8915 = vmatpush1.bf16.msra.mxu1 %v10934_v6  ;;  %v11016_v6 = vld [vmem:[%s12410_s5 + $0x1130] ss:$8 sps:$4 sm:$0xff]  }
 0x32a   : > { %9284 = vmatpush1.bf16.msra.mxu0 %v10937_v54  ;;  %8916 = vmatprep.subr.bf16.mxu1 %v10942_v45  ;;  %v11021_v54 = vld [vmem:[%s12410_s5 + $0x844] ss:$8 sps:$4 sm:$0xff]  }
 0x32b   : > { %9285 = vmatprep.subr.bf16.mxu0 %v10945_v8  ;;  %v11024_v45 = vld [vmem:[%s12410_s5 + $0x1144] ss:$8 sps:$4 sm:$0xff]   ;;  %v11019_v8 = vld [vmem:[%s12410_s5 + $0x840] ss:$8 sps:$4 sm:$0xff]  }
 0x32d   : > { %8917 = vmatpush1.bf16.msra.mxu1 %v10940_v9  ;;  %v11022_v9 = vld [vmem:[%s12410_s5 + $0x1140] ss:$8 sps:$4 sm:$0xff]  }
 0x32e   : > { %9286 = vmatpush1.bf16.msra.mxu0 %v10943_v10  ;;  %8918 = vmatprep.subr.bf16.mxu1 %v10948_v11  ;;  %v11027_v10 = vld [vmem:[%s12410_s5 + $0x854] ss:$8 sps:$4 sm:$0xff]  }
 0x32f   : > { %9287 = vmatprep.subr.bf16.mxu0 %v10951_v12  ;;  %v11030_v11 = vld [vmem:[%s12410_s5 + $0x1154] ss:$8 sps:$4 sm:$0xff]   ;;  %v11025_v12 = vld [vmem:[%s12410_s5 + $0x850] ss:$8 sps:$4 sm:$0xff]  }
 0x331   : > { %8919 = vmatpush1.bf16.msra.mxu1 %v10946_v13  ;;  %v11028_v13 = vld [vmem:[%s12410_s5 + $0x1150] ss:$8 sps:$4 sm:$0xff]  }
 0x332   : > { %9288 = vmatpush1.bf16.msra.mxu0 %v10949_v16  ;;  %8920 = vmatprep.subr.bf16.mxu1 %v10954_v17  ;;  %v11033_v16 = vld [vmem:[%s12410_s5 + $0x864] ss:$8 sps:$4 sm:$0xff]  }
 0x333   : > { %9289 = vmatprep.subr.bf16.mxu0 %v10957_v18  ;;  %v11036_v17 = vld [vmem:[%s12410_s5 + $0x1164] ss:$8 sps:$4 sm:$0xff]   ;;  %v11031_v18 = vld [vmem:[%s12410_s5 + $0x860] ss:$8 sps:$4 sm:$0xff]  }
 0x335   : > { %8921 = vmatpush1.bf16.msra.mxu1 %v10952_v19  ;;  %v11034_v19 = vld [vmem:[%s12410_s5 + $0x1160] ss:$8 sps:$4 sm:$0xff]  }
 0x336   : > { %9290 = vmatpush1.bf16.msra.mxu0 %v10955_v1  ;;  %8922 = vmatprep.subr.bf16.mxu1 %v10960_v41  ;;  %v11039_v1 = vld [vmem:[%s12410_s5 + $0x874] ss:$8 sps:$4 sm:$0xff]  }
 0x337   : > { %9291 = vmatprep.subr.bf16.mxu0 %v10963_v21  ;;  %v11042_v41 = vld [vmem:[%s12410_s5 + $0x1174] ss:$8 sps:$4 sm:$0xff]   ;;  %v11037_v21 = vld [vmem:[%s12410_s5 + $0x870] ss:$8 sps:$4 sm:$0xff]  }
 0x339   : > { %8923 = vmatpush1.bf16.msra.mxu1 %v10958_v22  ;;  %v11040_v22 = vld [vmem:[%s12410_s5 + $0x1170] ss:$8 sps:$4 sm:$0xff]  }
 0x33a   : > { %9292 = vmatpush1.bf16.msra.mxu0 %v10961_v23  ;;  %8924 = vmatprep.subr.bf16.mxu1 %v10966_v24  ;;  %v11045_v23 = vld [vmem:[%s12410_s5 + $0x884] ss:$8 sps:$4 sm:$0xff]  }
 0x33b   : > { %9293 = vmatprep.subr.bf16.mxu0 %v10969_v25  ;;  %v11048_v24 = vld [vmem:[%s12410_s5 + $0x1184] ss:$8 sps:$4 sm:$0xff]   ;;  %v11043_v25 = vld [vmem:[%s12410_s5 + $0x880] ss:$8 sps:$4 sm:$0xff]  }
 0x33d   : > { %8925 = vmatpush1.bf16.msra.mxu1 %v10964_v26  ;;  %v11046_v26 = vld [vmem:[%s12410_s5 + $0x1180] ss:$8 sps:$4 sm:$0xff]  }
 0x33e   : > { %9294 = vmatpush1.bf16.msra.mxu0 %v10967_v29  ;;  %8926 = vmatprep.subr.bf16.mxu1 %v10972_v30  ;;  %v11051_v29 = vld [vmem:[%s12410_s5 + $0x894] ss:$8 sps:$4 sm:$0xff]  }
 0x33f   : > { %9295 = vmatprep.subr.bf16.mxu0 %v10975_v31  ;;  %v11054_v30 = vld [vmem:[%s12410_s5 + $0x1194] ss:$8 sps:$4 sm:$0xff]   ;;  %v11049_v31 = vld [vmem:[%s12410_s5 + $0x890] ss:$8 sps:$4 sm:$0xff]  }
 0x341   : > { %8927 = vmatpush1.bf16.msra.mxu1 %v10970_v32  ;;  %v11052_v32 = vld [vmem:[%s12410_s5 + $0x1190] ss:$8 sps:$4 sm:$0xff]  }
 0x342   : > { %9296 = vmatpush1.bf16.msra.mxu0 %v10973_v14  ;;  %8928 = vmatprep.subr.bf16.mxu1 %v10978_v43  ;;  %v11057_v14 = vld [vmem:[%s12410_s5 + $0x8a4] ss:$8 sps:$4 sm:$0xff]  }
 0x343   : > { %9297 = vmatprep.subr.bf16.mxu0 %v10981_v34  ;;  %v11060_v43 = vld [vmem:[%s12410_s5 + $0x11a4] ss:$8 sps:$4 sm:$0xff]   ;;  %v11055_v34 = vld [vmem:[%s12410_s5 + $0x8a0] ss:$8 sps:$4 sm:$0xff]  }
 0x345   : > { %8929 = vmatpush1.bf16.msra.mxu1 %v10976_v35  ;;  %v11058_v35 = vld [vmem:[%s12410_s5 + $0x11a0] ss:$8 sps:$4 sm:$0xff]  }
 0x346   : > { %9298 = vmatpush1.bf16.msra.mxu0 %v10979_v36  ;;  %8930 = vmatprep.subr.bf16.mxu1 %v10984_v37  ;;  %v11063_v36 = vld [vmem:[%s12410_s5 + $0x8b4] ss:$8 sps:$4 sm:$0xff]  }
 0x347   : > { %9299 = vmatprep.subr.bf16.mxu0 %v10987_v39  ;;  %v11066_v37 = vld [vmem:[%s12410_s5 + $0x11b4] ss:$8 sps:$4 sm:$0xff]   ;;  %v11061_v39 = vld [vmem:[%s12410_s5 + $0x8b0] ss:$8 sps:$4 sm:$0xff]  }
 0x349   : > { %8931 = vmatpush1.bf16.msra.mxu1 %v10982_v42  ;;  %v11069_v42 = vld [vmem:[%s12410_s5 + $0x8c4] ss:$8 sps:$4 sm:$0xff]  }
 0x34a   : > { %9300 = vmatpush1.bf16.msra.mxu0 %v10985_v40  ;;  %8932 = vmatprep.subr.bf16.mxu1 %v10990_v46  ;;  %v11072_v40 = vld [vmem:[%s12410_s5 + $0x11c4] ss:$8 sps:$4 sm:$0xff]   ;;  %v11067_v46 = vld [vmem:[%s12410_s5 + $0x8c0] ss:$8 sps:$4 sm:$0xff]  }
 0x34b   : > { %9301 = vmatprep.subr.bf16.mxu0 %v10993_v47  ;;  %v11070_v47 = vld [vmem:[%s12410_s5 + $0x11c0] ss:$8 sps:$4 sm:$0xff]  }
 0x34d   : > { %8933 = vmatpush1.bf16.msra.mxu1 %v10988_v27  ;;  %v11075_v27 = vld [vmem:[%s12410_s5 + $0x8d4] ss:$8 sps:$4 sm:$0xff]  }
 0x34e   : > { %9302 = vmatpush1.bf16.msra.mxu0 %v10991_v20  ;;  %8943 = vmatprep.subr.bf16.mxu1 %v10997_v59  ;;  %v11078_v20 = vld [vmem:[%s12410_s5 + $0x11d4] ss:$8 sps:$4 sm:$0xff]   ;;  %v11073_v59 = vld [vmem:[%s12410_s5 + $0x8d0] ss:$8 sps:$4 sm:$0xff]  }
 0x34f   : > { %9312 = vmatprep.subr.bf16.mxu0 %v11000_v51  ;;  %v11076_v51 = vld [vmem:[%s12410_s5 + $0x11d0] ss:$8 sps:$4 sm:$0xff]  }
 0x350   : > { %8935 = vmatmul.mubr.bf16.vlgmr.msra.gmra.mrb[0].mxu1 %v5137_v55  ;;  %v11079_v55 = vld [vmem:[%s12410_s5 + $0x8e0] ss:$8 sps:$4 sm:$0xff]  }
 0x351   : > { %9304 = vmatmul.mubr.bf16.vlgmr.msra.gmra.mrb[0].mxu0 %v5155_v56  ;;  %8944 = vmatpush1.bf16.msra.mxu1 %v10995_v57  ;;  %v11082_v56 = vld [vmem:[%s12410_s5 + $0x11e0] ss:$8 sps:$4 sm:$0xff]   ;;  %v11087_v57 = vld [vmem:[%s12410_s5 + $0x8f4] ss:$8 sps:$4 sm:$0xff]  }
 0x352   : > { %9313 = vmatpush1.bf16.msra.mxu0 %v10998_v58  ;;  %8945 = vmatprep.subr.bf16.mxu1 %v11003_v38  ;;  %v11090_v58 = vld [vmem:[%s12410_s5 + $0x11f4] ss:$8 sps:$4 sm:$0xff]   ;;  %v11085_v38 = vld [vmem:[%s12410_s5 + $0x8f0] ss:$8 sps:$4 sm:$0xff]  }
 0x353   : > { %9314 = vmatprep.subr.bf16.mxu0 %v11006_v28  ;;  %8975 = vmatprep.mubr.bf16.mxu1 %v5140_v60  ;;  %v11088_v28 = vld [vmem:[%s12410_s5 + $0x11f0] ss:$8 sps:$4 sm:$0xff]   ;;  %v5139_v60 = vpack.c.bf16 %v13075_v48, %v13075_v48 }
 0x354   : > { %9344 = vmatprep.mubr.bf16.mxu0 %v5158_v61  ;;  %v5157_v61 = vpack.c.bf16 %v13078_v49, %v13078_v49  ;;  %v9371_v49 = vld [vmem:[%s4902_s12] sm:$0x3] (!%p10089_p13) }
 0x355   : > { %8946 = vmatpush1.bf16.msra.mxu1 %v11001_v33 }
 0x356   : > { %9315 = vmatpush1.bf16.msra.mxu0 %v11004_v7  ;;  %8947 = vmatprep.subr.bf16.mxu1 %v11009_v62 }
 0x357   : > { %9316 = vmatprep.subr.bf16.mxu0 %v11012_v63 }
 0x359   : > { %8948 = vmatpush1.bf16.msra.mxu1 %v11007_v0 }
 0x35a   : > { %9317 = vmatpush1.bf16.msra.mxu0 %v11010_v2  ;;  %8949 = vmatprep.subr.bf16.mxu1 %v11015_v3 }
 0x35b   : > { %9318 = vmatprep.subr.bf16.mxu0 %v11018_v4 }
 0x35d   : > { %8950 = vmatpush1.bf16.msra.mxu1 %v11013_v5 }
 0x35e   : > { %9319 = vmatpush1.bf16.msra.mxu0 %v11016_v6  ;;  %8951 = vmatprep.subr.bf16.mxu1 %v11021_v54 }
 0x35f   : > { %9320 = vmatprep.subr.bf16.mxu0 %v11024_v45  ;;  %v4915_v45 = vld [vmem:[#allocation2] sm:$0xf] }
 0x361   : > { %8952 = vmatpush1.bf16.msra.mxu1 %v11019_v8 }
 0x362   : > { %9321 = vmatpush1.bf16.msra.mxu0 %v11022_v9  ;;  %8953 = vmatprep.subr.bf16.mxu1 %v11027_v10  ;;  %v9375_v9 = vsub.s32 (!%p10089_p13), 0, %v12452_v44  ;;  %v9379_v10 = vsub.s32 (!%p10089_p13), 1, %v12452_v44 }
 0x363   : > { %9322 = vmatprep.subr.bf16.mxu0 %v11030_v11 }
 0x364   : > { %v9376_v11 = vrot.slane (!%p10089_p13), %v9371_v49, %v9375_v9 }
 0x365   : > { %8954 = vmatpush1.bf16.msra.mxu1 %v11025_v12  ;;  %v9380_v12 = vrot.slane (!%p10089_p13), %v9371_v49, %v9379_v10 }
 0x366   : > { %9323 = vmatpush1.bf16.msra.mxu0 %v11028_v13  ;;  %8955 = vmatprep.subr.bf16.mxu1 %v11033_v16 }
 0x367   : > { %9324 = vmatprep.subr.bf16.mxu0 %v11036_v17  ;;  %v9381_v13 = vcombine.low (!%p10089_p13), %v9376_v11, %v9380_v12 }
 0x369   : > { %8956 = vmatpush1.bf16.msra.mxu1 %v11031_v18  ;;  %v9388_v17 = vrot.slane (!%p10089_p13), %v9381_v13, %v12460_v50 }
 0x36a   : > { %9325 = vmatpush1.bf16.msra.mxu0 %v11034_v19  ;;  %8957 = vmatprep.subr.bf16.mxu1 %v11039_v1 }
 0x36b   : > { %9326 = vmatprep.subr.bf16.mxu0 %v11042_v41 }
 0x36d   : > { %8958 = vmatpush1.bf16.msra.mxu1 %v11037_v21 }
 0x36e   : > { %9327 = vmatpush1.bf16.msra.mxu0 %v11040_v22  ;;  %8959 = vmatprep.subr.bf16.mxu1 %v11045_v23 }
 0x36f   : > { %9328 = vmatprep.subr.bf16.mxu0 %v11048_v24 }
 0x371   : > { %8960 = vmatpush1.bf16.msra.mxu1 %v11043_v25 }
 0x372   : > { %9329 = vmatpush1.bf16.msra.mxu0 %v11046_v26  ;;  %8961 = vmatprep.subr.bf16.mxu1 %v11051_v29 }
 0x373   : > { %9330 = vmatprep.subr.bf16.mxu0 %v11054_v30 }
 0x375   : > { %8962 = vmatpush1.bf16.msra.mxu1 %v11049_v31 }
 0x376   : > { %9331 = vmatpush1.bf16.msra.mxu0 %v11052_v32  ;;  %8963 = vmatprep.subr.bf16.mxu1 %v11057_v14 }
 0x377   : > { %9332 = vmatprep.subr.bf16.mxu0 %v11060_v43 }
 0x379   : > { %8964 = vmatpush1.bf16.msra.mxu1 %v11055_v34 }
 0x37a   : > { %9333 = vmatpush1.bf16.msra.mxu0 %v11058_v35  ;;  %8965 = vmatprep.subr.bf16.mxu1 %v11063_v36 }
 0x37b   : > { %9334 = vmatprep.subr.bf16.mxu0 %v11066_v37 }
 0x37d   : > { %8966 = vmatpush1.bf16.msra.mxu1 %v11061_v39 }
 0x37e   : > { %9335 = vmatpush1.bf16.msra.mxu0 %v11064_v15  ;;  %8967 = vmatprep.subr.bf16.mxu1 %v11069_v42 }
 0x37f   : > { %9336 = vmatprep.subr.bf16.mxu0 %v11072_v40 }
 0x381   : > { %8968 = vmatpush1.bf16.msra.mxu1 %v11067_v46 }
 0x382   : > { %9337 = vmatpush1.bf16.msra.mxu0 %v11070_v47  ;;  %8969 = vmatprep.subr.bf16.mxu1 %v11075_v27 }
 0x383   : > { %9338 = vmatprep.subr.bf16.mxu0 %v11078_v20 }
 0x385   : > { %8970 = vmatpush1.bf16.msra.mxu1 %v11073_v59 }
 0x386   : > { %9339 = vmatpush1.bf16.msra.mxu0 %v11076_v51  ;;  %8971 = vmatprep.subr.bf16.mxu1 %v11081_v52 }
 0x387   : > { %9340 = vmatprep.subr.bf16.mxu0 %v11084_v53 }
 0x389   : > { %8972 = vmatpush1.bf16.msra.mxu1 %v11079_v55 }
 0x38a   : > { %9341 = vmatpush1.bf16.msra.mxu0 %v11082_v56  ;;  %8973 = vmatprep.subr.bf16.mxu1 %v11087_v57 }
 0x38b   : > { %9342 = vmatprep.subr.bf16.mxu0 %v11090_v58 }
 0x38d   : > { %8974 = vmatpush1.bf16.msra.mxu1 %v11085_v38 }
 0x38e   : > { %9343 = vmatpush1.bf16.msra.mxu0 %v11088_v28 }
 0x390   : > { %8976 = vmatmul.mubr.bf16.vlgmr.msra.gmra.mrb[0].mxu1 %v5139_v60 }
 0x391   : > { %9345 = vmatmul.mubr.bf16.vlgmr.msra.gmra.mrb[0].mxu0 %v5157_v61 }
 0x463   : > { %v8977_v33 = vpop.f32.mrb[0].mxu1 }
 0x464   : > { %v9346_v7 = vpop.f32.mrb[0].mxu0  ;;  %v8979_v63 = vpop.f32.mrb[1].mxu1 }
 0x465   : > { %v10093_v62 = vadd.f32 %v9346_v7, %v8977_v33  ;;  %v9348_v0 = vpop.f32.mrb[1].mxu0  ;;  %v8981_v3 = vpop.f32.mrb[2].mxu1 }
 0x466   : > { %v10094_v2 = vadd.f32 %v9348_v0, %v8979_v63  ;;  %v9350_v4 = vpop.f32.mrb[2].mxu0  ;;  %v8982_v5 = vpop.f32.mrb[3].mxu1 }
 0x467   : > { %v9351_v6 = vpop.f32.mrb[3].mxu0 }
 0x468   : > { %v9355_v54 = vcombine.low %v10093_v62, %v10094_v2  ;;  %9369 = sbr.rel (%p10089_p13) target bundleno = 1147 (0x47b), region = 92 }
 0x46a   : > { %v9362_v48 = vrot.slane %v9355_v54, %v12460_v50 }
 0x46c   : > { %v9364_v8 = vadd.f32 %v9362_v48, %v4915_v45 }
 0x46e   : > { %9365 = vst [vmem:[#allocation2] sm:$0xf] %v9364_v8 }
 0x475   : > { %v9370_v16 = vld [vmem:[#allocation2] sm:$0xf] }
 0x476   : > { %v9390_v18 = vadd.f32 %v9388_v17, %v9370_v16 }
 0x478   : > { %v9391_v19 = vmax.f32 %v9390_v18, 0.0 }
 0x47a   : > { %9392 = vst [vmem:[%s12408_s4] sm:$0xf] %v9391_v19 }
 0x47b PF: > { %s13_s18 = sadd.s32 1, %s11148_s18   ;;  %s13194_s12 = smov %s11128_s13 }
 0x47c   : > { %p10_p0 = scmp.ge.s32.totalorder %s13_s18, 6   ;;  %s13195_s13 = smov %s11223_s25 }
 0x47d   : > { %s13196_s14 = smov %s11140_s16  ;;  %s13197_s15 = smov %s11144_s17 }
 0x47e   : > { %s13198_s16 = smov %s13201_s19  ;;  %s13199_s17 = smov %s13205_s20 }
 0x47f   :  { %12 = sbr.rel (!%p10_p0) target bundleno = 4 (0x4), region = 139 }

</bundles_post_ra>
